<compile_context>
chip_gen: v7x
topology: tpu7x:2x2x1
jax: 0.10.0
libtpu: 0.0.40
codegen_flags: <defaults>
</compile_context>

<pallas_src>
import functools

import jax
import jax.numpy as jnp
from jax.experimental import pallas as pl
from jax.experimental.pallas import tpu as pltpu

EPS = 1e-5


# ----------------------------- kernels --------------------------------------

def conv1x1_stats_kernel(x_ref, w_ref, y_ref, s_ref):
    """1x1 conv (matmul) on one P-tile + per-tile channel sum / sum-of-squares."""
    y = jnp.dot(x_ref[...], w_ref[...], preferred_element_type=jnp.float32)
    y_ref[...] = y.astype(y_ref.dtype)                  # bf16 HBM intermediate
    s_ref[0, 0:1, :] = jnp.sum(y, axis=0, keepdims=True)
    s_ref[0, 1:2, :] = jnp.sum(y * y, axis=0, keepdims=True)


def bn_relu_conv1x1_stats_kernel(x_ref, scale_ref, shift_ref, w_ref,
                                 y_ref, s_ref):
    """Fused BN(prev)+ReLU -> 1x1 conv on one P-tile + stats for the next BN."""
    z = jnp.maximum(
        x_ref[...].astype(jnp.float32) * scale_ref[...] + shift_ref[...], 0.0)
    y = jnp.dot(z.astype(jnp.bfloat16), w_ref[...],
                preferred_element_type=jnp.float32)
    y_ref[...] = y.astype(y_ref.dtype)
    s_ref[0, 0:1, :] = jnp.sum(y, axis=0, keepdims=True)
    s_ref[0, 1:2, :] = jnp.sum(y * y, axis=0, keepdims=True)


def bn_relu_conv3x3_stats_kernel(y1_ref, scale_ref, shift_ref, ml_ref, mr_ref,
                                 w_ref, y2_ref, s_ref, xpad_ref, *, width):
    """Fused BN1+ReLU -> 3x3 conv (pad=1) on one image + per-image BN2 stats.

    Flat halo layout: interior pixel (h, w) lives at scratch row
    (h+1)*W + w + 1; rows [0, W+1) and the last W+1 rows are a zero halo.
    Tap (kh, kw) for output q = h*W + w then reads scratch row q + kh*W + kw,
    so every tap is a single matmul with M = H*W rows (vs. W previously).
    Horizontal wrap-around of the flat layout (left tap at w==0, right tap at
    w==W-1) is removed by the 0/1 column masks ml/mr.
    """
    _, HW, Cin = y1_ref.shape
    Cout = w_ref.shape[-1]
    W = width
    top = W + 1                                   # rows in each zero halo strip

    # Zero only the halo strips (the interior store below covers the rest).
    # Done every step, not @program_id==0, so a megacore split of the
    # "parallel" grid axis (per-core scratch) stays correct.
    xpad_ref[0:top, :] = jnp.zeros((top, Cin), xpad_ref.dtype)
    xpad_ref[top + HW:top + HW + top, :] = jnp.zeros((top, Cin), xpad_ref.dtype)

    # BN1 + ReLU in f32, single contiguous store into the flat scratch (bf16).
    z = jnp.maximum(
        y1_ref[0].astype(jnp.float32) * scale_ref[...] + shift_ref[...], 0.0)
    xpad_ref[top:top + HW, :] = z.astype(xpad_ref.dtype)

    ml = ml_ref[...]                              # (HW, 1) bf16 0/1 masks
    mr = mr_ref[...]

    # 9 shifted whole-image matmuls accumulated into one f32 chain.
    acc = jnp.zeros((HW, Cout), jnp.float32)
    for kh in range(3):
        for kw in range(3):
            a = xpad_ref[kh * W + kw:kh * W + kw + HW, :]
            if kw == 0:
                a = a * ml
            elif kw == 2:
                a = a * mr
            acc = acc + jnp.dot(a, w_ref[3 * kh + kw],
                                preferred_element_type=jnp.float32)

    y2_ref[0] = acc.astype(y2_ref.dtype)          # bf16 HBM intermediate
    s_ref[0, 0:1, :] = jnp.sum(acc, axis=0, keepdims=True)
    s_ref[0, 1:2, :] = jnp.sum(acc * acc, axis=0, keepdims=True)


def bn_add_relu_kernel(y_ref, scale_ref, shift_ref, res_ref, o_ref):
    """Fused BN3 + residual add + ReLU (pure elementwise, mem-bound)."""
    o_ref[...] = jnp.maximum(
        y_ref[...].astype(jnp.float32) * scale_ref[...] + shift_ref[...]
        + res_ref[...], 0.0)


# --------------------------- pallas_call wrappers ----------------------------

def _cparams(n_axes):
    # All grid axes are fully parallel (partial BN stats per tile, no block
    # revisits), so v7x can split the grid across both TensorCores.  32 MiB
    # scoped VMEM = default on v6e/v7x, raised from 16 MiB on v5e.
    return pltpu.CompilerParams(
        dimension_semantics=("parallel",) * n_axes,
        vmem_limit_bytes=32 * 1024 * 1024)


def _pick_tile_p(p, target=1024):
    """Largest multiple of 16 <= target that divides P (falls back to full P)."""
    t = min(target, p)
    t -= t % 16
    while t >= 16:
        if p % t == 0:
            return t
        t -= 16
    return p


def conv1x1_stats(x2d_bf16, w_bf16, tile_p):
    p, cin = x2d_bf16.shape
    cout = w_bf16.shape[1]
    n_tiles = p // tile_p
    return pl.pallas_call(
        conv1x1_stats_kernel,
        out_shape=(jax.ShapeDtypeStruct((p, cout), jnp.bfloat16),
                   jax.ShapeDtypeStruct((n_tiles, 2, cout), jnp.float32)),
        grid=(n_tiles,),
        in_specs=[pl.BlockSpec((tile_p, cin), lambda i: (i, 0)),
                  pl.BlockSpec((cin, cout), lambda i: (0, 0))],
        out_specs=(pl.BlockSpec((tile_p, cout), lambda i: (i, 0)),
                   pl.BlockSpec((1, 2, cout), lambda i: (i, 0, 0))),
        compiler_params=_cparams(1),
    )(x2d_bf16, w_bf16)


def bn_relu_conv1x1_stats(x2d_bf16, scale, shift, w_bf16, tile_p):
    p, cin = x2d_bf16.shape
    cout = w_bf16.shape[1]
    n_tiles = p // tile_p
    return pl.pallas_call(
        bn_relu_conv1x1_stats_kernel,
        out_shape=(jax.ShapeDtypeStruct((p, cout), jnp.bfloat16),
                   jax.ShapeDtypeStruct((n_tiles, 2, cout), jnp.float32)),
        grid=(n_tiles,),
        in_specs=[pl.BlockSpec((tile_p, cin), lambda i: (i, 0)),
                  pl.BlockSpec((1, cin), lambda i: (0, 0)),
                  pl.BlockSpec((1, cin), lambda i: (0, 0)),
                  pl.BlockSpec((cin, cout), lambda i: (0, 0))],
        out_specs=(pl.BlockSpec((tile_p, cout), lambda i: (i, 0)),
                   pl.BlockSpec((1, 2, cout), lambda i: (i, 0, 0))),
        compiler_params=_cparams(1),
    )(x2d_bf16, scale, shift, w_bf16)


def bn_relu_conv3x3_stats(y1_flat, scale, shift, mask_l, mask_r, w2_flat, width):
    n, hw, cin = y1_flat.shape
    cout = w2_flat.shape[-1]
    rows = hw + 2 * (width + 1)                   # flat interior + two halo strips
    kern = functools.partial(bn_relu_conv3x3_stats_kernel, width=width)
    return pl.pallas_call(
        kern,
        out_shape=(jax.ShapeDtypeStruct((n, hw, cout), jnp.bfloat16),
                   jax.ShapeDtypeStruct((n, 2, cout), jnp.float32)),
        grid=(n,),
        in_specs=[pl.BlockSpec((1, hw, cin), lambda i: (i, 0, 0)),
                  pl.BlockSpec((1, cin), lambda i: (0, 0)),
                  pl.BlockSpec((1, cin), lambda i: (0, 0)),
                  pl.BlockSpec((hw, 1), lambda i: (0, 0)),
                  pl.BlockSpec((hw, 1), lambda i: (0, 0)),
                  pl.BlockSpec((9, cin, cout), lambda i: (0, 0, 0))],
        out_specs=(pl.BlockSpec((1, hw, cout), lambda i: (i, 0, 0)),
                   pl.BlockSpec((1, 2, cout), lambda i: (i, 0, 0))),
        scratch_shapes=[pltpu.VMEM((rows, cin), jnp.bfloat16)],
        compiler_params=_cparams(1),
    )(y1_flat, scale, shift, mask_l, mask_r, w2_flat)


def bn_add_relu(y2d_bf16, scale, shift, residual2d, tile_p):
    p, c = y2d_bf16.shape
    n_tiles = p // tile_p
    return pl.pallas_call(
        bn_add_relu_kernel,
        out_shape=jax.ShapeDtypeStruct((p, c), jnp.float32),
        grid=(n_tiles,),
        in_specs=[pl.BlockSpec((tile_p, c), lambda i: (i, 0)),
                  pl.BlockSpec((1, c), lambda i: (0, 0)),
                  pl.BlockSpec((1, c), lambda i: (0, 0)),
                  pl.BlockSpec((tile_p, c), lambda i: (i, 0))],
        out_specs=pl.BlockSpec((tile_p, c), lambda i: (i, 0)),
        compiler_params=_cparams(1),
    )(y2d_bf16, scale, shift, residual2d)


# ------------------------------ Bottleneck -----------------------------------

def _fold_bn(stats_partial, count, gamma, beta):
    """Reduce per-tile (sum, sumsq) partials -> folded per-channel scale/shift.

    One-pass E[x^2]-mean^2 variance in f32 (biased batch stats, training mode).
    """
    s = jnp.sum(stats_partial, axis=0)                       # (2, C)
    mean = s[0] / count
    var = jnp.maximum(s[1] / count - mean * mean, 0.0)
    inv = jax.lax.rsqrt(var + EPS)
    scale = gamma.reshape(-1) * inv
    shift = beta.reshape(-1) - mean * scale
    return scale.reshape(1, -1), shift.reshape(1, -1)


def bottleneck_forward(x_nchw, params, stride=1, tile_p=None):
    """Bottleneck forward (downsample=None); x_nchw: (N, Cin, H, W) -> NCHW out."""
    x = jnp.transpose(x_nchw, (0, 2, 3, 1)).astype(jnp.float32)   # NCHW -> NHWC

    # TODO(synk): stride is applied as a 1x1-with-stride subsample before conv1
    # (ResNet v1); torchvision's Bottleneck strides conv2 (v1.5).  Unreachable
    # here since downsample=None forces stride == 1.
    x_s = x[:, ::stride, ::stride, :]
    n, h, w, cin = x_s.shape
    hw = h * w
    p = n * hw
    planes = params["w1"].shape[1]
    c4 = params["w3"].shape[1]
    assert cin == c4, "downsample=None requires inplanes == planes * 4"

    if tile_p is None or p % tile_p != 0 or tile_p % 16 != 0:
        tile_p = _pick_tile_p(p)

    x2d = x_s.reshape(p, cin)

    # --- conv1 (1x1, bf16 MXU) + BN1 partial stats ---------------------------
    y1, st1 = conv1x1_stats(x2d.astype(jnp.bfloat16),
                            params["w1"].astype(jnp.bfloat16), tile_p)
    scale1, shift1 = _fold_bn(st1, p, params["g1"], params["b1"])

    # Edge masks for the flattened 3x3 halo layout (tiny constants under jit).
    wcol = jnp.arange(hw, dtype=jnp.int32) % w
    mask_l = (wcol != 0).astype(jnp.bfloat16).reshape(hw, 1)
    mask_r = (wcol != w - 1).astype(jnp.bfloat16).reshape(hw, 1)

    # --- BN1+ReLU fused into conv2 (3x3, pad=1, flat halo in VMEM) -----------
    y2, st2 = bn_relu_conv3x3_stats(
        y1.reshape(n, hw, planes), scale1, shift1, mask_l, mask_r,
        params["w2"].reshape(9, planes, planes).astype(jnp.bfloat16), w)
    scale2, shift2 = _fold_bn(st2, p, params["g2"], params["b2"])

    # --- BN2+ReLU fused into conv3 (1x1 expansion) ---------------------------
    y3, st3 = bn_relu_conv1x1_stats(y2.reshape(p, planes), scale2, shift2,
                                    params["w3"].astype(jnp.bfloat16), tile_p)
    scale3, shift3 = _fold_bn(st3, p, params["g3"], params["b3"])

    # --- BN3 + residual + ReLU ------------------------------------------------
    # TODO(synk): BatchNorm running_mean/running_var buffer updates are not
    # reproduced (forward output only, training-mode batch statistics).
    residual = x_s.reshape(p, cin)
    out2d = bn_add_relu(y3, scale3, shift3, residual, tile_p)

    out = out2d.reshape(n, h, w, c4)
    return jnp.transpose(out, (0, 3, 1, 2))                  # back to NCHW


# --------------------------- reference & params ------------------------------

def _bn_train(y, gamma, beta):
    mean = jnp.mean(y, axis=(0, 1, 2))
    var = jnp.var(y, axis=(0, 1, 2))
    return (y - mean) * jax.lax.rsqrt(var + EPS) * gamma.reshape(-1) + beta.reshape(-1)


def reference_forward(x_nchw, params, stride=1):
    """Pure-JAX f32 reference (training-mode BatchNorm) for a sanity check."""
    x = jnp.transpose(x_nchw, (0, 2, 3, 1)).astype(jnp.float32)
    xs = x[:, ::stride, ::stride, :]
    y1 = jnp.einsum("nhwc,cd->nhwd", xs, params["w1"])
    z1 = jax.nn.relu(_bn_train(y1, params["g1"], params["b1"]))
    y2 = jax.lax.conv_general_dilated(
        z1, params["w2"], window_strides=(1, 1), padding="SAME",
        dimension_numbers=("NHWC", "HWIO", "NHWC"))
    z2 = jax.nn.relu(_bn_train(y2, params["g2"], params["b2"]))
    y3 = jnp.einsum("nhwc,cd->nhwd", z2, params["w3"])
    z3 = _bn_train(y3, params["g3"], params["b3"])
    out = jax.nn.relu(z3 + xs)
    return jnp.transpose(out, (0, 3, 1, 2))


def init_params(key, inplanes, planes):
    k1, k2, k3 = jax.random.split(key, 3)
    expansion = 4
    return {
        # conv weights stored channels-last: (Cin, Cout) / (3, 3, Cin, Cout)
        "w1": 0.1 * jax.random.normal(k1, (inplanes, planes), jnp.float32),
        "w2": 0.1 * jax.random.normal(k2, (3, 3, planes, planes), jnp.float32),
        "w3": 0.1 * jax.random.normal(k3, (planes, planes * expansion), jnp.float32),
        # BatchNorm affine params, PyTorch default init (gamma=1, beta=0)
        "g1": jnp.ones((1, planes), jnp.float32),
        "b1": jnp.zeros((1, planes), jnp.float32),
        "g2": jnp.ones((1, planes), jnp.float32),
        "b2": jnp.zeros((1, planes), jnp.float32),
        "g3": jnp.ones((1, planes * expansion), jnp.float32),
        "b3": jnp.zeros((1, planes * expansion), jnp.float32),
    }


if __name__ == "__main__":
    key = jax.random.PRNGKey(0)
    k_x, k_p = jax.random.split(key)

    # downsample=None requires inplanes == planes * 4 and stride == 1.
    inplanes, planes = 128, 32
    n, h, w = 2, 16, 16

    x = jax.random.normal(k_x, (n, inplanes, h, w), jnp.float32)   # NCHW input
    params = init_params(k_p, inplanes, planes)

    fwd = jax.jit(functools.partial(bottleneck_forward, params=params, stride=1))
    out = fwd(x)
    jax.block_until_ready(out)

    assert out.shape == (n, planes * 4, h, w)
    assert bool(jnp.all(jnp.isfinite(out)))

    # Loose-tolerance sanity check vs. the f32 reference (bf16 intermediates).
    ref = reference_forward(x, params, stride=1)
    err = float(jnp.max(jnp.abs(out - ref)))
    assert err < 2e-1, f"max abs error vs reference: {err}"

    print("KERNEL_OK")
</pallas_src>

<mosaic_0001>
module attributes {stable_mosaic.version = 11 : i64} {
  func.func @conv1x1_stats_kernel(%arg0: i32, %arg1: memref<512x128xbf16, #tpu.memory_space<vmem>>, %arg2: memref<128x32xbf16, #tpu.memory_space<vmem>>, %arg3: memref<512x32xbf16, #tpu.memory_space<vmem>>, %arg4: memref<1x2x32xf32, #tpu.memory_space<vmem>>) attributes {dimension_semantics = [#tpu.dimension_semantics<parallel>], iteration_bounds = array<i64: 1>, scalar_prefetch = 0 : i64, scratch_operands = 0 : i64, tpu.core_type = #tpu.core_type<tc>, window_params = [{transform_indices = @transform_0, window_bounds = array<i64: 512, 128>}, {pipeline_mode = #tpu.pipeline_mode<synchronous>, transform_indices = @transform_1, window_bounds = array<i64: 128, 32>}, {transform_indices = @transform_2, window_bounds = array<i64: 512, 32>}, {transform_indices = @transform_3, window_bounds = array<i64: 1, 2, 32>}]} {
    %c0 = arith.constant 0 : index
    %c0_0 = arith.constant 0 : index
    %0 = vector.load %arg1[%c0, %c0_0] : memref<512x128xbf16, #tpu.memory_space<vmem>>, vector<512x128xbf16>
    %c0_1 = arith.constant 0 : index
    %c0_2 = arith.constant 0 : index
    %1 = vector.load %arg2[%c0_1, %c0_2] : memref<128x32xbf16, #tpu.memory_space<vmem>>, vector<128x32xbf16>
    %cst = arith.constant dense<0.000000e+00> : vector<512x32xf32>
    %2 = tpu.matmul %0, %1, %cst {dimension_numbers = #tpu.dot_dimension_numbers<[1], [0], [0], [1], [0, 0, 1, 1], [], []>} : vector<512x128xbf16>, vector<128x32xbf16>, vector<512x32xf32> -> vector<512x32xf32>
    %3 = arith.truncf %2 : vector<512x32xf32> to vector<512x32xbf16>
    %c0_3 = arith.constant 0 : index
    %c0_4 = arith.constant 0 : index
    %4 = vector.load %arg3[%c0_3, %c0_4] : memref<512x32xbf16, #tpu.memory_space<vmem>>, vector<512x32xbf16>
    tpu.vector_store %arg3[%c0_3, %c0_4], %3 {strides = array<i32>} : memref<512x32xbf16, #tpu.memory_space<vmem>>, vector<512x32xbf16>,
    %cst_5 = arith.constant dense<0.000000e+00> : vector<32xf32>
    %5 = vector.multi_reduction <add>, %2, %cst_5 [0] : vector<512x32xf32> to vector<32xf32>
    %6 = vector.shape_cast %5 : vector<32xf32> to vector<1x32xf32>
    %c0_6 = arith.constant 0 : index
    %c0_7 = arith.constant 0 : index
    %c0_8 = arith.constant 0 : index
    %7 = vector.load %arg4[%c0_6, %c0_7, %c0_8] : memref<1x2x32xf32, #tpu.memory_space<vmem>>, vector<1x1x32xf32>
    %8 = vector.shape_cast %7 : vector<1x1x32xf32> to vector<1x32xf32>
    %9 = vector.shape_cast %6 : vector<1x32xf32> to vector<1x1x32xf32>
    tpu.vector_store %arg4[%c0_6, %c0_7, %c0_8], %9 {strides = array<i32>} : memref<1x2x32xf32, #tpu.memory_space<vmem>>, vector<1x1x32xf32>,
    %10 = arith.mulf %2, %2 : vector<512x32xf32>
    %cst_9 = arith.constant dense<0.000000e+00> : vector<32xf32>
    %11 = vector.multi_reduction <add>, %10, %cst_9 [0] : vector<512x32xf32> to vector<32xf32>
    %12 = vector.shape_cast %11 : vector<32xf32> to vector<1x32xf32>
    %c0_10 = arith.constant 0 : index
    %c1 = arith.constant 1 : index
    %c0_11 = arith.constant 0 : index
    %13 = vector.load %arg4[%c0_10, %c1, %c0_11] : memref<1x2x32xf32, #tpu.memory_space<vmem>>, vector<1x1x32xf32>
    %14 = vector.shape_cast %13 : vector<1x1x32xf32> to vector<1x32xf32>
    %15 = vector.shape_cast %12 : vector<1x32xf32> to vector<1x1x32xf32>
    tpu.vector_store %arg4[%c0_10, %c1, %c0_11], %15 {strides = array<i32>} : memref<1x2x32xf32, #tpu.memory_space<vmem>>, vector<1x1x32xf32>,
    return
  }
  func.func @transform_0(%arg0: i32) -> (i32, i32) {
    %c0_i32 = arith.constant 0 : i32
    %c0_i32_0 = arith.constant 0 : i32
    return %arg0, %c0_i32 : i32, i32
  }
  func.func @transform_1(%arg0: i32) -> (i32, i32) {
    %c0_i32 = arith.constant 0 : i32
    %c0_i32_0 = arith.constant 0 : i32
    %c0_i32_1 = arith.constant 0 : i32
    return %c0_i32, %c0_i32_0 : i32, i32
  }
  func.func @transform_2(%arg0: i32) -> (i32, i32) {
    %c0_i32 = arith.constant 0 : i32
    %c0_i32_0 = arith.constant 0 : i32
    return %arg0, %c0_i32 : i32, i32
  }
  func.func @transform_3(%arg0: i32) -> (i32, i32, i32) {
    %c0_i32 = arith.constant 0 : i32
    %c0_i32_0 = arith.constant 0 : i32
    %c0_i32_1 = arith.constant 0 : i32
    return %arg0, %c0_i32, %c0_i32_0 : i32, i32, i32
  }
}

module attributes {stable_mosaic.version = 11 : i64} {
  func.func @bn_relu_conv3x3_stats_kernel(%arg0: i32, %arg1: memref<1x256x32xbf16, #tpu.memory_space<vmem>>, %arg2: memref<1x32xf32, #tpu.memory_space<vmem>>, %arg3: memref<1x32xf32, #tpu.memory_space<vmem>>, %arg4: memref<256x1xbf16, #tpu.memory_space<vmem>>, %arg5: memref<256x1xbf16, #tpu.memory_space<vmem>>, %arg6: memref<9x32x32xbf16, #tpu.memory_space<vmem>>, %arg7: memref<1x256x32xbf16, #tpu.memory_space<vmem>>, %arg8: memref<1x2x32xf32, #tpu.memory_space<vmem>>, %arg9: memref<290x32xbf16, #tpu.memory_space<vmem>>) attributes {dimension_semantics = [#tpu.dimension_semantics<parallel>], iteration_bounds = array<i64: 2>, scalar_prefetch = 0 : i64, scratch_operands = 1 : i64, tpu.core_type = #tpu.core_type<tc>, window_params = [{transform_indices = @transform_0, window_bounds = array<i64: 1, 256, 32>}, {pipeline_mode = #tpu.pipeline_mode<synchronous>, transform_indices = @transform_1, window_bounds = array<i64: 1, 32>}, {pipeline_mode = #tpu.pipeline_mode<synchronous>, transform_indices = @transform_2, window_bounds = array<i64: 1, 32>}, {pipeline_mode = #tpu.pipeline_mode<synchronous>, transform_indices = @transform_3, window_bounds = array<i64: 256, 1>}, {pipeline_mode = #tpu.pipeline_mode<synchronous>, transform_indices = @transform_4, window_bounds = array<i64: 256, 1>}, {pipeline_mode = #tpu.pipeline_mode<synchronous>, transform_indices = @transform_5, window_bounds = array<i64: 9, 32, 32>}, {transform_indices = @transform_6, window_bounds = array<i64: 1, 256, 32>}, {transform_indices = @transform_7, window_bounds = array<i64: 1, 2, 32>}]} {
    %cst = arith.constant 0.000000e+00 : bf16
    %0 = vector.broadcast %cst : bf16 to vector<17x32xbf16>
    %c0 = arith.constant 0 : index
    %c0_0 = arith.constant 0 : index
    %1 = vector.load %arg9[%c0, %c0_0] : memref<290x32xbf16, #tpu.memory_space<vmem>>, vector<17x32xbf16>
    tpu.vector_store %arg9[%c0, %c0_0], %0 {strides = array<i32>} : memref<290x32xbf16, #tpu.memory_space<vmem>>, vector<17x32xbf16>,
    %cst_1 = arith.constant 0.000000e+00 : bf16
    %2 = vector.broadcast %cst_1 : bf16 to vector<17x32xbf16>
    %c273 = arith.constant 273 : index
    %c0_2 = arith.constant 0 : index
    %3 = vector.load %arg9[%c273, %c0_2] : memref<290x32xbf16, #tpu.memory_space<vmem>>, vector<17x32xbf16>
    tpu.vector_store %arg9[%c273, %c0_2], %2 {strides = array<i32>} : memref<290x32xbf16, #tpu.memory_space<vmem>>, vector<17x32xbf16>,
    %c0_3 = arith.constant 0 : index
    %c0_4 = arith.constant 0 : index
    %c0_5 = arith.constant 0 : index
    %4 = vector.load %arg1[%c0_3, %c0_4, %c0_5] : memref<1x256x32xbf16, #tpu.memory_space<vmem>>, vector<1x256x32xbf16>
    %5 = vector.shape_cast %4 : vector<1x256x32xbf16> to vector<256x32xbf16>
    %6 = arith.extf %5 : vector<256x32xbf16> to vector<256x32xf32>
    %c0_6 = arith.constant 0 : index
    %c0_7 = arith.constant 0 : index
    %7 = vector.load %arg2[%c0_6, %c0_7] : memref<1x32xf32, #tpu.memory_space<vmem>>, vector<1x32xf32>
    %8 = vector.broadcast %7 : vector<1x32xf32> to vector<256x32xf32>
    %9 = arith.mulf %6, %8 : vector<256x32xf32>
    %c0_8 = arith.constant 0 : index
    %c0_9 = arith.constant 0 : index
    %10 = vector.load %arg3[%c0_8, %c0_9] : memref<1x32xf32, #tpu.memory_space<vmem>>, vector<1x32xf32>
    %11 = vector.broadcast %10 : vector<1x32xf32> to vector<256x32xf32>
    %12 = arith.addf %9, %11 : vector<256x32xf32>
    %cst_10 = arith.constant 0.000000e+00 : f32
    %13 = vector.broadcast %cst_10 : f32 to vector<256x32xf32>
    %14 = arith.maximumf %12, %13 : vector<256x32xf32>
    %15 = arith.truncf %14 : vector<256x32xf32> to vector<256x32xbf16>
    %c17 = arith.constant 17 : index
    %c0_11 = arith.constant 0 : index
    %16 = vector.load %arg9[%c17, %c0_11] : memref<290x32xbf16, #tpu.memory_space<vmem>>, vector<256x32xbf16>
    tpu.vector_store %arg9[%c17, %c0_11], %15 {strides = array<i32>} : memref<290x32xbf16, #tpu.memory_space<vmem>>, vector<256x32xbf16>,
    %c0_12 = arith.constant 0 : index
    %c0_13 = arith.constant 0 : index
    %17 = vector.load %arg4[%c0_12, %c0_13] : memref<256x1xbf16, #tpu.memory_space<vmem>>, vector<256x1xbf16>
    %c0_14 = arith.constant 0 : index
    %c0_15 = arith.constant 0 : index
    %18 = vector.load %arg5[%c0_14, %c0_15] : memref<256x1xbf16, #tpu.memory_space<vmem>>, vector<256x1xbf16>
    %cst_16 = arith.constant 0.000000e+00 : f32
    %19 = vector.broadcast %cst_16 : f32 to vector<256x32xf32>
    %c0_17 = arith.constant 0 : index
    %c0_18 = arith.constant 0 : index
    %20 = vector.load %arg9[%c0_17, %c0_18] : memref<290x32xbf16, #tpu.memory_space<vmem>>, vector<256x32xbf16>
    %21 = vector.broadcast %17 : vector<256x1xbf16> to vector<256x32xbf16>
    %22 = arith.mulf %20, %21 : vector<256x32xbf16>
    %c0_19 = arith.constant 0 : index
    %c0_20 = arith.constant 0 : index
    %c0_21 = arith.constant 0 : index
    %23 = vector.load %arg6[%c0_19, %c0_20, %c0_21] : memref<9x32x32xbf16, #tpu.memory_space<vmem>>, vector<1x32x32xbf16>
    %24 = vector.shape_cast %23 : vector<1x32x32xbf16> to vector<32x32xbf16>
    %cst_22 = arith.constant dense<0.000000e+00> : vector<256x32xf32>
    %25 = tpu.matmul %22, %24, %cst_22 {dimension_numbers = #tpu.dot_dimension_numbers<[1], [0], [0], [1], [0, 0, 1, 1], [], []>} : vector<256x32xbf16>, vector<32x32xbf16>, vector<256x32xf32> -> vector<256x32xf32>
    %26 = arith.addf %19, %25 : vector<256x32xf32>
    %c1 = arith.constant 1 : index
    %c0_23 = arith.constant 0 : index
    %27 = vector.load %arg9[%c1, %c0_23] : memref<290x32xbf16, #tpu.memory_space<vmem>>, vector<256x32xbf16>
    %c1_24 = arith.constant 1 : index
    %c0_25 = arith.constant 0 : index
    %c0_26 = arith.constant 0 : index
    %28 = vector.load %arg6[%c1_24, %c0_25, %c0_26] : memref<9x32x32xbf16, #tpu.memory_space<vmem>>, vector<1x32x32xbf16>
    %29 = vector.shape_cast %28 : vector<1x32x32xbf16> to vector<32x32xbf16>
    %cst_27 = arith.constant dense<0.000000e+00> : vector<256x32xf32>
    %30 = tpu.matmul %27, %29, %cst_27 {dimension_numbers = #tpu.dot_dimension_numbers<[1], [0], [0], [1], [0, 0, 1, 1], [], []>} : vector<256x32xbf16>, vector<32x32xbf16>, vector<256x32xf32> -> vector<256x32xf32>
    %31 = arith.addf %26, %30 : vector<256x32xf32>
    %c2 = arith.constant 2 : index
    %c0_28 = arith.constant 0 : index
    %32 = vector.load %arg9[%c2, %c0_28] : memref<290x32xbf16, #tpu.memory_space<vmem>>, vector<256x32xbf16>
    %33 = vector.broadcast %18 : vector<256x1xbf16> to vector<256x32xbf16>
    %34 = arith.mulf %32, %33 : vector<256x32xbf16>
    %c2_29 = arith.constant 2 : index
    %c0_30 = arith.constant 0 : index
    %c0_31 = arith.constant 0 : index
    %35 = vector.load %arg6[%c2_29, %c0_30, %c0_31] : memref<9x32x32xbf16, #tpu.memory_space<vmem>>, vector<1x32x32xbf16>
    %36 = vector.shape_cast %35 : vector<1x32x32xbf16> to vector<32x32xbf16>
    %cst_32 = arith.constant dense<0.000000e+00> : vector<256x32xf32>
    %37 = tpu.matmul %34, %36, %cst_32 {dimension_numbers = #tpu.dot_dimension_numbers<[1], [0], [0], [1], [0, 0, 1, 1], [], []>} : vector<256x32xbf16>, vector<32x32xbf16>, vector<256x32xf32> -> vector<256x32xf32>
    %38 = arith.addf %31, %37 : vector<256x32xf32>
    %c16 = arith.constant 16 : index
    %c0_33 = arith.constant 0 : index
    %39 = vector.load %arg9[%c16, %c0_33] : memref<290x32xbf16, #tpu.memory_space<vmem>>, vector<256x32xbf16>
    %40 = vector.broadcast %17 : vector<256x1xbf16> to vector<256x32xbf16>
    %41 = arith.mulf %39, %40 : vector<256x32xbf16>
    %c3 = arith.constant 3 : index
    %c0_34 = arith.constant 0 : index
    %c0_35 = arith.constant 0 : index
    %42 = vector.load %arg6[%c3, %c0_34, %c0_35] : memref<9x32x32xbf16, #tpu.memory_space<vmem>>, vector<1x32x32xbf16>
    %43 = vector.shape_cast %42 : vector<1x32x32xbf16> to vector<32x32xbf16>
    %cst_36 = arith.constant dense<0.000000e+00> : vector<256x32xf32>
    %44 = tpu.matmul %41, %43, %cst_36 {dimension_numbers = #tpu.dot_dimension_numbers<[1], [0], [0], [1], [0, 0, 1, 1], [], []>} : vector<256x32xbf16>, vector<32x32xbf16>, vector<256x32xf32> -> vector<256x32xf32>
    %45 = arith.addf %38, %44 : vector<256x32xf32>
    %c17_37 = arith.constant 17 : index
    %c0_38 = arith.constant 0 : index
    %46 = vector.load %arg9[%c17_37, %c0_38] : memref<290x32xbf16, #tpu.memory_space<vmem>>, vector<256x32xbf16>
    %c4 = arith.constant 4 : index
    %c0_39 = arith.constant 0 : index
    %c0_40 = arith.constant 0 : index
    %47 = vector.load %arg6[%c4, %c0_39, %c0_40] : memref<9x32x32xbf16, #tpu.memory_space<vmem>>, vector<1x32x32xbf16>
    %48 = vector.shape_cast %47 : vector<1x32x32xbf16> to vector<32x32xbf16>
    %cst_41 = arith.constant dense<0.000000e+00> : vector<256x32xf32>
    %49 = tpu.matmul %46, %48, %cst_41 {dimension_numbers = #tpu.dot_dimension_numbers<[1], [0], [0], [1], [0, 0, 1, 1], [], []>} : vector<256x32xbf16>, vector<32x32xbf16>, vector<256x32xf32> -> vector<256x32xf32>
    %50 = arith.addf %45, %49 : vector<256x32xf32>
    %c18 = arith.constant 18 : index
    %c0_42 = arith.constant 0 : index
    %51 = vector.load %arg9[%c18, %c0_42] : memref<290x32xbf16, #tpu.memory_space<vmem>>, vector<256x32xbf16>
    %52 = vector.broadcast %18 : vector<256x1xbf16> to vector<256x32xbf16>
    %53 = arith.mulf %51, %52 : vector<256x32xbf16>
    %c5 = arith.constant 5 : index
    %c0_43 = arith.constant 0 : index
    %c0_44 = arith.constant 0 : index
    %54 = vector.load %arg6[%c5, %c0_43, %c0_44] : memref<9x32x32xbf16, #tpu.memory_space<vmem>>, vector<1x32x32xbf16>
    %55 = vector.shape_cast %54 : vector<1x32x32xbf16> to vector<32x32xbf16>
    %cst_45 = arith.constant dense<0.000000e+00> : vector<256x32xf32>
    %56 = tpu.matmul %53, %55, %cst_45 {dimension_numbers = #tpu.dot_dimension_numbers<[1], [0], [0], [1], [0, 0, 1, 1], [], []>} : vector<256x32xbf16>, vector<32x32xbf16>, vector<256x32xf32> -> vector<256x32xf32>
    %57 = arith.addf %50, %56 : vector<256x32xf32>
    %c32 = arith.constant 32 : index
    %c0_46 = arith.constant 0 : index
    %58 = vector.load %arg9[%c32, %c0_46] : memref<290x32xbf16, #tpu.memory_space<vmem>>, vector<256x32xbf16>
    %59 = vector.broadcast %17 : vector<256x1xbf16> to vector<256x32xbf16>
    %60 = arith.mulf %58, %59 : vector<256x32xbf16>
    %c6 = arith.constant 6 : index
    %c0_47 = arith.constant 0 : index
    %c0_48 = arith.constant 0 : index
    %61 = vector.load %arg6[%c6, %c0_47, %c0_48] : memref<9x32x32xbf16, #tpu.memory_space<vmem>>, vector<1x32x32xbf16>
    %62 = vector.shape_cast %61 : vector<1x32x32xbf16> to vector<32x32xbf16>
    %cst_49 = arith.constant dense<0.000000e+00> : vector<256x32xf32>
    %63 = tpu.matmul %60, %62, %cst_49 {dimension_numbers = #tpu.dot_dimension_numbers<[1], [0], [0], [1], [0, 0, 1, 1], [], []>} : vector<256x32xbf16>, vector<32x32xbf16>, vector<256x32xf32> -> vector<256x32xf32>
    %64 = arith.addf %57, %63 : vector<256x32xf32>
    %c33 = arith.constant 33 : index
    %c0_50 = arith.constant 0 : index
    %65 = vector.load %arg9[%c33, %c0_50] : memref<290x32xbf16, #tpu.memory_space<vmem>>, vector<256x32xbf16>
    %c7 = arith.constant 7 : index
    %c0_51 = arith.constant 0 : index
    %c0_52 = arith.constant 0 : index
    %66 = vector.load %arg6[%c7, %c0_51, %c0_52] : memref<9x32x32xbf16, #tpu.memory_space<vmem>>, vector<1x32x32xbf16>
    %67 = vector.shape_cast %66 : vector<1x32x32xbf16> to vector<32x32xbf16>
    %cst_53 = arith.constant dense<0.000000e+00> : vector<256x32xf32>
    %68 = tpu.matmul %65, %67, %cst_53 {dimension_numbers = #tpu.dot_dimension_numbers<[1], [0], [0], [1], [0, 0, 1, 1], [], []>} : vector<256x32xbf16>, vector<32x32xbf16>, vector<256x32xf32> -> vector<256x32xf32>
    %69 = arith.addf %64, %68 : vector<256x32xf32>
    %c34 = arith.constant 34 : index
    %c0_54 = arith.constant 0 : index
    %70 = vector.load %arg9[%c34, %c0_54] : memref<290x32xbf16, #tpu.memory_space<vmem>>, vector<256x32xbf16>
    %71 = vector.broadcast %18 : vector<256x1xbf16> to vector<256x32xbf16>
    %72 = arith.mulf %70, %71 : vector<256x32xbf16>
    %c8 = arith.constant 8 : index
    %c0_55 = arith.constant 0 : index
    %c0_56 = arith.constant 0 : index
    %73 = vector.load %arg6[%c8, %c0_55, %c0_56] : memref<9x32x32xbf16, #tpu.memory_space<vmem>>, vector<1x32x32xbf16>
    %74 = vector.shape_cast %73 : vector<1x32x32xbf16> to vector<32x32xbf16>
    %cst_57 = arith.constant dense<0.000000e+00> : vector<256x32xf32>
    %75 = tpu.matmul %72, %74, %cst_57 {dimension_numbers = #tpu.dot_dimension_numbers<[1], [0], [0], [1], [0, 0, 1, 1], [], []>} : vector<256x32xbf16>, vector<32x32xbf16>, vector<256x32xf32> -> vector<256x32xf32>
    %76 = arith.addf %69, %75 : vector<256x32xf32>
    %77 = arith.truncf %76 : vector<256x32xf32> to vector<256x32xbf16>
    %c0_58 = arith.constant 0 : index
    %c0_59 = arith.constant 0 : index
    %c0_60 = arith.constant 0 : index
    %78 = vector.load %arg7[%c0_58, %c0_59, %c0_60] : memref<1x256x32xbf16, #tpu.memory_space<vmem>>, vector<1x256x32xbf16>
    %79 = vector.shape_cast %78 : vector<1x256x32xbf16> to vector<256x32xbf16>
    %80 = vector.shape_cast %77 : vector<256x32xbf16> to vector<1x256x32xbf16>
    tpu.vector_store %arg7[%c0_58, %c0_59, %c0_60], %80 {strides = array<i32>} : memref<1x256x32xbf16, #tpu.memory_space<vmem>>, vector<1x256x32xbf16>,
    %cst_61 = arith.constant dense<0.000000e+00> : vector<32xf32>
    %81 = vector.multi_reduction <add>, %76, %cst_61 [0] : vector<256x32xf32> to vector<32xf32>
    %82 = vector.shape_cast %81 : vector<32xf32> to vector<1x32xf32>
    %c0_62 = arith.constant 0 : index
    %c0_63 = arith.constant 0 : index
    %c0_64 = arith.constant 0 : index
    %83 = vector.load %arg8[%c0_62, %c0_63, %c0_64] : memref<1x2x32xf32, #tpu.memory_space<vmem>>, vector<1x1x32xf32>
    %84 = vector.shape_cast %83 : vector<1x1x32xf32> to vector<1x32xf32>
    %85 = vector.shape_cast %82 : vector<1x32xf32> to vector<1x1x32xf32>
    tpu.vector_store %arg8[%c0_62, %c0_63, %c0_64], %85 {strides = array<i32>} : memref<1x2x32xf32, #tpu.memory_space<vmem>>, vector<1x1x32xf32>,
    %86 = arith.mulf %76, %76 : vector<256x32xf32>
    %cst_65 = arith.constant dense<0.000000e+00> : vector<32xf32>
    %87 = vector.multi_reduction <add>, %86, %cst_65 [0] : vector<256x32xf32> to vector<32xf32>
    %88 = vector.shape_cast %87 : vector<32xf32> to vector<1x32xf32>
    %c0_66 = arith.constant 0 : index
    %c1_67 = arith.constant 1 : index
    %c0_68 = arith.constant 0 : index
    %89 = vector.load %arg8[%c0_66, %c1_67, %c0_68] : memref<1x2x32xf32, #tpu.memory_space<vmem>>, vector<1x1x32xf32>
    %90 = vector.shape_cast %89 : vector<1x1x32xf32> to vector<1x32xf32>
    %91 = vector.shape_cast %88 : vector<1x32xf32> to vector<1x1x32xf32>
    tpu.vector_store %arg8[%c0_66, %c1_67, %c0_68], %91 {strides = array<i32>} : memref<1x2x32xf32, #tpu.memory_space<vmem>>, vector<1x1x32xf32>,
    return
  }
  func.func @transform_0(%arg0: i32) -> (i32, i32, i32) {
    %c0_i32 = arith.constant 0 : i32
    %c0_i32_0 = arith.constant 0 : i32
    %c0_i32_1 = arith.constant 0 : i32
    return %arg0, %c0_i32, %c0_i32_0 : i32, i32, i32
  }
  func.func @transform_1(%arg0: i32) -> (i32, i32) {
    %c0_i32 = arith.constant 0 : i32
    %c0_i32_0 = arith.constant 0 : i32
    %c0_i32_1 = arith.constant 0 : i32
    return %c0_i32, %c0_i32_0 : i32, i32
  }
  func.func @transform_2(%arg0: i32) -> (i32, i32) {
    %c0_i32 = arith.constant 0 : i32
    %c0_i32_0 = arith.constant 0 : i32
    %c0_i32_1 = arith.constant 0 : i32
    return %c0_i32, %c0_i32_0 : i32, i32
  }
  func.func @transform_3(%arg0: i32) -> (i32, i32) {
    %c0_i32 = arith.constant 0 : i32
    %c0_i32_0 = arith.constant 0 : i32
    %c0_i32_1 = arith.constant 0 : i32
    return %c0_i32, %c0_i32_0 : i32, i32
  }
  func.func @transform_4(%arg0: i32) -> (i32, i32) {
    %c0_i32 = arith.constant 0 : i32
    %c0_i32_0 = arith.constant 0 : i32
    %c0_i32_1 = arith.constant 0 : i32
    return %c0_i32, %c0_i32_0 : i32, i32
  }
  func.func @transform_5(%arg0: i32) -> (i32, i32, i32) {
    %c0_i32 = arith.constant 0 : i32
    %c0_i32_0 = arith.constant 0 : i32
    %c0_i32_1 = arith.constant 0 : i32
    %c0_i32_2 = arith.constant 0 : i32
    return %c0_i32, %c0_i32_0, %c0_i32_1 : i32, i32, i32
  }
  func.func @transform_6(%arg0: i32) -> (i32, i32, i32) {
    %c0_i32 = arith.constant 0 : i32
    %c0_i32_0 = arith.constant 0 : i32
    %c0_i32_1 = arith.constant 0 : i32
    return %arg0, %c0_i32, %c0_i32_0 : i32, i32, i32
  }
  func.func @transform_7(%arg0: i32) -> (i32, i32, i32) {
    %c0_i32 = arith.constant 0 : i32
    %c0_i32_0 = arith.constant 0 : i32
    %c0_i32_1 = arith.constant 0 : i32
    return %arg0, %c0_i32, %c0_i32_0 : i32, i32, i32
  }
}

module attributes {stable_mosaic.version = 11 : i64} {
  func.func @bn_relu_conv1x1_stats_kernel(%arg0: i32, %arg1: memref<512x32xbf16, #tpu.memory_space<vmem>>, %arg2: memref<1x32xf32, #tpu.memory_space<vmem>>, %arg3: memref<1x32xf32, #tpu.memory_space<vmem>>, %arg4: memref<32x128xbf16, #tpu.memory_space<vmem>>, %arg5: memref<512x128xbf16, #tpu.memory_space<vmem>>, %arg6: memref<1x2x128xf32, #tpu.memory_space<vmem>>) attributes {dimension_semantics = [#tpu.dimension_semantics<parallel>], iteration_bounds = array<i64: 1>, scalar_prefetch = 0 : i64, scratch_operands = 0 : i64, tpu.core_type = #tpu.core_type<tc>, window_params = [{transform_indices = @transform_0, window_bounds = array<i64: 512, 32>}, {pipeline_mode = #tpu.pipeline_mode<synchronous>, transform_indices = @transform_1, window_bounds = array<i64: 1, 32>}, {pipeline_mode = #tpu.pipeline_mode<synchronous>, transform_indices = @transform_2, window_bounds = array<i64: 1, 32>}, {pipeline_mode = #tpu.pipeline_mode<synchronous>, transform_indices = @transform_3, window_bounds = array<i64: 32, 128>}, {transform_indices = @transform_4, window_bounds = array<i64: 512, 128>}, {transform_indices = @transform_5, window_bounds = array<i64: 1, 2, 128>}]} {
    %c0 = arith.constant 0 : index
    %c0_0 = arith.constant 0 : index
    %0 = vector.load %arg1[%c0, %c0_0] : memref<512x32xbf16, #tpu.memory_space<vmem>>, vector<512x32xbf16>
    %1 = arith.extf %0 : vector<512x32xbf16> to vector<512x32xf32>
    %c0_1 = arith.constant 0 : index
    %c0_2 = arith.constant 0 : index
    %2 = vector.load %arg2[%c0_1, %c0_2] : memref<1x32xf32, #tpu.memory_space<vmem>>, vector<1x32xf32>
    %3 = vector.broadcast %2 : vector<1x32xf32> to vector<512x32xf32>
    %4 = arith.mulf %1, %3 : vector<512x32xf32>
    %c0_3 = arith.constant 0 : index
    %c0_4 = arith.constant 0 : index
    %5 = vector.load %arg3[%c0_3, %c0_4] : memref<1x32xf32, #tpu.memory_space<vmem>>, vector<1x32xf32>
    %6 = vector.broadcast %5 : vector<1x32xf32> to vector<512x32xf32>
    %7 = arith.addf %4, %6 : vector<512x32xf32>
    %cst = arith.constant 0.000000e+00 : f32
    %8 = vector.broadcast %cst : f32 to vector<512x32xf32>
    %9 = arith.maximumf %7, %8 : vector<512x32xf32>
    %10 = arith.truncf %9 : vector<512x32xf32> to vector<512x32xbf16>
    %c0_5 = arith.constant 0 : index
    %c0_6 = arith.constant 0 : index
    %11 = vector.load %arg4[%c0_5, %c0_6] : memref<32x128xbf16, #tpu.memory_space<vmem>>, vector<32x128xbf16>
    %cst_7 = arith.constant dense<0.000000e+00> : vector<512x128xf32>
    %12 = tpu.matmul %10, %11, %cst_7 {dimension_numbers = #tpu.dot_dimension_numbers<[1], [0], [0], [1], [0, 0, 1, 1], [], []>} : vector<512x32xbf16>, vector<32x128xbf16>, vector<512x128xf32> -> vector<512x128xf32>
    %13 = arith.truncf %12 : vector<512x128xf32> to vector<512x128xbf16>
    %c0_8 = arith.constant 0 : index
    %c0_9 = arith.constant 0 : index
    %14 = vector.load %arg5[%c0_8, %c0_9] : memref<512x128xbf16, #tpu.memory_space<vmem>>, vector<512x128xbf16>
    tpu.vector_store %arg5[%c0_8, %c0_9], %13 {strides = array<i32>} : memref<512x128xbf16, #tpu.memory_space<vmem>>, vector<512x128xbf16>,
    %cst_10 = arith.constant dense<0.000000e+00> : vector<128xf32>
    %15 = vector.multi_reduction <add>, %12, %cst_10 [0] : vector<512x128xf32> to vector<128xf32>
    %16 = vector.shape_cast %15 : vector<128xf32> to vector<1x128xf32>
    %c0_11 = arith.constant 0 : index
    %c0_12 = arith.constant 0 : index
    %c0_13 = arith.constant 0 : index
    %17 = vector.load %arg6[%c0_11, %c0_12, %c0_13] : memref<1x2x128xf32, #tpu.memory_space<vmem>>, vector<1x1x128xf32>
    %18 = vector.shape_cast %17 : vector<1x1x128xf32> to vector<1x128xf32>
    %19 = vector.shape_cast %16 : vector<1x128xf32> to vector<1x1x128xf32>
    tpu.vector_store %arg6[%c0_11, %c0_12, %c0_13], %19 {strides = array<i32>} : memref<1x2x128xf32, #tpu.memory_space<vmem>>, vector<1x1x128xf32>,
    %20 = arith.mulf %12, %12 : vector<512x128xf32>
    %cst_14 = arith.constant dense<0.000000e+00> : vector<128xf32>
    %21 = vector.multi_reduction <add>, %20, %cst_14 [0] : vector<512x128xf32> to vector<128xf32>
    %22 = vector.shape_cast %21 : vector<128xf32> to vector<1x128xf32>
    %c0_15 = arith.constant 0 : index
    %c1 = arith.constant 1 : index
    %c0_16 = arith.constant 0 : index
    %23 = vector.load %arg6[%c0_15, %c1, %c0_16] : memref<1x2x128xf32, #tpu.memory_space<vmem>>, vector<1x1x128xf32>
    %24 = vector.shape_cast %23 : vector<1x1x128xf32> to vector<1x128xf32>
    %25 = vector.shape_cast %22 : vector<1x128xf32> to vector<1x1x128xf32>
    tpu.vector_store %arg6[%c0_15, %c1, %c0_16], %25 {strides = array<i32>} : memref<1x2x128xf32, #tpu.memory_space<vmem>>, vector<1x1x128xf32>,
    return
  }
  func.func @transform_0(%arg0: i32) -> (i32, i32) {
    %c0_i32 = arith.constant 0 : i32
    %c0_i32_0 = arith.constant 0 : i32
    return %arg0, %c0_i32 : i32, i32
  }
  func.func @transform_1(%arg0: i32) -> (i32, i32) {
    %c0_i32 = arith.constant 0 : i32
    %c0_i32_0 = arith.constant 0 : i32
    %c0_i32_1 = arith.constant 0 : i32
    return %c0_i32, %c0_i32_0 : i32, i32
  }
  func.func @transform_2(%arg0: i32) -> (i32, i32) {
    %c0_i32 = arith.constant 0 : i32
    %c0_i32_0 = arith.constant 0 : i32
    %c0_i32_1 = arith.constant 0 : i32
    return %c0_i32, %c0_i32_0 : i32, i32
  }
  func.func @transform_3(%arg0: i32) -> (i32, i32) {
    %c0_i32 = arith.constant 0 : i32
    %c0_i32_0 = arith.constant 0 : i32
    %c0_i32_1 = arith.constant 0 : i32
    return %c0_i32, %c0_i32_0 : i32, i32
  }
  func.func @transform_4(%arg0: i32) -> (i32, i32) {
    %c0_i32 = arith.constant 0 : i32
    %c0_i32_0 = arith.constant 0 : i32
    return %arg0, %c0_i32 : i32, i32
  }
  func.func @transform_5(%arg0: i32) -> (i32, i32, i32) {
    %c0_i32 = arith.constant 0 : i32
    %c0_i32_0 = arith.constant 0 : i32
    %c0_i32_1 = arith.constant 0 : i32
    return %arg0, %c0_i32, %c0_i32_0 : i32, i32, i32
  }
}

module attributes {stable_mosaic.version = 11 : i64} {
  func.func @bn_add_relu_kernel(%arg0: i32, %arg1: memref<512x128xbf16, #tpu.memory_space<vmem>>, %arg2: memref<1x128xf32, #tpu.memory_space<vmem>>, %arg3: memref<1x128xf32, #tpu.memory_space<vmem>>, %arg4: memref<512x128xf32, #tpu.memory_space<vmem>>, %arg5: memref<512x128xf32, #tpu.memory_space<vmem>>) attributes {dimension_semantics = [#tpu.dimension_semantics<parallel>], iteration_bounds = array<i64: 1>, scalar_prefetch = 0 : i64, scratch_operands = 0 : i64, tpu.core_type = #tpu.core_type<tc>, window_params = [{transform_indices = @transform_0, window_bounds = array<i64: 512, 128>}, {pipeline_mode = #tpu.pipeline_mode<synchronous>, transform_indices = @transform_1, window_bounds = array<i64: 1, 128>}, {pipeline_mode = #tpu.pipeline_mode<synchronous>, transform_indices = @transform_2, window_bounds = array<i64: 1, 128>}, {transform_indices = @transform_3, window_bounds = array<i64: 512, 128>}, {transform_indices = @transform_4, window_bounds = array<i64: 512, 128>}]} {
    %c0 = arith.constant 0 : index
    %c0_0 = arith.constant 0 : index
    %0 = vector.load %arg1[%c0, %c0_0] : memref<512x128xbf16, #tpu.memory_space<vmem>>, vector<512x128xbf16>
    %1 = arith.extf %0 : vector<512x128xbf16> to vector<512x128xf32>
    %c0_1 = arith.constant 0 : index
    %c0_2 = arith.constant 0 : index
    %2 = vector.load %arg2[%c0_1, %c0_2] : memref<1x128xf32, #tpu.memory_space<vmem>>, vector<1x128xf32>
    %3 = vector.broadcast %2 : vector<1x128xf32> to vector<512x128xf32>
    %4 = arith.mulf %1, %3 : vector<512x128xf32>
    %c0_3 = arith.constant 0 : index
    %c0_4 = arith.constant 0 : index
    %5 = vector.load %arg3[%c0_3, %c0_4] : memref<1x128xf32, #tpu.memory_space<vmem>>, vector<1x128xf32>
    %6 = vector.broadcast %5 : vector<1x128xf32> to vector<512x128xf32>
    %7 = arith.addf %4, %6 : vector<512x128xf32>
    %c0_5 = arith.constant 0 : index
    %c0_6 = arith.constant 0 : index
    %8 = vector.load %arg4[%c0_5, %c0_6] : memref<512x128xf32, #tpu.memory_space<vmem>>, vector<512x128xf32>
    %9 = arith.addf %7, %8 : vector<512x128xf32>
    %cst = arith.constant 0.000000e+00 : f32
    %10 = vector.broadcast %cst : f32 to vector<512x128xf32>
    %11 = arith.maximumf %9, %10 : vector<512x128xf32>
    %c0_7 = arith.constant 0 : index
    %c0_8 = arith.constant 0 : index
    %12 = vector.load %arg5[%c0_7, %c0_8] : memref<512x128xf32, #tpu.memory_space<vmem>>, vector<512x128xf32>
    tpu.vector_store %arg5[%c0_7, %c0_8], %11 {strides = array<i32>} : memref<512x128xf32, #tpu.memory_space<vmem>>, vector<512x128xf32>,
    return
  }
  func.func @transform_0(%arg0: i32) -> (i32, i32) {
    %c0_i32 = arith.constant 0 : i32
    %c0_i32_0 = arith.constant 0 : i32
    return %arg0, %c0_i32 : i32, i32
  }
  func.func @transform_1(%arg0: i32) -> (i32, i32) {
    %c0_i32 = arith.constant 0 : i32
    %c0_i32_0 = arith.constant 0 : i32
    %c0_i32_1 = arith.constant 0 : i32
    return %c0_i32, %c0_i32_0 : i32, i32
  }
  func.func @transform_2(%arg0: i32) -> (i32, i32) {
    %c0_i32 = arith.constant 0 : i32
    %c0_i32_0 = arith.constant 0 : i32
    %c0_i32_1 = arith.constant 0 : i32
    return %c0_i32, %c0_i32_0 : i32, i32
  }
  func.func @transform_3(%arg0: i32) -> (i32, i32) {
    %c0_i32 = arith.constant 0 : i32
    %c0_i32_0 = arith.constant 0 : i32
    return %arg0, %c0_i32 : i32, i32
  }
  func.func @transform_4(%arg0: i32) -> (i32, i32) {
    %c0_i32 = arith.constant 0 : i32
    %c0_i32_0 = arith.constant 0 : i32
    return %arg0, %c0_i32 : i32, i32
  }
}

</mosaic_0001>

<bundles_post_ra>
// kernel: bottleneck_forward.7
= control target key start
LH: loop header
LB: loop body
LE: loop exit
PB: predicated region body
PF: predicated region fallthrough
CT: control target
= control target key end

     0   :  { %s1214_s0 = inlined_call_operand.vmem [shape: bf16[512,128], index: 0, kind: input, shape index: {}]   ;;  %s1215_s1 = inlined_call_operand.vmem [shape: f32[1,128], index: 1, kind: input, shape index: {}]   ;;  %s1216_s2 = inlined_call_operand.vmem [shape: f32[1,128], index: 2, kind: input, shape index: {}]   ;;  %s1217_s3 = inlined_call_operand.vmem [shape: f32[512,128], index: 3, kind: input, shape index: {}]   ;;  %s1218_s4 = inlined_call_operand.hbm [shape: f32[512,128], index: 4, kind: output, shape index: {}]  }
   0x1   :  { %v563_v0 = vld [vmem:[%s1214_s0] sm:$0xff]   ;;  %v690_v4 = vld [vmem:[%s1214_s0 + $0x8] sm:$0xff]   ;;  %v691_v8 = vld [vmem:[%s1214_s0 + $0x10] sm:$0xff]  }
   0x2   :  { %v782_v1 = vld [vmem:[%s1215_s1] ss:$0 sm:$0xff]  ;;  %v564_v2 = vunpack.c.l.bf16 %v563_v0  ;;  %v565_v3 = vunpack.c.h.bf16 %v563_v0  ;;  %v568_v6 = vunpack.c.l.bf16 %v690_v4  ;;  %v569_v7 = vunpack.c.h.bf16 %v690_v4  ;;  %v692_v13 = vld [vmem:[%s1214_s0 + $0x18] sm:$0xff]   ;;  %v289_v15 = vld [vmem:[%s1217_s3 + $0x8] sm:$0xff] }
   0x3   :  { %v790_v5 = vld [vmem:[%s1216_s2] ss:$0 sm:$0xff]  ;;  %v572_v11 = vunpack.c.l.bf16 %v691_v8  ;;  %v573_v12 = vunpack.c.h.bf16 %v691_v8  ;;  %v576_v18 = vunpack.c.l.bf16 %v692_v13  ;;  %v577_v19 = vunpack.c.h.bf16 %v692_v13  ;;  %v290_v22 = vld [vmem:[%s1217_s3 + $0x10] sm:$0xff]  ;;  %v291_v23 = vld [vmem:[%s1217_s3 + $0x18] sm:$0xff] }
   0x4   :  { %v153_v9 = vmul.f32 %v564_v2, %v782_v1  ;;  %v154_v10 = vmul.f32 %v565_v3, %v782_v1  ;;  %v288_v14 = vld [vmem:[%s1217_s3] sm:$0xff]  ;;  %v155_v16 = vmul.f32 %v568_v6, %v782_v1  ;;  %v156_v17 = vmul.f32 %v569_v7, %v782_v1  ;;  %v293_v29 = vld [vmem:[%s1217_s3 + $0x28] sm:$0xff]  ;;  %v294_v36 = vld [vmem:[%s1217_s3 + $0x30] sm:$0xff] }
   0x5   :  { %v157_v24 = vmul.f32 %v572_v11, %v782_v1  ;;  %v158_v25 = vmul.f32 %v573_v12, %v782_v1  ;;  %v292_v28 = vld [vmem:[%s1217_s3 + $0x20] sm:$0xff]  ;;  %v159_v30 = vmul.f32 %v576_v18, %v782_v1  ;;  %v160_v31 = vmul.f32 %v577_v19, %v782_v1  ;;  %v295_v37 = vld [vmem:[%s1217_s3 + $0x38] sm:$0xff]  ;;  %v694_v47 = vld [vmem:[%s1214_s0 + $0x28] sm:$0xff]  }
   0x6   :  { %v224_v20 = vadd.f32 %v790_v5, %v153_v9  ;;  %v225_v21 = vadd.f32 %v790_v5, %v154_v10  ;;  %v226_v26 = vadd.f32 %v790_v5, %v155_v16  ;;  %v227_v27 = vadd.f32 %v790_v5, %v156_v17  ;;  %v693_v42 = vld [vmem:[%s1214_s0 + $0x20] sm:$0xff]   ;;  %v695_v52 = vld [vmem:[%s1214_s0 + $0x30] sm:$0xff]   ;;  %v696_v57 = vld [vmem:[%s1214_s0 + $0x38] sm:$0xff]  }
   0x7   :  { %v228_v34 = vadd.f32 %v790_v5, %v157_v24  ;;  %v229_v35 = vadd.f32 %v790_v5, %v158_v25  ;;  %v230_v40 = vadd.f32 %v790_v5, %v159_v30  ;;  %v231_v41 = vadd.f32 %v790_v5, %v160_v31  ;;  %v296_v3 = vld [vmem:[%s1217_s3 + $0x40] sm:$0xff]  ;;  %v297_v4 = vld [vmem:[%s1217_s3 + $0x48] sm:$0xff]  ;;  %v298_v12 = vld [vmem:[%s1217_s3 + $0x50] sm:$0xff] }
   0x8   :  { %v352_v32 = vadd.f32 %v288_v14, %v224_v20  ;;  %v353_v33 = vadd.f32 %v289_v15, %v225_v21  ;;  %v354_v38 = vadd.f32 %v290_v22, %v226_v26  ;;  %v355_v39 = vadd.f32 %v291_v23, %v227_v27  ;;  %v299_v13 = vld [vmem:[%s1217_s3 + $0x58] sm:$0xff]  ;;  %v300_v18 = vld [vmem:[%s1217_s3 + $0x60] sm:$0xff]  ;;  %v301_v19 = vld [vmem:[%s1217_s3 + $0x68] sm:$0xff] }
   0x9   :  { %v356_v45 = vadd.f32 %v292_v28, %v228_v34  ;;  %v357_v46 = vadd.f32 %v293_v29, %v229_v35  ;;  %v358_v50 = vadd.f32 %v294_v36, %v230_v40  ;;  %v359_v51 = vadd.f32 %v295_v37, %v231_v41  ;;  %v302_v26 = vld [vmem:[%s1217_s3 + $0x70] sm:$0xff]  ;;  %v303_v27 = vld [vmem:[%s1217_s3 + $0x78] sm:$0xff]  ;;  %v698_v37 = vld [vmem:[%s1214_s0 + $0x48] sm:$0xff]  }
   0xa   :  { %v416_v43 = vmax.f32 %v352_v32, 0.0  ;;  %v417_v44 = vmax.f32 %v353_v33, 0.0  ;;  %v418_v48 = vmax.f32 %v354_v38, 0.0  ;;  %v419_v49 = vmax.f32 %v355_v39, 0.0  ;;  %v697_v32 = vld [vmem:[%s1214_s0 + $0x40] sm:$0xff]  }
   0xb   :  { %v420_v53 = vmax.f32 %v356_v45, 0.0  ;;  %v421_v54 = vmax.f32 %v357_v46, 0.0  ;;  %v580_v55 = vunpack.c.l.bf16 %v693_v42  ;;  %v581_v56 = vunpack.c.h.bf16 %v693_v42  ;;  %v699_v42 = vld [vmem:[%s1214_s0 + $0x50] sm:$0xff]  }
   0xc   :  { %480 = vst [vmem:[#allocation2] sm:$0xff] %v416_v43  ;;  %481 = vst [vmem:[#allocation2 + $0x8] sm:$0xff] %v417_v44  ;;  %v422_v58 = vmax.f32 %v358_v50, 0.0  ;;  %v423_v59 = vmax.f32 %v359_v51, 0.0  ;;  %v584_v60 = vunpack.c.l.bf16 %v694_v47  ;;  %v585_v61 = vunpack.c.h.bf16 %v694_v47  ;;  %v700_v47 = vld [vmem:[%s1214_s0 + $0x58] sm:$0xff]  }
   0xd   :  { %482 = vst [vmem:[#allocation2 + $0x10] sm:$0xff] %v418_v48  ;;  %483 = vst [vmem:[#allocation2 + $0x18] sm:$0xff] %v419_v49  ;;  %v161_v62 = vmul.f32 %v580_v55, %v782_v1  ;;  %v162_v63 = vmul.f32 %v581_v56, %v782_v1  ;;  %v588_v0 = vunpack.c.l.bf16 %v695_v52  ;;  %v589_v2 = vunpack.c.h.bf16 %v695_v52  ;;  %v304_v56 = vld [vmem:[%s1217_s3 + $0x80] sm:$0xff] }
   0xe   :  { %484 = vst [vmem:[#allocation2 + $0x20] sm:$0xff] %v420_v53  ;;  %485 = vst [vmem:[#allocation2 + $0x28] sm:$0xff] %v421_v54  ;;  %v163_v6 = vmul.f32 %v584_v60, %v782_v1  ;;  %v164_v7 = vmul.f32 %v585_v61, %v782_v1  ;;  %v592_v8 = vunpack.c.l.bf16 %v696_v57  ;;  %v593_v9 = vunpack.c.h.bf16 %v696_v57  ;;  %v305_v57 = vld [vmem:[%s1217_s3 + $0x88] sm:$0xff] }
   0xf   :  { %486 = vst [vmem:[#allocation2 + $0x30] sm:$0xff] %v422_v58  ;;  %487 = vst [vmem:[#allocation2 + $0x38] sm:$0xff] %v423_v59  ;;  %v232_v10 = vadd.f32 %v790_v5, %v161_v62  ;;  %v233_v11 = vadd.f32 %v790_v5, %v162_v63  ;;  %v165_v14 = vmul.f32 %v588_v0, %v782_v1  ;;  %v596_v45 = vunpack.c.l.bf16 %v697_v32  ;;  %v306_v0 = vld [vmem:[%s1217_s3 + $0x90] sm:$0xff] }
  0x10   :  { %v166_v15 = vmul.f32 %v589_v2, %v782_v1  ;;  %v234_v16 = vadd.f32 %v790_v5, %v163_v6  ;;  %v235_v17 = vadd.f32 %v790_v5, %v164_v7  ;;  %v167_v20 = vmul.f32 %v592_v8, %v782_v1  ;;  %v307_v2 = vld [vmem:[%s1217_s3 + $0x98] sm:$0xff]  ;;  %v308_v8 = vld [vmem:[%s1217_s3 + $0xa0] sm:$0xff] }
  0x11   :  { %v168_v21 = vmul.f32 %v593_v9, %v782_v1  ;;  %v360_v22 = vadd.f32 %v296_v3, %v232_v10  ;;  %v361_v23 = vadd.f32 %v297_v4, %v233_v11  ;;  %v236_v24 = vadd.f32 %v790_v5, %v165_v14  ;;  %v309_v9 = vld [vmem:[%s1217_s3 + $0xa8] sm:$0xff] }
  0x12   :  { %v237_v25 = vadd.f32 %v790_v5, %v166_v15  ;;  %v362_v28 = vadd.f32 %v298_v12, %v234_v16  ;;  %v363_v29 = vadd.f32 %v299_v13, %v235_v17  ;;  %v238_v30 = vadd.f32 %v790_v5, %v167_v20  ;;  %v310_v16 = vld [vmem:[%s1217_s3 + $0xb0] sm:$0xff]  ;;  %v311_v17 = vld [vmem:[%s1217_s3 + $0xb8] sm:$0xff] }
  0x13   :  { %v239_v31 = vadd.f32 %v790_v5, %v168_v21  ;;  %v424_v33 = vmax.f32 %v360_v22, 0.0  ;;  %v425_v34 = vmax.f32 %v361_v23, 0.0  ;;  %v364_v35 = vadd.f32 %v300_v18, %v236_v24  ;;  %v701_v22 = vld [vmem:[%s1214_s0 + $0x60] sm:$0xff]  }
  0x14   :  { %v365_v36 = vadd.f32 %v301_v19, %v237_v25  ;;  %v426_v38 = vmax.f32 %v362_v28, 0.0  ;;  %v427_v39 = vmax.f32 %v363_v29, 0.0  ;;  %v366_v40 = vadd.f32 %v302_v26, %v238_v30 }
  0x15   :  { %v367_v41 = vadd.f32 %v303_v27, %v239_v31  ;;  %488 = vst [vmem:[#allocation2 + $0x40] sm:$0xff] %v424_v33  ;;  %489 = vst [vmem:[#allocation2 + $0x48] sm:$0xff] %v425_v34  ;;  %v428_v43 = vmax.f32 %v364_v35, 0.0  ;;  %v597_v46 = vunpack.c.h.bf16 %v697_v32  ;;  %v600_v50 = vunpack.c.l.bf16 %v698_v37  ;;  %v702_v27 = vld [vmem:[%s1214_s0 + $0x68] sm:$0xff]   ;;  %v703_v32 = vld [vmem:[%s1214_s0 + $0x70] sm:$0xff]  }
  0x16   :  { %v429_v44 = vmax.f32 %v365_v36, 0.0  ;;  %490 = vst [vmem:[#allocation2 + $0x50] sm:$0xff] %v426_v38  ;;  %491 = vst [vmem:[#allocation2 + $0x58] sm:$0xff] %v427_v39  ;;  %v430_v48 = vmax.f32 %v366_v40, 0.0  ;;  %v601_v51 = vunpack.c.h.bf16 %v698_v37  ;;  %v169_v52 = vmul.f32 %v596_v45, %v782_v1  ;;  %v704_v37 = vld [vmem:[%s1214_s0 + $0x78] sm:$0xff]  }
  0x17   :  { %v431_v49 = vmax.f32 %v367_v41, 0.0  ;;  %492 = vst [vmem:[#allocation2 + $0x60] sm:$0xff] %v428_v43  ;;  %v170_v53 = vmul.f32 %v597_v46, %v782_v1  ;;  %v604_v54 = vunpack.c.l.bf16 %v699_v42  ;;  %v605_v55 = vunpack.c.h.bf16 %v699_v42 }
  0x18   :  { %493 = vst [vmem:[#allocation2 + $0x68] sm:$0xff] %v429_v44  ;;  %494 = vst [vmem:[#allocation2 + $0x70] sm:$0xff] %v430_v48  ;;  %v171_v58 = vmul.f32 %v600_v50, %v782_v1  ;;  %v172_v59 = vmul.f32 %v601_v51, %v782_v1  ;;  %v608_v60 = vunpack.c.l.bf16 %v700_v47  ;;  %v609_v61 = vunpack.c.h.bf16 %v700_v47 }
  0x19   :  { %495 = vst [vmem:[#allocation2 + $0x78] sm:$0xff] %v431_v49  ;;  %v240_v62 = vadd.f32 %v790_v5, %v169_v52  ;;  %v241_v63 = vadd.f32 %v790_v5, %v170_v53  ;;  %v173_v3 = vmul.f32 %v604_v54, %v782_v1  ;;  %v174_v4 = vmul.f32 %v605_v55, %v782_v1 }
  0x1a   :  { %v242_v6 = vadd.f32 %v790_v5, %v171_v58  ;;  %v243_v7 = vadd.f32 %v790_v5, %v172_v59  ;;  %v175_v10 = vmul.f32 %v608_v60, %v782_v1  ;;  %v176_v11 = vmul.f32 %v609_v61, %v782_v1 }
  0x1b   :  { %v368_v12 = vadd.f32 %v304_v56, %v240_v62  ;;  %v369_v13 = vadd.f32 %v305_v57, %v241_v63  ;;  %v244_v14 = vadd.f32 %v790_v5, %v173_v3  ;;  %v245_v15 = vadd.f32 %v790_v5, %v174_v4 }
  0x1c   :  { %v370_v18 = vadd.f32 %v306_v0, %v242_v6  ;;  %v371_v19 = vadd.f32 %v307_v2, %v243_v7  ;;  %v246_v20 = vadd.f32 %v790_v5, %v175_v10  ;;  %v247_v21 = vadd.f32 %v790_v5, %v176_v11 }
  0x1d   :  { %v432_v23 = vmax.f32 %v368_v12, 0.0  ;;  %v433_v24 = vmax.f32 %v369_v13, 0.0  ;;  %v372_v25 = vadd.f32 %v308_v8, %v244_v14  ;;  %v373_v26 = vadd.f32 %v309_v9, %v245_v15 }
  0x1e   :  { %v434_v28 = vmax.f32 %v370_v18, 0.0  ;;  %v435_v29 = vmax.f32 %v371_v19, 0.0  ;;  %v374_v30 = vadd.f32 %v310_v16, %v246_v20  ;;  %v375_v31 = vadd.f32 %v311_v17, %v247_v21 }
  0x1f   :  { %496 = vst [vmem:[#allocation2 + $0x80] sm:$0xff] %v432_v23  ;;  %497 = vst [vmem:[#allocation2 + $0x88] sm:$0xff] %v433_v24  ;;  %v436_v33 = vmax.f32 %v372_v25, 0.0  ;;  %v437_v34 = vmax.f32 %v373_v26, 0.0  ;;  %v612_v35 = vunpack.c.l.bf16 %v701_v22  ;;  %v613_v36 = vunpack.c.h.bf16 %v701_v22 }
  0x20   :  { %498 = vst [vmem:[#allocation2 + $0x90] sm:$0xff] %v434_v28  ;;  %499 = vst [vmem:[#allocation2 + $0x98] sm:$0xff] %v435_v29  ;;  %v438_v38 = vmax.f32 %v374_v30, 0.0  ;;  %v439_v39 = vmax.f32 %v375_v31, 0.0  ;;  %v616_v40 = vunpack.c.l.bf16 %v702_v27  ;;  %v617_v41 = vunpack.c.h.bf16 %v702_v27 }
  0x21   :  { %9 = vsyncpa [#allocation3], 0  ;;  %500 = vst [vmem:[#allocation2 + $0xa0] sm:$0xff] %v436_v33  ;;  %v177_v42 = vmul.f32 %v612_v35, %v782_v1  ;;  %v178_v43 = vmul.f32 %v613_v36, %v782_v1  ;;  %v620_v44 = vunpack.c.l.bf16 %v703_v32  ;;  %v621_v45 = vunpack.c.h.bf16 %v703_v32  ;;  %v312_v46 = vld [vmem:[%s1217_s3 + $0xc0] sm:$0xff]  ;;  %v313_v47 = vld [vmem:[%s1217_s3 + $0xc8] sm:$0xff]  ;;  %s748_s14 = smov [#allocation2]  }
  0x22   :  { %501 = vst [vmem:[#allocation2 + $0xa8] sm:$0xff] %v437_v34  ;;  %502 = vst [vmem:[#allocation2 + $0xb0] sm:$0xff] %v438_v38  ;;  %v179_v48 = vmul.f32 %v616_v40, %v782_v1  ;;  %v180_v49 = vmul.f32 %v617_v41, %v782_v1  ;;  %v624_v50 = vunpack.c.l.bf16 %v704_v37  ;;  %v625_v51 = vunpack.c.h.bf16 %v704_v37  ;;  %v314_v54 = vld [vmem:[%s1217_s3 + $0xd0] sm:$0xff]  ;;  %v315_v55 = vld [vmem:[%s1217_s3 + $0xd8] sm:$0xff]  ;;  %s549_s15 = sshll.u32 %s748_s14, 4  ;;  %s550_s15 = int_to_ptr.vmem [resolvable:$true] %s549_s15 }
  0x23   :  { %503 = vst [vmem:[#allocation2 + $0xb8] sm:$0xff] %v439_v39  ;;  %v248_v52 = vadd.f32 %v790_v5, %v177_v42  ;;  %v249_v53 = vadd.f32 %v790_v5, %v178_v43  ;;  %v181_v56 = vmul.f32 %v620_v44, %v782_v1  ;;  %v182_v57 = vmul.f32 %v621_v45, %v782_v1  ;;  %v316_v60 = vld [vmem:[%s1217_s3 + $0xe0] sm:$0xff]  ;;  %v317_v61 = vld [vmem:[%s1217_s3 + $0xe8] sm:$0xff]  ;;  %v318_v6 = vld [vmem:[%s1217_s3 + $0xf0] sm:$0xff]  ;;  %p729_p1 = scmp.lt.s32.totalorder %s550_s15, %s550_s15 }
  0x24   :  { %v250_v58 = vadd.f32 %v790_v5, %v179_v48  ;;  %v251_v59 = vadd.f32 %v790_v5, %v180_v49  ;;  %v183_v62 = vmul.f32 %v624_v50, %v782_v1  ;;  %v184_v63 = vmul.f32 %v625_v51, %v782_v1  ;;  %v319_v7 = vld [vmem:[%s1217_s3 + $0xf8] sm:$0xff]  ;;  %v705_v12 = vld [vmem:[%s1214_s0 + $0x80] sm:$0xff]   ;;  %v706_v17 = vld [vmem:[%s1214_s0 + $0x88] sm:$0xff]  }
  0x25   :  { %v376_v0 = vadd.f32 %v312_v46, %v248_v52  ;;  %v377_v2 = vadd.f32 %v313_v47, %v249_v53  ;;  %v252_v3 = vadd.f32 %v790_v5, %v181_v56  ;;  %v253_v4 = vadd.f32 %v790_v5, %v182_v57  ;;  %v707_v22 = vld [vmem:[%s1214_s0 + $0x90] sm:$0xff]   ;;  %v708_v27 = vld [vmem:[%s1214_s0 + $0x98] sm:$0xff]   ;;  %v320_v36 = vld [vmem:[%s1217_s3 + $0x100] sm:$0xff] }
  0x26   :  { %v378_v8 = vadd.f32 %v314_v54, %v250_v58  ;;  %v379_v9 = vadd.f32 %v315_v55, %v251_v59  ;;  %v254_v10 = vadd.f32 %v790_v5, %v183_v62  ;;  %v255_v11 = vadd.f32 %v790_v5, %v184_v63  ;;  %v321_v37 = vld [vmem:[%s1217_s3 + $0x108] sm:$0xff]  ;;  %v322_v44 = vld [vmem:[%s1217_s3 + $0x110] sm:$0xff]  ;;  %v323_v45 = vld [vmem:[%s1217_s3 + $0x118] sm:$0xff] }
  0x27   :  { %v440_v13 = vmax.f32 %v376_v0, 0.0  ;;  %v441_v14 = vmax.f32 %v377_v2, 0.0  ;;  %v380_v15 = vadd.f32 %v316_v60, %v252_v3  ;;  %v381_v16 = vadd.f32 %v317_v61, %v253_v4  ;;  %v324_v50 = vld [vmem:[%s1217_s3 + $0x120] sm:$0xff]  ;;  %v325_v51 = vld [vmem:[%s1217_s3 + $0x128] sm:$0xff]  ;;  %v326_v58 = vld [vmem:[%s1217_s3 + $0x130] sm:$0xff] }
  0x28   :  { %v442_v18 = vmax.f32 %v378_v8, 0.0  ;;  %v443_v19 = vmax.f32 %v379_v9, 0.0  ;;  %v382_v20 = vadd.f32 %v318_v6, %v254_v10  ;;  %v383_v21 = vadd.f32 %v319_v7, %v255_v11  ;;  %v327_v59 = vld [vmem:[%s1217_s3 + $0x138] sm:$0xff]  ;;  %v709_v0 = vld [vmem:[%s1214_s0 + $0xa0] sm:$0xff]   ;;  %v710_v7 = vld [vmem:[%s1214_s0 + $0xa8] sm:$0xff]  }
  0x29   :  { %504 = vst [vmem:[#allocation2 + $0xc0] sm:$0xff] %v440_v13  ;;  %505 = vst [vmem:[#allocation2 + $0xc8] sm:$0xff] %v441_v14  ;;  %v444_v23 = vmax.f32 %v380_v15, 0.0  ;;  %v445_v24 = vmax.f32 %v381_v16, 0.0  ;;  %v628_v25 = vunpack.c.l.bf16 %v705_v12  ;;  %v629_v26 = vunpack.c.h.bf16 %v705_v12  ;;  %v711_v12 = vld [vmem:[%s1214_s0 + $0xb0] sm:$0xff]  }
  0x2a   :  { %506 = vst [vmem:[#allocation2 + $0xd0] sm:$0xff] %v442_v18  ;;  %507 = vst [vmem:[#allocation2 + $0xd8] sm:$0xff] %v443_v19  ;;  %v446_v28 = vmax.f32 %v382_v20, 0.0  ;;  %v447_v29 = vmax.f32 %v383_v21, 0.0  ;;  %v632_v30 = vunpack.c.l.bf16 %v706_v17  ;;  %v633_v31 = vunpack.c.h.bf16 %v706_v17  ;;  %v712_v17 = vld [vmem:[%s1214_s0 + $0xb8] sm:$0xff]  }
  0x2b   :  { %508 = vst [vmem:[#allocation2 + $0xe0] sm:$0xff] %v444_v23  ;;  %509 = vst [vmem:[#allocation2 + $0xe8] sm:$0xff] %v445_v24  ;;  %v185_v32 = vmul.f32 %v628_v25, %v782_v1  ;;  %v186_v33 = vmul.f32 %v629_v26, %v782_v1  ;;  %v636_v34 = vunpack.c.l.bf16 %v707_v22  ;;  %v637_v35 = vunpack.c.h.bf16 %v707_v22  ;;  %v328_v26 = vld [vmem:[%s1217_s3 + $0x140] sm:$0xff] }
  0x2c   :  { %510 = vst [vmem:[#allocation2 + $0xf0] sm:$0xff] %v446_v28  ;;  %511 = vst [vmem:[#allocation2 + $0xf8] sm:$0xff] %v447_v29  ;;  %v187_v38 = vmul.f32 %v632_v30, %v782_v1  ;;  %v188_v39 = vmul.f32 %v633_v31, %v782_v1  ;;  %v640_v40 = vunpack.c.l.bf16 %v708_v27  ;;  %v641_v41 = vunpack.c.h.bf16 %v708_v27  ;;  %v329_v27 = vld [vmem:[%s1217_s3 + $0x148] sm:$0xff] }
  0x2d   :  { %v256_v42 = vadd.f32 %v790_v5, %v185_v32  ;;  %v257_v43 = vadd.f32 %v790_v5, %v186_v33  ;;  %v189_v46 = vmul.f32 %v636_v34, %v782_v1  ;;  %v190_v47 = vmul.f32 %v637_v35, %v782_v1  ;;  %v330_v34 = vld [vmem:[%s1217_s3 + $0x150] sm:$0xff]  ;;  %v331_v35 = vld [vmem:[%s1217_s3 + $0x158] sm:$0xff] }
  0x2e   :  { %v258_v48 = vadd.f32 %v790_v5, %v187_v38  ;;  %v259_v49 = vadd.f32 %v790_v5, %v188_v39  ;;  %v191_v52 = vmul.f32 %v640_v40, %v782_v1  ;;  %v192_v53 = vmul.f32 %v641_v41, %v782_v1  ;;  %v332_v40 = vld [vmem:[%s1217_s3 + $0x160] sm:$0xff]  ;;  %v333_v41 = vld [vmem:[%s1217_s3 + $0x168] sm:$0xff] }
  0x2f   :  { %v384_v54 = vadd.f32 %v320_v36, %v256_v42  ;;  %v385_v55 = vadd.f32 %v321_v37, %v257_v43  ;;  %v260_v56 = vadd.f32 %v790_v5, %v189_v46  ;;  %v261_v57 = vadd.f32 %v790_v5, %v190_v47 }
  0x30   :  { %v386_v60 = vadd.f32 %v322_v44, %v258_v48  ;;  %v387_v61 = vadd.f32 %v323_v45, %v259_v49  ;;  %v262_v62 = vadd.f32 %v790_v5, %v191_v52  ;;  %v263_v63 = vadd.f32 %v790_v5, %v192_v53  ;;  %v334_v48 = vld [vmem:[%s1217_s3 + $0x170] sm:$0xff]  ;;  %v335_v49 = vld [vmem:[%s1217_s3 + $0x178] sm:$0xff] }
  0x31   :  { %v448_v2 = vmax.f32 %v384_v54, 0.0  ;;  %v449_v3 = vmax.f32 %v385_v55, 0.0  ;;  %v388_v4 = vadd.f32 %v324_v50, %v260_v56  ;;  %v389_v6 = vadd.f32 %v325_v51, %v261_v57  ;;  %v713_v54 = vld [vmem:[%s1214_s0 + $0xc0] sm:$0xff]  }
  0x32   :  { %v450_v8 = vmax.f32 %v386_v60, 0.0  ;;  %v451_v9 = vmax.f32 %v387_v61, 0.0  ;;  %v390_v10 = vadd.f32 %v326_v58, %v262_v62  ;;  %v391_v11 = vadd.f32 %v327_v59, %v263_v63  ;;  %v714_v59 = vld [vmem:[%s1214_s0 + $0xc8] sm:$0xff]  }
  0x33   :  { %512 = vst [vmem:[#allocation2 + $0x100] sm:$0xff] %v448_v2  ;;  %513 = vst [vmem:[#allocation2 + $0x108] sm:$0xff] %v449_v3  ;;  %v452_v13 = vmax.f32 %v388_v4, 0.0  ;;  %v453_v14 = vmax.f32 %v389_v6, 0.0  ;;  %v644_v15 = vunpack.c.l.bf16 %v709_v0  ;;  %v645_v16 = vunpack.c.h.bf16 %v709_v0  ;;  %v715_v0 = vld [vmem:[%s1214_s0 + $0xd0] sm:$0xff]  }
  0x34   :  { %514 = vst [vmem:[#allocation2 + $0x110] sm:$0xff] %v450_v8  ;;  %515 = vst [vmem:[#allocation2 + $0x118] sm:$0xff] %v451_v9  ;;  %v454_v18 = vmax.f32 %v390_v10, 0.0  ;;  %v455_v19 = vmax.f32 %v391_v11, 0.0  ;;  %v648_v20 = vunpack.c.l.bf16 %v710_v7  ;;  %v649_v21 = vunpack.c.h.bf16 %v710_v7  ;;  %v716_v7 = vld [vmem:[%s1214_s0 + $0xd8] sm:$0xff]  }
  0x35   :  { %516 = vst [vmem:[#allocation2 + $0x120] sm:$0xff] %v452_v13  ;;  %517 = vst [vmem:[#allocation2 + $0x128] sm:$0xff] %v453_v14  ;;  %v193_v22 = vmul.f32 %v644_v15, %v782_v1  ;;  %v194_v23 = vmul.f32 %v645_v16, %v782_v1  ;;  %v652_v24 = vunpack.c.l.bf16 %v711_v12  ;;  %v653_v25 = vunpack.c.h.bf16 %v711_v12  ;;  %v336_v16 = vld [vmem:[%s1217_s3 + $0x180] sm:$0xff] }
  0x36   :  { %518 = vst [vmem:[#allocation2 + $0x130] sm:$0xff] %v454_v18  ;;  %519 = vst [vmem:[#allocation2 + $0x138] sm:$0xff] %v455_v19  ;;  %v195_v28 = vmul.f32 %v648_v20, %v782_v1  ;;  %v196_v29 = vmul.f32 %v649_v21, %v782_v1  ;;  %v656_v30 = vunpack.c.l.bf16 %v712_v17  ;;  %v657_v31 = vunpack.c.h.bf16 %v712_v17  ;;  %v337_v17 = vld [vmem:[%s1217_s3 + $0x188] sm:$0xff] }
  0x37   :  { %v264_v32 = vadd.f32 %v790_v5, %v193_v22  ;;  %v265_v33 = vadd.f32 %v790_v5, %v194_v23  ;;  %v197_v36 = vmul.f32 %v652_v24, %v782_v1  ;;  %v198_v37 = vmul.f32 %v653_v25, %v782_v1  ;;  %v338_v24 = vld [vmem:[%s1217_s3 + $0x190] sm:$0xff]  ;;  %v339_v25 = vld [vmem:[%s1217_s3 + $0x198] sm:$0xff] }
  0x38   :  { %v266_v38 = vadd.f32 %v790_v5, %v195_v28  ;;  %v267_v39 = vadd.f32 %v790_v5, %v196_v29  ;;  %v199_v42 = vmul.f32 %v656_v30, %v782_v1  ;;  %v200_v43 = vmul.f32 %v657_v31, %v782_v1  ;;  %v340_v30 = vld [vmem:[%s1217_s3 + $0x1a0] sm:$0xff]  ;;  %v341_v31 = vld [vmem:[%s1217_s3 + $0x1a8] sm:$0xff] }
  0x39   :  { %v392_v44 = vadd.f32 %v328_v26, %v264_v32  ;;  %v393_v45 = vadd.f32 %v329_v27, %v265_v33  ;;  %v268_v46 = vadd.f32 %v790_v5, %v197_v36  ;;  %v269_v47 = vadd.f32 %v790_v5, %v198_v37 }
  0x3a   :  { %v394_v50 = vadd.f32 %v330_v34, %v266_v38  ;;  %v395_v51 = vadd.f32 %v331_v35, %v267_v39  ;;  %v270_v52 = vadd.f32 %v790_v5, %v199_v42  ;;  %v271_v53 = vadd.f32 %v790_v5, %v200_v43  ;;  %v342_v38 = vld [vmem:[%s1217_s3 + $0x1b0] sm:$0xff]  ;;  %v343_v39 = vld [vmem:[%s1217_s3 + $0x1b8] sm:$0xff] }
  0x3b   :  { %v456_v55 = vmax.f32 %v392_v44, 0.0  ;;  %v457_v56 = vmax.f32 %v393_v45, 0.0  ;;  %v396_v57 = vadd.f32 %v332_v40, %v268_v46  ;;  %v397_v58 = vadd.f32 %v333_v41, %v269_v47  ;;  %v717_v44 = vld [vmem:[%s1214_s0 + $0xe0] sm:$0xff]  }
  0x3c   :  { %v458_v60 = vmax.f32 %v394_v50, 0.0  ;;  %v459_v61 = vmax.f32 %v395_v51, 0.0  ;;  %v398_v62 = vadd.f32 %v334_v48, %v270_v52  ;;  %v399_v63 = vadd.f32 %v335_v49, %v271_v53  ;;  %v718_v49 = vld [vmem:[%s1214_s0 + $0xe8] sm:$0xff]  }
  0x3d   :  { %520 = vst [vmem:[#allocation2 + $0x140] sm:$0xff] %v456_v55  ;;  %521 = vst [vmem:[#allocation2 + $0x148] sm:$0xff] %v457_v56  ;;  %v460_v2 = vmax.f32 %v396_v57, 0.0  ;;  %v461_v3 = vmax.f32 %v397_v58, 0.0  ;;  %v660_v4 = vunpack.c.l.bf16 %v713_v54  ;;  %v661_v6 = vunpack.c.h.bf16 %v713_v54  ;;  %v719_v54 = vld [vmem:[%s1214_s0 + $0xf0] sm:$0xff]  }
  0x3e   :  { %522 = vst [vmem:[#allocation2 + $0x150] sm:$0xff] %v458_v60  ;;  %523 = vst [vmem:[#allocation2 + $0x158] sm:$0xff] %v459_v61  ;;  %v462_v8 = vmax.f32 %v398_v62, 0.0  ;;  %v463_v9 = vmax.f32 %v399_v63, 0.0  ;;  %v664_v10 = vunpack.c.l.bf16 %v714_v59  ;;  %v665_v11 = vunpack.c.h.bf16 %v714_v59  ;;  %v720_v59 = vld [vmem:[%s1214_s0 + $0xf8] sm:$0xff]  }
  0x3f   :  { %524 = vst [vmem:[#allocation2 + $0x160] sm:$0xff] %v460_v2  ;;  %525 = vst [vmem:[#allocation2 + $0x168] sm:$0xff] %v461_v3  ;;  %v201_v12 = vmul.f32 %v660_v4, %v782_v1  ;;  %v202_v13 = vmul.f32 %v661_v6, %v782_v1  ;;  %v668_v14 = vunpack.c.l.bf16 %v715_v0  ;;  %v669_v15 = vunpack.c.h.bf16 %v715_v0  ;;  %v344_v6 = vld [vmem:[%s1217_s3 + $0x1c0] sm:$0xff] }
  0x40   :  { %526 = vst [vmem:[#allocation2 + $0x170] sm:$0xff] %v462_v8  ;;  %527 = vst [vmem:[#allocation2 + $0x178] sm:$0xff] %v463_v9  ;;  %v203_v18 = vmul.f32 %v664_v10, %v782_v1  ;;  %v204_v19 = vmul.f32 %v665_v11, %v782_v1  ;;  %v672_v20 = vunpack.c.l.bf16 %v716_v7  ;;  %v673_v21 = vunpack.c.h.bf16 %v716_v7  ;;  %v345_v7 = vld [vmem:[%s1217_s3 + $0x1c8] sm:$0xff] }
  0x41   :  { %v272_v22 = vadd.f32 %v790_v5, %v201_v12  ;;  %v273_v23 = vadd.f32 %v790_v5, %v202_v13  ;;  %v205_v26 = vmul.f32 %v668_v14, %v782_v1  ;;  %v206_v27 = vmul.f32 %v669_v15, %v782_v1  ;;  %v346_v14 = vld [vmem:[%s1217_s3 + $0x1d0] sm:$0xff]  ;;  %v347_v15 = vld [vmem:[%s1217_s3 + $0x1d8] sm:$0xff] }
  0x42   :  { %v274_v28 = vadd.f32 %v790_v5, %v203_v18  ;;  %v275_v29 = vadd.f32 %v790_v5, %v204_v19  ;;  %v207_v32 = vmul.f32 %v672_v20, %v782_v1  ;;  %v208_v33 = vmul.f32 %v673_v21, %v782_v1  ;;  %v348_v20 = vld [vmem:[%s1217_s3 + $0x1e0] sm:$0xff]  ;;  %v349_v21 = vld [vmem:[%s1217_s3 + $0x1e8] sm:$0xff] }
  0x43   :  { %v400_v34 = vadd.f32 %v336_v16, %v272_v22  ;;  %v401_v35 = vadd.f32 %v337_v17, %v273_v23  ;;  %v276_v36 = vadd.f32 %v790_v5, %v205_v26  ;;  %v277_v37 = vadd.f32 %v790_v5, %v206_v27 }
  0x44   :  { %v402_v40 = vadd.f32 %v338_v24, %v274_v28  ;;  %v403_v41 = vadd.f32 %v339_v25, %v275_v29  ;;  %v278_v42 = vadd.f32 %v790_v5, %v207_v32  ;;  %v279_v43 = vadd.f32 %v790_v5, %v208_v33  ;;  %v350_v28 = vld [vmem:[%s1217_s3 + $0x1f0] sm:$0xff]  ;;  %v351_v29 = vld [vmem:[%s1217_s3 + $0x1f8] sm:$0xff]  ;;  %s724_s3 = scalar_lea.vmem %s550_s15, 8192 }
  0x45   :  { %v464_v45 = vmax.f32 %v400_v34, 0.0  ;;  %v465_v46 = vmax.f32 %v401_v35, 0.0  ;;  %v404_v47 = vadd.f32 %v340_v30, %v276_v36  ;;  %v405_v48 = vadd.f32 %v341_v31, %v277_v37  ;;  %p725_p0 = scmp.ne.s32.totalorder %s550_s15, %s724_s3  ;;  %p730_p2 = scmp.lt.s32.totalorder %s724_s3, %s724_s3 }
  0x46   :  { %v466_v50 = vmax.f32 %v402_v40, 0.0  ;;  %v467_v51 = vmax.f32 %v403_v41, 0.0  ;;  %v406_v52 = vadd.f32 %v342_v38, %v278_v42  ;;  %v407_v53 = vadd.f32 %v343_v39, %v279_v43 }
  0x47   :  { %528 = vst [vmem:[#allocation2 + $0x180] sm:$0xff] %v464_v45  ;;  %529 = vst [vmem:[#allocation2 + $0x188] sm:$0xff] %v465_v46  ;;  %v468_v55 = vmax.f32 %v404_v47, 0.0  ;;  %v469_v56 = vmax.f32 %v405_v48, 0.0  ;;  %v676_v57 = vunpack.c.l.bf16 %v717_v44  ;;  %v677_v58 = vunpack.c.h.bf16 %v717_v44  ;;  %p731_p3 = por %p730_p2, %p729_p1 }
  0x48   :  { %530 = vst [vmem:[#allocation2 + $0x190] sm:$0xff] %v466_v50  ;;  %531 = vst [vmem:[#allocation2 + $0x198] sm:$0xff] %v467_v51  ;;  %v470_v60 = vmax.f32 %v406_v52, 0.0  ;;  %v471_v61 = vmax.f32 %v407_v53, 0.0  ;;  %v680_v62 = vunpack.c.l.bf16 %v718_v49  ;;  %v681_v63 = vunpack.c.h.bf16 %v718_v49 }
  0x49   :  { %532 = vst [vmem:[#allocation2 + $0x1a0] sm:$0xff] %v468_v55  ;;  %533 = vst [vmem:[#allocation2 + $0x1a8] sm:$0xff] %v469_v56  ;;  %v209_v0 = vmul.f32 %v676_v57, %v782_v1  ;;  %v210_v2 = vmul.f32 %v677_v58, %v782_v1  ;;  %v684_v3 = vunpack.c.l.bf16 %v719_v54  ;;  %v685_v4 = vunpack.c.h.bf16 %v719_v54  ;;  %p732_p4 = pnand %p731_p3, %p725_p0 }
  0x4a   :  { %534 = vst [vmem:[#allocation2 + $0x1b0] sm:$0xff] %v470_v60  ;;  %535 = vst [vmem:[#allocation2 + $0x1b8] sm:$0xff] %v471_v61  ;;  %v211_v8 = vmul.f32 %v680_v62, %v782_v1  ;;  %v212_v9 = vmul.f32 %v681_v63, %v782_v1  ;;  %v688_v10 = vunpack.c.l.bf16 %v720_v59  ;;  %v689_v11 = vunpack.c.h.bf16 %v720_v59 }
  0x4b   :  { %v280_v12 = vadd.f32 %v790_v5, %v209_v0  ;;  %v281_v13 = vadd.f32 %v790_v5, %v210_v2  ;;  %v213_v16 = vmul.f32 %v684_v3, %v782_v1  ;;  %v214_v17 = vmul.f32 %v685_v4, %v782_v1 }
  0x4c   :  { %v282_v18 = vadd.f32 %v790_v5, %v211_v8  ;;  %v283_v19 = vadd.f32 %v790_v5, %v212_v9  ;;  %v215_v22 = vmul.f32 %v688_v10, %v782_v1  ;;  %v216_v23 = vmul.f32 %v689_v11, %v782_v1 }
  0x4d   :  { %v408_v24 = vadd.f32 %v344_v6, %v280_v12  ;;  %v409_v25 = vadd.f32 %v345_v7, %v281_v13  ;;  %v284_v26 = vadd.f32 %v790_v5, %v213_v16  ;;  %v285_v27 = vadd.f32 %v790_v5, %v214_v17 }
  0x4e   :  { %v410_v30 = vadd.f32 %v346_v14, %v282_v18  ;;  %v411_v31 = vadd.f32 %v347_v15, %v283_v19  ;;  %v286_v32 = vadd.f32 %v790_v5, %v215_v22  ;;  %v287_v1 = vadd.f32 %v790_v5, %v216_v23 }
  0x4f   :  { %v472_v33 = vmax.f32 %v408_v24, 0.0  ;;  %v473_v34 = vmax.f32 %v409_v25, 0.0  ;;  %v412_v35 = vadd.f32 %v348_v20, %v284_v26  ;;  %v413_v36 = vadd.f32 %v349_v21, %v285_v27 }
  0x50   :  { %v474_v37 = vmax.f32 %v410_v30, 0.0  ;;  %v475_v38 = vmax.f32 %v411_v31, 0.0  ;;  %v414_v39 = vadd.f32 %v350_v28, %v286_v32  ;;  %v415_v40 = vadd.f32 %v351_v29, %v287_v1 }
  0x51   :  { %536 = vst [vmem:[#allocation2 + $0x1c0] sm:$0xff] %v472_v33  ;;  %537 = vst [vmem:[#allocation2 + $0x1c8] sm:$0xff] %v473_v34  ;;  %v476_v41 = vmax.f32 %v412_v35, 0.0  ;;  %v477_v42 = vmax.f32 %v413_v36, 0.0 }
  0x52   :  { %538 = vst [vmem:[#allocation2 + $0x1d0] sm:$0xff] %v474_v37  ;;  %539 = vst [vmem:[#allocation2 + $0x1d8] sm:$0xff] %v475_v38  ;;  %v478_v43 = vmax.f32 %v414_v39, 0.0  ;;  %v479_v44 = vmax.f32 %v415_v40, 0.0 }
  0x53   :  { %540 = vst [vmem:[#allocation2 + $0x1e0] sm:$0xff] %v476_v41  ;;  %541 = vst [vmem:[#allocation2 + $0x1e8] sm:$0xff] %v477_v42 }
  0x54   :  { %542 = vst [vmem:[#allocation2 + $0x1f0] sm:$0xff] %v478_v43  ;;  %543 = vst [vmem:[#allocation2 + $0x1f8] sm:$0xff] %v479_v44 }
  0x55   :  { %735 = shalt.err (!%p732_p4)
}
  0x56   :  { %s736_s18 = scalar_lea.hbm %s1218_s4, 8192 }
  0x57   :  { %p737_p5 = scmp.ne.s32.totalorder %s1218_s4, %s736_s18  ;;  %p740_p6 = scmp.lt.u32.totalorder %s736_s18, %s1218_s4 }
  0x59   :  { %p742_p7 = pnand %p740_p6, %p737_p5 }
  0x5b   :  { %745 = shalt.err (!%p742_p7)
}
  0x5c   :  { %s749_s23 = smov 128   ;;  %s750_s24 = smov 8  }
  0x5d   :  { %555 = dma.vmem_to_hbm [thread:$0]  %s550_s15, 8192, %s1218_s4, [#allocation3], %s749_s23, %s749_s23, %s750_s24  }
  0x5e   :  { %746 = dma.done.wait [#allocation3], 8192  }
  0x5f   :  { %747 = vsyncadd [#allocation3], 4294959104 }
  0x60   :  { %559 = vsyncpa [#allocation3], 1 }

// kernel: bottleneck_forward.4
= control target key start
LH: loop header
LB: loop body
LE: loop exit
PB: predicated region body
PF: predicated region fallthrough
CT: control target
= control target key end

     0   :  { %vm879_vm0 = vcmask 257024   ;;  %vm944_vm1 = vcmask 261120   ;;  %vm1078_vm2 = vcmask 253952   ;;  %s2384_s1 = inlined_call_operand.vmem [shape: bf16[128,32], index: 1, kind: input, shape index: {}]   ;;  %s2385_s0 = inlined_call_operand.vmem [shape: bf16[512,128], index: 0, kind: input, shape index: {}]   ;;  %s2386_s2 = inlined_call_operand.vmem [shape: bf16[512,32], index: 2, kind: output, shape index: {0}]   ;;  %s2387_s3 = inlined_call_operand.vmem [shape: f32[1,2,32], index: 3, kind: output, shape index: {1}]  }
   0x1   :  { %v1590_v0 = vld [vmem:[%s2384_s1] sm:$0xff]   ;;  %v1591_v1 = vld [vmem:[%s2384_s1 + $0x8] sm:$0xff]   ;;  %v1592_v2 = vld [vmem:[%s2384_s1 + $0x10] sm:$0xff]  }
   0x2   :  { %1494 = vmatprep.subr.bf16.mxu0 %v1590_v0  ;;  %1574 = vmatprep.subr.bf16.mxu1 %v1590_v0  ;;  %v1593_v3 = vld [vmem:[%s2384_s1 + $0x18] sm:$0xff]   ;;  %v1598_v4 = vld [vmem:[%s2385_s0] sm:$0xff]   ;;  %v1595_v6 = vld [vmem:[%s2384_s1 + $0x28] sm:$0xff]  }
   0x3   :  { %1495 = vmatpush3.bf16.msra.mxu0 %v1590_v0  ;;  %1582 = vmatpush3.bf16.msra.mxu1 %v1590_v0  ;;  %v1594_v5 = vld [vmem:[%s2384_s1 + $0x20] sm:$0xff]   ;;  %v1596_v7 = vld [vmem:[%s2384_s1 + $0x30] sm:$0xff]   ;;  %v1597_v8 = vld [vmem:[%s2384_s1 + $0x38] sm:$0xff]  }
   0x4   :  { %1496 = vmatprep.subr.bf16.mxu0 %v1591_v1  ;;  %1575 = vmatprep.subr.bf16.mxu1 %v1591_v1  ;;  %v1614_v9 = vld [vmem:[%s2385_s0 + $0x80] sm:$0xff]   ;;  %v1599_v10 = vld [vmem:[%s2385_s0 + $0x8] sm:$0xff]   ;;  %v1600_v11 = vld [vmem:[%s2385_s0 + $0x10] sm:$0xff]  }
   0x5   :  { %1510 = vmatprep.mubr.bf16.mxu0 %v1598_v4  ;;  %1542 = vmatprep.mubr.bf16.mxu1 %v1614_v9  ;;  %v1615_v12 = vld [vmem:[%s2385_s0 + $0x88] sm:$0xff]   ;;  %v1616_v13 = vld [vmem:[%s2385_s0 + $0x90] sm:$0xff]   ;;  %v1601_v14 = vld [vmem:[%s2385_s0 + $0x18] sm:$0xff]  }
   0x6   :  { %v1602_v15 = vld [vmem:[%s2385_s0 + $0x20] sm:$0xff]   ;;  %v1617_v16 = vld [vmem:[%s2385_s0 + $0x98] sm:$0xff]   ;;  %v1603_v18 = vld [vmem:[%s2385_s0 + $0x28] sm:$0xff]  }
   0x7   :  { %1497 = vmatpush3.bf16.msra.mxu0 %v1591_v1  ;;  %1583 = vmatpush3.bf16.msra.mxu1 %v1591_v1  ;;  %v1618_v17 = vld [vmem:[%s2385_s0 + $0xa0] sm:$0xff]   ;;  %v1619_v19 = vld [vmem:[%s2385_s0 + $0xa8] sm:$0xff]   ;;  %v1604_v20 = vld [vmem:[%s2385_s0 + $0x30] sm:$0xff]  }
   0x8   :  { %1498 = vmatprep.subr.bf16.mxu0 %v1592_v2  ;;  %1576 = vmatprep.subr.bf16.mxu1 %v1592_v2  ;;  %v1620_v21 = vld [vmem:[%s2385_s0 + $0xb0] sm:$0xff]   ;;  %v1605_v22 = vld [vmem:[%s2385_s0 + $0x38] sm:$0xff]   ;;  %v1606_v24 = vld [vmem:[%s2385_s0 + $0x40] sm:$0xff]  }
   0x9   :  { %v1621_v23 = vld [vmem:[%s2385_s0 + $0xb8] sm:$0xff]   ;;  %v1622_v25 = vld [vmem:[%s2385_s0 + $0xc0] sm:$0xff]   ;;  %v1607_v26 = vld [vmem:[%s2385_s0 + $0x48] sm:$0xff]  }
   0xa   :  { %v1623_v27 = vld [vmem:[%s2385_s0 + $0xc8] sm:$0xff]   ;;  %v1608_v28 = vld [vmem:[%s2385_s0 + $0x50] sm:$0xff]   ;;  %v1609_v30 = vld [vmem:[%s2385_s0 + $0x58] sm:$0xff]  }
   0xb   :  { %1499 = vmatpush3.bf16.msra.mxu0 %v1592_v2  ;;  %1584 = vmatpush3.bf16.msra.mxu1 %v1592_v2  ;;  %v1624_v29 = vld [vmem:[%s2385_s0 + $0xd0] sm:$0xff]   ;;  %v1625_v31 = vld [vmem:[%s2385_s0 + $0xd8] sm:$0xff]   ;;  %v1610_v32 = vld [vmem:[%s2385_s0 + $0x60] sm:$0xff]  }
   0xc   :  { %1500 = vmatprep.subr.bf16.mxu0 %v1593_v3  ;;  %1577 = vmatprep.subr.bf16.mxu1 %v1593_v3  ;;  %v1626_v33 = vld [vmem:[%s2385_s0 + $0xe0] sm:$0xff]   ;;  %v1611_v34 = vld [vmem:[%s2385_s0 + $0x68] sm:$0xff]   ;;  %v1612_v36 = vld [vmem:[%s2385_s0 + $0x70] sm:$0xff]  }
   0xd   :  { %v1627_v35 = vld [vmem:[%s2385_s0 + $0xe8] sm:$0xff]   ;;  %v1628_v37 = vld [vmem:[%s2385_s0 + $0xf0] sm:$0xff]   ;;  %v1613_v38 = vld [vmem:[%s2385_s0 + $0x78] sm:$0xff]  }
   0xe   :  { %v1629_v39 = vld [vmem:[%s2385_s0 + $0xf8] sm:$0xff]  }
   0xf   :  { %1501 = vmatpush3.bf16.msra.mxu0 %v1593_v3  ;;  %1585 = vmatpush3.bf16.msra.mxu1 %v1593_v3 }
  0x10   :  { %1502 = vmatprep.subr.bf16.mxu0 %v1594_v5  ;;  %1578 = vmatprep.subr.bf16.mxu1 %v1594_v5 }
  0x13   :  { %1503 = vmatpush3.bf16.msra.mxu0 %v1594_v5  ;;  %1586 = vmatpush3.bf16.msra.mxu1 %v1594_v5 }
  0x14   :  { %1504 = vmatprep.subr.bf16.mxu0 %v1595_v6  ;;  %1579 = vmatprep.subr.bf16.mxu1 %v1595_v6 }
  0x17   :  { %1505 = vmatpush3.bf16.msra.mxu0 %v1595_v6  ;;  %1587 = vmatpush3.bf16.msra.mxu1 %v1595_v6 }
  0x18   :  { %1506 = vmatprep.subr.bf16.mxu0 %v1596_v7  ;;  %1580 = vmatprep.subr.bf16.mxu1 %v1596_v7 }
  0x1b   :  { %1507 = vmatpush3.bf16.msra.mxu0 %v1596_v7  ;;  %1588 = vmatpush3.bf16.msra.mxu1 %v1596_v7 }
  0x1c   :  { %1508 = vmatprep.subr.bf16.mxu0 %v1597_v8  ;;  %1581 = vmatprep.subr.bf16.mxu1 %v1597_v8 }
  0x1f   :  { %1509 = vmatpush3.bf16.msra.mxu0 %v1597_v8  ;;  %1589 = vmatpush3.bf16.msra.mxu1 %v1597_v8 }
  0x22   :  { %1511 = vmatmul.mubr.bf16.vlgmr.msra.gmra.mrb[0].mxu0 %v1599_v10  ;;  %1543 = vmatmul.mubr.bf16.vlgmr.msra.gmra.mrb[0].mxu1 %v1615_v12 }
  0x23   :  { %1514 = vmatprep.mubr.bf16.mxu0 %v1600_v11  ;;  %1546 = vmatprep.mubr.bf16.mxu1 %v1616_v13 }
  0x2a   :  { %1515 = vmatmul.mubr.bf16.gmra.mrb[4].mxu0 %v1601_v14  ;;  %1547 = vmatmul.mubr.bf16.gmra.mrb[4].mxu1 %v1617_v16 }
  0x2b   :  { %1518 = vmatprep.mubr.bf16.mxu0 %v1602_v15  ;;  %1550 = vmatprep.mubr.bf16.mxu1 %v1618_v17 }
  0x32   :  { %1519 = vmatmul.mubr.bf16.gmra.mrb[8].mxu0 %v1603_v18  ;;  %1551 = vmatmul.mubr.bf16.gmra.mrb[8].mxu1 %v1619_v19 }
  0x33   :  { %1522 = vmatprep.mubr.bf16.mxu0 %v1604_v20  ;;  %1554 = vmatprep.mubr.bf16.mxu1 %v1620_v21 }
  0x3a   :  { %1523 = vmatmul.mubr.bf16.gmra.mrb[12].mxu0 %v1605_v22  ;;  %1555 = vmatmul.mubr.bf16.gmra.mrb[12].mxu1 %v1621_v23 }
  0x3b   :  { %1526 = vmatprep.mubr.bf16.mxu0 %v1606_v24  ;;  %1558 = vmatprep.mubr.bf16.mxu1 %v1622_v25 }
  0x42   :  { %1527 = vmatmul.mubr.bf16.gmra.mrb[16].mxu0 %v1607_v26  ;;  %1559 = vmatmul.mubr.bf16.gmra.mrb[16].mxu1 %v1623_v27 }
  0x43   :  { %1530 = vmatprep.mubr.bf16.mxu0 %v1608_v28  ;;  %1562 = vmatprep.mubr.bf16.mxu1 %v1624_v29 }
  0x4a   :  { %1531 = vmatmul.mubr.bf16.gmra.mrb[20].mxu0 %v1609_v30  ;;  %1563 = vmatmul.mubr.bf16.gmra.mrb[20].mxu1 %v1625_v31 }
  0x4b   :  { %1534 = vmatprep.mubr.bf16.mxu0 %v1610_v32  ;;  %1566 = vmatprep.mubr.bf16.mxu1 %v1626_v33 }
  0x52   :  { %1535 = vmatmul.mubr.bf16.gmra.mrb[24].mxu0 %v1611_v34  ;;  %1567 = vmatmul.mubr.bf16.gmra.mrb[24].mxu1 %v1627_v35 }
  0x53   :  { %1538 = vmatprep.mubr.bf16.mxu0 %v1612_v36  ;;  %1570 = vmatprep.mubr.bf16.mxu1 %v1628_v37 }
  0x5a   :  { %1539 = vmatmul.mubr.bf16.gmra.mrb[28].mxu0 %v1613_v38  ;;  %1571 = vmatmul.mubr.bf16.gmra.mrb[28].mxu1 %v1629_v39 }
  0xf5   :  { %v1512_v40 = vpop.f32.mrb[0].mxu0  ;;  %v1770_v41 = vpop.f32.mrb[0].mxu1 }
  0xf6   :  { %v1392_v42 = vpack.c.bf16 %v1512_v40, %v1512_v40  ;;  %v368_v43 = vpop.f32.mrb[1].mxu0  ;;  %v1424_v44 = vpack.c.bf16 %v1770_v41, %v1770_v41  ;;  %v1774_v45 = vpop.f32.mrb[1].mxu1  ;;  %v1082_v50 = vmul.f32 %v1512_v40, %v1512_v40  ;;  %v948_v61 = vsel %vm944_vm1, %v1512_v40, 0.0 }
  0xf7   :  { %v1390_v46 = vpack.c.bf16 %v368_v43, %v368_v43  ;;  %v1080_v47 = vmul.f32 %v368_v43, %v368_v43  ;;  %v1513_v48 = vpop.f32.mrb[2].mxu0  ;;  %v1776_v49 = vpop.f32.mrb[2].mxu1  ;;  %v945_v54 = vsel %vm944_vm1, %v368_v43, 0.0  ;;  %v1422_v60 = vpack.c.bf16 %v1774_v45, %v1774_v45 }
  0xf8   :  { %882 = vst.msk [vmem:[%s2386_s2 + $0x8] sm:$0xf] %vm879_vm0, %v1392_v42  ;;  %v1393_v51 = vpack.c.bf16 %v1513_v48, %v1513_v48  ;;  %v371_v52 = vpop.f32.mrb[3].mxu0  ;;  %914 = vst.msk [vmem:[%s2386_s2 + $0x88] sm:$0xf] %vm879_vm0, %v1424_v44  ;;  %v1786_v53 = vpop.f32.mrb[3].mxu1  ;;  %v1083_v58 = vmul.f32 %v1513_v48, %v1513_v48  ;;  %v1425_v0 = vpack.c.bf16 %v1776_v49, %v1776_v49 }
  0xf9   :  { %880 = vst.msk [vmem:[%s2386_s2] sm:$0xf] %vm879_vm0, %v1390_v46  ;;  %v1391_v55 = vpack.c.bf16 %v371_v52, %v371_v52  ;;  %v946_v56 = vsel %vm944_vm1, %v371_v52, 0.0  ;;  %v1081_v57 = vmul.f32 %v371_v52, %v371_v52  ;;  %v1144_v62 = vsel %vm944_vm1, %v1080_v47, 0.0  ;;  %912 = vst.msk [vmem:[%s2386_s2 + $0x80] sm:$0xf] %vm879_vm0, %v1422_v60 }
  0xfa   :  { %883 = vst.msk [vmem:[%s2386_s2 + $0xc] sm:$0xf] %vm879_vm0, %v1393_v51  ;;  %v947_v59 = vadd.f32 %v946_v56, %v945_v54  ;;  %v1147_v3 = vsel %vm944_vm1, %v1082_v50, 0.0  ;;  %915 = vst.msk [vmem:[%s2386_s2 + $0x8c] sm:$0xf] %vm879_vm0, %v1425_v0  ;;  %v1423_v5 = vpack.c.bf16 %v1786_v53, %v1786_v53  ;;  %v950_v7 = vsel %vm944_vm1, %v1513_v48, 0.0 }
  0xfb   :  { %881 = vst.msk [vmem:[%s2386_s2 + $0x4] sm:$0xf] %vm879_vm0, %v1391_v55  ;;  %v1145_v63 = vsel %vm944_vm1, %v1081_v57, 0.0  ;;  %v1149_v8 = vsel %vm944_vm1, %v1083_v58, 0.0 }
  0xfc   :  { %v949_v1 = vadd.f32 %v948_v61, %v947_v59  ;;  %v1146_v2 = vadd.f32 %v1145_v63, %v1144_v62  ;;  %913 = vst.msk [vmem:[%s2386_s2 + $0x84] sm:$0xf] %vm879_vm0, %v1423_v5 }
  0xfd   :  { %v1516_v4 = vpop.f32.mrb[4].mxu0  ;;  %v1820_v6 = vpop.f32.mrb[4].mxu1 }
  0xfe   :  { %v1148_v9 = vadd.f32 %v1147_v3, %v1146_v2  ;;  %v1396_v10 = vpack.c.bf16 %v1516_v4, %v1516_v4  ;;  %v384_v11 = vpop.f32.mrb[5].mxu0  ;;  %v1824_v12 = vpop.f32.mrb[5].mxu1  ;;  %v951_v14 = vadd.f32 %v950_v7, %v949_v1  ;;  %v1086_v26 = vmul.f32 %v1516_v4, %v1516_v4 }
  0xff   :  { %v1394_v13 = vpack.c.bf16 %v384_v11, %v384_v11  ;;  %v952_v15 = vsel %vm944_vm1, %v384_v11, 0.0  ;;  %v1084_v16 = vmul.f32 %v384_v11, %v384_v11  ;;  %v1517_v17 = vpop.f32.mrb[6].mxu0  ;;  %v1831_v18 = vpop.f32.mrb[6].mxu1  ;;  %v1428_v31 = vpack.c.bf16 %v1820_v6, %v1820_v6 }
 0x100   :  { %886 = vst.msk [vmem:[%s2386_s2 + $0x18] sm:$0xf] %vm879_vm0, %v1396_v10  ;;  %v1150_v19 = vadd.f32 %v1149_v8, %v1148_v9  ;;  %v1397_v20 = vpack.c.bf16 %v1517_v17, %v1517_v17  ;;  %v387_v21 = vpop.f32.mrb[7].mxu0  ;;  %v1837_v22 = vpop.f32.mrb[7].mxu1  ;;  %v953_v23 = vadd.f32 %v952_v15, %v951_v14  ;;  %v956_v32 = vsel %vm944_vm1, %v1516_v4, 0.0 }
 0x101   :  { %884 = vst.msk [vmem:[%s2386_s2 + $0x10] sm:$0xf] %vm879_vm0, %v1394_v13  ;;  %v1151_v24 = vsel %vm944_vm1, %v1084_v16, 0.0  ;;  %v1395_v25 = vpack.c.bf16 %v387_v21, %v387_v21  ;;  %v954_v28 = vsel %vm944_vm1, %v387_v21, 0.0  ;;  %v1085_v29 = vmul.f32 %v387_v21, %v387_v21  ;;  %918 = vst.msk [vmem:[%s2386_s2 + $0x98] sm:$0xf] %vm879_vm0, %v1428_v31 }
 0x102   :  { %v1152_v27 = vadd.f32 %v1151_v24, %v1150_v19  ;;  %887 = vst.msk [vmem:[%s2386_s2 + $0x1c] sm:$0xf] %vm879_vm0, %v1397_v20  ;;  %v955_v30 = vadd.f32 %v954_v28, %v953_v23  ;;  %v1087_v33 = vmul.f32 %v1517_v17, %v1517_v17  ;;  %v1426_v35 = vpack.c.bf16 %v1824_v12, %v1824_v12 }
 0x103   :  { %885 = vst.msk [vmem:[%s2386_s2 + $0x14] sm:$0xf] %vm879_vm0, %v1395_v25  ;;  %v1153_v34 = vsel %vm944_vm1, %v1085_v29, 0.0  ;;  %v1155_v40 = vsel %vm944_vm1, %v1086_v26, 0.0  ;;  %v958_v42 = vsel %vm944_vm1, %v1517_v17, 0.0  ;;  %v1429_v5 = vpack.c.bf16 %v1831_v18, %v1831_v18 }
 0x104   :  { %v957_v36 = vadd.f32 %v956_v32, %v955_v30  ;;  %v1154_v37 = vadd.f32 %v1153_v34, %v1152_v27  ;;  %916 = vst.msk [vmem:[%s2386_s2 + $0x90] sm:$0xf] %vm879_vm0, %v1426_v35  ;;  %v1157_v55 = vsel %vm944_vm1, %v1087_v33, 0.0  ;;  %v1427_v14 = vpack.c.bf16 %v1837_v22, %v1837_v22 }
 0x105   :  { %v1520_v38 = vpop.f32.mrb[8].mxu0  ;;  %v1863_v39 = vpop.f32.mrb[8].mxu1  ;;  %919 = vst.msk [vmem:[%s2386_s2 + $0x9c] sm:$0xf] %vm879_vm0, %v1429_v5 }
 0x106   :  { %v1400_v43 = vpack.c.bf16 %v1520_v38, %v1520_v38  ;;  %v400_v44 = vpop.f32.mrb[9].mxu0  ;;  %v1871_v46 = vpop.f32.mrb[9].mxu1  ;;  %v1156_v47 = vadd.f32 %v1155_v40, %v1154_v37  ;;  %v959_v50 = vadd.f32 %v958_v42, %v957_v36  ;;  %v1090_v63 = vmul.f32 %v1520_v38, %v1520_v38  ;;  %917 = vst.msk [vmem:[%s2386_s2 + $0x94] sm:$0xf] %vm879_vm0, %v1427_v14 }
 0x107   :  { %v1398_v48 = vpack.c.bf16 %v400_v44, %v400_v44  ;;  %v960_v51 = vsel %vm944_vm1, %v400_v44, 0.0  ;;  %v1521_v52 = vpop.f32.mrb[10].mxu0  ;;  %v1874_v54 = vpop.f32.mrb[10].mxu1  ;;  %v1088_v56 = vmul.f32 %v400_v44, %v400_v44  ;;  %v964_v7 = vsel %vm944_vm1, %v1520_v38, 0.0 }
 0x108   :  { %890 = vst.msk [vmem:[%s2386_s2 + $0x28] sm:$0xf] %vm879_vm0, %v1400_v43  ;;  %v1401_v57 = vpack.c.bf16 %v1521_v52, %v1521_v52  ;;  %v403_v58 = vpop.f32.mrb[11].mxu0  ;;  %v1881_v59 = vpop.f32.mrb[11].mxu1  ;;  %v961_v60 = vadd.f32 %v960_v51, %v959_v50  ;;  %v1158_v61 = vadd.f32 %v1157_v55, %v1156_v47  ;;  %v1091_v8 = vmul.f32 %v1521_v52, %v1521_v52 }
 0x109   :  { %888 = vst.msk [vmem:[%s2386_s2 + $0x20] sm:$0xf] %vm879_vm0, %v1398_v48  ;;  %v1399_v62 = vpack.c.bf16 %v403_v58, %v403_v58  ;;  %v1159_v0 = vsel %vm944_vm1, %v1088_v56, 0.0  ;;  %v962_v1 = vsel %vm944_vm1, %v403_v58, 0.0  ;;  %v1089_v2 = vmul.f32 %v403_v58, %v403_v58 }
 0x10a   :  { %891 = vst.msk [vmem:[%s2386_s2 + $0x2c] sm:$0xf] %vm879_vm0, %v1401_v57  ;;  %v1160_v3 = vadd.f32 %v1159_v0, %v1158_v61  ;;  %v963_v4 = vadd.f32 %v962_v1, %v961_v60  ;;  %v1163_v16 = vsel %vm944_vm1, %v1090_v63, 0.0  ;;  %v966_v17 = vsel %vm944_vm1, %v1521_v52, 0.0 }
 0x10b   :  { %889 = vst.msk [vmem:[%s2386_s2 + $0x24] sm:$0xf] %vm879_vm0, %v1399_v62  ;;  %v1161_v9 = vsel %vm944_vm1, %v1089_v2, 0.0  ;;  %v1165_v29 = vsel %vm944_vm1, %v1091_v8, 0.0  ;;  %v1432_v47 = vpack.c.bf16 %v1863_v39, %v1863_v39  ;;  %v1430_v57 = vpack.c.bf16 %v1871_v46, %v1871_v46 }
 0x10c   :  { %v965_v10 = vadd.f32 %v964_v7, %v963_v4  ;;  %v1162_v11 = vadd.f32 %v1161_v9, %v1160_v3 }
 0x10d   :  { %v1524_v13 = vpop.f32.mrb[12].mxu0  ;;  %v1907_v15 = vpop.f32.mrb[12].mxu1  ;;  %922 = vst.msk [vmem:[%s2386_s2 + $0xa8] sm:$0xf] %vm879_vm0, %v1432_v47  ;;  %920 = vst.msk [vmem:[%s2386_s2 + $0xa0] sm:$0xf] %vm879_vm0, %v1430_v57 }
 0x10e   :  { %v1404_v19 = vpack.c.bf16 %v1524_v13, %v1524_v13  ;;  %v416_v20 = vpop.f32.mrb[13].mxu0  ;;  %v1911_v21 = vpop.f32.mrb[13].mxu1  ;;  %v1164_v23 = vadd.f32 %v1163_v16, %v1162_v11  ;;  %v967_v25 = vadd.f32 %v966_v17, %v965_v10  ;;  %v1094_v37 = vmul.f32 %v1524_v13, %v1524_v13 }
 0x10f   :  { %v1402_v24 = vpack.c.bf16 %v416_v20, %v416_v20  ;;  %v968_v26 = vsel %vm944_vm1, %v416_v20, 0.0  ;;  %v1525_v27 = vpop.f32.mrb[14].mxu0  ;;  %v1918_v28 = vpop.f32.mrb[14].mxu1  ;;  %v1092_v30 = vmul.f32 %v416_v20, %v416_v20  ;;  %v972_v48 = vsel %vm944_vm1, %v1524_v13, 0.0 }
 0x110   :  { %894 = vst.msk [vmem:[%s2386_s2 + $0x38] sm:$0xf] %vm879_vm0, %v1404_v19  ;;  %v1405_v31 = vpack.c.bf16 %v1525_v27, %v1525_v27  ;;  %v419_v32 = vpop.f32.mrb[15].mxu0  ;;  %v1925_v33 = vpop.f32.mrb[15].mxu1  ;;  %v969_v34 = vadd.f32 %v968_v26, %v967_v25  ;;  %v1166_v35 = vadd.f32 %v1165_v29, %v1164_v23  ;;  %v1095_v50 = vmul.f32 %v1525_v27, %v1525_v27 }
 0x111   :  { %892 = vst.msk [vmem:[%s2386_s2 + $0x30] sm:$0xf] %vm879_vm0, %v1402_v24  ;;  %v1403_v36 = vpack.c.bf16 %v419_v32, %v419_v32  ;;  %v1167_v38 = vsel %vm944_vm1, %v1092_v30, 0.0  ;;  %v970_v40 = vsel %vm944_vm1, %v419_v32, 0.0  ;;  %v1093_v42 = vmul.f32 %v419_v32, %v419_v32 }
 0x112   :  { %895 = vst.msk [vmem:[%s2386_s2 + $0x3c] sm:$0xf] %vm879_vm0, %v1405_v31  ;;  %v1168_v43 = vadd.f32 %v1167_v38, %v1166_v35  ;;  %v971_v44 = vadd.f32 %v970_v40, %v969_v34  ;;  %v1171_v60 = vsel %vm944_vm1, %v1094_v37, 0.0  ;;  %v974_v61 = vsel %vm944_vm1, %v1525_v27, 0.0 }
 0x113   :  { %893 = vst.msk [vmem:[%s2386_s2 + $0x34] sm:$0xf] %vm879_vm0, %v1403_v36  ;;  %v1169_v51 = vsel %vm944_vm1, %v1093_v42, 0.0  ;;  %v1173_v8 = vsel %vm944_vm1, %v1095_v50, 0.0  ;;  %v1433_v27 = vpack.c.bf16 %v1874_v54, %v1874_v54  ;;  %v1431_v36 = vpack.c.bf16 %v1881_v59, %v1881_v59 }
 0x114   :  { %v973_v52 = vadd.f32 %v972_v48, %v971_v44  ;;  %v1170_v55 = vadd.f32 %v1169_v51, %v1168_v43 }
 0x115   :  { %v1528_v56 = vpop.f32.mrb[16].mxu0  ;;  %v1951_v58 = vpop.f32.mrb[16].mxu1  ;;  %923 = vst.msk [vmem:[%s2386_s2 + $0xac] sm:$0xf] %vm879_vm0, %v1433_v27  ;;  %921 = vst.msk [vmem:[%s2386_s2 + $0xa4] sm:$0xf] %vm879_vm0, %v1431_v36 }
 0x116   :  { %v1408_v62 = vpack.c.bf16 %v1528_v56, %v1528_v56  ;;  %v432_v63 = vpop.f32.mrb[17].mxu0  ;;  %v1955_v0 = vpop.f32.mrb[17].mxu1  ;;  %v1172_v1 = vadd.f32 %v1171_v60, %v1170_v55  ;;  %v975_v3 = vadd.f32 %v974_v61, %v973_v52  ;;  %v1098_v19 = vmul.f32 %v1528_v56, %v1528_v56 }
 0x117   :  { %v1406_v2 = vpack.c.bf16 %v432_v63, %v432_v63  ;;  %v976_v4 = vsel %vm944_vm1, %v432_v63, 0.0  ;;  %v1529_v5 = vpop.f32.mrb[18].mxu0  ;;  %v1962_v7 = vpop.f32.mrb[18].mxu1  ;;  %v1096_v9 = vmul.f32 %v432_v63, %v432_v63  ;;  %v980_v29 = vsel %vm944_vm1, %v1528_v56, 0.0 }
 0x118   :  { %898 = vst.msk [vmem:[%s2386_s2 + $0x48] sm:$0xf] %vm879_vm0, %v1408_v62  ;;  %v1409_v10 = vpack.c.bf16 %v1529_v5, %v1529_v5  ;;  %v435_v11 = vpop.f32.mrb[19].mxu0  ;;  %v1969_v13 = vpop.f32.mrb[19].mxu1  ;;  %v977_v14 = vadd.f32 %v976_v4, %v975_v3  ;;  %v1174_v16 = vadd.f32 %v1173_v8, %v1172_v1  ;;  %v1099_v30 = vmul.f32 %v1529_v5, %v1529_v5 }
 0x119   :  { %896 = vst.msk [vmem:[%s2386_s2 + $0x40] sm:$0xf] %vm879_vm0, %v1406_v2  ;;  %v1407_v17 = vpack.c.bf16 %v435_v11, %v435_v11  ;;  %v1175_v20 = vsel %vm944_vm1, %v1096_v9, 0.0  ;;  %v978_v23 = vsel %vm944_vm1, %v435_v11, 0.0  ;;  %v1097_v24 = vmul.f32 %v435_v11, %v435_v11 }
 0x11a   :  { %899 = vst.msk [vmem:[%s2386_s2 + $0x4c] sm:$0xf] %vm879_vm0, %v1409_v10  ;;  %v1176_v25 = vadd.f32 %v1175_v20, %v1174_v16  ;;  %v979_v26 = vadd.f32 %v978_v23, %v977_v14  ;;  %v1179_v38 = vsel %vm944_vm1, %v1098_v19, 0.0  ;;  %v982_v40 = vsel %vm944_vm1, %v1529_v5, 0.0 }
 0x11b   :  { %897 = vst.msk [vmem:[%s2386_s2 + $0x44] sm:$0xf] %vm879_vm0, %v1407_v17  ;;  %v1177_v31 = vsel %vm944_vm1, %v1097_v24, 0.0  ;;  %v1181_v56 = vsel %vm944_vm1, %v1099_v30, 0.0  ;;  %v1436_v11 = vpack.c.bf16 %v1907_v15, %v1907_v15  ;;  %v1434_v24 = vpack.c.bf16 %v1911_v21, %v1911_v21 }
 0x11c   :  { %v981_v32 = vadd.f32 %v980_v29, %v979_v26  ;;  %v1178_v34 = vadd.f32 %v1177_v31, %v1176_v25 }
 0x11d   :  { %v1532_v35 = vpop.f32.mrb[20].mxu0  ;;  %v1995_v37 = vpop.f32.mrb[20].mxu1  ;;  %926 = vst.msk [vmem:[%s2386_s2 + $0xb8] sm:$0xf] %vm879_vm0, %v1436_v11  ;;  %924 = vst.msk [vmem:[%s2386_s2 + $0xb0] sm:$0xf] %vm879_vm0, %v1434_v24 }
 0x11e   :  { %v1412_v42 = vpack.c.bf16 %v1532_v35, %v1532_v35  ;;  %v448_v43 = vpop.f32.mrb[21].mxu0  ;;  %v1999_v44 = vpop.f32.mrb[21].mxu1  ;;  %v1180_v47 = vadd.f32 %v1179_v38, %v1178_v34  ;;  %v983_v50 = vadd.f32 %v982_v40, %v981_v32  ;;  %v1102_v3 = vmul.f32 %v1532_v35, %v1532_v35 }
 0x11f   :  { %v1410_v48 = vpack.c.bf16 %v448_v43, %v448_v43  ;;  %v984_v51 = vsel %vm944_vm1, %v448_v43, 0.0  ;;  %v1533_v52 = vpop.f32.mrb[22].mxu0  ;;  %v2006_v55 = vpop.f32.mrb[22].mxu1  ;;  %v1100_v57 = vmul.f32 %v448_v43, %v448_v43  ;;  %v988_v14 = vsel %vm944_vm1, %v1532_v35, 0.0 }
 0x120   :  { %902 = vst.msk [vmem:[%s2386_s2 + $0x58] sm:$0xf] %vm879_vm0, %v1412_v42  ;;  %v1413_v60 = vpack.c.bf16 %v1533_v52, %v1533_v52  ;;  %v451_v61 = vpop.f32.mrb[23].mxu0  ;;  %v2013_v62 = vpop.f32.mrb[23].mxu1  ;;  %v985_v63 = vadd.f32 %v984_v51, %v983_v50  ;;  %v1182_v1 = vadd.f32 %v1181_v56, %v1180_v47  ;;  %v1103_v16 = vmul.f32 %v1533_v52, %v1533_v52 }
 0x121   :  { %900 = vst.msk [vmem:[%s2386_s2 + $0x50] sm:$0xf] %vm879_vm0, %v1410_v48  ;;  %v1411_v2 = vpack.c.bf16 %v451_v61, %v451_v61  ;;  %v1183_v4 = vsel %vm944_vm1, %v1100_v57, 0.0  ;;  %v986_v5 = vsel %vm944_vm1, %v451_v61, 0.0  ;;  %v1101_v8 = vmul.f32 %v451_v61, %v451_v61 }
 0x122   :  { %903 = vst.msk [vmem:[%s2386_s2 + $0x5c] sm:$0xf] %vm879_vm0, %v1413_v60  ;;  %v1184_v9 = vadd.f32 %v1183_v4, %v1182_v1  ;;  %v987_v10 = vadd.f32 %v986_v5, %v985_v63  ;;  %v1187_v26 = vsel %vm944_vm1, %v1102_v3, 0.0  ;;  %v990_v27 = vsel %vm944_vm1, %v1533_v52, 0.0 }
 0x123   :  { %901 = vst.msk [vmem:[%s2386_s2 + $0x54] sm:$0xf] %vm879_vm0, %v1411_v2  ;;  %v1185_v17 = vsel %vm944_vm1, %v1101_v8, 0.0  ;;  %v1189_v42 = vsel %vm944_vm1, %v1103_v16, 0.0  ;;  %v1437_v3 = vpack.c.bf16 %v1918_v28, %v1918_v28 }
 0x124   :  { %v989_v19 = vadd.f32 %v988_v14, %v987_v10  ;;  %v1186_v20 = vadd.f32 %v1185_v17, %v1184_v9  ;;  %v1435_v14 = vpack.c.bf16 %v1925_v33, %v1925_v33 }
 0x125   :  { %v1536_v23 = vpop.f32.mrb[24].mxu0  ;;  %v2039_v25 = vpop.f32.mrb[24].mxu1  ;;  %927 = vst.msk [vmem:[%s2386_s2 + $0xbc] sm:$0xf] %vm879_vm0, %v1437_v3 }
 0x126   :  { %v1416_v29 = vpack.c.bf16 %v1536_v23, %v1536_v23  ;;  %v464_v30 = vpop.f32.mrb[25].mxu0  ;;  %v2043_v31 = vpop.f32.mrb[25].mxu1  ;;  %v1188_v32 = vadd.f32 %v1187_v26, %v1186_v20  ;;  %v991_v35 = vadd.f32 %v990_v27, %v989_v19  ;;  %v1106_v57 = vmul.f32 %v1536_v23, %v1536_v23  ;;  %925 = vst.msk [vmem:[%s2386_s2 + $0xb4] sm:$0xf] %vm879_vm0, %v1435_v14 }
 0x127   :  { %v1414_v34 = vpack.c.bf16 %v464_v30, %v464_v30  ;;  %v992_v36 = vsel %vm944_vm1, %v464_v30, 0.0  ;;  %v1537_v38 = vpop.f32.mrb[26].mxu0  ;;  %v2050_v40 = vpop.f32.mrb[26].mxu1  ;;  %v1104_v43 = vmul.f32 %v464_v30, %v464_v30  ;;  %v996_v4 = vsel %vm944_vm1, %v1536_v23, 0.0 }
 0x128   :  { %906 = vst.msk [vmem:[%s2386_s2 + $0x68] sm:$0xf] %vm879_vm0, %v1416_v29  ;;  %v1417_v47 = vpack.c.bf16 %v1537_v38, %v1537_v38  ;;  %v467_v48 = vpop.f32.mrb[27].mxu0  ;;  %v2057_v50 = vpop.f32.mrb[27].mxu1  ;;  %v993_v51 = vadd.f32 %v992_v36, %v991_v35  ;;  %v1190_v52 = vadd.f32 %v1189_v42, %v1188_v32  ;;  %v1107_v5 = vmul.f32 %v1537_v38, %v1537_v38 }
 0x129   :  { %904 = vst.msk [vmem:[%s2386_s2 + $0x60] sm:$0xf] %vm879_vm0, %v1414_v34  ;;  %v1415_v56 = vpack.c.bf16 %v467_v48, %v467_v48  ;;  %v1191_v60 = vsel %vm944_vm1, %v1104_v43, 0.0  ;;  %v994_v61 = vsel %vm944_vm1, %v467_v48, 0.0  ;;  %v1105_v63 = vmul.f32 %v467_v48, %v467_v48 }
 0x12a   :  { %907 = vst.msk [vmem:[%s2386_s2 + $0x6c] sm:$0xf] %vm879_vm0, %v1417_v47  ;;  %v1192_v1 = vadd.f32 %v1191_v60, %v1190_v52  ;;  %v995_v2 = vadd.f32 %v994_v61, %v993_v51  ;;  %v1195_v17 = vsel %vm944_vm1, %v1106_v57, 0.0  ;;  %v998_v19 = vsel %vm944_vm1, %v1537_v38, 0.0 }
 0x12b   :  { %905 = vst.msk [vmem:[%s2386_s2 + $0x64] sm:$0xf] %vm879_vm0, %v1415_v56  ;;  %v1193_v8 = vsel %vm944_vm1, %v1105_v63, 0.0  ;;  %v1197_v35 = vsel %vm944_vm1, %v1107_v5, 0.0  ;;  %v1112_v5 = vmul.f32 %v1774_v45, %v1774_v45 }
 0x12c   :  { %v997_v9 = vadd.f32 %v996_v4, %v995_v2  ;;  %v1194_v10 = vadd.f32 %v1193_v8, %v1192_v1  ;;  %v1440_v1 = vpack.c.bf16 %v1951_v58, %v1951_v58 }
 0x12d   :  { %v1540_v11 = vpop.f32.mrb[28].mxu0  ;;  %v2083_v16 = vpop.f32.mrb[28].mxu1 }
 0x12e   :  { %v1420_v20 = vpack.c.bf16 %v1540_v11, %v1540_v11  ;;  %v480_v23 = vpop.f32.mrb[29].mxu0  ;;  %v2087_v24 = vpop.f32.mrb[29].mxu1  ;;  %v1196_v26 = vadd.f32 %v1195_v17, %v1194_v10  ;;  %v999_v29 = vadd.f32 %v998_v19, %v997_v9  ;;  %v1110_v52 = vmul.f32 %v1540_v11, %v1540_v11  ;;  %930 = vst.msk [vmem:[%s2386_s2 + $0xc8] sm:$0xf] %vm879_vm0, %v1440_v1 }
 0x12f   :  { %v1418_v27 = vpack.c.bf16 %v480_v23, %v480_v23  ;;  %v1000_v30 = vsel %vm944_vm1, %v480_v23, 0.0  ;;  %v1541_v32 = vpop.f32.mrb[30].mxu0  ;;  %v2094_v34 = vpop.f32.mrb[30].mxu1  ;;  %v1108_v36 = vmul.f32 %v480_v23, %v480_v23  ;;  %v1004_v2 = vsel %vm944_vm1, %v1540_v11, 0.0 }
 0x130   :  { %910 = vst.msk [vmem:[%s2386_s2 + $0x78] sm:$0xf] %vm879_vm0, %v1420_v20  ;;  %v1421_v38 = vpack.c.bf16 %v1541_v32, %v1541_v32  ;;  %v483_v42 = vpop.f32.mrb[31].mxu0  ;;  %v2101_v43 = vpop.f32.mrb[31].mxu1  ;;  %v1001_v47 = vadd.f32 %v1000_v30, %v999_v29  ;;  %v1198_v48 = vadd.f32 %v1197_v35, %v1196_v26  ;;  %v1111_v3 = vmul.f32 %v1541_v32, %v1541_v32 }
 0x131   :  { %908 = vst.msk [vmem:[%s2386_s2 + $0x70] sm:$0xf] %vm879_vm0, %v1418_v27  ;;  %v1419_v51 = vpack.c.bf16 %v483_v42, %v483_v42  ;;  %v1199_v56 = vsel %vm944_vm1, %v1108_v36, 0.0  ;;  %v1002_v57 = vsel %vm944_vm1, %v483_v42, 0.0  ;;  %v1109_v60 = vmul.f32 %v483_v42, %v483_v42 }
 0x132   :  { %911 = vst.msk [vmem:[%s2386_s2 + $0x7c] sm:$0xf] %vm879_vm0, %v1421_v38  ;;  %v1200_v61 = vadd.f32 %v1199_v56, %v1198_v48  ;;  %v1003_v63 = vadd.f32 %v1002_v57, %v1001_v47  ;;  %v1438_v10 = vpack.c.bf16 %v1955_v0, %v1955_v0  ;;  %v1203_v14 = vsel %vm944_vm1, %v1110_v52, 0.0 }
 0x133   :  { %909 = vst.msk [vmem:[%s2386_s2 + $0x74] sm:$0xf] %vm879_vm0, %v1419_v51  ;;  %v1201_v4 = vsel %vm944_vm1, %v1109_v60, 0.0  ;;  %v1006_v11 = vsel %vm944_vm1, %v1541_v32, 0.0  ;;  %v1008_v17 = vsel %vm944_vm1, %v1774_v45, 0.0  ;;  %v1441_v19 = vpack.c.bf16 %v1962_v7, %v1962_v7 }
 0x134   :  { %v1005_v8 = vadd.f32 %v1004_v2, %v1003_v63  ;;  %v1202_v9 = vadd.f32 %v1201_v4, %v1200_v61  ;;  %928 = vst.msk [vmem:[%s2386_s2 + $0xc0] sm:$0xf] %vm879_vm0, %v1438_v10  ;;  %v1439_v26 = vpack.c.bf16 %v1969_v13, %v1969_v13  ;;  %v1205_v27 = vsel %vm944_vm1, %v1111_v3, 0.0 }
 0x135   :  { %v1207_v29 = vsel %vm944_vm1, %v1112_v5, 0.0  ;;  %v1113_v45 = vmul.f32 %v1786_v53, %v1786_v53  ;;  %931 = vst.msk [vmem:[%s2386_s2 + $0xcc] sm:$0xf] %vm879_vm0, %v1441_v19  ;;  %v1444_v30 = vpack.c.bf16 %v1995_v37, %v1995_v37  ;;  %v1114_v36 = vmul.f32 %v1770_v41, %v1770_v41 }
 0x136   :  { %v1204_v20 = vadd.f32 %v1203_v14, %v1202_v9  ;;  %v1007_v23 = vadd.f32 %v1006_v11, %v1005_v8  ;;  %929 = vst.msk [vmem:[%s2386_s2 + $0xc4] sm:$0xf] %vm879_vm0, %v1439_v26  ;;  %v1010_v38 = vsel %vm944_vm1, %v1786_v53, 0.0  ;;  %v1442_v42 = vpack.c.bf16 %v1999_v44, %v1999_v44 }
 0x137   :  { %934 = vst.msk [vmem:[%s2386_s2 + $0xd8] sm:$0xf] %vm879_vm0, %v1444_v30  ;;  %v1012_v47 = vsel %vm944_vm1, %v1770_v41, 0.0  ;;  %v1445_v52 = vpack.c.bf16 %v2006_v55, %v2006_v55  ;;  %v1115_v56 = vmul.f32 %v1776_v49, %v1776_v49  ;;  %v1209_v53 = vsel %vm944_vm1, %v1113_v45, 0.0 }
 0x138   :  { %v1009_v32 = vadd.f32 %v1008_v17, %v1007_v23  ;;  %v1206_v35 = vadd.f32 %v1205_v27, %v1204_v20  ;;  %v1116_v57 = vmul.f32 %v1824_v12, %v1824_v12  ;;  %932 = vst.msk [vmem:[%s2386_s2 + $0xd0] sm:$0xf] %vm879_vm0, %v1442_v42  ;;  %v1443_v41 = vpack.c.bf16 %v2013_v62, %v2013_v62 }
 0x139   :  { %935 = vst.msk [vmem:[%s2386_s2 + $0xdc] sm:$0xf] %vm879_vm0, %v1445_v52  ;;  %v1211_v63 = vsel %vm944_vm1, %v1114_v36, 0.0  ;;  %v1014_v1 = vsel %vm944_vm1, %v1776_v49, 0.0  ;;  %v1016_v2 = vsel %vm944_vm1, %v1824_v12, 0.0  ;;  %v1448_v3 = vpack.c.bf16 %v2039_v25, %v2039_v25 }
 0x13a   :  { %v1208_v48 = vadd.f32 %v1207_v29, %v1206_v35  ;;  %v1011_v51 = vadd.f32 %v1010_v38, %v1009_v32  ;;  %933 = vst.msk [vmem:[%s2386_s2 + $0xd4] sm:$0xf] %vm879_vm0, %v1443_v41  ;;  %v1446_v8 = vpack.c.bf16 %v2043_v31, %v2043_v31  ;;  %v1213_v9 = vsel %vm944_vm1, %v1115_v56, 0.0 }
 0x13b   :  { %v1215_v49 = vsel %vm944_vm1, %v1116_v57, 0.0  ;;  %v1117_v12 = vmul.f32 %v1837_v22, %v1837_v22  ;;  %938 = vst.msk [vmem:[%s2386_s2 + $0xe8] sm:$0xf] %vm879_vm0, %v1448_v3  ;;  %v1449_v10 = vpack.c.bf16 %v2050_v40, %v2050_v40  ;;  %v1118_v17 = vmul.f32 %v1820_v6, %v1820_v6 }
 0x13c   :  { %v1013_v60 = vadd.f32 %v1012_v47, %v1011_v51  ;;  %v1210_v61 = vadd.f32 %v1209_v53, %v1208_v48  ;;  %936 = vst.msk [vmem:[%s2386_s2 + $0xe0] sm:$0xf] %vm879_vm0, %v1446_v8  ;;  %v1018_v19 = vsel %vm944_vm1, %v1837_v22, 0.0  ;;  %v1447_v20 = vpack.c.bf16 %v2057_v50, %v2057_v50 }
 0x13d   :  { %939 = vst.msk [vmem:[%s2386_s2 + $0xec] sm:$0xf] %vm879_vm0, %v1449_v10  ;;  %v1020_v23 = vsel %vm944_vm1, %v1820_v6, 0.0  ;;  %v1452_v29 = vpack.c.bf16 %v2083_v16, %v2083_v16  ;;  %v1119_v45 = vmul.f32 %v1831_v18, %v1831_v18  ;;  %v1217_v22 = vsel %vm944_vm1, %v1117_v12, 0.0 }
 0x13e   :  { %v1212_v4 = vadd.f32 %v1211_v63, %v1210_v61  ;;  %v1015_v5 = vadd.f32 %v1014_v1, %v1013_v60  ;;  %v1120_v30 = vmul.f32 %v1871_v46, %v1871_v46  ;;  %937 = vst.msk [vmem:[%s2386_s2 + $0xe4] sm:$0xf] %vm879_vm0, %v1447_v20  ;;  %v1450_v6 = vpack.c.bf16 %v2087_v24, %v2087_v24 }
 0x13f   :  { %942 = vst.msk [vmem:[%s2386_s2 + $0xf8] sm:$0xf] %vm879_vm0, %v1452_v29  ;;  %v1219_v36 = vsel %vm944_vm1, %v1118_v17, 0.0  ;;  %v1022_v38 = vsel %vm944_vm1, %v1831_v18, 0.0  ;;  %v1024_v42 = vsel %vm944_vm1, %v1871_v46, 0.0  ;;  %v1453_v47 = vpack.c.bf16 %v2094_v34, %v2094_v34 }
 0x140   :  { %v1017_v14 = vadd.f32 %v1016_v2, %v1015_v5  ;;  %v1214_v11 = vadd.f32 %v1213_v9, %v1212_v4  ;;  %940 = vst.msk [vmem:[%s2386_s2 + $0xf0] sm:$0xf] %vm879_vm0, %v1450_v6  ;;  %v1451_v52 = vpack.c.bf16 %v2101_v43, %v2101_v43  ;;  %v1221_v56 = vsel %vm944_vm1, %v1119_v45, 0.0 }
 0x141   :  { %v1223_v18 = vsel %vm944_vm1, %v1120_v30, 0.0  ;;  %v1121_v46 = vmul.f32 %v1881_v59, %v1881_v59  ;;  %943 = vst.msk [vmem:[%s2386_s2 + $0xfc] sm:$0xf] %vm879_vm0, %v1453_v47  ;;  %v1122_v41 = vmul.f32 %v1863_v39, %v1863_v39  ;;  %v1026_v60 = vsel %vm944_vm1, %v1881_v59, 0.0 }
 0x142   :  { %v1216_v26 = vadd.f32 %v1215_v49, %v1214_v11  ;;  %v1019_v27 = vadd.f32 %v1018_v19, %v1017_v14  ;;  %941 = vst.msk [vmem:[%s2386_s2 + $0xf4] sm:$0xf] %vm879_vm0, %v1451_v52  ;;  %v1028_v1 = vsel %vm944_vm1, %v1863_v39, 0.0  ;;  %v1123_v2 = vmul.f32 %v1874_v54, %v1874_v54 }
 0x143   :  { %v1225_v3 = vsel %vm944_vm1, %v1121_v46, 0.0  ;;  %v1124_v4 = vmul.f32 %v1911_v21, %v1911_v21  ;;  %v1227_v9 = vsel %vm944_vm1, %v1122_v41, 0.0  ;;  %v1030_v59 = vsel %vm944_vm1, %v1874_v54, 0.0 }
 0x144   :  { %v1021_v32 = vadd.f32 %v1020_v23, %v1019_v27  ;;  %v1218_v35 = vadd.f32 %v1217_v22, %v1216_v26  ;;  %v1032_v49 = vsel %vm944_vm1, %v1911_v21, 0.0  ;;  %v1229_v10 = vsel %vm944_vm1, %v1123_v2, 0.0 }
 0x145   :  { %v1231_v14 = vsel %vm944_vm1, %v1124_v4, 0.0  ;;  %v1125_v11 = vmul.f32 %v1925_v33, %v1925_v33  ;;  %v1126_v20 = vmul.f32 %v1907_v15, %v1907_v15  ;;  %v1034_v54 = vsel %vm944_vm1, %v1925_v33, 0.0 }
 0x146   :  { %v1220_v48 = vadd.f32 %v1219_v36, %v1218_v35  ;;  %v1023_v51 = vadd.f32 %v1022_v38, %v1021_v32  ;;  %v1036_v21 = vsel %vm944_vm1, %v1907_v15, 0.0  ;;  %v1127_v27 = vmul.f32 %v1918_v28, %v1918_v28 }
 0x147   :  { %v1233_v29 = vsel %vm944_vm1, %v1125_v11, 0.0  ;;  %v1128_v45 = vmul.f32 %v1955_v0, %v1955_v0  ;;  %v1235_v6 = vsel %vm944_vm1, %v1126_v20, 0.0  ;;  %v1038_v33 = vsel %vm944_vm1, %v1918_v28, 0.0 }
 0x148   :  { %v1025_v53 = vadd.f32 %v1024_v42, %v1023_v51  ;;  %v1222_v57 = vadd.f32 %v1221_v56, %v1220_v48  ;;  %v1040_v32 = vsel %vm944_vm1, %v1955_v0, 0.0  ;;  %v1237_v36 = vsel %vm944_vm1, %v1127_v27, 0.0 }
 0x149   :  { %v1239_v38 = vsel %vm944_vm1, %v1128_v45, 0.0  ;;  %v1129_v42 = vmul.f32 %v1969_v13, %v1969_v13  ;;  %v1130_v51 = vmul.f32 %v1951_v58, %v1951_v58  ;;  %v1042_v28 = vsel %vm944_vm1, %v1969_v13, 0.0 }
 0x14a   :  { %v1224_v61 = vadd.f32 %v1223_v18, %v1222_v57  ;;  %v1027_v63 = vadd.f32 %v1026_v60, %v1025_v53  ;;  %v1044_v0 = vsel %vm944_vm1, %v1951_v58, 0.0  ;;  %v1131_v18 = vmul.f32 %v1962_v7, %v1962_v7 }
 0x14b   :  { %v1241_v46 = vsel %vm944_vm1, %v1129_v42, 0.0  ;;  %v1132_v53 = vmul.f32 %v1999_v44, %v1999_v44  ;;  %v1243_v60 = vsel %vm944_vm1, %v1130_v51, 0.0  ;;  %v1046_v13 = vsel %vm944_vm1, %v1962_v7, 0.0 }
 0x14c   :  { %v1029_v5 = vadd.f32 %v1028_v1, %v1027_v63  ;;  %v1226_v8 = vadd.f32 %v1225_v3, %v1224_v61  ;;  %v1048_v61 = vsel %vm944_vm1, %v1999_v44, 0.0  ;;  %v1245_v1 = vsel %vm944_vm1, %v1131_v18, 0.0 }
 0x14d   :  { %v1247_v2 = vsel %vm944_vm1, %v1132_v53, 0.0  ;;  %v1133_v3 = vmul.f32 %v2013_v62, %v2013_v62  ;;  %v1050_v7 = vsel %vm944_vm1, %v2013_v62, 0.0  ;;  %v1052_v44 = vsel %vm944_vm1, %v1995_v37, 0.0 }
 0x14e   :  { %v1228_v12 = vadd.f32 %v1227_v9, %v1226_v8  ;;  %v1031_v39 = vadd.f32 %v1030_v59, %v1029_v5  ;;  %v1134_v8 = vmul.f32 %v1995_v37, %v1995_v37  ;;  %v1054_v62 = vsel %vm944_vm1, %v2006_v55, 0.0 }
 0x14f   :  { %v1138_v27 = vmul.f32 %v2039_v25, %v2039_v25 }
 0x150   :  { %v1033_v17 = vadd.f32 %v1032_v49, %v1031_v39  ;;  %v1230_v19 = vadd.f32 %v1229_v10, %v1228_v12  ;;  %v1135_v49 = vmul.f32 %v2006_v55, %v2006_v55  ;;  %v1249_v12 = vsel %vm944_vm1, %v1133_v3, 0.0 }
 0x151   :  { %v1136_v39 = vmul.f32 %v2043_v31, %v2043_v31  ;;  %v1251_v11 = vsel %vm944_vm1, %v1134_v8, 0.0  ;;  %v1058_v55 = vsel %vm944_vm1, %v2057_v50, 0.0 }
 0x152   :  { %v1232_v23 = vadd.f32 %v1231_v14, %v1230_v19  ;;  %v1035_v26 = vadd.f32 %v1034_v54, %v1033_v17  ;;  %v1056_v17 = vsel %vm944_vm1, %v2043_v31, 0.0  ;;  %v1253_v20 = vsel %vm944_vm1, %v1135_v49, 0.0 }
 0x153   :  { %v1255_v54 = vsel %vm944_vm1, %v1136_v39, 0.0  ;;  %v1060_v31 = vsel %vm944_vm1, %v2039_v25, 0.0 }
 0x154   :  { %v1037_v22 = vadd.f32 %v1036_v21, %v1035_v26  ;;  %v1234_v30 = vadd.f32 %v1233_v29, %v1232_v23  ;;  %v1137_v23 = vmul.f32 %v2057_v50, %v2057_v50  ;;  %v1062_v50 = vsel %vm944_vm1, %v2050_v40, 0.0 }
 0x156   :  { %v1236_v35 = vadd.f32 %v1235_v6, %v1234_v30  ;;  %v1039_v15 = vadd.f32 %v1038_v33, %v1037_v22  ;;  %v1139_v22 = vmul.f32 %v2050_v40, %v2050_v40  ;;  %v1257_v30 = vsel %vm944_vm1, %v1137_v23, 0.0 }
 0x157   :  { %v1140_v6 = vmul.f32 %v2087_v24, %v2087_v24  ;;  %v1066_v40 = vsel %vm944_vm1, %v2101_v43, 0.0 }
 0x158   :  { %v1041_v47 = vadd.f32 %v1040_v32, %v1039_v15  ;;  %v1238_v48 = vadd.f32 %v1237_v36, %v1236_v35  ;;  %v1259_v35 = vsel %vm944_vm1, %v1138_v27, 0.0  ;;  %v1064_v15 = vsel %vm944_vm1, %v2087_v24, 0.0 }
 0x159   :  { %v1263_v42 = vsel %vm944_vm1, %v1140_v6, 0.0  ;;  %v1068_v24 = vsel %vm944_vm1, %v2083_v16, 0.0 }
 0x15a   :  { %v1240_v52 = vadd.f32 %v1239_v38, %v1238_v48  ;;  %v1043_v56 = vadd.f32 %v1042_v28, %v1041_v47  ;;  %v1261_v38 = vsel %vm944_vm1, %v1139_v22, 0.0  ;;  %v1141_v47 = vmul.f32 %v2101_v43, %v2101_v43 }
 0x15b   :  { %v1142_v28 = vmul.f32 %v2083_v16, %v2083_v16 }
 0x15c   :  { %v1045_v57 = vadd.f32 %v1044_v0, %v1043_v56  ;;  %v1242_v41 = vadd.f32 %v1241_v46, %v1240_v52  ;;  %v1143_v0 = vmul.f32 %v2094_v34, %v2094_v34  ;;  %v1265_v18 = vsel %vm944_vm1, %v1141_v47, 0.0 }
 0x15e   :  { %v1244_v63 = vadd.f32 %v1243_v60, %v1242_v41  ;;  %v1047_v58 = vadd.f32 %v1046_v13, %v1045_v57  ;;  %v1267_v57 = vsel %vm944_vm1, %v1142_v28, 0.0  ;;  %v1070_v41 = vsel %vm944_vm1, %v2094_v34, 0.0 }
 0x15f   :  { %v1269_v43 = vsel %vm944_vm1, %v1143_v0, 0.0 }
 0x160   :  { %v1049_v4 = vadd.f32 %v1048_v61, %v1047_v58  ;;  %v1246_v5 = vadd.f32 %v1245_v1, %v1244_v63 }
 0x162   :  { %v1248_v9 = vadd.f32 %v1247_v2, %v1246_v5  ;;  %v1051_v59 = vadd.f32 %v1050_v7, %v1049_v4 }
 0x164   :  { %v1053_v10 = vadd.f32 %v1052_v44, %v1051_v59  ;;  %v1250_v14 = vadd.f32 %v1249_v12, %v1248_v9 }
 0x166   :  { %v1252_v19 = vadd.f32 %v1251_v11, %v1250_v14  ;;  %v1055_v37 = vadd.f32 %v1054_v62, %v1053_v10 }
 0x168   :  { %v1057_v26 = vadd.f32 %v1056_v17, %v1055_v37  ;;  %v1254_v21 = vadd.f32 %v1253_v20, %v1252_v19 }
 0x16a   :  { %v1256_v29 = vadd.f32 %v1255_v54, %v1254_v21  ;;  %v1059_v45 = vadd.f32 %v1058_v55, %v1057_v26 }
 0x16c   :  { %v1061_v33 = vadd.f32 %v1060_v31, %v1059_v45  ;;  %v1258_v32 = vadd.f32 %v1257_v30, %v1256_v29 }
 0x16e   :  { %v1260_v36 = vadd.f32 %v1259_v35, %v1258_v32  ;;  %v1063_v25 = vadd.f32 %v1062_v50, %v1061_v33 }
 0x170   :  { %v1065_v48 = vadd.f32 %v1064_v15, %v1063_v25  ;;  %v1262_v51 = vadd.f32 %v1261_v38, %v1260_v36 }
 0x172   :  { %v1264_v52 = vadd.f32 %v1263_v42, %v1262_v51  ;;  %v1067_v56 = vadd.f32 %v1066_v40, %v1065_v48 }
 0x174   :  { %v1069_v46 = vadd.f32 %v1068_v24, %v1067_v56  ;;  %v1266_v53 = vadd.f32 %v1265_v18, %v1264_v52 }
 0x176   :  { %v1071_v60 = vadd.f32 %v1070_v41, %v1069_v46  ;;  %v1268_v13 = vadd.f32 %v1267_v57, %v1266_v53 }
 0x178   :  { %v1072_v61 = vrot.slane %v1071_v60, 4  ;;  %v1270_v63 = vadd.f32 %v1269_v43, %v1268_v13 }
 0x17a   :  { %v1073_v58 = vadd.f32 %v1072_v61, %v1071_v60  ;;  %v1271_v16 = vrot.slane %v1270_v63, 4 }
 0x17c   :  { %v1074_v1 = vrot.slane %v1073_v58, 2  ;;  %v1272_v2 = vadd.f32 %v1271_v16, %v1270_v63 }
 0x17e   :  { %v1075_v3 = vadd.f32 %v1074_v1, %v1073_v58  ;;  %v1273_v4 = vrot.slane %v1272_v2, 2 }
 0x180   :  { %v1076_v5 = vrot.slane %v1075_v3, 1  ;;  %v1274_v8 = vadd.f32 %v1273_v4, %v1272_v2 }
 0x182   :  { %v1077_v7 = vadd.f32 %v1076_v5, %v1075_v3  ;;  %v1275_v9 = vrot.slane %v1274_v8, 1 }
 0x184   :  { %1079 = vst.msk [vmem:[%s2387_s3] sm:$0x1] %vm1078_vm2, %v1077_v7  ;;  %v1276_v34 = vadd.f32 %v1275_v9, %v1274_v8 }
 0x186   :  { %1277 = vst.msk [vmem:[%s2387_s3 + $0x1] sm:$0x1] %vm1078_vm2, %v1276_v34 }

// kernel: bottleneck_forward.6
= control target key start
LH: loop header
LB: loop body
LE: loop exit
PB: predicated region body
PF: predicated region fallthrough
CT: control target
= control target key end

     0   :  { %vm402_vm0 = vcmask 261120   ;;  %s2530_s3 = inlined_call_operand.vmem [shape: bf16[32,128], index: 3, kind: input, shape index: {}]   ;;  %s2531_s0 = inlined_call_operand.vmem [shape: bf16[512,32], index: 0, kind: input, shape index: {}]   ;;  %s2532_s1 = inlined_call_operand.vmem [shape: f32[1,32], index: 1, kind: input, shape index: {}]   ;;  %s2533_s2 = inlined_call_operand.vmem [shape: f32[1,32], index: 2, kind: input, shape index: {}]   ;;  %s2534_s4 = inlined_call_operand.vmem [shape: bf16[512,128], index: 4, kind: output, shape index: {0}]   ;;  %s2535_s5 = inlined_call_operand.vmem [shape: f32[1,2,128], index: 5, kind: output, shape index: {1}]  }
   0x1   :  { %v1940_v0 = vld [vmem:[%s2530_s3] sm:$0xff]   ;;  %v1941_v1 = vld [vmem:[%s2530_s3 + $0x8] sm:$0xff]   ;;  %v1773_v7 = vld [vmem:[%s2531_s0 + $0x10] sm:$0xff]  }
   0x2   :  { %1868 = vmatprep.subr.bf16.mxu0 %v1940_v0  ;;  %v1485_v2 = vld [vmem:[%s2531_s0] sm:$0xff]   ;;  %1936 = vmatprep.subr.bf16.mxu1 %v1940_v0  ;;  %v1772_v6 = vld [vmem:[%s2531_s0 + $0x8] sm:$0xff]   ;;  %v1774_v8 = vld [vmem:[%s2531_s0 + $0x18] sm:$0xff]   ;;  %v1494_v12 = vunpack.c.l.bf16 %v1773_v7  ;;  %v1495_v13 = vunpack.c.h.bf16 %v1773_v7 }
   0x3   :  { %v1984_v3 = vld [vmem:[%s2532_s1] ss:$0 sm:$0xff]  ;;  %1869 = vmatpush3.bf16.msra.mxu0 %v1940_v0  ;;  %v1486_v4 = vunpack.c.l.bf16 %v1485_v2  ;;  %v1487_v5 = vunpack.c.h.bf16 %v1485_v2  ;;  %1938 = vmatpush3.bf16.msra.mxu1 %v1940_v0  ;;  %v1490_v10 = vunpack.c.l.bf16 %v1772_v6  ;;  %v1491_v11 = vunpack.c.h.bf16 %v1772_v6  ;;  %v1776_v35 = vld [vmem:[%s2531_s0 + $0x28] sm:$0xff]   ;;  %v1777_v40 = vld [vmem:[%s2531_s0 + $0x30] sm:$0xff]  }
   0x4   :  { %1870 = vmatprep.subr.bf16.mxu0 %v1941_v1  ;;  %v1998_v9 = vld [vmem:[%s2533_s2] ss:$0 sm:$0xff]  ;;  %1937 = vmatprep.subr.bf16.mxu1 %v1941_v1  ;;  %v1498_v16 = vunpack.c.l.bf16 %v1774_v8  ;;  %v1499_v17 = vunpack.c.h.bf16 %v1774_v8  ;;  %v159_v20 = vmul.f32 %v1494_v12, %v1984_v3  ;;  %v160_v21 = vmul.f32 %v1495_v13, %v1984_v3  ;;  %v1778_v51 = vld [vmem:[%s2531_s0 + $0x38] sm:$0xff]   ;;  %v1780_v8 = vld [vmem:[%s2531_s0 + $0x48] sm:$0xff]  }
   0x5   :  { %v155_v14 = vmul.f32 %v1486_v4, %v1984_v3  ;;  %v156_v15 = vmul.f32 %v1487_v5, %v1984_v3  ;;  %v157_v18 = vmul.f32 %v1490_v10, %v1984_v3  ;;  %v158_v19 = vmul.f32 %v1491_v11, %v1984_v3  ;;  %v1775_v30 = vld [vmem:[%s2531_s0 + $0x20] sm:$0xff]   ;;  %v1781_v11 = vld [vmem:[%s2531_s0 + $0x50] sm:$0xff]  }
   0x6   :  { %v161_v24 = vmul.f32 %v1498_v16, %v1984_v3  ;;  %v162_v25 = vmul.f32 %v1499_v17, %v1984_v3  ;;  %v230_v28 = vadd.f32 %v1998_v9, %v159_v20  ;;  %v231_v29 = vadd.f32 %v1998_v9, %v160_v21  ;;  %v1779_v63 = vld [vmem:[%s2531_s0 + $0x40] sm:$0xff]   ;;  %v1782_v20 = vld [vmem:[%s2531_s0 + $0x58] sm:$0xff]  }
   0x7   :  { %1871 = vmatpush3.bf16.msra.mxu0 %v1941_v1  ;;  %v226_v22 = vadd.f32 %v1998_v9, %v155_v14  ;;  %v227_v23 = vadd.f32 %v1998_v9, %v156_v15  ;;  %v228_v26 = vadd.f32 %v1998_v9, %v157_v18  ;;  %v229_v27 = vadd.f32 %v1998_v9, %v158_v19 }
   0x8   :  { %1939 = vmatpush3.bf16.msra.mxu1 %v1941_v1  ;;  %v232_v33 = vadd.f32 %v1998_v9, %v161_v24  ;;  %v233_v34 = vadd.f32 %v1998_v9, %v162_v25  ;;  %v294_v38 = vmax.f32 %v230_v28, 0.0  ;;  %v295_v39 = vmax.f32 %v231_v29, 0.0 }
   0x9   :  { %v290_v31 = vmax.f32 %v226_v22, 0.0  ;;  %v291_v32 = vmax.f32 %v227_v23, 0.0  ;;  %v292_v36 = vmax.f32 %v228_v26, 0.0  ;;  %v293_v37 = vmax.f32 %v229_v27, 0.0 }
   0xa   :  { %v1502_v42 = vunpack.c.l.bf16 %v1775_v30  ;;  %v356_v44 = vpack.c.bf16 %v295_v39, %v294_v38  ;;  %v1503_v45 = vunpack.c.h.bf16 %v1775_v30  ;;  %v1506_v46 = vunpack.c.l.bf16 %v1776_v35 }
   0xb   :  { %v354_v41 = vpack.c.bf16 %v291_v32, %v290_v31  ;;  %v355_v43 = vpack.c.bf16 %v293_v37, %v292_v36  ;;  %v296_v47 = vmax.f32 %v232_v33, 0.0  ;;  %v1507_v49 = vunpack.c.h.bf16 %v1776_v35  ;;  %v1783_v31 = vld [vmem:[%s2531_s0 + $0x60] sm:$0xff]  }
   0xc   :  { %v163_v48 = vmul.f32 %v1502_v42, %v1984_v3  ;;  %v1510_v50 = vunpack.c.l.bf16 %v1777_v40  ;;  %v297_v52 = vmax.f32 %v233_v34, 0.0  ;;  %v164_v53 = vmul.f32 %v1503_v45, %v1984_v3 }
   0xd   :  { %1872 = vmatprep.mubr.msk.bf16.mxu0 %vm402_vm0, %v354_v41  ;;  %v165_v54 = vmul.f32 %v1506_v46, %v1984_v3  ;;  %v1511_v55 = vunpack.c.h.bf16 %v1777_v40  ;;  %v166_v57 = vmul.f32 %v1507_v49, %v1984_v3  ;;  %v1514_v61 = vunpack.c.l.bf16 %v1778_v51 }
   0xe   :  { %1873 = vmatmul.mubr.msk.bf16.vlgmr.msra.gmra.mrb[0].mxu0 %vm402_vm0, %v355_v43  ;;  %v234_v56 = vadd.f32 %v1998_v9, %v163_v48  ;;  %v167_v58 = vmul.f32 %v1510_v50, %v1984_v3  ;;  %v235_v59 = vadd.f32 %v1998_v9, %v164_v53  ;;  %v1515_v62 = vunpack.c.h.bf16 %v1778_v51 }
   0xf   :  { %1876 = vmatprep.mubr.msk.bf16.mxu0 %vm402_vm0, %v356_v44  ;;  %v168_v60 = vmul.f32 %v1511_v55, %v1984_v3  ;;  %v236_v1 = vadd.f32 %v1998_v9, %v165_v54  ;;  %v237_v2 = vadd.f32 %v1998_v9, %v166_v57  ;;  %v357_v5 = vpack.c.bf16 %v297_v52, %v296_v47  ;;  %v1784_v44 = vld [vmem:[%s2531_s0 + $0x68] sm:$0xff]  }
  0x10   :  { %v298_v0 = vmax.f32 %v234_v56, 0.0  ;;  %v238_v4 = vadd.f32 %v1998_v9, %v167_v58  ;;  %v299_v6 = vmax.f32 %v235_v59, 0.0  ;;  %v1518_v10 = vunpack.c.l.bf16 %v1779_v63  ;;  %v1785_v56 = vld [vmem:[%s2531_s0 + $0x70] sm:$0xff]  }
  0x11   :  { %v239_v7 = vadd.f32 %v1998_v9, %v168_v60  ;;  %v169_v13 = vmul.f32 %v1514_v61, %v1984_v3  ;;  %v170_v14 = vmul.f32 %v1515_v62, %v1984_v3  ;;  %v1519_v15 = vunpack.c.h.bf16 %v1779_v63 }
  0x12   :  { %v358_v12 = vpack.c.bf16 %v299_v6, %v298_v0  ;;  %v300_v16 = vmax.f32 %v236_v1, 0.0  ;;  %v301_v17 = vmax.f32 %v237_v2, 0.0  ;;  %v302_v18 = vmax.f32 %v238_v4, 0.0  ;;  %v2094_v1 = vld [vmem:[%s2531_s0 + $0x78] sm:$0xff]   ;;  %v1787_v2 = vld [vmem:[%s2531_s0 + $0x80] sm:$0xff]  }
  0x13   :  { %v1522_v19 = vunpack.c.l.bf16 %v1780_v8  ;;  %v303_v21 = vmax.f32 %v239_v7, 0.0  ;;  %v171_v22 = vmul.f32 %v1518_v10, %v1984_v3  ;;  %v1523_v23 = vunpack.c.h.bf16 %v1780_v8 }
  0x14   :  { %v1526_v24 = vunpack.c.l.bf16 %v1781_v11  ;;  %v172_v25 = vmul.f32 %v1519_v15, %v1984_v3  ;;  %v1527_v27 = vunpack.c.h.bf16 %v1781_v11  ;;  %v1530_v30 = vunpack.c.l.bf16 %v1782_v20 }
  0x15   :  { %v173_v26 = vmul.f32 %v1522_v19, %v1984_v3  ;;  %v174_v28 = vmul.f32 %v1523_v23, %v1984_v3  ;;  %v240_v32 = vadd.f32 %v1998_v9, %v169_v13  ;;  %v241_v33 = vadd.f32 %v1998_v9, %v170_v14  ;;  %v1788_v19 = vld [vmem:[%s2531_s0 + $0x88] sm:$0xff]  }
  0x16   :  { %1877 = vmatmul.mubr.msk.bf16.gmra.mrb[4].mxu0 %vm402_vm0, %v357_v5  ;;  %v175_v29 = vmul.f32 %v1526_v24, %v1984_v3  ;;  %v176_v34 = vmul.f32 %v1527_v27, %v1984_v3  ;;  %v1531_v35 = vunpack.c.h.bf16 %v1782_v20  ;;  %v359_v36 = vpack.c.bf16 %v301_v17, %v300_v16  ;;  %v1789_v24 = vld [vmem:[%s2531_s0 + $0x90] sm:$0xff]  }
  0x17   :  { %1880 = vmatprep.mubr.msk.bf16.mxu0 %vm402_vm0, %v358_v12  ;;  %v360_v37 = vpack.c.bf16 %v303_v21, %v302_v18  ;;  %v242_v38 = vadd.f32 %v1998_v9, %v171_v22  ;;  %v177_v39 = vmul.f32 %v1530_v30, %v1984_v3  ;;  %v243_v40 = vadd.f32 %v1998_v9, %v172_v25 }
  0x18   :  { %v244_v41 = vadd.f32 %v1998_v9, %v173_v26  ;;  %v178_v42 = vmul.f32 %v1531_v35, %v1984_v3  ;;  %v1534_v43 = vunpack.c.l.bf16 %v1783_v31  ;;  %v245_v45 = vadd.f32 %v1998_v9, %v174_v28 }
  0x19   :  { %v246_v46 = vadd.f32 %v1998_v9, %v175_v29  ;;  %v247_v47 = vadd.f32 %v1998_v9, %v176_v34  ;;  %v248_v48 = vadd.f32 %v1998_v9, %v177_v39  ;;  %v1535_v50 = vunpack.c.h.bf16 %v1783_v31 }
  0x1a   :  { %v249_v49 = vadd.f32 %v1998_v9, %v178_v42  ;;  %v179_v51 = vmul.f32 %v1534_v43, %v1984_v3  ;;  %v304_v52 = vmax.f32 %v240_v32, 0.0  ;;  %v305_v53 = vmax.f32 %v241_v33, 0.0  ;;  %v1790_v33 = vld [vmem:[%s2531_s0 + $0x98] sm:$0xff]  }
  0x1b   :  { %v1538_v54 = vunpack.c.l.bf16 %v1784_v44  ;;  %v1539_v55 = vunpack.c.h.bf16 %v1784_v44  ;;  %v306_v57 = vmax.f32 %v242_v38, 0.0  ;;  %v307_v58 = vmax.f32 %v243_v40, 0.0 }
  0x1c   :  { %v308_v59 = vmax.f32 %v244_v41, 0.0  ;;  %v180_v60 = vmul.f32 %v1535_v50, %v1984_v3  ;;  %v309_v61 = vmax.f32 %v245_v45, 0.0  ;;  %v310_v62 = vmax.f32 %v246_v46, 0.0  ;;  %v1791_v46 = vld [vmem:[%s2531_s0 + $0xa0] sm:$0xff]  }
  0x1d   :  { %v311_v63 = vmax.f32 %v247_v47, 0.0  ;;  %v181_v0 = vmul.f32 %v1538_v54, %v1984_v3  ;;  %v312_v4 = vmax.f32 %v248_v48, 0.0  ;;  %v313_v5 = vmax.f32 %v249_v49, 0.0 }
  0x1e   :  { %1881 = vmatmul.mubr.msk.bf16.gmra.mrb[8].mxu0 %vm402_vm0, %v359_v36  ;;  %v2100_v6 = vadd.f32 %v1998_v9, %v179_v51  ;;  %v1542_v7 = vunpack.c.l.bf16 %v1785_v56  ;;  %v361_v8 = vpack.c.bf16 %v305_v53, %v304_v52  ;;  %v2103_v10 = vadd.f32 %v1998_v9, %v180_v60 }
  0x1f   :  { %1884 = vmatprep.mubr.msk.bf16.mxu0 %vm402_vm0, %v360_v37  ;;  %v182_v11 = vmul.f32 %v1539_v55, %v1984_v3  ;;  %v1543_v12 = vunpack.c.h.bf16 %v1785_v56  ;;  %v362_v13 = vpack.c.bf16 %v307_v58, %v306_v57  ;;  %v1546_v14 = vunpack.c.l.bf16 %v2094_v1  ;;  %v1792_v55 = vld [vmem:[%s2531_s0 + $0xa8] sm:$0xff]  }
  0x20   :  { %v1550_v15 = vunpack.c.l.bf16 %v1787_v2  ;;  %v363_v16 = vpack.c.bf16 %v309_v61, %v308_v59  ;;  %v364_v17 = vpack.c.bf16 %v311_v63, %v310_v62  ;;  %v2108_v18 = vadd.f32 %v1998_v9, %v181_v0 }
  0x21   :  { %v2113_v20 = vpack.c.bf16 %v313_v5, %v312_v4  ;;  %v314_v21 = vmax.f32 %v2100_v6, 0.0  ;;  %v183_v22 = vmul.f32 %v1542_v7, %v1984_v3  ;;  %v1551_v23 = vunpack.c.h.bf16 %v1787_v2  ;;  %v1793_v7 = vld [vmem:[%s2531_s0 + $0xb0] sm:$0xff]   ;;  %v1795_v6 = vld [vmem:[%s2531_s0 + $0xc0] sm:$0xff]  }
  0x22   :  { %v315_v25 = vmax.f32 %v2103_v10, 0.0  ;;  %v2123_v26 = vadd.f32 %v1998_v9, %v182_v11  ;;  %v184_v27 = vmul.f32 %v1543_v12, %v1984_v3  ;;  %v187_v28 = vmul.f32 %v1550_v15, %v1984_v3 }
  0x23   :  { %v1547_v29 = vunpack.c.h.bf16 %v2094_v1  ;;  %v2130_v30 = vmul.f32 %v1546_v14, %v1984_v3  ;;  %v188_v31 = vmul.f32 %v1551_v23, %v1984_v3  ;;  %v1554_v32 = vunpack.c.l.bf16 %v1788_v19 }
  0x24   :  { %v316_v34 = vmax.f32 %v2108_v18, 0.0  ;;  %v258_v35 = vadd.f32 %v1998_v9, %v187_v28  ;;  %v1555_v36 = vunpack.c.h.bf16 %v1788_v19  ;;  %v1558_v37 = vunpack.c.l.bf16 %v1789_v24  ;;  %v1797_v18 = vld [vmem:[%s2531_s0 + $0xd0] sm:$0xff]  }
  0x25   :  { %v2139_v38 = vadd.f32 %v1998_v9, %v183_v22  ;;  %v259_v39 = vadd.f32 %v1998_v9, %v188_v31  ;;  %v189_v40 = vmul.f32 %v1554_v32, %v1984_v3  ;;  %v1559_v41 = vunpack.c.h.bf16 %v1789_v24  ;;  %v1794_v24 = vld [vmem:[%s2531_s0 + $0xb8] sm:$0xff]  }
  0x26   :  { %1885 = vmatmul.mubr.msk.bf16.gmra.mrb[12].mxu0 %vm402_vm0, %v361_v8  ;;  %v322_v42 = vmax.f32 %v258_v35, 0.0  ;;  %v190_v43 = vmul.f32 %v1555_v36, %v1984_v3  ;;  %v191_v44 = vmul.f32 %v1558_v37, %v1984_v3  ;;  %v1562_v45 = vunpack.c.l.bf16 %v1790_v33 }
  0x27   :  { %1888 = vmatprep.mubr.msk.bf16.mxu0 %vm402_vm0, %v362_v13  ;;  %v2149_v47 = vadd.f32 %v1998_v9, %v184_v27  ;;  %v323_v48 = vmax.f32 %v259_v39, 0.0  ;;  %v260_v49 = vadd.f32 %v1998_v9, %v189_v40  ;;  %v192_v50 = vmul.f32 %v1559_v41, %v1984_v3 }
  0x28   :  { %v261_v51 = vadd.f32 %v1998_v9, %v190_v43  ;;  %v262_v52 = vadd.f32 %v1998_v9, %v191_v44  ;;  %v1563_v53 = vunpack.c.h.bf16 %v1790_v33  ;;  %v193_v54 = vmul.f32 %v1562_v45, %v1984_v3 }
  0x29   :  { %v370_v56 = vpack.c.bf16 %v323_v48, %v322_v42  ;;  %v324_v57 = vmax.f32 %v260_v49, 0.0  ;;  %v263_v58 = vadd.f32 %v1998_v9, %v192_v50  ;;  %v1566_v59 = vunpack.c.l.bf16 %v1791_v46 }
  0x2a   :  { %v325_v60 = vmax.f32 %v261_v51, 0.0  ;;  %v326_v61 = vmax.f32 %v262_v52, 0.0  ;;  %v194_v62 = vmul.f32 %v1563_v53, %v1984_v3  ;;  %v264_v63 = vadd.f32 %v1998_v9, %v193_v54  ;;  %v1796_v52 = vld [vmem:[%s2531_s0 + $0xc8] sm:$0xff]  }
  0x2b   :  { %1904 = vmatprep.mubr.msk.bf16.mxu1 %vm402_vm0, %v370_v56  ;;  %v327_v0 = vmax.f32 %v263_v58, 0.0  ;;  %v1567_v2 = vunpack.c.h.bf16 %v1791_v46  ;;  %v195_v4 = vmul.f32 %v1566_v59, %v1984_v3  ;;  %v1570_v5 = vunpack.c.l.bf16 %v1792_v55 }
  0x2c   :  { %v371_v8 = vpack.c.bf16 %v325_v60, %v324_v57  ;;  %v265_v10 = vadd.f32 %v1998_v9, %v194_v62  ;;  %v328_v11 = vmax.f32 %v264_v63, 0.0  ;;  %v1571_v12 = vunpack.c.h.bf16 %v1792_v55 }
  0x2d   :  { %v372_v13 = vpack.c.bf16 %v327_v0, %v326_v61  ;;  %v196_v14 = vmul.f32 %v1567_v2, %v1984_v3  ;;  %v266_v15 = vadd.f32 %v1998_v9, %v195_v4  ;;  %v1574_v22 = vunpack.c.l.bf16 %v1793_v7 }
  0x2e   :  { %1889 = vmatmul.mubr.msk.bf16.gmra.mrb[16].mxu0 %vm402_vm0, %v363_v16  ;;  %v197_v16 = vmul.f32 %v1570_v5, %v1984_v3  ;;  %1905 = vmatmul.mubr.msk.bf16.vlgmr.msra.gmra.mrb[0].mxu1 %vm402_vm0, %v371_v8  ;;  %v198_v19 = vmul.f32 %v1571_v12, %v1984_v3  ;;  %v1575_v23 = vunpack.c.h.bf16 %v1793_v7  ;;  %v366_v27 = vpack.c.bf16 %v315_v25, %v314_v21 }
  0x2f   :  { %1892 = vmatprep.mubr.msk.bf16.mxu0 %vm402_vm0, %v364_v17  ;;  %v329_v17 = vmax.f32 %v265_v10, 0.0  ;;  %v317_v28 = vmax.f32 %v2123_v26, 0.0  ;;  %1908 = vmatprep.mubr.msk.bf16.mxu1 %vm402_vm0, %v372_v13  ;;  %v267_v31 = vadd.f32 %v1998_v9, %v196_v14  ;;  %v330_v32 = vmax.f32 %v266_v15, 0.0  ;;  %v1798_v14 = vld [vmem:[%s2531_s0 + $0xd8] sm:$0xff]  }
  0x30   :  { %v318_v33 = vmax.f32 %v2139_v38, 0.0  ;;  %v186_v35 = vmul.f32 %v1547_v29, %v1984_v3  ;;  %v199_v36 = vmul.f32 %v1574_v22, %v1984_v3  ;;  %v200_v37 = vmul.f32 %v1575_v23, %v1984_v3 }
  0x31   :  { %v319_v21 = vmax.f32 %v2149_v47, 0.0  ;;  %v331_v25 = vmax.f32 %v267_v31, 0.0  ;;  %v1578_v26 = vunpack.c.l.bf16 %v1794_v24  ;;  %v1579_v39 = vunpack.c.h.bf16 %v1794_v24 }
  0x32   :  { %v373_v38 = vpack.c.bf16 %v329_v17, %v328_v11  ;;  %v268_v1 = vadd.f32 %v1998_v9, %v197_v16  ;;  %v269_v29 = vadd.f32 %v1998_v9, %v198_v19  ;;  %v270_v40 = vadd.f32 %v1998_v9, %v199_v36  ;;  %v1799_v17 = vld [vmem:[%s2531_s0 + $0xe0] sm:$0xff]  }
  0x33   :  { %v374_v41 = vpack.c.bf16 %v331_v25, %v330_v32  ;;  %v271_v42 = vadd.f32 %v1998_v9, %v200_v37  ;;  %v1582_v43 = vunpack.c.l.bf16 %v1795_v6  ;;  %v1583_v44 = vunpack.c.h.bf16 %v1795_v6 }
  0x34   :  { %v256_v45 = vadd.f32 %v1998_v9, %v2130_v30  ;;  %v257_v46 = vadd.f32 %v1998_v9, %v186_v35  ;;  %v202_v47 = vmul.f32 %v1579_v39, %v1984_v3  ;;  %v367_v48 = vpack.c.bf16 %v317_v28, %v316_v34  ;;  %v1800_v39 = vld [vmem:[%s2531_s0 + $0xe8] sm:$0xff]  }
  0x35   :  { %v368_v49 = vpack.c.bf16 %v319_v21, %v318_v33  ;;  %v332_v50 = vmax.f32 %v268_v1, 0.0  ;;  %v333_v51 = vmax.f32 %v269_v29, 0.0  ;;  %v334_v30 = vmax.f32 %v270_v40, 0.0  ;;  %v1801_v29 = vld [vmem:[%s2531_s0 + $0xf0] sm:$0xff]  }
  0x36   :  { %1893 = vmatmul.mubr.msk.bf16.gmra.mrb[20].mxu0 %vm402_vm0, %v2113_v20  ;;  %v201_v20 = vmul.f32 %v1578_v26, %v1984_v3  ;;  %1909 = vmatmul.mubr.msk.bf16.gmra.mrb[4].mxu1 %vm402_vm0, %v373_v38  ;;  %v335_v53 = vmax.f32 %v271_v42, 0.0  ;;  %v203_v54 = vmul.f32 %v1582_v43, %v1984_v3  ;;  %v204_v55 = vmul.f32 %v1583_v44, %v1984_v3 }
  0x37   :  { %1896 = vmatprep.mubr.msk.bf16.mxu0 %vm402_vm0, %v366_v27  ;;  %1912 = vmatprep.mubr.msk.bf16.mxu1 %vm402_vm0, %v374_v41  ;;  %v320_v34 = vmax.f32 %v256_v45, 0.0  ;;  %v321_v56 = vmax.f32 %v257_v46, 0.0  ;;  %v273_v58 = vadd.f32 %v1998_v9, %v202_v47  ;;  %v1586_v59 = vunpack.c.l.bf16 %v1796_v52 }
  0x38   :  { %v272_v57 = vadd.f32 %v1998_v9, %v201_v20  ;;  %v375_v60 = vpack.c.bf16 %v333_v51, %v332_v50  ;;  %v1587_v61 = vunpack.c.h.bf16 %v1796_v52  ;;  %v1590_v62 = vunpack.c.l.bf16 %v1797_v18 }
  0x39   :  { %v1591_v63 = vunpack.c.h.bf16 %v1797_v18  ;;  %v376_v0 = vpack.c.bf16 %v335_v53, %v334_v30  ;;  %v274_v2 = vadd.f32 %v1998_v9, %v203_v54  ;;  %v275_v4 = vadd.f32 %v1998_v9, %v204_v55  ;;  %v1802_v18 = vld [vmem:[%s2531_s0 + $0xf8] sm:$0xff]  }
  0x3a   :  { %v336_v5 = vmax.f32 %v272_v57, 0.0  ;;  %v337_v7 = vmax.f32 %v273_v58, 0.0  ;;  %v205_v8 = vmul.f32 %v1586_v59, %v1984_v3  ;;  %v369_v10 = vpack.c.bf16 %v321_v56, %v320_v34 }
  0x3b   :  { %v206_v11 = vmul.f32 %v1587_v61, %v1984_v3  ;;  %v207_v12 = vmul.f32 %v1590_v62, %v1984_v3  ;;  %v208_v13 = vmul.f32 %v1591_v63, %v1984_v3  ;;  %v338_v15 = vmax.f32 %v274_v2, 0.0 }
  0x3c   :  { %v339_v16 = vmax.f32 %v275_v4, 0.0  ;;  %v377_v19 = vpack.c.bf16 %v337_v7, %v336_v5  ;;  %v276_v22 = vadd.f32 %v1998_v9, %v205_v8  ;;  %v1594_v23 = vunpack.c.l.bf16 %v1798_v14 }
  0x3d   :  { %v277_v24 = vadd.f32 %v1998_v9, %v206_v11  ;;  %v278_v27 = vadd.f32 %v1998_v9, %v207_v12  ;;  %v279_v28 = vadd.f32 %v1998_v9, %v208_v13  ;;  %v1595_v31 = vunpack.c.h.bf16 %v1798_v14 }
  0x3e   :  { %1897 = vmatmul.mubr.msk.bf16.gmra.mrb[24].mxu0 %vm402_vm0, %v367_v48  ;;  %1913 = vmatmul.mubr.msk.bf16.gmra.mrb[8].mxu1 %vm402_vm0, %v375_v60  ;;  %v378_v32 = vpack.c.bf16 %v339_v16, %v338_v15  ;;  %v1598_v33 = vunpack.c.l.bf16 %v1799_v17  ;;  %v1599_v35 = vunpack.c.h.bf16 %v1799_v17  ;;  %v340_v36 = vmax.f32 %v276_v22, 0.0 }
  0x3f   :  { %1900 = vmatprep.mubr.msk.bf16.mxu0 %vm402_vm0, %v368_v49  ;;  %1916 = vmatprep.mubr.msk.bf16.mxu1 %vm402_vm0, %v376_v0  ;;  %v209_v37 = vmul.f32 %v1594_v23, %v1984_v3  ;;  %v341_v6 = vmax.f32 %v277_v24, 0.0  ;;  %v342_v21 = vmax.f32 %v278_v27, 0.0  ;;  %v343_v25 = vmax.f32 %v279_v28, 0.0 }
  0x40   :  { %v210_v26 = vmul.f32 %v1595_v31, %v1984_v3  ;;  %v211_v38 = vmul.f32 %v1598_v33, %v1984_v3  ;;  %v212_v1 = vmul.f32 %v1599_v35, %v1984_v3  ;;  %v1602_v41 = vunpack.c.l.bf16 %v1800_v39 }
  0x41   :  { %v280_v40 = vadd.f32 %v1998_v9, %v209_v37  ;;  %v379_v42 = vpack.c.bf16 %v341_v6, %v340_v36  ;;  %v380_v43 = vpack.c.bf16 %v343_v25, %v342_v21  ;;  %v1603_v45 = vunpack.c.h.bf16 %v1800_v39 }
  0x42   :  { %v281_v44 = vadd.f32 %v1998_v9, %v210_v26  ;;  %v282_v46 = vadd.f32 %v1998_v9, %v211_v38  ;;  %v283_v20 = vadd.f32 %v1998_v9, %v212_v1  ;;  %v1606_v47 = vunpack.c.l.bf16 %v1801_v29 }
  0x43   :  { %v1607_v48 = vunpack.c.h.bf16 %v1801_v29  ;;  %v213_v49 = vmul.f32 %v1602_v41, %v1984_v3  ;;  %v344_v50 = vmax.f32 %v280_v40, 0.0  ;;  %v214_v52 = vmul.f32 %v1603_v45, %v1984_v3 }
  0x44   :  { %v345_v51 = vmax.f32 %v281_v44, 0.0  ;;  %v346_v30 = vmax.f32 %v282_v46, 0.0  ;;  %v347_v53 = vmax.f32 %v283_v20, 0.0  ;;  %v215_v54 = vmul.f32 %v1606_v47, %v1984_v3 }
  0x45   :  { %v216_v55 = vmul.f32 %v1607_v48, %v1984_v3  ;;  %v284_v34 = vadd.f32 %v1998_v9, %v213_v49  ;;  %v285_v57 = vadd.f32 %v1998_v9, %v214_v52  ;;  %v1610_v58 = vunpack.c.l.bf16 %v1802_v18 }
  0x46   :  { %1901 = vmatmul.mubr.msk.bf16.gmra.mrb[28].mxu0 %vm402_vm0, %v369_v10  ;;  %1917 = vmatmul.mubr.msk.bf16.gmra.mrb[12].mxu1 %vm402_vm0, %v377_v19  ;;  %v381_v56 = vpack.c.bf16 %v345_v51, %v344_v50  ;;  %v1611_v59 = vunpack.c.h.bf16 %v1802_v18  ;;  %v382_v60 = vpack.c.bf16 %v347_v53, %v346_v30  ;;  %v286_v61 = vadd.f32 %v1998_v9, %v215_v54 }
  0x47   :  { %1920 = vmatprep.mubr.msk.bf16.mxu1 %vm402_vm0, %v378_v32  ;;  %v287_v62 = vadd.f32 %v1998_v9, %v216_v55  ;;  %v348_v63 = vmax.f32 %v284_v34, 0.0  ;;  %v349_v0 = vmax.f32 %v285_v57, 0.0  ;;  %v217_v2 = vmul.f32 %v1610_v58, %v1984_v3 }
  0x48   :  { %v218_v4 = vmul.f32 %v1611_v59, %v1984_v3  ;;  %v350_v5 = vmax.f32 %v286_v61, 0.0 }
  0x49   :  { %v351_v7 = vmax.f32 %v287_v62, 0.0  ;;  %v383_v8 = vpack.c.bf16 %v349_v0, %v348_v63  ;;  %v288_v10 = vadd.f32 %v1998_v9, %v217_v2 }
  0x4a   :  { %v289_v11 = vadd.f32 %v1998_v9, %v218_v4 }
  0x4b   :  { %v384_v12 = vpack.c.bf16 %v351_v7, %v350_v5  ;;  %v352_v13 = vmax.f32 %v288_v10, 0.0 }
  0x4c   :  { %v353_v14 = vmax.f32 %v289_v11, 0.0 }
  0x4e   :  { %1921 = vmatmul.mubr.msk.bf16.gmra.mrb[16].mxu1 %vm402_vm0, %v379_v42  ;;  %v385_v15 = vpack.c.bf16 %v353_v14, %v352_v13 }
  0x4f   :  { %1924 = vmatprep.mubr.msk.bf16.mxu1 %vm402_vm0, %v380_v43 }
  0x56   :  { %1925 = vmatmul.mubr.msk.bf16.gmra.mrb[20].mxu1 %vm402_vm0, %v381_v56 }
  0x57   :  { %1928 = vmatprep.mubr.msk.bf16.mxu1 %vm402_vm0, %v382_v60 }
  0x5e   :  { %1929 = vmatmul.mubr.msk.bf16.gmra.mrb[24].mxu1 %vm402_vm0, %v383_v8 }
  0x5f   :  { %1932 = vmatprep.mubr.msk.bf16.mxu1 %vm402_vm0, %v384_v12 }
  0x66   :  { %1933 = vmatmul.mubr.msk.bf16.gmra.mrb[28].mxu1 %vm402_vm0, %v385_v15 }
  0xe1   :  { %v1874_v3 = vpop.f32.mrb[0].mxu0 }
  0xe2   :  { %v533_v16 = vpop.f32.mrb[1].mxu0  ;;  %v1180_v9 = vmul.f32 %v1874_v3, %v1874_v3 }
  0xe3   :  { %v1875_v17 = vpop.f32.mrb[2].mxu0  ;;  %v1178_v23 = vmul.f32 %v533_v16, %v533_v16 }
  0xe4   :  { %v1620_v19 = vpack.c.bf16 %v1875_v17, %v1874_v3  ;;  %v536_v22 = vpop.f32.mrb[3].mxu0  ;;  %v1181_v33 = vmul.f32 %v1875_v17, %v1875_v17 }
  0xe5   :  { %v1615_v24 = vpack.c.bf16 %v536_v22, %v533_v16  ;;  %v1108_v27 = vadd.f32 %v536_v22, %v533_v16  ;;  %v1179_v28 = vmul.f32 %v536_v22, %v536_v22 }
  0xe6   :  { %1803 = vst [vmem:[%s2534_s4 + $0x8] sm:$0xff] %v1620_v19  }
  0xe7   :  { %1616 = vst [vmem:[%s2534_s4] sm:$0xff] %v1615_v24   ;;  %v1109_v31 = vadd.f32 %v1874_v3, %v1108_v27  ;;  %v1242_v32 = vadd.f32 %v1179_v28, %v1178_v23 }
  0xe9   :  { %v1243_v35 = vadd.f32 %v1242_v32, %v1180_v9  ;;  %v1878_v36 = vpop.f32.mrb[4].mxu0  ;;  %v1110_v37 = vadd.f32 %v1875_v17, %v1109_v31 }
  0xea   :  { %v549_v6 = vpop.f32.mrb[5].mxu0  ;;  %v1184_v43 = vmul.f32 %v1878_v36, %v1878_v36 }
  0xeb   :  { %v1111_v21 = vadd.f32 %v1110_v37, %v549_v6  ;;  %v1182_v25 = vmul.f32 %v549_v6, %v549_v6  ;;  %v1244_v26 = vadd.f32 %v1243_v35, %v1181_v33  ;;  %v1879_v39 = vpop.f32.mrb[6].mxu0 }
  0xec   :  { %v1630_v38 = vpack.c.bf16 %v1879_v39, %v1878_v36  ;;  %v552_v1 = vpop.f32.mrb[7].mxu0  ;;  %v1185_v46 = vmul.f32 %v1879_v39, %v1879_v39 }
  0xed   :  { %v1245_v29 = vadd.f32 %v1244_v26, %v1182_v25  ;;  %v1625_v40 = vpack.c.bf16 %v552_v1, %v549_v6  ;;  %v1112_v41 = vadd.f32 %v1111_v21, %v552_v1  ;;  %v1183_v42 = vmul.f32 %v552_v1, %v552_v1 }
  0xee   :  { %1805 = vst [vmem:[%s2534_s4 + $0x18] sm:$0xff] %v1630_v38  }
  0xef   :  { %1804 = vst [vmem:[%s2534_s4 + $0x10] sm:$0xff] %v1625_v40   ;;  %v1113_v44 = vadd.f32 %v1878_v36, %v1112_v41  ;;  %v1246_v45 = vadd.f32 %v1245_v29, %v1183_v42 }
  0xf1   :  { %v1247_v20 = vadd.f32 %v1246_v45, %v1184_v43  ;;  %v1882_v47 = vpop.f32.mrb[8].mxu0  ;;  %v1114_v48 = vadd.f32 %v1879_v39, %v1113_v44 }
  0xf2   :  { %v565_v49 = vpop.f32.mrb[9].mxu0  ;;  %v1188_v57 = vmul.f32 %v1882_v47, %v1882_v47 }
  0xf3   :  { %v1115_v50 = vadd.f32 %v1114_v48, %v565_v49  ;;  %v1186_v51 = vmul.f32 %v565_v49, %v565_v49  ;;  %v1248_v52 = vadd.f32 %v1247_v20, %v1185_v46  ;;  %v1883_v30 = vpop.f32.mrb[10].mxu0 }
  0xf4   :  { %v1640_v53 = vpack.c.bf16 %v1883_v30, %v1882_v47  ;;  %v568_v54 = vpop.f32.mrb[11].mxu0  ;;  %v1189_v60 = vmul.f32 %v1883_v30, %v1883_v30 }
  0xf5   :  { %v1249_v55 = vadd.f32 %v1248_v52, %v1186_v51  ;;  %v1635_v18 = vpack.c.bf16 %v568_v54, %v565_v49  ;;  %v1116_v34 = vadd.f32 %v1115_v50, %v568_v54  ;;  %v1187_v56 = vmul.f32 %v568_v54, %v568_v54 }
  0xf6   :  { %1807 = vst [vmem:[%s2534_s4 + $0x28] sm:$0xff] %v1640_v53  }
  0xf7   :  { %1806 = vst [vmem:[%s2534_s4 + $0x20] sm:$0xff] %v1635_v18   ;;  %v1117_v58 = vadd.f32 %v1882_v47, %v1116_v34  ;;  %v1250_v59 = vadd.f32 %v1249_v55, %v1187_v56 }
  0xf9   :  { %v1251_v61 = vadd.f32 %v1250_v59, %v1188_v57  ;;  %v1886_v62 = vpop.f32.mrb[12].mxu0  ;;  %v1118_v63 = vadd.f32 %v1883_v30, %v1117_v58 }
  0xfa   :  { %v581_v0 = vpop.f32.mrb[13].mxu0  ;;  %v1192_v15 = vmul.f32 %v1886_v62, %v1886_v62 }
  0xfb   :  { %v1119_v2 = vadd.f32 %v1118_v63, %v581_v0  ;;  %v1190_v4 = vmul.f32 %v581_v0, %v581_v0  ;;  %v1252_v5 = vadd.f32 %v1251_v61, %v1189_v60  ;;  %v1887_v7 = vpop.f32.mrb[14].mxu0 }
  0xfc   :  { %v1650_v8 = vpack.c.bf16 %v1887_v7, %v1886_v62  ;;  %v584_v10 = vpop.f32.mrb[15].mxu0  ;;  %v1193_v17 = vmul.f32 %v1887_v7, %v1887_v7 }
  0xfd   :  { %v1253_v11 = vadd.f32 %v1252_v5, %v1190_v4  ;;  %v1645_v12 = vpack.c.bf16 %v584_v10, %v581_v0  ;;  %v1120_v13 = vadd.f32 %v1119_v2, %v584_v10  ;;  %v1191_v14 = vmul.f32 %v584_v10, %v584_v10 }
  0xfe   :  { %1809 = vst [vmem:[%s2534_s4 + $0x38] sm:$0xff] %v1650_v8  }
  0xff   :  { %1808 = vst [vmem:[%s2534_s4 + $0x30] sm:$0xff] %v1645_v12   ;;  %v1121_v3 = vadd.f32 %v1886_v62, %v1120_v13  ;;  %v1254_v16 = vadd.f32 %v1253_v11, %v1191_v14 }
 0x101   :  { %v1255_v19 = vadd.f32 %v1254_v16, %v1192_v15  ;;  %v1890_v22 = vpop.f32.mrb[16].mxu0  ;;  %v1122_v23 = vadd.f32 %v1887_v7, %v1121_v3  ;;  %v2302_v21 = vpop.f32.mrb[0].mxu1 }
 0x102   :  { %v597_v24 = vpop.f32.mrb[17].mxu0  ;;  %v2307_v25 = vpop.f32.mrb[1].mxu1  ;;  %v1196_v26 = vmul.f32 %v1890_v22, %v1890_v22 }
 0x103   :  { %v1123_v27 = vadd.f32 %v1122_v23, %v597_v24  ;;  %v1194_v28 = vmul.f32 %v597_v24, %v597_v24  ;;  %v1256_v9 = vadd.f32 %v1255_v19, %v1193_v17  ;;  %v1891_v31 = vpop.f32.mrb[18].mxu0  ;;  %v2312_v1 = vpop.f32.mrb[2].mxu1 }
 0x104   :  { %v1660_v32 = vpack.c.bf16 %v1891_v31, %v1890_v22  ;;  %v600_v33 = vpop.f32.mrb[19].mxu0  ;;  %v1700_v29 = vpack.c.bf16 %v2312_v1, %v2302_v21  ;;  %v2316_v40 = vpop.f32.mrb[3].mxu1  ;;  %v1197_v41 = vmul.f32 %v1891_v31, %v1891_v31 }
 0x105   :  { %v1257_v35 = vadd.f32 %v1256_v9, %v1194_v28  ;;  %v1655_v36 = vpack.c.bf16 %v600_v33, %v597_v24  ;;  %v1124_v37 = vadd.f32 %v1123_v27, %v600_v33  ;;  %v1195_v6 = vmul.f32 %v600_v33, %v600_v33 }
 0x106   :  { %1811 = vst [vmem:[%s2534_s4 + $0x48] sm:$0xff] %v1660_v32   ;;  %v1695_v45 = vpack.c.bf16 %v2316_v40, %v2307_v25  ;;  %1819 = vst [vmem:[%s2534_s4 + $0x88] sm:$0xff] %v1700_v29  }
 0x107   :  { %1810 = vst [vmem:[%s2534_s4 + $0x40] sm:$0xff] %v1655_v36   ;;  %v1125_v39 = vadd.f32 %v1890_v22, %v1124_v37  ;;  %v1258_v38 = vadd.f32 %v1257_v35, %v1195_v6 }
 0x108   :  { %1818 = vst [vmem:[%s2534_s4 + $0x80] sm:$0xff] %v1695_v45  }
 0x109   :  { %v1259_v42 = vadd.f32 %v1258_v38, %v1196_v26  ;;  %v1894_v43 = vpop.f32.mrb[20].mxu0  ;;  %v1126_v44 = vadd.f32 %v1891_v31, %v1125_v39  ;;  %v2326_v55 = vpop.f32.mrb[4].mxu1 }
 0x10a   :  { %v613_v46 = vpop.f32.mrb[21].mxu0  ;;  %v2331_v18 = vpop.f32.mrb[5].mxu1  ;;  %v1200_v34 = vmul.f32 %v1894_v43, %v1894_v43 }
 0x10b   :  { %v1127_v20 = vadd.f32 %v1126_v44, %v613_v46  ;;  %v1198_v47 = vmul.f32 %v613_v46, %v613_v46  ;;  %v1260_v48 = vadd.f32 %v1259_v42, %v1197_v41  ;;  %v1895_v49 = vpop.f32.mrb[22].mxu0  ;;  %v2336_v58 = vpop.f32.mrb[6].mxu1 }
 0x10c   :  { %v1670_v50 = vpack.c.bf16 %v1895_v49, %v1894_v43  ;;  %v616_v51 = vpop.f32.mrb[23].mxu0  ;;  %v1710_v59 = vpack.c.bf16 %v2336_v58, %v2326_v55  ;;  %v2340_v60 = vpop.f32.mrb[7].mxu1  ;;  %v1201_v61 = vmul.f32 %v1895_v49, %v1895_v49 }
 0x10d   :  { %v1261_v52 = vadd.f32 %v1260_v48, %v1198_v47  ;;  %v1665_v30 = vpack.c.bf16 %v616_v51, %v613_v46  ;;  %v1128_v53 = vadd.f32 %v1127_v20, %v616_v51  ;;  %v1199_v54 = vmul.f32 %v616_v51, %v616_v51 }
 0x10e   :  { %1813 = vst [vmem:[%s2534_s4 + $0x58] sm:$0xff] %v1670_v50   ;;  %v1705_v2 = vpack.c.bf16 %v2340_v60, %v2331_v18  ;;  %1821 = vst [vmem:[%s2534_s4 + $0x98] sm:$0xff] %v1710_v59   ;;  %v1210_v50 = vmul.f32 %v2307_v25, %v2307_v25 }
 0x10f   :  { %1812 = vst [vmem:[%s2534_s4 + $0x50] sm:$0xff] %v1665_v30   ;;  %v1129_v56 = vadd.f32 %v1894_v43, %v1128_v53  ;;  %v1262_v57 = vadd.f32 %v1261_v52, %v1199_v54 }
 0x110   :  { %1820 = vst [vmem:[%s2534_s4 + $0x90] sm:$0xff] %v1705_v2   ;;  %v1212_v2 = vmul.f32 %v2302_v21, %v2302_v21 }
 0x111   :  { %v1263_v62 = vadd.f32 %v1262_v57, %v1200_v34  ;;  %v1898_v63 = vpop.f32.mrb[24].mxu0  ;;  %v1130_v0 = vadd.f32 %v1895_v49, %v1129_v56  ;;  %v2350_v16 = vpop.f32.mrb[8].mxu1 }
 0x112   :  { %v629_v4 = vpop.f32.mrb[25].mxu0  ;;  %v2355_v17 = vpop.f32.mrb[9].mxu1  ;;  %v1204_v19 = vmul.f32 %v1898_v63, %v1898_v63 }
 0x113   :  { %v1131_v5 = vadd.f32 %v1130_v0, %v629_v4  ;;  %v1202_v7 = vmul.f32 %v629_v4, %v629_v4  ;;  %v1264_v8 = vadd.f32 %v1263_v62, %v1201_v61  ;;  %v1899_v10 = vpop.f32.mrb[26].mxu0  ;;  %v2360_v24 = vpop.f32.mrb[10].mxu1  ;;  %v1211_v62 = vmul.f32 %v2316_v40, %v2316_v40 }
 0x114   :  { %v1680_v11 = vpack.c.bf16 %v1899_v10, %v1898_v63  ;;  %v632_v12 = vpop.f32.mrb[27].mxu0  ;;  %v1720_v27 = vpack.c.bf16 %v2360_v24, %v2350_v16  ;;  %v2364_v28 = vpop.f32.mrb[11].mxu1  ;;  %v1205_v9 = vmul.f32 %v1899_v10, %v1899_v10 }
 0x115   :  { %v1265_v13 = vadd.f32 %v1264_v8, %v1202_v7  ;;  %v1675_v14 = vpack.c.bf16 %v632_v12, %v629_v4  ;;  %v1132_v15 = vadd.f32 %v1131_v5, %v632_v12  ;;  %v1203_v3 = vmul.f32 %v632_v12, %v632_v12 }
 0x116   :  { %1815 = vst [vmem:[%s2534_s4 + $0x68] sm:$0xff] %v1680_v11   ;;  %v1715_v35 = vpack.c.bf16 %v2364_v28, %v2355_v17  ;;  %1823 = vst [vmem:[%s2534_s4 + $0xa8] sm:$0xff] %v1720_v27   ;;  %v1213_v7 = vmul.f32 %v2312_v1, %v2312_v1  ;;  %v1214_v12 = vmul.f32 %v2331_v18, %v2331_v18 }
 0x117   :  { %1814 = vst [vmem:[%s2534_s4 + $0x60] sm:$0xff] %v1675_v14   ;;  %v1133_v22 = vadd.f32 %v1898_v63, %v1132_v15  ;;  %v1266_v23 = vadd.f32 %v1265_v13, %v1203_v3  ;;  %v1215_v3 = vmul.f32 %v2340_v60, %v2340_v60 }
 0x118   :  { %1822 = vst [vmem:[%s2534_s4 + $0xa0] sm:$0xff] %v1715_v35  }
 0x119   :  { %v1267_v31 = vadd.f32 %v1266_v23, %v1204_v19  ;;  %v1902_v32 = vpop.f32.mrb[28].mxu0  ;;  %v1134_v33 = vadd.f32 %v1899_v10, %v1133_v22  ;;  %v2374_v45 = vpop.f32.mrb[12].mxu1  ;;  %v1216_v23 = vmul.f32 %v2326_v55, %v2326_v55 }
 0x11a   :  { %v645_v36 = vpop.f32.mrb[29].mxu0  ;;  %v2379_v46 = vpop.f32.mrb[13].mxu1  ;;  %v1208_v20 = vmul.f32 %v1902_v32, %v1902_v32 }
 0x11b   :  { %v1135_v37 = vadd.f32 %v1134_v33, %v645_v36  ;;  %v1206_v6 = vmul.f32 %v645_v36, %v645_v36  ;;  %v1268_v26 = vadd.f32 %v1267_v31, %v1205_v9  ;;  %v1903_v39 = vpop.f32.mrb[30].mxu0  ;;  %v2384_v49 = vpop.f32.mrb[14].mxu1  ;;  %v1217_v31 = vmul.f32 %v2336_v58, %v2336_v58 }
 0x11c   :  { %v1690_v38 = vpack.c.bf16 %v1903_v39, %v1902_v32  ;;  %v648_v29 = vpop.f32.mrb[31].mxu0  ;;  %v1730_v51 = vpack.c.bf16 %v2384_v49, %v2374_v45  ;;  %v2390_v52 = vpop.f32.mrb[15].mxu1  ;;  %v1209_v30 = vmul.f32 %v1903_v39, %v1903_v39 }
 0x11d   :  { %v1269_v41 = vadd.f32 %v1268_v26, %v1206_v6  ;;  %v1685_v42 = vpack.c.bf16 %v648_v29, %v645_v36  ;;  %v1136_v43 = vadd.f32 %v1135_v37, %v648_v29  ;;  %v1207_v44 = vmul.f32 %v648_v29, %v648_v29 }
 0x11e   :  { %1817 = vst [vmem:[%s2534_s4 + $0x78] sm:$0xff] %v1690_v38   ;;  %v1725_v34 = vpack.c.bf16 %v2390_v52, %v2379_v46  ;;  %1825 = vst [vmem:[%s2534_s4 + $0xb8] sm:$0xff] %v1730_v51   ;;  %v1218_v36 = vmul.f32 %v2355_v17, %v2355_v17 }
 0x11f   :  { %1816 = vst [vmem:[%s2534_s4 + $0x70] sm:$0xff] %v1685_v42   ;;  %v1137_v47 = vadd.f32 %v1902_v32, %v1136_v43  ;;  %v1270_v48 = vadd.f32 %v1269_v41, %v1207_v44  ;;  %v1220_v41 = vmul.f32 %v2350_v16, %v2350_v16  ;;  %v1221_v44 = vmul.f32 %v2360_v24, %v2360_v24 }
 0x120   :  { %1824 = vst [vmem:[%s2534_s4 + $0xb0] sm:$0xff] %v1725_v34  }
 0x121   :  { %v1271_v53 = vadd.f32 %v1270_v48, %v1208_v20  ;;  %v1138_v54 = vadd.f32 %v1903_v39, %v1137_v47  ;;  %v2404_v63 = vpop.f32.mrb[16].mxu1 }
 0x122   :  { %v2406_v0 = vpop.f32.mrb[17].mxu1 }
 0x123   :  { %v1139_v56 = vadd.f32 %v1138_v54, %v2307_v25  ;;  %v1272_v57 = vadd.f32 %v1271_v53, %v1209_v30  ;;  %v2411_v5 = vpop.f32.mrb[18].mxu1 }
 0x124   :  { %v1740_v8 = vpack.c.bf16 %v2411_v5, %v2404_v63  ;;  %v2417_v10 = vpop.f32.mrb[19].mxu1 }
 0x125   :  { %v1273_v59 = vadd.f32 %v1272_v57, %v1210_v50  ;;  %v1140_v61 = vadd.f32 %v1139_v56, %v2316_v40  ;;  %v1222_v50 = vmul.f32 %v2379_v46, %v2379_v46  ;;  %v1224_v57 = vmul.f32 %v2374_v45, %v2374_v45 }
 0x126   :  { %1827 = vst [vmem:[%s2534_s4 + $0xc8] sm:$0xff] %v1740_v8  }
 0x127   :  { %v1141_v25 = vadd.f32 %v2302_v21, %v1140_v61  ;;  %v1274_v4 = vadd.f32 %v1273_v59, %v1211_v62  ;;  %v1735_v21 = vpack.c.bf16 %v2417_v10, %v2406_v0  ;;  %v1225_v62 = vmul.f32 %v2384_v49, %v2384_v49 }
 0x129   :  { %v1275_v40 = vadd.f32 %v1274_v4, %v1212_v2  ;;  %v1142_v11 = vadd.f32 %v2312_v1, %v1141_v25  ;;  %1826 = vst [vmem:[%s2534_s4 + $0xc0] sm:$0xff] %v1735_v21   ;;  %v2434_v19 = vpop.f32.mrb[20].mxu1  ;;  %v1228_v21 = vmul.f32 %v2404_v63, %v2404_v63 }
 0x12a   :  { %v2436_v22 = vpop.f32.mrb[21].mxu1 }
 0x12b   :  { %v1143_v13 = vadd.f32 %v1142_v11, %v2331_v18  ;;  %v1276_v14 = vadd.f32 %v1275_v40, %v1213_v7  ;;  %v2441_v9 = vpop.f32.mrb[22].mxu1 }
 0x12c   :  { %v1750_v32 = vpack.c.bf16 %v2441_v9, %v2434_v19  ;;  %v744_v33 = vpop.f32.mrb[23].mxu1 }
 0x12d   :  { %v1277_v15 = vadd.f32 %v1276_v14, %v1214_v12  ;;  %v1144_v1 = vadd.f32 %v1143_v13, %v2340_v60  ;;  %v1745_v37 = vpack.c.bf16 %v744_v33, %v2436_v22 }
 0x12e   :  { %1829 = vst [vmem:[%s2534_s4 + $0xd8] sm:$0xff] %v1750_v32   ;;  %v1232_v32 = vmul.f32 %v2434_v19, %v2434_v19 }
 0x12f   :  { %v1145_v18 = vadd.f32 %v2326_v55, %v1144_v1  ;;  %v1278_v27 = vadd.f32 %v1277_v15, %v1215_v3  ;;  %1828 = vst [vmem:[%s2534_s4 + $0xd0] sm:$0xff] %v1745_v37   ;;  %v1230_v3 = vmul.f32 %v2436_v22, %v2436_v22 }
 0x131   :  { %v1279_v60 = vadd.f32 %v1278_v27, %v1216_v23  ;;  %v1146_v35 = vadd.f32 %v2336_v58, %v1145_v18  ;;  %v1219_v58 = vmul.f32 %v2364_v28, %v2364_v28  ;;  %v2461_v38 = vpop.f32.mrb[24].mxu1 }
 0x132   :  { %v757_v29 = vpop.f32.mrb[25].mxu1 }
 0x133   :  { %v1147_v55 = vadd.f32 %v1146_v35, %v2355_v17  ;;  %v1280_v6 = vadd.f32 %v1279_v60, %v1217_v31  ;;  %v2466_v43 = vpop.f32.mrb[26].mxu1  ;;  %v1231_v31 = vmul.f32 %v744_v33, %v744_v33  ;;  %v1233_v35 = vmul.f32 %v2441_v9, %v2441_v9 }
 0x134   :  { %v1760_v20 = vpack.c.bf16 %v2466_v43, %v2461_v38  ;;  %v760_v47 = vpop.f32.mrb[27].mxu1  ;;  %v1234_v37 = vmul.f32 %v757_v29, %v757_v29 }
 0x135   :  { %v1281_v26 = vadd.f32 %v1280_v6, %v1218_v36  ;;  %v1148_v39 = vadd.f32 %v1147_v55, %v2364_v28  ;;  %v1755_v51 = vpack.c.bf16 %v760_v47, %v757_v29 }
 0x136   :  { %1831 = vst [vmem:[%s2534_s4 + $0xe8] sm:$0xff] %v1760_v20  }
 0x137   :  { %v1149_v42 = vadd.f32 %v2350_v16, %v1148_v39  ;;  %v1282_v17 = vadd.f32 %v1281_v26, %v1219_v58  ;;  %1830 = vst [vmem:[%s2534_s4 + $0xe0] sm:$0xff] %v1755_v51   ;;  %v1235_v39 = vmul.f32 %v760_v47, %v760_v47 }
 0x139   :  { %v1283_v48 = vadd.f32 %v1282_v17, %v1220_v41  ;;  %v1150_v28 = vadd.f32 %v2360_v24, %v1149_v42  ;;  %v1223_v24 = vmul.f32 %v2390_v52, %v2390_v52  ;;  %v1934_v34 = vpop.f32.mrb[28].mxu1 }
 0x13a   :  { %v773_v56 = vpop.f32.mrb[29].mxu1 }
 0x13b   :  { %v1151_v16 = vadd.f32 %v1150_v28, %v2379_v46  ;;  %v1284_v30 = vadd.f32 %v1283_v48, %v1221_v44  ;;  %v1935_v46 = vpop.f32.mrb[30].mxu1  ;;  %v1238_v44 = vmul.f32 %v773_v56, %v773_v56 }
 0x13c   :  { %v1770_v2 = vpack.c.bf16 %v1935_v46, %v1934_v34  ;;  %v776_v25 = vpop.f32.mrb[31].mxu1 }
 0x13d   :  { %v1285_v53 = vadd.f32 %v1284_v30, %v1222_v50  ;;  %v1152_v54 = vadd.f32 %v1151_v16, %v2390_v52  ;;  %v1226_v52 = vmul.f32 %v2406_v0, %v2406_v0  ;;  %v1765_v8 = vpack.c.bf16 %v776_v25, %v773_v56 }
 0x13e   :  { %1833 = vst [vmem:[%s2534_s4 + $0xf8] sm:$0xff] %v1770_v2   ;;  %v1239_v28 = vmul.f32 %v776_v25, %v776_v25  ;;  %v1240_v50 = vmul.f32 %v1934_v34, %v1934_v34  ;;  %v1241_v16 = vmul.f32 %v1935_v46, %v1935_v46 }
 0x13f   :  { %v1153_v59 = vadd.f32 %v2374_v45, %v1152_v54  ;;  %v1286_v61 = vadd.f32 %v1285_v53, %v1223_v24  ;;  %1832 = vst [vmem:[%s2534_s4 + $0xf0] sm:$0xff] %v1765_v8  }
 0x141   :  { %v1287_v4 = vadd.f32 %v1286_v61, %v1224_v57  ;;  %v1154_v7 = vadd.f32 %v2384_v49, %v1153_v59  ;;  %v1227_v49 = vmul.f32 %v2417_v10, %v2417_v10 }
 0x143   :  { %v1155_v45 = vadd.f32 %v1154_v7, %v2406_v0  ;;  %v1288_v40 = vadd.f32 %v1287_v4, %v1225_v62  ;;  %v1229_v0 = vmul.f32 %v2411_v5, %v2411_v5 }
 0x145   :  { %v1289_v11 = vadd.f32 %v1288_v40, %v1226_v52  ;;  %v1156_v12 = vadd.f32 %v1155_v45, %v2417_v10 }
 0x147   :  { %v1157_v13 = vadd.f32 %v2404_v63, %v1156_v12  ;;  %v1290_v14 = vadd.f32 %v1289_v11, %v1227_v49 }
 0x149   :  { %v1291_v15 = vadd.f32 %v1290_v14, %v1228_v21  ;;  %v1158_v1 = vadd.f32 %v2411_v5, %v1157_v13 }
 0x14b   :  { %v1159_v23 = vadd.f32 %v1158_v1, %v2436_v22  ;;  %v1292_v18 = vadd.f32 %v1291_v15, %v1229_v0 }
 0x14d   :  { %v1293_v27 = vadd.f32 %v1292_v18, %v1230_v3  ;;  %v1160_v10 = vadd.f32 %v1159_v23, %v744_v33  ;;  %v1236_v33 = vmul.f32 %v2461_v38, %v2461_v38 }
 0x14f   :  { %v1161_v63 = vadd.f32 %v2434_v19, %v1160_v10  ;;  %v1294_v60 = vadd.f32 %v1293_v27, %v1231_v31  ;;  %v1237_v19 = vmul.f32 %v2466_v43, %v2466_v43 }
 0x151   :  { %v1295_v36 = vadd.f32 %v1294_v60, %v1232_v32  ;;  %v1162_v5 = vadd.f32 %v2441_v9, %v1161_v63 }
 0x153   :  { %v1163_v55 = vadd.f32 %v1162_v5, %v757_v29  ;;  %v1296_v6 = vadd.f32 %v1295_v36, %v1233_v35 }
 0x155   :  { %v1297_v22 = vadd.f32 %v1296_v6, %v1234_v37  ;;  %v1164_v26 = vadd.f32 %v1163_v55, %v760_v47 }
 0x157   :  { %v1165_v58 = vadd.f32 %v2461_v38, %v1164_v26  ;;  %v1298_v41 = vadd.f32 %v1297_v22, %v1235_v39 }
 0x159   :  { %v1299_v42 = vadd.f32 %v1298_v41, %v1236_v33  ;;  %v1166_v17 = vadd.f32 %v2466_v43, %v1165_v58 }
 0x15b   :  { %v1167_v9 = vadd.f32 %v1166_v17, %v773_v56  ;;  %v1300_v20 = vadd.f32 %v1299_v42, %v1237_v19 }
 0x15d   :  { %v1301_v29 = vadd.f32 %v1300_v20, %v1238_v44  ;;  %v1168_v48 = vadd.f32 %v1167_v9, %v776_v25 }
 0x15f   :  { %v1169_v47 = vadd.f32 %v1934_v34, %v1168_v48  ;;  %v1302_v51 = vadd.f32 %v1301_v29, %v1239_v28 }
 0x161   :  { %v1170_v30 = vadd.f32 %v1935_v46, %v1169_v47  ;;  %v1303_v53 = vadd.f32 %v1302_v51, %v1240_v50 }
 0x163   :  { %v1171_v38 = vrot.slane %v1170_v30, 4  ;;  %v1304_v54 = vadd.f32 %v1303_v53, %v1241_v16 }
 0x165   :  { %v1172_v24 = vadd.f32 %v1171_v38, %v1170_v30  ;;  %v1305_v57 = vrot.slane %v1304_v54, 4 }
 0x167   :  { %v1173_v59 = vrot.slane %v1172_v24, 2  ;;  %v1306_v61 = vadd.f32 %v1305_v57, %v1304_v54 }
 0x169   :  { %v1174_v62 = vadd.f32 %v1173_v59, %v1172_v24  ;;  %v1307_v43 = vrot.slane %v1306_v61, 2 }
 0x16b   :  { %v1175_v2 = vrot.slane %v1174_v62, 1  ;;  %v1308_v56 = vadd.f32 %v1307_v43, %v1306_v61 }
 0x16d   :  { %v1176_v4 = vadd.f32 %v1175_v2, %v1174_v62  ;;  %v1309_v7 = vrot.slane %v1308_v56, 1 }
 0x16f   :  { %1177 = vst [vmem:[%s2535_s5] sm:$0x1] %v1176_v4  ;;  %v1310_v34 = vadd.f32 %v1309_v7, %v1308_v56 }
 0x171   :  { %1311 = vst [vmem:[%s2535_s5 + $0x1] sm:$0x1] %v1310_v34 }

// kernel: bottleneck_forward.5
= control target key start
LH: loop header
LB: loop body
LE: loop exit
PB: predicated region body
PF: predicated region fallthrough
CT: control target
= control target key end

     0   :  { %s7741_s24 = smov 0   ;;  %s10175_s0 = inlined_call_operand.vmem [shape: bf16[2,256,32], index: 0, kind: input, shape index: {}]   ;;  %s10176_s1 = inlined_call_operand.vmem [shape: f32[1,32], index: 1, kind: input, shape index: {}]   ;;  %s10177_s2 = inlined_call_operand.vmem [shape: f32[1,32], index: 2, kind: input, shape index: {}]   ;;  %s10178_s3 = inlined_call_operand.vmem [shape: bf16[256,1], index: 3, kind: input, shape index: {}]   ;;  %s10179_s4 = inlined_call_operand.vmem [shape: bf16[256,1], index: 4, kind: input, shape index: {}]   ;;  %s10180_s5 = inlined_call_operand.vmem [shape: bf16[9,32,32], index: 5, kind: input, shape index: {}]   ;;  %s10181_s6 = inlined_call_operand.vmem [shape: bf16[2,256,32], index: 6, kind: output, shape index: {0}]   ;;  %s10182_s7 = inlined_call_operand.vmem [shape: f32[2,2,32], index: 7, kind: output, shape index: {1}]  }
   0x1 LB: > { %s6237_s25 = sadd.s32 4294967295, %s7697_s24   ;;  %p6241_p0 = scmp.ge.s32.totalorder %s7697_s24, 1  ;;  %s7697_s24 = sphi %s7741_s24, %s18_s24  }
   0x2   : > { %p240_p1 = scmp.lt.s32.totalorder %s7697_s24, 3 }
   0x4   : > { %p241_p2 = pnand %p6241_p0, %p240_p1 }
   0x6   : > { %244 = sbr.rel (%p241_p2) target bundleno = 702 (0x2be), region = 44 }
   0xd   : > { %vm294_vm0 = vcmask 253952   ;;  %vm295_vm1 = vsmask.f32 256  ;;  %v297_v0 = vld [vmem:[#allocation2 + $0x8] sm:$0x1]  ;;  %v7699_v2 = vmov 0  }
   0xe   : > { %vm7751_vm2 = vmand %vm294_vm0, %vm295_vm1  ;;  %vm301_vm3 = vsmask.f32 7938  ;;  %7561 = vset.pattern.permute.xlu1 %v7699_v2  ;;  %308 = vst.msk [vmem:[#allocation2 + $0x90] sm:$0x1] %vm294_vm0, %v7699_v2  ;;  %7560 = vset.pattern.permute.xlu0 %v7699_v2  ;;  %v303_v4 = vld [vmem:[#allocation2 + $0x88] sm:$0xf] }
   0xf   : > { %v298_v3 = vsel %vm7751_vm2, 0, %v297_v0  ;;  %p276_p3 = scmp.lt.s32.totalorder %s6237_s25, 1  ;;  %vm291_vm4 = vcmask 257024   ;;  %v972_v5 = vld [vmem:[%s10179_s4 + $0x8] sm:$0xf]  ;;  %v7562_v11 = vld [vmem:[%s10180_s5 + $0x40] sm:$0xff]  }
  0x10   : > { %299 = vst [vmem:[#allocation2 + $0x8] sm:$0x1] %v298_v3  ;;  %v970_v6 = vld [vmem:[%s10179_s4] sm:$0xf]  ;;  %292 = vst.msk [vmem:[#allocation2] sm:$0xf] %vm291_vm4, %v7699_v2  ;;  %2258 = vperm.xlu1 %7561, %v972_v5   ;;  %7110 = vmatprep.subr.bf16.mxu0 %v7562_v11 }
  0x11   : > { %s10652_s25 = smov (!%p276_p3, %s6237_s25), 1  ;;  %293 = vst.msk [vmem:[#allocation2 + $0x4] sm:$0xf] %vm291_vm4, %v7699_v2  ;;  %vm7770_vm5 = vmand %vm291_vm4, %vm301_vm3  ;;  %2234 = vperm.xlu0 %7560, %v970_v6   ;;  %v973_v9 = vld [vmem:[%s10179_s4 + $0xc] sm:$0xf]  ;;  %v7563_v12 = vld [vmem:[%s10180_s5 + $0x10] sm:$0xff]   ;;  %7111 = vmatpush3.bf16.msra.mxu0 %v7562_v11 }
  0x12   : > { %306 = vst.msk [vmem:[#allocation2 + $0x8c] sm:$0xf] %vm291_vm4, %v7699_v2  ;;  %v304_v8 = vsel %vm7770_vm5, 0, %v303_v4  ;;  %v971_v10 = vld [vmem:[%s10179_s4 + $0x4] sm:$0xf]  ;;  %s6659_s13 = sshll.u32 %s10652_s25, 7  ;;  %6966 = vmatprep.subr.bf16.mxu1 %v7563_v12 }
  0x13   : > { %305 = vst [vmem:[#allocation2 + $0x88] sm:$0xf] %v304_v8  ;;  %s7795_s18 = scalar_lea.vmem %s10175_s0, %s6659_s13  ;;  %v7800_v13 = vld [vmem:[%s10176_s1] ss:$0 sm:$0xff]  ;;  %v975_v19 = vld [vmem:[%s10179_s4 + $0x14] sm:$0xf]  ;;  %6967 = vmatpush3.bf16.msra.mxu1 %v7563_v12  ;;  %s10028_s15 = scalar_lea.vmem %s10181_s6, %s6659_s13 }
  0x14   : > { %v6726_v14 = vld [vmem:[%s7795_s18] sm:$0xff]   ;;  %v6803_v15 = vld [vmem:[%s7795_s18 + $0x78] sm:$0xff]   ;;  %2270 = vperm.xlu1 %7561, %v973_v9   ;;  %v974_v20 = vld [vmem:[%s10179_s4 + $0x10] sm:$0xf]  ;;  %vm579_vm6 = vsmask.f32 4368 }
  0x15   : > { %2246 = vperm.xlu0 %7560, %v971_v10   ;;  %v6727_v16 = vunpack.c.l.bf16 %v6726_v14  ;;  %v6787_v17 = vunpack.c.l.bf16 %v6803_v15  ;;  %v6788_v18 = vunpack.c.h.bf16 %v6803_v15  ;;  %v7813_v21 = vld [vmem:[%s10177_s2] ss:$0 sm:$0xff]  ;;  %v6728_v25 = vunpack.c.h.bf16 %v6726_v14  ;;  %v977_v29 = vld [vmem:[%s10179_s4 + $0x1c] sm:$0xf]  ;;  %v976_v30 = vld [vmem:[%s10179_s4 + $0x18] sm:$0xf] }
  0x16   : > { %v7564_v34 = vld [vmem:[%s10180_s5 + $0x48] sm:$0xff]   ;;  %v979_v39 = vld [vmem:[%s10179_s4 + $0x24] sm:$0xf]  ;;  %v978_v40 = vld [vmem:[%s10179_s4 + $0x20] sm:$0xf]  ;;  %vm1720_vm9 = vcmask 261120  }
  0x17   : > { %v380_v22 = vmul.f32 %v6727_v16, %v7800_v13  ;;  %v410_v23 = vmul.f32 %v6787_v17, %v7800_v13  ;;  %v411_v24 = vmul.f32 %v6788_v18, %v7800_v13  ;;  %v381_v35 = vmul.f32 %v6728_v25, %v7800_v13  ;;  %7112 = vmatprep.subr.bf16.mxu0 %v7564_v34  ;;  %v981_v46 = vld [vmem:[%s10179_s4 + $0x2c] sm:$0xf]  ;;  %v7565_v47 = vld [vmem:[%s10180_s5 + $0x18] sm:$0xff]   ;;  %v980_v52 = vld [vmem:[%s10179_s4 + $0x28] sm:$0xf]  ;;  %s6246_s13 = sshll.u32 %s10652_s25, 1 }
  0x18   : > { %2294 = vperm.xlu1 %7561, %v975_v19   ;;  %7113 = vmatpush3.bf16.msra.mxu0 %v7564_v34  ;;  %v6789_v53 = vld [vmem:[%s7795_s18 + $0x8] sm:$0xff]   ;;  %vm7859_vm7 = vmor %vm295_vm1, %vm579_vm6  ;;  %v983_v5 = vld [vmem:[%s10179_s4 + $0x34] sm:$0xf]  ;;  %vm1575_vm8 = vsmask.f32 7424  ;;  %vm2648_vm10 = vcmask 1040384   ;;  %s289_s19 = scalar_lea.vmem %s10182_s7, %s6246_s13 }
  0x19   : > { %2282 = vperm.xlu0 %7560, %v974_v20   ;;  %v419_v26 = vadd.f32 %v7813_v21, %v380_v22  ;;  %v449_v27 = vadd.f32 %v7813_v21, %v410_v23  ;;  %v450_v28 = vadd.f32 %v7813_v21, %v411_v24  ;;  %v420_v48 = vadd.f32 %v7813_v21, %v381_v35  ;;  %v901_v54 = vld [vmem:[#allocation2 + $0x8] sm:$0xf]  ;;  %v982_v6 = vld [vmem:[%s10179_s4 + $0x30] sm:$0xf]  ;;  %v985_v11 = vld [vmem:[%s10179_s4 + $0x3c] sm:$0xf] }
  0x1a   : > { %6968 = vmatprep.subr.bf16.mxu1 %v7565_v47  ;;  %v6731_v55 = vunpack.c.l.bf16 %v6789_v53  ;;  %v6732_v56 = vunpack.c.h.bf16 %v6789_v53  ;;  %v935_v60 = vld [vmem:[#allocation2 + $0x88] sm:$0x1]  ;;  %v984_v12 = vld [vmem:[%s10179_s4 + $0x38] sm:$0xf]  ;;  %v6790_v18 = vld [vmem:[%s7795_s18 + $0x10] sm:$0xff]   ;;  %vm2649_vm11 = vcmask 1044484  }
  0x1b   : > { %v451_v31 = vmax.f32 %v419_v26, 0.0  ;;  %v481_v32 = vmax.f32 %v449_v27, 0.0  ;;  %v482_v33 = vmax.f32 %v450_v28, 0.0  ;;  %6969 = vmatpush3.bf16.msra.mxu1 %v7565_v47  ;;  %v452_v2 = vmax.f32 %v420_v48, 0.0  ;;  %v987_v19 = vld [vmem:[%s10179_s4 + $0x44] sm:$0xf]  ;;  %vm8379_vm12 = vmor %vm2648_vm10, %vm2649_vm11 }
  0x1c   : > { %2318 = vperm.xlu1 %7561, %v977_v29   ;;  %v382_v63 = vmul.f32 %v6731_v55, %v7800_v13  ;;  %v383_v0 = vmul.f32 %v6732_v56, %v7800_v13  ;;  %v986_v20 = vld [vmem:[%s10179_s4 + $0x40] sm:$0xf]  ;;  %v6735_v25 = vunpack.c.l.bf16 %v6790_v18  ;;  %v6791_v26 = vld [vmem:[%s7795_s18 + $0x18] sm:$0xff]   ;;  %v6736_v27 = vunpack.c.h.bf16 %v6790_v18  ;;  %v1455_v29 = vld [vmem:[#allocation2 + $0x4] sm:$0xf] }
  0x1d   : > { %2306 = vperm.xlu0 %7560, %v976_v30   ;;  %v6661_v36 = vpack.c.bf16 %v451_v31, %v451_v31  ;;  %v7831_v37 = vpack.c.bf16 %v481_v32, %v481_v32  ;;  %v6692_v38 = vpack.c.bf16 %v482_v33, %v482_v33  ;;  %v6662_v10 = vpack.c.bf16 %v452_v2, %v452_v2  ;;  %v1454_v28 = vld [vmem:[#allocation2] sm:$0xf]  ;;  %v991_v53 = vld [vmem:[%s10179_s4 + $0x54] sm:$0xf] }
  0x1e   : > { %v421_v9 = vadd.f32 %v7813_v21, %v382_v63  ;;  %v422_v7 = vadd.f32 %v7813_v21, %v383_v0  ;;  %v6739_v30 = vunpack.c.l.bf16 %v6791_v26  ;;  %v6740_v31 = vunpack.c.h.bf16 %v6791_v26 }
  0x1f   : > { %v582_v41 = vshrl.u32 %v6661_v36, 16  ;;  %v585_v42 = vshll.u32 %v6661_v36, 16  ;;  %v851_v43 = vshrl.u32 %v7831_v37, 16  ;;  %v860_v44 = vshrl.u32 %v6692_v38, 16  ;;  %v989_v36 = vld [vmem:[%s10179_s4 + $0x4c] sm:$0xf] }
  0x20   : > { %v863_v45 = vshll.u32 %v6692_v38, 16  ;;  %2342 = vperm.xlu1 %7561, %v979_v39   ;;  %v453_v1 = vmax.f32 %v421_v9, 0.0  ;;  %v454_v14 = vmax.f32 %v422_v7, 0.0  ;;  %v590_v15 = vshrl.u32 %v6662_v10, 16 }
  0x21   : > { %2330 = vperm.xlu0 %7560, %v978_v40   ;;  %v7847_v49 = vrot.slane %v582_v41, 7  ;;  %v7849_v50 = vrot.slane %v851_v43, 7  ;;  %v862_v51 = vrot.slane %v860_v44, 7  ;;  %v593_v16 = vshll.u32 %v6662_v10, 16 }
  0x22   : > { %v6663_v22 = vpack.c.bf16 %v453_v1, %v453_v1  ;;  %v6664_v23 = vpack.c.bf16 %v454_v14, %v454_v14  ;;  %v592_v24 = vrot.slane %v590_v15, 7  ;;  %v384_v40 = vmul.f32 %v6735_v25, %v7800_v13  ;;  %v938_v1 = vld [vmem:[%s10178_s3] sm:$0xf] }
  0x23   : > { %v587_v57 = vor.u32 %v585_v42, %v7847_v49  ;;  %v858_v58 = vrot.slane %v7849_v50, 4  ;;  %v865_v59 = vor.u32 %v863_v45, %v862_v51  ;;  %v867_v62 = vrot.slane %v862_v51, 4  ;;  %v988_v42 = vld [vmem:[%s10179_s4 + $0x48] sm:$0xf] }
  0x24   : > { %2366 = vperm.xlu1 %7561, %v981_v46   ;;  %v588_v17 = vrot.slane %v7847_v49, 4  ;;  %v595_v32 = vor.u32 %v593_v16, %v592_v24  ;;  %v597_v33 = vrot.slane %v592_v24, 4  ;;  %v599_v34 = vshrl.u32 %v6663_v22, 16 }
  0x25   : > { %2354 = vperm.xlu0 %7560, %v980_v52   ;;  %v866_v3 = vsel %vm7859_vm7, %v858_v58, %v865_v59  ;;  %v902_v4 = vsel %vm7770_vm5, %v587_v57, %v901_v54  ;;  %v936_v8 = vsel %vm7751_vm2, %v867_v62, %v935_v60  ;;  %v602_v35 = vshll.u32 %v6663_v22, 16  ;;  %v7915_v52 = vld [vmem:[%s10180_s5] sm:$0xff]   ;;  %v7924_v58 = vld [vmem:[%s10180_s5 + $0x50] sm:$0xff]  }
  0x26   : > { %903 = vst [vmem:[#allocation2 + $0x8] sm:$0xf] %v902_v4  ;;  %934 = vst.msk [vmem:[#allocation2 + $0x84] sm:$0xf] %vm291_vm4, %v866_v3  ;;  %v608_v38 = vshrl.u32 %v6664_v23, 16  ;;  %v611_v39 = vshll.u32 %v6664_v23, 16  ;;  %v385_v41 = vmul.f32 %v6736_v27, %v7800_v13  ;;  %v596_v43 = vsel %vm7859_vm7, %v588_v17, %v595_v32  ;;  %7002 = vmatprep.subr.bf16.mxu1 %v7915_v52 }
  0x27   : > { %937 = vst [vmem:[#allocation2 + $0x88] sm:$0x1] %v936_v8  ;;  %v601_v44 = vrot.slane %v599_v34, 7  ;;  %v6285_v45 = vcombine.low %v1454_v28, %v1455_v29  ;;  %v386_v46 = vmul.f32 %v6739_v30, %v7800_v13  ;;  %904 = vst.msk [vmem:[#allocation2 + $0xc] sm:$0xf] %vm291_vm4, %v596_v43  ;;  %v423_v48 = vadd.f32 %v7813_v21, %v384_v40  ;;  %v6792_v57 = vld [vmem:[%s7795_s18 + $0x20] sm:$0xff]  }
  0x28   : > { %2390 = vperm.xlu1 %7561, %v983_v5   ;;  %v7906_v47 = vrot.slane %v608_v38, 7  ;;  %v424_v49 = vadd.f32 %v7813_v21, %v385_v41  ;;  %v387_v51 = vmul.f32 %v6740_v31, %v7800_v13  ;;  %v990_v59 = vld [vmem:[%s10179_s4 + $0x50] sm:$0xf]  ;;  %7146 = vmatprep.subr.bf16.mxu0 %v7924_v58  ;;  %v6744_v17 = vunpack.c.h.bf16 %v6792_v57  ;;  %v992_v34 = vld [vmem:[%s10179_s4 + $0x58] sm:$0xf] }
  0x29   : > { %2378 = vperm.xlu0 %7560, %v982_v6   ;;  %v604_v54 = vor.u32 %v602_v35, %v601_v44  ;;  %v606_v55 = vrot.slane %v601_v44, 4  ;;  %v1579_v56 = vshll.u32 %v6285_v45, 16  ;;  %v455_v62 = vmax.f32 %v423_v48, 0.0 }
  0x2a   : > { %v613_v60 = vor.u32 %v611_v39, %v7906_v47  ;;  %v456_v63 = vmax.f32 %v424_v49, 0.0  ;;  %v1577_v0 = vshrl.u32 %v6285_v45, 16  ;;  %v615_v3 = vrot.slane %v7906_v47, 4 }
  0x2b   : > { %v605_v2 = vsel %vm7859_vm7, %v597_v33, %v604_v54  ;;  %v425_v4 = vadd.f32 %v7813_v21, %v386_v46  ;;  %v426_v5 = vadd.f32 %v7813_v21, %v387_v51  ;;  %v6665_v9 = vpack.c.bf16 %v455_v62, %v455_v62  ;;  %v940_v33 = vld [vmem:[%s10178_s3 + $0x8] sm:$0xf] }
  0x2c   : > { %2414 = vperm.xlu1 %7561, %v985_v11   ;;  %v614_v6 = vsel %vm7859_vm7, %v606_v55, %v613_v60  ;;  %905 = vst.msk [vmem:[#allocation2 + $0x10] sm:$0xf] %vm291_vm4, %v605_v2  ;;  %v6666_v7 = vpack.c.bf16 %v456_v63, %v456_v63  ;;  %v6743_v11 = vunpack.c.l.bf16 %v6792_v57  ;;  %v1581_v14 = vrot.slane %v1579_v56, 1  ;;  %v941_v2 = vld [vmem:[%s10178_s3 + $0xc] sm:$0xf] }
  0x2d   : > { %2402 = vperm.xlu0 %7560, %v984_v12   ;;  %v3589_v8 = vld [vmem:[#allocation2 + $0x8] sm:$0xf]  ;;  %v939_v12 = vld [vmem:[%s10178_s3 + $0x4] sm:$0xf]  ;;  %906 = vst.msk [vmem:[#allocation2 + $0x14] sm:$0xf] %vm291_vm4, %v614_v6  ;;  %v389_v28 = vmul.f32 %v6744_v17, %v7800_v13 }
  0x2e   : > { %v1456_v10 = vld [vmem:[#allocation2 + $0x8] sm:$0xf]  ;;  %v457_v15 = vmax.f32 %v425_v4, 0.0  ;;  %v458_v16 = vmax.f32 %v426_v5, 0.0  ;;  %v617_v18 = vshrl.u32 %v6665_v9, 16  ;;  %v629_v22 = vshll.u32 %v6666_v7, 16 }
  0x2f   : > { %v3590_v23 = vld [vmem:[#allocation2 + $0xc] sm:$0xf]  ;;  %v388_v27 = vmul.f32 %v6743_v11, %v7800_v13  ;;  %v1582_v35 = vor.u32 %v1581_v14, %v1577_v0  ;;  %v428_v57 = vadd.f32 %v7813_v21, %v389_v28  ;;  %vm2900_vm13 = vcmask 1046528  }
  0x30   : > { %2438 = vperm.xlu1 %7561, %v987_v19   ;;  %v620_v19 = vshll.u32 %v6665_v9, 16  ;;  %v1457_v24 = vld [vmem:[#allocation2 + $0xc] sm:$0xf]  ;;  %v6667_v25 = vpack.c.bf16 %v457_v15, %v457_v15  ;;  %v6668_v26 = vpack.c.bf16 %v458_v16, %v458_v16  ;;  %v6435_v29 = vcombine.low %v3589_v8, %v3590_v23  ;;  %v995_v15 = vld [vmem:[%s10179_s4 + $0x64] sm:$0xf] }
  0x31   : > { %2426 = vperm.xlu0 %7560, %v986_v20   ;;  %v626_v20 = vshrl.u32 %v6666_v7, 16  ;;  %v619_v30 = vrot.slane %v617_v18, 7  ;;  %v6286_v32 = vcombine.low %v1456_v10, %v1457_v24  ;;  %v427_v49 = vadd.f32 %v7813_v21, %v388_v27 }
  0x32   : > { %v638_v38 = vshll.u32 %v6667_v25, 16  ;;  %v644_v39 = vshrl.u32 %v6668_v26, 16  ;;  %v3711_v40 = vshrl.u32 %v6435_v29, 16  ;;  %v3713_v41 = vshll.u32 %v6435_v29, 16 }
  0x33   : > { %v628_v31 = vrot.slane %v626_v20, 7  ;;  %v624_v43 = vrot.slane %v619_v30, 4  ;;  %v3591_v44 = vld [vmem:[#allocation2 + $0x10] sm:$0xf]  ;;  %v1584_v46 = vshll.u32 %v6286_v32, 16  ;;  %v1588_v47 = vshrl.u32 %v6286_v32, 16 }
  0x34   : > { %2462 = vperm.xlu1 %7561, %v989_v36   ;;  %v635_v36 = vshrl.u32 %v6667_v25, 16  ;;  %v1458_v48 = vld [vmem:[#allocation2 + $0x10] sm:$0xf]  ;;  %v3592_v51 = vld [vmem:[#allocation2 + $0x14] sm:$0xf]  ;;  %v647_v56 = vshll.u32 %v6668_v26, 16 }
  0x35   : > { %2450 = vperm.xlu0 %7560, %v988_v42   ;;  %v622_v42 = vor.u32 %v620_v19, %v619_v30  ;;  %v631_v45 = vor.u32 %v629_v22, %v628_v31  ;;  %v1459_v55 = vld [vmem:[#allocation2 + $0x14] sm:$0xf]  ;;  %v7962_v60 = vcombine.low %v3591_v44, %v3592_v51  ;;  %v1586_v63 = vrot.slane %v1584_v46, 1  ;;  %v994_v19 = vld [vmem:[%s10179_s4 + $0x60] sm:$0xf] }
  0x36   : > { %v6287_v0 = vcombine.low %v1458_v48, %v1459_v55  ;;  %v637_v4 = vrot.slane %v635_v36, 7  ;;  %v646_v5 = vrot.slane %v644_v39, 7  ;;  %v459_v6 = vmax.f32 %v427_v49, 0.0  ;;  %v943_v39 = vld [vmem:[%s10178_s3 + $0x14] sm:$0xf] }
  0x37   : > { %v623_v54 = vsel %vm7859_vm7, %v615_v3, %v622_v42  ;;  %v632_v62 = vsel %vm7859_vm7, %v624_v43, %v631_v45  ;;  %v633_v3 = vrot.slane %v628_v31, 4  ;;  %v3718_v9 = vshll.u32 %v7962_v60, 16  ;;  %v996_v55 = vld [vmem:[%s10179_s4 + $0x68] sm:$0xf] }
  0x38   : > { %2486 = vperm.xlu1 %7561, %v991_v53   ;;  %v3715_v53 = vrot.slane %v3713_v41, 1  ;;  %907 = vst.msk [vmem:[#allocation2 + $0x18] sm:$0xf] %vm291_vm4, %v623_v54  ;;  %908 = vst.msk [vmem:[#allocation2 + $0x1c] sm:$0xf] %vm291_vm4, %v632_v62  ;;  %v1587_v7 = vsel %vm1575_vm8, %v1582_v35, %v1586_v63  ;;  %v1590_v10 = vor.u32 %v1588_v47, %v1586_v63  ;;  %v1592_v11 = vshll.u32 %v6287_v0, 16 }
  0x39   : > { %2474 = vperm.xlu0 %7560, %v990_v59   ;;  %v993_v59 = vld [vmem:[%s10179_s4 + $0x5c] sm:$0xf]  ;;  %6970 = vmatprep.mubr.msk.bf16.mxu1 %vm1720_vm9, %v1587_v7  ;;  %v649_v14 = vor.u32 %v647_v56, %v646_v5  ;;  %v3720_v16 = vrot.slane %v3718_v9, 1  ;;  %v460_v17 = vmax.f32 %v428_v57, 0.0  ;;  %v6669_v18 = vpack.c.bf16 %v459_v6, %v459_v6  ;;  %v6793_v47 = vld [vmem:[%s7795_s18 + $0x28] sm:$0xff]   ;;  %v6794_v9 = vld [vmem:[%s7795_s18 + $0x30] sm:$0xff]  }
  0x3a   : > { %v3716_v8 = vor.u32 %v3715_v53, %v3711_v40  ;;  %v1594_v20 = vrot.slane %v1592_v11, 1  ;;  %v3722_v25 = vshrl.u32 %v7962_v60, 16  ;;  %v1596_v32 = vshrl.u32 %v6287_v0, 16  ;;  %v942_v40 = vld [vmem:[%s10178_s3 + $0x10] sm:$0xf] }
  0x3b   : > { %v6670_v26 = vpack.c.bf16 %v460_v17, %v460_v17  ;;  %v653_v27 = vshrl.u32 %v6669_v18, 16  ;;  %v656_v30 = vshll.u32 %v6669_v18, 16  ;;  %v944_v54 = vld [vmem:[%s10178_s3 + $0x18] sm:$0xf]  ;;  %v6747_v0 = vunpack.c.l.bf16 %v6793_v47 }
  0x3c   : > { %1048 = vperm.xlu1 %7561, %v939_v12   ;;  %v640_v12 = vor.u32 %v638_v38, %v637_v4  ;;  %v3721_v24 = vsel %vm1575_vm8, %v3716_v8, %v3720_v16  ;;  %v1595_v29 = vsel %vm1575_vm8, %v1590_v10, %v1594_v20  ;;  %v3724_v48 = vor.u32 %v3722_v25, %v3720_v16 }
  0x3d   : > { %1036 = vperm.xlu0 %7560, %v938_v1   ;;  %v642_v1 = vrot.slane %v637_v4, 4  ;;  %7114 = vmatprep.mubr.msk.bf16.mxu0 %vm1720_vm9, %v3721_v24  ;;  %v655_v35 = vrot.slane %v653_v27, 7  ;;  %v662_v36 = vshrl.u32 %v6670_v26, 16  ;;  %v665_v38 = vshll.u32 %v6670_v26, 16 }
  0x3e   : > { %v641_v22 = vsel %vm7859_vm7, %v633_v3, %v640_v12  ;;  %6971 = vmatmul.mubr.msk.bf16.vlgmr.msra.gmra.mrb[0].mxu1 %vm1720_vm9, %v1595_v29  ;;  %v1598_v53 = vor.u32 %v1596_v32, %v1594_v20  ;;  %v390_v11 = vmul.f32 %v6747_v0, %v7800_v13  ;;  %v7591_v12 = vld [vmem:[%s10180_s5 + $0x58] sm:$0xff]   ;;  %v6751_v20 = vunpack.c.l.bf16 %v6794_v9  ;;  %v999_v32 = vld [vmem:[%s10179_s4 + $0x74] sm:$0xf] }
  0x3f   : > { %v650_v23 = vsel %vm7859_vm7, %v642_v1, %v649_v14  ;;  %909 = vst.msk [vmem:[#allocation2 + $0x20] sm:$0xf] %vm291_vm4, %v641_v22  ;;  %v7989_v28 = vld [vmem:[#allocation2 + $0x18] sm:$0xf]  ;;  %v1461_v42 = vld [vmem:[#allocation2 + $0x1c] sm:$0xf]  ;;  %v658_v43 = vor.u32 %v656_v30, %v655_v35  ;;  %7003 = vmatpush3.bf16.msra.mxu1 %v7915_v52  ;;  %v6752_v26 = vunpack.c.h.bf16 %v6794_v9 }
  0x40   : > { %1060 = vperm.xlu1 %7561, %v940_v33   ;;  %910 = vst.msk [vmem:[#allocation2 + $0x24] sm:$0xf] %vm291_vm4, %v650_v23  ;;  %v1460_v31 = vld [vmem:[#allocation2 + $0x18] sm:$0xf]  ;;  %v7992_v33 = vld [vmem:[#allocation2 + $0x1c] sm:$0xf] }
  0x41   : > { %2498 = vperm.xlu0 %7560, %v992_v34   ;;  %v651_v34 = vrot.slane %v646_v5, 4  ;;  %v6437_v41 = vcombine.low %v7989_v28, %v7992_v33  ;;  %v660_v44 = vrot.slane %v655_v35, 4  ;;  %v8003_v45 = vrot.slane %v662_v36, 7  ;;  %v997_v22 = vld [vmem:[%s10179_s4 + $0x6c] sm:$0xf] }
  0x42   : > { %v6288_v46 = vcombine.low %v1460_v31, %v1461_v42  ;;  %v945_v23 = vld [vmem:[%s10178_s3 + $0x1c] sm:$0xf]  ;;  %v392_v31 = vmul.f32 %v6751_v20, %v7800_v13  ;;  %v393_v36 = vmul.f32 %v6752_v26, %v7800_v13  ;;  %v948_v20 = vld [vmem:[%s10178_s3 + $0x28] sm:$0xf]  ;;  %v1000_v26 = vld [vmem:[%s10179_s4 + $0x78] sm:$0xf] }
  0x43   : > { %v3726_v49 = vshll.u32 %v6437_v41, 16  ;;  %v3730_v51 = vshrl.u32 %v6437_v41, 16  ;;  %v659_v56 = vsel %vm7859_vm7, %v651_v34, %v658_v43  ;;  %v667_v57 = vor.u32 %v665_v38, %v8003_v45 }
  0x44   : > { %2510 = vperm.xlu1 %7561, %v993_v59   ;;  %v1600_v59 = vshll.u32 %v6288_v46, 16  ;;  %v1604_v52 = vshrl.u32 %v6288_v46, 16  ;;  %911 = vst.msk [vmem:[#allocation2 + $0x28] sm:$0xf] %vm291_vm4, %v659_v56  ;;  %v431_v42 = vadd.f32 %v7813_v21, %v392_v31  ;;  %v6795_v56 = vld [vmem:[%s7795_s18 + $0x38] sm:$0xff]  }
  0x45   : > { %1072 = vperm.xlu0 %7560, %v941_v2   ;;  %v3728_v60 = vrot.slane %v3726_v49, 1  ;;  %v6748_v2 = vunpack.c.h.bf16 %v6793_v47  ;;  %v668_v4 = vsel %vm7859_vm7, %v660_v44, %v667_v57  ;;  %v669_v47 = vrot.slane %v8003_v45, 4  ;;  %v947_v45 = vld [vmem:[%s10178_s3 + $0x24] sm:$0xf] }
  0x46   : > { %v8016_v62 = vld [vmem:[#allocation2 + $0x20] sm:$0xf]  ;;  %v1602_v5 = vrot.slane %v1600_v59, 1  ;;  %912 = vst.msk [vmem:[#allocation2 + $0x2c] sm:$0xf] %vm291_vm4, %v668_v4  ;;  %v463_v57 = vmax.f32 %v431_v42, 0.0 }
  0x47   : > { %v8018_v63 = vld [vmem:[#allocation2 + $0x24] sm:$0xf]  ;;  %v1462_v6 = vld [vmem:[#allocation2 + $0x20] sm:$0xf]  ;;  %v3729_v7 = vsel %vm1575_vm8, %v3724_v48, %v3728_v60  ;;  %v3732_v1 = vor.u32 %v3730_v51, %v3728_v60  ;;  %v391_v18 = vmul.f32 %v6748_v2, %v7800_v13  ;;  %v432_v48 = vadd.f32 %v7813_v21, %v393_v36 }
  0x48   : > { %2534 = vperm.xlu1 %7561, %v995_v15   ;;  %v6438_v3 = vcombine.low %v8016_v62, %v8018_v63  ;;  %v1463_v8 = vld [vmem:[#allocation2 + $0x24] sm:$0xf]  ;;  %7115 = vmatmul.mubr.msk.bf16.vlgmr.msra.gmra.mrb[0].mxu0 %vm1720_vm9, %v3729_v7  ;;  %v1603_v15 = vsel %vm1575_vm8, %v1598_v53, %v1602_v5  ;;  %v1606_v16 = vor.u32 %v1604_v52, %v1602_v5  ;;  %v946_v5 = vld [vmem:[%s10178_s3 + $0x20] sm:$0xf]  ;;  %v6755_v7 = vunpack.c.l.bf16 %v6795_v56 }
  0x49   : > { %2522 = vperm.xlu0 %7560, %v994_v19   ;;  %v6289_v10 = vcombine.low %v1462_v6, %v1463_v8  ;;  %v429_v19 = vadd.f32 %v7813_v21, %v390_v11  ;;  %6974 = vmatprep.mubr.msk.bf16.mxu1 %vm1720_vm9, %v1603_v15  ;;  %v430_v29 = vadd.f32 %v7813_v21, %v391_v18  ;;  %v464_v59 = vmax.f32 %v432_v48, 0.0  ;;  %v8085_v11 = vld [vmem:[%s10180_s5 + $0x60] sm:$0xff]   ;;  %v1001_v48 = vld [vmem:[%s10179_s4 + $0x7c] sm:$0xf] }
  0x4a   : > { %v3734_v14 = vshll.u32 %v6438_v3, 16  ;;  %v3738_v25 = vshrl.u32 %v6438_v3, 16  ;;  %7147 = vmatpush3.bf16.msra.mxu0 %v7924_v58  ;;  %v998_v58 = vld [vmem:[%s10179_s4 + $0x70] sm:$0xf]  ;;  %v6673_v6 = vpack.c.bf16 %v463_v57, %v463_v57  ;;  %v6756_v36 = vunpack.c.h.bf16 %v6795_v56 }
  0x4b   : > { %v1608_v17 = vshll.u32 %v6289_v10, 16  ;;  %v461_v30 = vmax.f32 %v429_v19, 0.0  ;;  %7148 = vmatprep.subr.bf16.mxu0 %v7591_v12  ;;  %v8050_v35 = vld [vmem:[#allocation2 + $0x28] sm:$0xf]  ;;  %v1612_v38 = vshrl.u32 %v6289_v10, 16  ;;  %v6674_v8 = vpack.c.bf16 %v464_v59, %v464_v59 }
  0x4c   : > { %1096 = vperm.xlu1 %7561, %v943_v39   ;;  %v3736_v24 = vrot.slane %v3734_v14, 1  ;;  %v1464_v43 = vld [vmem:[#allocation2 + $0x28] sm:$0xf] }
  0x4d   : > { %1084 = vperm.xlu0 %7560, %v942_v40   ;;  %v1610_v27 = vrot.slane %v1608_v17, 1  ;;  %v462_v40 = vmax.f32 %v430_v29, 0.0  ;;  %v6671_v41 = vpack.c.bf16 %v461_v30, %v461_v30  ;;  %v8059_v44 = vld [vmem:[#allocation2 + $0x2c] sm:$0xf]  ;;  %v692_v17 = vshll.u32 %v6673_v6, 16 }
  0x4e   : > { %v3737_v34 = vsel %vm1575_vm8, %v3732_v1, %v3736_v24  ;;  %v3740_v46 = vor.u32 %v3738_v25, %v3736_v24  ;;  %v1465_v49 = vld [vmem:[#allocation2 + $0x2c] sm:$0xf]  ;;  %v8066_v51 = vcombine.low %v8050_v35, %v8059_v44  ;;  %7149 = vmatpush3.bf16.msra.mxu0 %v7591_v12  ;;  %v698_v18 = vshrl.u32 %v6674_v8, 16 }
  0x4f   : > { %v1611_v39 = vsel %vm1575_vm8, %v1606_v16, %v1610_v27  ;;  %7118 = vmatprep.mubr.msk.bf16.mxu0 %vm1720_vm9, %v3737_v34  ;;  %v6672_v53 = vpack.c.bf16 %v462_v40, %v462_v40  ;;  %v8069_v52 = vcombine.low %v1464_v43, %v1465_v49  ;;  %v1614_v60 = vor.u32 %v1612_v38, %v1610_v27  ;;  %v7606_v10 = vld [vmem:[%s10180_s5 + $0x8] sm:$0xff]  }
  0x50   : > { %1108 = vperm.xlu1 %7561, %v944_v54   ;;  %6975 = vmatmul.mubr.msk.bf16.gmra.mrb[4].mxu1 %vm1720_vm9, %v1611_v39  ;;  %v671_v54 = vshrl.u32 %v6671_v41, 16  ;;  %v3742_v0 = vshll.u32 %v8066_v51, 16  ;;  %v689_v16 = vshrl.u32 %v6673_v6, 16  ;;  %v701_v19 = vshll.u32 %v6674_v8, 16  ;;  %v6797_v43 = vld [vmem:[%s7795_s18 + $0x48] sm:$0xff]  }
  0x51   : > { %2546 = vperm.xlu0 %7560, %v996_v55   ;;  %v674_v55 = vshll.u32 %v6671_v41, 16  ;;  %v680_v3 = vshrl.u32 %v6672_v53, 16  ;;  %v683_v4 = vshll.u32 %v6672_v53, 16  ;;  %v1616_v9 = vshll.u32 %v8069_v52, 16  ;;  %7004 = vmatprep.subr.bf16.mxu1 %v7606_v10  ;;  %v949_v49 = vld [vmem:[%s10178_s3 + $0x2c] sm:$0xf] }
  0x52   : > { %v673_v2 = vrot.slane %v671_v54, 7  ;;  %v3744_v12 = vrot.slane %v3742_v0, 1  ;;  %7182 = vmatprep.subr.bf16.mxu0 %v8085_v11  ;;  %v3746_v25 = vshrl.u32 %v8066_v51, 16  ;;  %v691_v29 = vrot.slane %v689_v16, 7  ;;  %7005 = vmatpush3.bf16.msra.mxu1 %v7606_v10  ;;  %v950_v10 = vld [vmem:[%s10178_s3 + $0x30] sm:$0xf] }
  0x53   : > { %v682_v15 = vrot.slane %v680_v3, 7  ;;  %v8100_v30 = vrot.slane %v698_v18, 7  ;;  %v1618_v31 = vrot.slane %v1616_v9, 1  ;;  %v1620_v34 = vshrl.u32 %v8069_v52, 16  ;;  %v8128_v52 = vld [vmem:[%s7795_s18 + $0x50] sm:$0xff]  }
  0x54   : > { %2558 = vperm.xlu1 %7561, %v997_v22   ;;  %v676_v1 = vor.u32 %v674_v55, %v673_v2  ;;  %v678_v14 = vrot.slane %v673_v2, 4  ;;  %v3745_v22 = vsel %vm1575_vm8, %v3740_v46, %v3744_v12  ;;  %v394_v38 = vmul.f32 %v6755_v7, %v7800_v13  ;;  %v951_v7 = vld [vmem:[%s10178_s3 + $0x34] sm:$0xf] }
  0x55   : > { %1120 = vperm.xlu0 %7560, %v945_v23   ;;  %v685_v24 = vor.u32 %v683_v4, %v682_v15  ;;  %7119 = vmatmul.mubr.msk.bf16.gmra.mrb[4].mxu0 %vm1720_vm9, %v3745_v22  ;;  %v687_v27 = vrot.slane %v682_v15, 4  ;;  %v694_v39 = vor.u32 %v692_v17, %v691_v29  ;;  %v696_v40 = vrot.slane %v691_v29, 4  ;;  %v952_v29 = vld [vmem:[%s10178_s3 + $0x38] sm:$0xf] }
  0x56   : > { %v677_v23 = vsel %vm7859_vm7, %v669_v47, %v676_v1  ;;  %v703_v41 = vor.u32 %v701_v19, %v8100_v30  ;;  %v1619_v42 = vsel %vm1575_vm8, %v1614_v60, %v1618_v31  ;;  %v395_v46 = vmul.f32 %v6756_v36, %v7800_v13 }
  0x57   : > { %913 = vst.msk [vmem:[#allocation2 + $0x30] sm:$0xf] %vm291_vm4, %v677_v23  ;;  %v433_v47 = vadd.f32 %v7813_v21, %v394_v38  ;;  %v695_v51 = vsel %vm7859_vm7, %v687_v27, %v694_v39  ;;  %6978 = vmatprep.mubr.msk.bf16.mxu1 %vm1720_vm9, %v1619_v42  ;;  %v6763_v59 = vunpack.c.l.bf16 %v6797_v43  ;;  %v3748_v60 = vor.u32 %v3746_v25, %v3744_v12  ;;  %v953_v23 = vld [vmem:[%s10178_s3 + $0x3c] sm:$0xf] }
  0x58   : > { %2582 = vperm.xlu1 %7561, %v999_v32   ;;  %v686_v32 = vsel %vm7859_vm7, %v678_v14, %v685_v24  ;;  %v704_v53 = vsel %vm7859_vm7, %v696_v40, %v703_v41  ;;  %915 = vst.msk [vmem:[#allocation2 + $0x38] sm:$0xf] %vm291_vm4, %v695_v51  ;;  %v434_v56 = vadd.f32 %v7813_v21, %v395_v46  ;;  %v705_v8 = vrot.slane %v8100_v30, 4 }
  0x59   : > { %2570 = vperm.xlu0 %7560, %v998_v58   ;;  %v6796_v58 = vld [vmem:[%s7795_s18 + $0x40] sm:$0xff]   ;;  %914 = vst.msk [vmem:[#allocation2 + $0x34] sm:$0xf] %vm291_vm4, %v686_v32  ;;  %916 = vst.msk [vmem:[#allocation2 + $0x3c] sm:$0xf] %vm291_vm4, %v704_v53  ;;  %v465_v57 = vmax.f32 %v433_v47, 0.0  ;;  %v6764_v9 = vunpack.c.h.bf16 %v6797_v43  ;;  %v398_v14 = vmul.f32 %v6763_v59, %v7800_v13  ;;  %v6767_v15 = vunpack.c.l.bf16 %v8128_v52 }
  0x5a   : > { %v6759_v54 = vunpack.c.l.bf16 %v6796_v58  ;;  %v6760_v55 = vunpack.c.h.bf16 %v6796_v58  ;;  %v6768_v22 = vunpack.c.h.bf16 %v8128_v52  ;;  %v955_v59 = vld [vmem:[%s10178_s3 + $0x44] sm:$0xf] }
  0x5b   : > { %v6675_v6 = vpack.c.bf16 %v465_v57, %v465_v57  ;;  %v8166_v41 = vadd.f32 %v7813_v21, %v398_v14 }
  0x5c   : > { %1144 = vperm.xlu1 %7561, %v947_v45   ;;  %v8130_v45 = vor.u32 %v1620_v34, %v1618_v31  ;;  %v396_v0 = vmul.f32 %v6759_v54, %v7800_v13  ;;  %v397_v2 = vmul.f32 %v6760_v55, %v7800_v13  ;;  %v399_v34 = vmul.f32 %v6764_v9, %v7800_v13 }
  0x5d   : > { %1132 = vperm.xlu0 %7560, %v946_v5   ;;  %v466_v5 = vmax.f32 %v434_v56, 0.0  ;;  %v707_v19 = vshrl.u32 %v6675_v6, 16 }
  0x5e   : > { %v8134_v3 = vld [vmem:[#allocation2 + $0x30] sm:$0xf]  ;;  %v435_v12 = vadd.f32 %v7813_v21, %v396_v0  ;;  %v436_v1 = vadd.f32 %v7813_v21, %v397_v2  ;;  %v954_v0 = vld [vmem:[%s10178_s3 + $0x40] sm:$0xf] }
  0x5f   : > { %v1466_v4 = vld [vmem:[#allocation2 + $0x30] sm:$0xf]  ;;  %v6676_v18 = vpack.c.bf16 %v466_v5, %v466_v5  ;;  %v709_v30 = vrot.slane %v707_v19, 7  ;;  %v8161_v38 = vld [vmem:[#allocation2 + $0x38] sm:$0xf] }
  0x60   : > { %1156 = vperm.xlu1 %7561, %v948_v20   ;;  %v8147_v16 = vld [vmem:[#allocation2 + $0x34] sm:$0xf]  ;;  %v710_v20 = vshll.u32 %v6675_v6, 16  ;;  %v468_v27 = vmax.f32 %v436_v1, 0.0  ;;  %v8163_v58 = vld [vmem:[#allocation2 + $0x3c] sm:$0xf] }
  0x61   : > { %2594 = vperm.xlu0 %7560, %v1000_v26   ;;  %v1467_v17 = vld [vmem:[#allocation2 + $0x34] sm:$0xf]  ;;  %v6440_v24 = vcombine.low %v8134_v3, %v8147_v16  ;;  %v467_v26 = vmax.f32 %v435_v12, 0.0  ;;  %v716_v31 = vshrl.u32 %v6676_v18, 16  ;;  %v719_v32 = vshll.u32 %v6676_v18, 16 }
  0x62   : > { %v8155_v25 = vcombine.low %v1466_v4, %v1467_v17  ;;  %v8170_v42 = vcombine.low %v8161_v38, %v8163_v58  ;;  %v712_v46 = vor.u32 %v710_v20, %v709_v30  ;;  %v6678_v47 = vpack.c.bf16 %v468_v27, %v468_v27  ;;  %v1468_v53 = vld [vmem:[#allocation2 + $0x38] sm:$0xf]  ;;  %v1469_v57 = vld [vmem:[#allocation2 + $0x3c] sm:$0xf]  ;;  %v957_v17 = vld [vmem:[%s10178_s3 + $0x4c] sm:$0xf] }
  0x63   : > { %v3750_v36 = vshll.u32 %v6440_v24, 16  ;;  %v3754_v39 = vshrl.u32 %v6440_v24, 16  ;;  %v6677_v40 = vpack.c.bf16 %v467_v26, %v467_v26  ;;  %v714_v13 = vrot.slane %v709_v30, 4  ;;  %v8200_v20 = vld [vmem:[%s10176_s1] ss:$0 sm:$0xff]  ;;  %v6799_v30 = vld [vmem:[%s7795_s18 + $0x58] sm:$0xff]  }
  0x64   : > { %2606 = vperm.xlu1 %7561, %v1001_v48   ;;  %v1624_v43 = vshll.u32 %v8155_v25, 16  ;;  %v3758_v54 = vshll.u32 %v8170_v42, 16  ;;  %v713_v21 = vsel %vm7859_vm7, %v705_v8, %v712_v46  ;;  %v737_v1 = vshll.u32 %v6678_v47, 16  ;;  %v956_v24 = vld [vmem:[%s10178_s3 + $0x48] sm:$0xf] }
  0x65   : > { %1168 = vperm.xlu0 %7560, %v949_v49   ;;  %v3752_v48 = vrot.slane %v3750_v36, 1  ;;  %v718_v49 = vrot.slane %v716_v31, 7  ;;  %v725_v51 = vshrl.u32 %v6677_v40, 16  ;;  %v728_v56 = vshll.u32 %v6677_v40, 16  ;;  %917 = vst.msk [vmem:[#allocation2 + $0x40] sm:$0xf] %vm291_vm4, %v713_v21 }
  0x66   : > { %v1626_v55 = vrot.slane %v1624_v43, 1  ;;  %v3760_v8 = vrot.slane %v3758_v54, 1  ;;  %v1628_v14 = vshrl.u32 %v8155_v25, 16  ;;  %v3762_v18 = vshrl.u32 %v8170_v42, 16  ;;  %v959_v46 = vld [vmem:[%s10178_s3 + $0x54] sm:$0xf] }
  0x67   : > { %v3753_v2 = vsel %vm1575_vm8, %v3748_v60, %v3752_v48  ;;  %v3756_v4 = vor.u32 %v3754_v39, %v3752_v48  ;;  %v721_v5 = vor.u32 %v719_v32, %v718_v49  ;;  %v723_v6 = vrot.slane %v718_v49, 4  ;;  %v8217_v32 = vld [vmem:[%s10177_s2] ss:$0 sm:$0xff] }
  0x68   : > { %1192 = vperm.xlu1 %7561, %v951_v7   ;;  %7122 = vmatprep.mubr.msk.bf16.mxu0 %vm1720_vm9, %v3753_v2  ;;  %v1627_v9 = vsel %vm1575_vm8, %v8130_v45, %v1626_v55  ;;  %v727_v7 = vrot.slane %v725_v51, 7  ;;  %v6292_v60 = vcombine.low %v1468_v53, %v1469_v57  ;;  %v1630_v27 = vor.u32 %v1628_v14, %v1626_v55 }
  0x69   : > { %1180 = vperm.xlu0 %7560, %v950_v10   ;;  %v734_v10 = vshrl.u32 %v6678_v47, 16  ;;  %6979 = vmatmul.mubr.msk.bf16.gmra.mrb[8].mxu1 %vm1720_vm9, %v1627_v9  ;;  %v722_v12 = vsel %vm7859_vm7, %v714_v13, %v721_v5  ;;  %v3761_v45 = vsel %vm1575_vm8, %v3756_v4, %v3760_v8  ;;  %v469_v36 = vmax.f32 %v8166_v41, 0.0 }
  0x6a   : > { %918 = vst.msk [vmem:[#allocation2 + $0x44] sm:$0xf] %vm291_vm4, %v722_v12  ;;  %v730_v19 = vor.u32 %v728_v56, %v727_v7  ;;  %7123 = vmatmul.mubr.msk.bf16.gmra.mrb[8].mxu0 %vm1720_vm9, %v3761_v45  ;;  %v732_v25 = vrot.slane %v727_v7, 4  ;;  %v1636_v42 = vshrl.u32 %v6292_v60, 16  ;;  %v401_v43 = vmul.f32 %v8200_v20, %v6768_v22  ;;  %v7616_v12 = vld [vmem:[%s10180_s5 + $0x20] sm:$0xff]  }
  0x6b   : > { %v8209_v26 = vrot.slane %v734_v10, 7  ;;  %v6679_v41 = vpack.c.bf16 %v469_v36, %v469_v36  ;;  %v6771_v48 = vunpack.c.l.bf16 %v6799_v30  ;;  %v3764_v49 = vor.u32 %v3762_v18, %v3760_v8  ;;  %7038 = vmatprep.subr.bf16.mxu1 %v7616_v12 }
  0x6c   : > { %1216 = vperm.xlu1 %7561, %v953_v23   ;;  %v400_v23 = vmul.f32 %v8200_v20, %v6767_v15  ;;  %v731_v31 = vsel %vm7859_vm7, %v723_v6, %v730_v19  ;;  %v438_v15 = vadd.f32 %v8217_v32, %v399_v34  ;;  %v958_v34 = vld [vmem:[%s10178_s3 + $0x50] sm:$0xf]  ;;  %v8233_v13 = vld [vmem:[#allocation2 + $0x40] sm:$0xf]  ;;  %v440_v55 = vadd.f32 %v8217_v32, %v401_v43  ;;  %v961_v6 = vld [vmem:[%s10178_s3 + $0x5c] sm:$0xf] }
  0x6d   : > { %1204 = vperm.xlu0 %7560, %v952_v29   ;;  %v1632_v29 = vshll.u32 %v6292_v60, 16  ;;  %v739_v39 = vor.u32 %v737_v1, %v8209_v26  ;;  %919 = vst.msk [vmem:[#allocation2 + $0x48] sm:$0xf] %vm291_vm4, %v731_v31  ;;  %v1470_v51 = vld [vmem:[#allocation2 + $0x40] sm:$0xf]  ;;  %v743_v54 = vshrl.u32 %v6679_v41, 16  ;;  %v6772_v56 = vunpack.c.h.bf16 %v6799_v30 }
  0x6e   : > { %v439_v47 = vadd.f32 %v8217_v32, %v400_v23  ;;  %v470_v53 = vmax.f32 %v438_v15, 0.0  ;;  %v741_v4 = vrot.slane %v8209_v26, 4  ;;  %v746_v5 = vshll.u32 %v6679_v41, 16  ;;  %v960_v1 = vld [vmem:[%s10178_s3 + $0x58] sm:$0xf] }
  0x6f   : > { %v1634_v40 = vrot.slane %v1632_v29, 1  ;;  %v740_v52 = vsel %vm7859_vm7, %v732_v25, %v739_v39  ;;  %v745_v7 = vrot.slane %v743_v54, 7  ;;  %v402_v10 = vmul.f32 %v8200_v20, %v6771_v48  ;;  %v963_v25 = vld [vmem:[%s10178_s3 + $0x64] sm:$0xf]  ;;  %v962_v26 = vld [vmem:[%s10178_s3 + $0x60] sm:$0xf] }
  0x70   : > { %1240 = vperm.xlu1 %7561, %v955_v59   ;;  %920 = vst.msk [vmem:[#allocation2 + $0x4c] sm:$0xf] %vm291_vm4, %v740_v52  ;;  %v471_v21 = vmax.f32 %v439_v47, 0.0  ;;  %v6680_v2 = vpack.c.bf16 %v470_v53, %v470_v53 }
  0x71   : > { %1228 = vperm.xlu0 %7560, %v954_v0   ;;  %v1635_v22 = vsel %vm1575_vm8, %v1630_v27, %v1634_v40  ;;  %v8241_v57 = vld [vmem:[#allocation2 + $0x44] sm:$0xf]  ;;  %v1638_v0 = vor.u32 %v1636_v42, %v1634_v40  ;;  %v748_v30 = vor.u32 %v746_v5, %v745_v7  ;;  %v750_v31 = vrot.slane %v745_v7, 4 }
  0x72   : > { %6982 = vmatprep.mubr.msk.bf16.mxu1 %vm1720_vm9, %v1635_v22  ;;  %v1471_v59 = vld [vmem:[#allocation2 + $0x44] sm:$0xf]  ;;  %v6442_v8 = vcombine.low %v8233_v13, %v8241_v57  ;;  %v752_v60 = vshrl.u32 %v6680_v2, 16  ;;  %v755_v14 = vshll.u32 %v6680_v2, 16  ;;  %v6681_v45 = vpack.c.bf16 %v471_v21, %v471_v21 }
  0x73   : > { %v6293_v9 = vcombine.low %v1470_v51, %v1471_v59  ;;  %v749_v47 = vsel %vm7859_vm7, %v741_v4, %v748_v30  ;;  %v441_v22 = vadd.f32 %v8217_v32, %v402_v10 }
  0x74   : > { %1264 = vperm.xlu1 %7561, %v957_v17   ;;  %v472_v17 = vmax.f32 %v440_v55, 0.0  ;;  %v3766_v18 = vshll.u32 %v6442_v8, 16  ;;  %v3770_v19 = vshrl.u32 %v6442_v8, 16  ;;  %v8263_v27 = vld [vmem:[#allocation2 + $0x48] sm:$0xf]  ;;  %v754_v15 = vrot.slane %v752_v60, 7 }
  0x75   : > { %1252 = vperm.xlu0 %7560, %v956_v24   ;;  %v1640_v23 = vshll.u32 %v6293_v9, 16  ;;  %v403_v24 = vmul.f32 %v8200_v20, %v6772_v56  ;;  %v1644_v29 = vshrl.u32 %v6293_v9, 16  ;;  %v8265_v40 = vld [vmem:[#allocation2 + $0x48] sm:$0xf]  ;;  %v761_v43 = vshrl.u32 %v6681_v45, 16 }
  0x76   : > { %v3768_v36 = vrot.slane %v3766_v18, 1  ;;  %10316 = vst [vmem:[#allocation3_spill] sm:$0xff] %v8265_v40  ;;  %v6682_v42 = vpack.c.bf16 %v472_v17, %v472_v17  ;;  %v757_v48 = vor.u32 %v755_v14, %v754_v15  ;;  %v764_v52 = vshll.u32 %v6681_v45, 16  ;;  %921 = vst.msk [vmem:[#allocation2 + $0x50] sm:$0xf] %vm291_vm4, %v749_v47 }
  0x77   : > { %v1642_v39 = vrot.slane %v1640_v23, 1  ;;  %v1473_v41 = vld [vmem:[#allocation2 + $0x4c] sm:$0xf]  ;;  %v442_v55 = vadd.f32 %v8217_v32, %v403_v24  ;;  %v759_v4 = vrot.slane %v754_v15, 4  ;;  %v763_v5 = vrot.slane %v761_v43, 7 }
  0x78   : > { %1288 = vperm.xlu1 %7561, %v959_v46   ;;  %v8268_v46 = vld [vmem:[%s7795_s18 + $0x60] sm:$0xff]   ;;  %v3769_v51 = vsel %vm1575_vm8, %v3764_v49, %v3768_v36  ;;  %v3772_v21 = vor.u32 %v3770_v19, %v3768_v36  ;;  %v8286_v56 = vcombine.low %v8265_v40, %v1473_v41  ;;  %v758_v49 = vsel %vm7859_vm7, %v750_v31, %v757_v48  ;;  %v964_v8 = vld [vmem:[%s10178_s3 + $0x68] sm:$0xf]  ;;  %v967_v24 = vld [vmem:[%s10178_s3 + $0x74] sm:$0xf] }
  0x79   : > { %1276 = vperm.xlu0 %7560, %v958_v34   ;;  %v8270_v34 = vld [vmem:[#allocation2 + $0x4c] sm:$0xf]  ;;  %v1643_v54 = vsel %vm1575_vm8, %v1638_v0, %v1642_v39  ;;  %7126 = vmatprep.mubr.msk.bf16.mxu0 %vm1720_vm9, %v3769_v51  ;;  %v6775_v59 = vunpack.c.l.bf16 %v8268_v46  ;;  %922 = vst.msk [vmem:[#allocation2 + $0x54] sm:$0xf] %vm291_vm4, %v758_v49  ;;  %v1646_v9 = vor.u32 %v1644_v29, %v1642_v39  ;;  %v773_v10 = vshll.u32 %v6682_v42, 16  ;;  %v6802_v40 = vld [vmem:[%s7795_s18 + $0x70] sm:$0xff]  }
  0x7a   : > { %v8278_v53 = vcombine.low %v8263_v27, %v8270_v34  ;;  %6983 = vmatmul.mubr.msk.bf16.gmra.mrb[12].mxu1 %vm1720_vm9, %v1643_v54  ;;  %v965_v0 = vld [vmem:[%s10178_s3 + $0x6c] sm:$0xf]  ;;  %v1648_v7 = vshll.u32 %v8286_v56, 16  ;;  %v473_v12 = vmax.f32 %v441_v22, 0.0  ;;  %v766_v60 = vor.u32 %v764_v52, %v763_v5  ;;  %v966_v15 = vld [vmem:[%s10178_s3 + $0x70] sm:$0xf] }
  0x7b   : > { %v768_v14 = vrot.slane %v763_v5, 4  ;;  %v1042_v45 = vlaneseq  ;;  %v474_v19 = vmax.f32 %v442_v55, 0.0  ;;  %v1652_v41 = vshrl.u32 %v8286_v56, 16  ;;  %v969_v5 = vld [vmem:[%s10178_s3 + $0x7c] sm:$0xf] }
  0x7c   : > { %1312 = vperm.xlu1 %7561, %v961_v6   ;;  %10317 = vst [vmem:[#allocation4_spill] sm:$0xff] %v8278_v53  ;;  %v3774_v2 = vshll.u32 %v8278_v53, 16  ;;  %v770_v6 = vshrl.u32 %v6682_v42, 16  ;;  %v1650_v18 = vrot.slane %v1648_v7, 1  ;;  %v6683_v23 = vpack.c.bf16 %v473_v12, %v473_v12 }
  0x7d   : > { %1300 = vperm.xlu0 %7560, %v960_v1   ;;  %v767_v30 = vsel %vm7859_vm7, %v759_v4, %v766_v60  ;;  %v8314_v39 = vld [vmem:[#allocation2 + $0x50] sm:$0xf]  ;;  %v6684_v42 = vpack.c.bf16 %v474_v19, %v474_v19  ;;  %v404_v52 = vmul.f32 %v8200_v20, %v6775_v59  ;;  %v1043_v22 = vshrl.u32 %v1042_v45, 7 }
  0x7e   : > { %v8300_v1 = vrot.slane %v3774_v2, 1  ;;  %v772_v17 = vrot.slane %v770_v6, 7  ;;  %v1651_v36 = vsel %vm1575_vm8, %v1646_v9, %v1650_v18  ;;  %10319 = vst [vmem:[#allocation6_spill] sm:$0xff] %v8314_v39  ;;  %923 = vst.msk [vmem:[#allocation2 + $0x58] sm:$0xf] %vm291_vm4, %v767_v30  ;;  %v779_v43 = vshrl.u32 %v6683_v23, 16 }
  0x7f   : > { %6986 = vmatprep.mubr.msk.bf16.mxu1 %vm1720_vm9, %v1651_v36  ;;  %v782_v48 = vshll.u32 %v6683_v23, 16  ;;  %v8327_v2 = vld [vmem:[#allocation2 + $0x50] sm:$0xf]  ;;  %v443_v59 = vadd.f32 %v8217_v32, %v404_v52  ;;  %v968_v6 = vld [vmem:[%s10178_s3 + $0x78] sm:$0xf]  ;;  %v1654_v12 = vor.u32 %v1652_v41, %v1650_v18 }
  0x80   : > { %1336 = vperm.xlu1 %7561, %v963_v25   ;;  %10318 = vst [vmem:[#allocation5_spill] sm:$0xff] %v8300_v1  ;;  %v7700_v25 = vmov 839922192   ;;  %v3777_v29 = vsel %vm1575_vm8, %v3772_v21, %v8300_v1  ;;  %v775_v31 = vor.u32 %v773_v10, %v772_v17  ;;  %v8322_v51 = vld [vmem:[#allocation2 + $0x54] sm:$0xf]  ;;  %v777_v54 = vrot.slane %v772_v17, 4 }
  0x81   : > { %1324 = vperm.xlu0 %7560, %v962_v26   ;;  %v1040_v26 = vunpack.c.l.s4 %v7700_v25  ;;  %7127 = vmatmul.mubr.msk.bf16.gmra.mrb[12].mxu0 %vm1720_vm9, %v3777_v29  ;;  %10320 = vst [vmem:[#allocation7_spill] sm:$0xff] %v8322_v51  ;;  %v781_v55 = vrot.slane %v779_v43, 7  ;;  %v788_v21 = vshrl.u32 %v6684_v42, 16  ;;  %v6295_v56 = vcombine.low %v8314_v39, %v8322_v51  ;;  %v8329_v4 = vld [vmem:[#allocation2 + $0x54] sm:$0xf] }
  0x82   : > { %v776_v47 = vsel %vm7859_vm7, %v768_v14, %v775_v31  ;;  %v8340_v10 = vcombine.low %v8327_v2, %v8329_v4  ;;  %v475_v14 = vmax.f32 %v443_v59, 0.0  ;;  %v6776_v25 = vunpack.c.h.bf16 %v8268_v46  ;;  %v7633_v1 = vld [vmem:[#allocation2 + $0x10] sm:$0xf]  ;;  %v3188_v39 = vld [vmem:[#allocation2 + $0xc] sm:$0xf] }
  0x83   : > { %924 = vst.msk [vmem:[#allocation2 + $0x5c] sm:$0xf] %vm291_vm4, %v776_v47  ;;  %v1041_v49 = vunpack.c.0.s8 %v1040_v26  ;;  %v786_v9 = vrot.slane %v781_v55, 4  ;;  %v790_v7 = vrot.slane %v788_v21, 7  ;;  %v1656_v60 = vshll.u32 %v6295_v56, 16 }
  0x84   : > { %1360 = vperm.xlu1 %7561, %v965_v0   ;;  %v791_v0 = vshll.u32 %v6684_v42, 16  ;;  %10321 = vst [vmem:[#allocation8_spill] sm:$0xff] %v8340_v10  ;;  %v6685_v26 = vpack.c.bf16 %v475_v14, %v475_v14  ;;  %v1660_v29 = vshrl.u32 %v6295_v56, 16  ;;  %v405_v52 = vmul.f32 %v8200_v20, %v6776_v25  ;;  %v8386_v25 = vld [vmem:[#allocation2 + $0x1c] sm:$0xf] }
  0x85   : > { %1348 = vperm.xlu0 %7560, %v964_v8   ;;  %v784_v8 = vor.u32 %v782_v48, %v781_v55  ;;  %v8344_v19 = vsub.s32 %v1041_v49, %v1043_v22  ;;  %v1658_v23 = vrot.slane %v1656_v60, 1  ;;  %v795_v56 = vrot.slane %v790_v7, 4  ;;  %10326 = vst [vmem:[#allocation11_spill] sm:$0xff] %v8386_v25  ;;  %v7634_v10 = vld [vmem:[#allocation2 + $0x14] sm:$0xf] }
  0x86   : > { %v793_v45 = vor.u32 %v791_v0, %v790_v7  ;;  %v797_v47 = vshrl.u32 %v6685_v26, 16  ;;  %v800_v22 = vshll.u32 %v6685_v26, 16  ;;  %v3199_v7 = vld [vmem:[#allocation2 + $0x38] sm:$0xf] }
  0x87   : > { %v785_v17 = vsel %vm7859_vm7, %v777_v54, %v784_v8  ;;  %v1659_v30 = vsel %vm1575_vm8, %v1654_v12, %v1658_v23  ;;  %v1662_v55 = vor.u32 %v1660_v29, %v1658_v23 }
  0x88   : > { %1384 = vperm.xlu1 %7561, %v967_v24   ;;  %v1476_v24 = vld [vmem:[#allocation2 + $0x58] sm:$0xf]  ;;  %925 = vst.msk [vmem:[#allocation2 + $0x60] sm:$0xf] %vm291_vm4, %v785_v17  ;;  %v794_v18 = vsel %vm7859_vm7, %v786_v9, %v793_v45  ;;  %6987 = vmatmul.mubr.msk.bf16.gmra.mrb[16].mxu1 %vm1720_vm9, %v1659_v30  ;;  %v8367_v49 = vrot.slane %v797_v47, 7  ;;  %v444_v9 = vadd.f32 %v8217_v32, %v405_v52 }
  0x89   : > { %1372 = vperm.xlu0 %7560, %v966_v15   ;;  %926 = vst.msk [vmem:[#allocation2 + $0x64] sm:$0xf] %vm291_vm4, %v794_v18  ;;  %v8352_v15 = vld [vmem:[#allocation2 + $0x58] sm:$0xf] }
  0x8a   : > { %v1477_v31 = vld [vmem:[#allocation2 + $0x5c] sm:$0xf]  ;;  %v802_v8 = vor.u32 %v800_v22, %v8367_v49  ;;  %v8396_v47 = vld [vmem:[#allocation2 + $0x18] sm:$0xf]  ;;  %v476_v52 = vmax.f32 %v444_v9, 0.0  ;;  %v8399_v22 = vld [vmem:[%s7795_s18 + $0x68] sm:$0xff]  }
  0x8b   : > { %v8354_v36 = vld [vmem:[#allocation2 + $0x5c] sm:$0xf]  ;;  %v8357_v41 = vcombine.low %v1476_v24, %v1477_v31  ;;  %10328 = vst [vmem:[#allocation13_spill] sm:$0xff] %v8396_v47  ;;  %v4910_v9 = vld [vmem:[#allocation2 + $0x24] sm:$0xf] }
  0x8c   : > { %1408 = vperm.xlu1 %7561, %v969_v5   ;;  %v8361_v46 = vcombine.low %v8352_v15, %v8354_v36  ;;  %v803_v45 = vsel %vm7859_vm7, %v795_v56, %v802_v8 }
  0x8d   : > { %1396 = vperm.xlu0 %7560, %v968_v6   ;;  %v1664_v21 = vshll.u32 %v8357_v41, 16  ;;  %927 = vst.msk [vmem:[#allocation2 + $0x68] sm:$0xf] %vm291_vm4, %v803_v45  ;;  %v6779_v45 = vunpack.c.l.bf16 %v8399_v22 }
  0x8e   : > { %10322 = vst [vmem:[#allocation9_spill] sm:$0xff] %v8361_v46 }
  0x8f   : > { %v2259_v42 = vpop.permute.xlu1 %2258  ;;  %v8369_v6 = vrot.slane %v1664_v21, 1 }
  0x90   : > { %v2235_v43 = vpop.permute.xlu0 %2234  ;;  %v2267_v48 = vrot.slane %v2259_v42, %v8344_v19 }
  0x91   : > { %v2243_v54 = vrot.slane %v2235_v43, %v8344_v19  ;;  %v1667_v17 = vsel %vm1575_vm8, %v1662_v55, %v8369_v6 }
  0x92   : > { %v2656_v0 = vrot.slane %v2267_v48, 7  ;;  %6990 = vmatprep.mubr.msk.bf16.mxu1 %vm1720_vm9, %v1667_v17  ;;  %v4909_v17 = vld [vmem:[#allocation2 + $0x20] sm:$0xf] }
  0x93   : > { %v2271_v59 = vpop.permute.xlu1 %2270  ;;  %v8373_v12 = vrot.slane %v2243_v54, 7  ;;  %v4095_v54 = vld [vmem:[#allocation2 + $0x8] sm:$0xe] }
  0x94   : > { %v2247_v5 = vpop.permute.xlu0 %2246  ;;  %v2279_v60 = vrot.slane %v2271_v59, %v8344_v19  ;;  %v2658_v23 = vrot.slane %v2656_v0, 4 }
  0x95   : > { %10323 = vst [vmem:[#allocation10_spill] sm:$0xff] %v8373_v12  ;;  %v2255_v14 = vrot.slane %v2247_v5, %v8344_v19  ;;  %v2652_v42 = vrot.slane %v8373_v12, 4 }
  0x96   : > { %v2659_v24 = vrot.slane %v2279_v60, 7 }
  0x97   : > { %v2653_v26 = vrot.slane %v2255_v14, 7  ;;  %v2295_v29 = vpop.permute.xlu1 %2294 }
  0x98   : > { %v2283_v18 = vpop.permute.xlu0 %2282  ;;  %v2303_v30 = vrot.slane %v2295_v29, %v8344_v19  ;;  %v8394_v43 = vsel %vm8379_vm12, %v2658_v23, %v2659_v24  ;;  %v2661_v60 = vrot.slane %v2659_v24, 4  ;;  %v4096_v23 = vmul.bf16 %v4095_v54, %v8373_v12 }
  0x99   : > { %v2291_v31 = vrot.slane %v2283_v18, %v8344_v19  ;;  %10327 = vst [vmem:[#allocation12_spill] sm:$0xff] %v8394_v43  ;;  %v2655_v48 = vrot.slane %v2653_v26, 4  ;;  %v8405_v21 = vsel %vm8379_vm12, %v2652_v42, %v2653_v26  ;;  %v8417_v18 = vpack.c.bf16 %v476_v52, %v476_v52  ;;  %v7632_v42 = vld [vmem:[#allocation2 + $0x10] sm:$0xf] }
  0x9a   : > { %10329 = vst [vmem:[#allocation14_spill] sm:$0xff] %v8405_v21  ;;  %v2665_v59 = vrot.slane %v2303_v30, 7 }
  0x9b   : > { %v8409_v56 = vsel %vm8379_vm12, %v2655_v48, %v2656_v0  ;;  %v2319_v5 = vpop.permute.xlu1 %2318  ;;  %v2662_v14 = vrot.slane %v2291_v31, 7  ;;  %v7631_v0 = vld [vmem:[#allocation2 + $0xc] sm:$0xf] }
  0x9c   : > { %10330 = vst [vmem:[#allocation15_spill] sm:$0xff] %v8409_v56  ;;  %v2307_v8 = vpop.permute.xlu0 %2306  ;;  %v2327_v26 = vrot.slane %v2319_v5, %v8344_v19  ;;  %v4097_v30 = vmul.bf16 %v7631_v0, %v8405_v21  ;;  %v4098_v24 = vmul.bf16 %v7632_v42, %v8409_v56  ;;  %v2667_v55 = vrot.slane %v2665_v59, 4  ;;  %v8428_v56 = vld [vmem:[#allocation2 + $0x28] sm:$0xf] }
  0x9d   : > { %v2315_v29 = vrot.slane %v2307_v8, %v8344_v19  ;;  %v2663_v31 = vsel %vm8379_vm12, %v2661_v60, %v2662_v14  ;;  %v2664_v48 = vrot.slane %v2662_v14, 4  ;;  %10331 = vst [vmem:[#allocation16_spill] sm:$0xff] %v8428_v56 }
  0x9e   : > { %v2783_v54 = vmul.bf16 %v7633_v1, %v2663_v31  ;;  %v4100_v5 = vmul.bf16 %v7989_v28, %v2663_v31  ;;  %v5416_v53 = vmul.bf16 %v4909_v17, %v2663_v31  ;;  %v2671_v47 = vrot.slane %v2327_v26, 7  ;;  %v7635_v1 = vld [vmem:[#allocation2 + $0x14] sm:$0xf] }
  0x9f   : > { %v2343_v8 = vpop.permute.xlu1 %2342  ;;  %v2666_v0 = vsel %vm8379_vm12, %v2664_v48, %v2665_v59  ;;  %v2668_v25 = vrot.slane %v2315_v29, 7  ;;  %v4099_v17 = vmul.bf16 %v7635_v1, %v8394_v43 }
  0xa0   : > { %v2331_v52 = vpop.permute.xlu0 %2330  ;;  %v2784_v60 = vmul.bf16 %v7634_v10, %v2666_v0  ;;  %v4101_v14 = vmul.bf16 %v7992_v33, %v2666_v0  ;;  %v5417_v46 = vmul.bf16 %v4910_v9, %v2666_v0  ;;  %v2351_v28 = vrot.slane %v2343_v8, %v8344_v19  ;;  %v8442_v33 = vld [vmem:[#allocation2 + $0x2c] sm:$0xf]  ;;  %v8444_v9 = vld [vmem:[#allocation2 + $0x30] sm:$0xf] }
  0xa1   : > { %v2339_v42 = vrot.slane %v2331_v52, %v8344_v19  ;;  %v8434_v31 = vsel %vm8379_vm12, %v2667_v55, %v2668_v25  ;;  %v2670_v59 = vrot.slane %v2668_v25, 4  ;;  %10334 = vst [vmem:[#allocation19_spill] sm:$0xff] %v8442_v33  ;;  %10335 = vst [vmem:[#allocation20_spill] sm:$0xff] %v8444_v9  ;;  %v6474_v8 = vcombine.low %v4096_v23, %v4097_v30  ;;  %v8514_v33 = vld [vmem:[#allocation2 + $0x40] sm:$0xf] }
  0xa2   : > { %v8436_v29 = vcombine.low %v2783_v54, %v2784_v60  ;;  %v8438_v48 = vcombine.low %v4100_v5, %v4101_v14  ;;  %v8440_v10 = vcombine.low %v5416_v53, %v5417_v46  ;;  %v2673_v1 = vrot.slane %v2671_v47, 4  ;;  %v1478_v5 = vld [vmem:[#allocation2 + $0x60] sm:$0xf]  ;;  %10339 = vst [vmem:[#allocation24_spill] sm:$0xff] %v8514_v33 }
  0xa3   : > { %v2674_v26 = vrot.slane %v2339_v42, 7  ;;  %v2367_v52 = vpop.permute.xlu1 %2366  ;;  %v8448_v55 = vsel %vm8379_vm12, %v2670_v59, %v2671_v47  ;;  %v6475_v54 = vcombine.low %v4098_v24, %v4099_v17  ;;  %v1479_v42 = vld [vmem:[#allocation2 + $0x64] sm:$0xf]  ;;  %v2677_v53 = vrot.slane %v2351_v28, 7 }
  0xa4   : > { %10332 = vst [vmem:[#allocation17_spill] sm:$0xff] %v8436_v29  ;;  %10333 = vst [vmem:[#allocation18_spill] sm:$0xff] %v8440_v10  ;;  %v2355_v0 = vpop.permute.xlu0 %2354  ;;  %v806_v46 = vshrl.u32 %v8417_v18, 16  ;;  %v6780_v60 = vunpack.c.h.bf16 %v8399_v22  ;;  %v8455_v23 = vmul.f32 %v8200_v20, %v6779_v45  ;;  %v4220_v30 = vrot.slane %v8438_v48, 1 }
  0xa5   : > { %v8462_v14 = vsel %vm8379_vm12, %v2673_v1, %v2674_v26  ;;  %v2676_v24 = vrot.slane %v2674_v26, 4  ;;  %v4103_v28 = vmul.bf16 %v8018_v63, %v8448_v55  ;;  %v4217_v22 = vrot.slane %v6474_v8, 1 }
  0xa6   : > { %v8468_v25 = vcombine.low %v1478_v5, %v1479_v42  ;;  %v4218_v47 = vrot.slane %v6475_v54, 1  ;;  %v2375_v1 = vrot.slane %v2367_v52, %v8344_v19  ;;  %v2363_v26 = vrot.slane %v2355_v0, %v8344_v19  ;;  %v7617_v52 = vld [vmem:[%s10180_s5 + $0x68] sm:$0xff]  }
  0xa7   : > { %v2391_v59 = vpop.permute.xlu1 %2390  ;;  %v8472_v48 = vsel %vm8379_vm12, %v2676_v24, %v2677_v53  ;;  %v4102_v63 = vmul.bf16 %v8016_v62, %v8434_v31  ;;  %v2679_v56 = vrot.slane %v2677_v53, 4  ;;  %v8482_v24 = vld [vmem:[#allocation2 + $0x38] sm:$0xf]  ;;  %v4104_v62 = vmul.bf16 %v8050_v35, %v8462_v14 }
  0xa8   : > { %v2379_v45 = vpop.permute.xlu0 %2378  ;;  %v4105_v8 = vmul.bf16 %v8059_v44, %v8472_v48  ;;  %v2399_v17 = vrot.slane %v2391_v59, %v8344_v19  ;;  %v4219_v5 = vsel %vm2900_vm13, %v4217_v22, %v4218_v47  ;;  %v2683_v42 = vrot.slane %v2375_v1, 7  ;;  %10336 = vst [vmem:[#allocation21_spill] sm:$0xff] %v8482_v24 }
  0xa9   : > { %v2680_v9 = vrot.slane %v2363_v26, 7  ;;  %v4221_v54 = vsel %vm2900_vm13, %v4218_v47, %v4220_v30  ;;  %7150 = vmatprep.mubr.msk.bf16.mxu0 %vm1720_vm9, %v4219_v5  ;;  %v2387_v44 = vrot.slane %v2379_v45, %v8344_v19  ;;  %v6477_v0 = vcombine.low %v4102_v63, %v4103_v28  ;;  %v8497_v26 = vld [vmem:[#allocation2 + $0x3c] sm:$0xf] }
  0xaa   : > { %v1668_v59 = vshrl.u32 %v8357_v41, 16  ;;  %10338 = vst [vmem:[#allocation23_spill] sm:$0xff] %v8497_v26  ;;  %7151 = vmatmul.mubr.msk.bf16.vlgmr.msra.gmra.mrb[0].mxu0 %vm1720_vm9, %v4221_v54  ;;  %v1672_v35 = vshll.u32 %v8468_v25, 16  ;;  %v8502_v5 = vmul.f32 %v8200_v20, %v6780_v60  ;;  %v2689_v45 = vrot.slane %v2399_v17, 7  ;;  %v7621_v17 = vld [vmem:[%s10180_s5 + $0x70] sm:$0xff]  }
  0xab   : > { %v2415_v53 = vpop.permute.xlu1 %2414  ;;  %v8495_v1 = vsel %vm8379_vm12, %v2679_v56, %v2680_v9  ;;  %v2682_v47 = vrot.slane %v2680_v9, 4  ;;  %v8507_v63 = vcombine.low %v4104_v62, %v4105_v8  ;;  %7183 = vmatpush3.bf16.msra.mxu0 %v8085_v11  ;;  %v2685_v56 = vrot.slane %v2683_v42, 4 }
  0xac   : > { %v2403_v22 = vpop.permute.xlu0 %2402  ;;  %10337 = vst [vmem:[#allocation22_spill] sm:$0xff] %v8495_v1  ;;  %v2423_v41 = vrot.slane %v2415_v53, %v8344_v19  ;;  %v2686_v54 = vrot.slane %v2387_v44, 7  ;;  %v4222_v60 = vrot.slane %v6477_v0, 1  ;;  %7184 = vmatprep.subr.bf16.mxu0 %v7617_v52  ;;  %v1670_v28 = vor.u32 %v1668_v59, %v8369_v6  ;;  %v8537_v59 = vld [vmem:[#allocation2 + $0x48] sm:$0xf] }
  0xad   : > { %v8512_v9 = vsel %vm8379_vm12, %v2682_v47, %v2683_v42  ;;  %v2411_v62 = vrot.slane %v2403_v22, %v8344_v19  ;;  %v8523_v42 = vrot.slane %v806_v46, 7  ;;  %v8529_v47 = vld [vmem:[#allocation2 + $0x44] sm:$0xf]  ;;  %v8532_v10 = vrot.slane %v1672_v35, 1  ;;  %10342 = vst [vmem:[#allocation27_spill] sm:$0xff] %v8537_v59 }
  0xae   : > { %v8527_v44 = vsel %vm8379_vm12, %v2685_v56, %v2686_v54  ;;  %v2688_v0 = vrot.slane %v2686_v54, 4  ;;  %10341 = vst [vmem:[#allocation26_spill] sm:$0xff] %v8529_v47  ;;  %v4223_v24 = vsel %vm2900_vm13, %v4220_v30, %v4222_v60  ;;  %v2691_v8 = vrot.slane %v2689_v45, 4 }
  0xaf   : > { %v2439_v11 = vpop.permute.xlu1 %2438  ;;  %10340 = vst [vmem:[#allocation25_spill] sm:$0xff] %v8527_v44  ;;  %7154 = vmatprep.mubr.msk.bf16.mxu0 %vm1720_vm9, %v4223_v24  ;;  %v2695_v6 = vrot.slane %v2423_v41, 7  ;;  %v2692_v46 = vrot.slane %v2411_v62, 7  ;;  %7185 = vmatpush3.bf16.msra.mxu0 %v7617_v52  ;;  %v4107_v56 = vmul.bf16 %v8147_v16, %v8512_v9  ;;  %v4224_v30 = vrot.slane %v8507_v63, 1 }
  0xb0   : > { %v2427_v53 = vpop.permute.xlu0 %2426  ;;  %v8543_v54 = vsel %vm8379_vm12, %v2688_v0, %v2689_v45  ;;  %7218 = vmatprep.subr.bf16.mxu0 %v7621_v17  ;;  %v2447_v52 = vrot.slane %v2439_v11, %v8344_v19  ;;  %v809_v22 = vshll.u32 %v8417_v18, 16  ;;  %v4106_v45 = vmul.bf16 %v8134_v3, %v8495_v1  ;;  %v8557_v0 = vld [vmem:[#allocation2 + $0x4c] sm:$0xf]  ;;  %v8574_v17 = vld [vmem:[#allocation2 + $0x50] sm:$0xf] }
  0xb1   : > { %10343 = vst [vmem:[#allocation28_spill] sm:$0xff] %v8543_v54  ;;  %v2435_v35 = vrot.slane %v2427_v53, %v8344_v19  ;;  %v8551_v41 = vsel %vm8379_vm12, %v2691_v8, %v2692_v46  ;;  %v2694_v63 = vrot.slane %v2692_v46, 4  ;;  %10345 = vst [vmem:[#allocation30_spill] sm:$0xff] %v8557_v0  ;;  %v445_v53 = vadd.f32 %v8217_v32, %v8455_v23 }
  0xb2   : > { %10344 = vst [vmem:[#allocation29_spill] sm:$0xff] %v8551_v41  ;;  %v4225_v8 = vsel %vm2900_vm13, %v4222_v60, %v4224_v30  ;;  %v1675_v11 = vsel %vm1575_vm8, %v1670_v28, %v8532_v10  ;;  %v804_v18 = vrot.slane %v8367_v49, 4  ;;  %v4109_v3 = vmul.bf16 %v8163_v58, %v8543_v54  ;;  %10347 = vst [vmem:[#allocation32_spill] sm:$0xff] %v8574_v17  ;;  %v8604_v17 = vld [vmem:[#allocation2 + $0x58] sm:$0xf] }
  0xb3   : > { %v2463_v62 = vpop.permute.xlu1 %2462  ;;  %v2698_v24 = vrot.slane %v2435_v35, 7  ;;  %v2697_v46 = vrot.slane %v2695_v6, 4  ;;  %v8571_v33 = vsel %vm8379_vm12, %v2694_v63, %v2695_v6  ;;  %7155 = vmatmul.mubr.msk.bf16.gmra.mrb[4].mxu0 %vm1720_vm9, %v4225_v8  ;;  %6991 = vmatmul.mubr.msk.bf16.gmra.mrb[20].mxu1 %vm1720_vm9, %v1675_v11  ;;  %v6479_v23 = vcombine.low %v4106_v45, %v4107_v56  ;;  %v8587_v11 = vld [vmem:[#allocation2 + $0x54] sm:$0xf]  ;;  %10351 = vst [vmem:[#allocation36_spill] sm:$0xff] %v8604_v17 }
  0xb4   : > { %v2451_v16 = vpop.permute.xlu0 %2450  ;;  %10346 = vst [vmem:[#allocation31_spill] sm:$0xff] %v8571_v33  ;;  %v2701_v60 = vrot.slane %v2447_v52, 7  ;;  %v2471_v49 = vrot.slane %v2463_v62, %v8344_v19  ;;  %v811_v59 = vor.u32 %v809_v22, %v8523_v42  ;;  %v4108_v6 = vmul.bf16 %v8161_v38, %v8527_v44  ;;  %10349 = vst [vmem:[#allocation34_spill] sm:$0xff] %v8587_v11  ;;  %v1018_v44 = vld [vmem:[#allocation2 + $0x40] sm:$0xf] }
  0xb5   : > { %v8585_v63 = vsel %vm8379_vm12, %v2697_v46, %v2698_v24  ;;  %v2700_v8 = vrot.slane %v2698_v24, 4  ;;  %v4226_v56 = vrot.slane %v6479_v23, 1  ;;  %v2459_v62 = vrot.slane %v2451_v16, %v8344_v19  ;;  %v9246_v54 = vld [vmem:[#allocation2 + $0x1c] sm:$0xf] }
  0xb6   : > { %10348 = vst [vmem:[#allocation33_spill] sm:$0xff] %v8585_v63  ;;  %v446_v45 = vadd.f32 %v8217_v32, %v8502_v5  ;;  %v8599_v46 = vcombine.low %v4108_v6, %v4109_v3  ;;  %v477_v24 = vmax.f32 %v445_v53, 0.0  ;;  %v2703_v28 = vrot.slane %v2701_v60, 4 }
  0xb7   : > { %v2487_v35 = vpop.permute.xlu1 %2486  ;;  %v8596_v22 = vsel %vm8379_vm12, %v2700_v8, %v2701_v60  ;;  %v4227_v38 = vsel %vm2900_vm13, %v4224_v30, %v4226_v56  ;;  %v2707_v52 = vrot.slane %v2471_v49, 7  ;;  %v2704_v16 = vrot.slane %v2459_v62, 7  ;;  %v8614_v60 = vld [vmem:[#allocation2 + $0x5c] sm:$0xf]  ;;  %v8651_v62 = vld [vmem:[#allocation2 + $0x64] sm:$0xf] }
  0xb8   : > { %v2475_v58 = vpop.permute.xlu0 %2474  ;;  %10350 = vst [vmem:[#allocation35_spill] sm:$0xff] %v8596_v22  ;;  %7158 = vmatprep.mubr.msk.bf16.mxu0 %vm1720_vm9, %v4227_v38  ;;  %v10200_v8 = vrot.slane %v8599_v46, 1  ;;  %v812_v30 = vsel %vm7859_vm7, %v804_v18, %v811_v59  ;;  %10353 = vst [vmem:[#allocation38_spill] sm:$0xff] %v8614_v60  ;;  %v2495_v49 = vrot.slane %v2487_v35, %v8344_v19  ;;  %v478_v6 = vmax.f32 %v446_v45, 0.0  ;;  %v8631_v45 = vld [vmem:[#allocation2 + $0x60] sm:$0xf] }
  0xb9   : > { %v2483_v47 = vrot.slane %v2475_v58, %v8344_v19  ;;  %v8612_v53 = vsel %vm8379_vm12, %v2703_v28, %v2704_v16  ;;  %v2706_v3 = vrot.slane %v2704_v16, 4  ;;  %928 = vst.msk [vmem:[#allocation2 + $0x6c] sm:$0xf] %vm291_vm4, %v812_v30  ;;  %v1676_v18 = vshrl.u32 %v8468_v25, 16  ;;  %10355 = vst [vmem:[#allocation40_spill] sm:$0xff] %v8631_v45 }
  0xba   : > { %10352 = vst [vmem:[#allocation37_spill] sm:$0xff] %v8612_v53  ;;  %v4229_v59 = vsel %vm2900_vm13, %v4226_v56, %v10200_v8  ;;  %v2709_v28 = vrot.slane %v2707_v52, 4  ;;  %v6687_v16 = vpack.c.bf16 %v477_v24, %v477_v24  ;;  %v4110_v56 = vmul.bf16 %v8233_v13, %v8551_v41  ;;  %10357 = vst [vmem:[#allocation42_spill] sm:$0xff] %v8651_v62 }
  0xbb   : > { %v1049_v5 = vpop.permute.xlu1 %1048  ;;  %v8628_v38 = vsel %vm8379_vm12, %v2706_v3, %v2707_v52  ;;  %7159 = vmatmul.mubr.msk.bf16.gmra.mrb[8].mxu0 %vm1720_vm9, %v4229_v59  ;;  %v2710_v35 = vrot.slane %v2483_v47, 7  ;;  %v4111_v25 = vmul.bf16 %v8241_v57, %v8571_v33  ;;  %v6688_v3 = vpack.c.bf16 %v478_v6, %v478_v6  ;;  %v8659_v52 = vld [vmem:[#allocation2 + $0x68] sm:$0xf] }
  0xbc   : > { %v1037_v0 = vpop.permute.xlu0 %1036  ;;  %10354 = vst [vmem:[#allocation39_spill] sm:$0xff] %v8628_v38  ;;  %v4112_v47 = vmul.bf16 %v8263_v27, %v8585_v63  ;;  %v8645_v59 = vrot.slane %v2495_v49, 7  ;;  %v4113_v13 = vmul.bf16 %v8270_v34, %v8596_v22  ;;  %10358 = vst [vmem:[#allocation43_spill] sm:$0xff] %v8659_v52  ;;  %v815_v27 = vshrl.u32 %v6687_v16, 16  ;;  %v3187_v22 = vld [vmem:[#allocation2 + $0x8] sm:$0xf] }
  0xbd   : > { %v8649_v24 = vsel %vm8379_vm12, %v2709_v28, %v2710_v35  ;;  %v2712_v23 = vrot.slane %v2710_v35, 4  ;;  %v818_v28 = vshll.u32 %v6687_v16, 16  ;;  %v824_v35 = vshrl.u32 %v6688_v3, 16 }
  0xbe   : > { %10356 = vst [vmem:[#allocation41_spill] sm:$0xff] %v8649_v24  ;;  %v827_v8 = vshll.u32 %v6688_v3, 16  ;;  %v813_v60 = vrot.slane %v8523_v42, 4  ;;  %v6481_v11 = vcombine.low %v4110_v56, %v4111_v25  ;;  %v8684_v26 = vrot.slane %v1049_v5, %v8344_v19 }
  0xbf   : > { %v8633_v30 = vpop.permute.xlu1 %1060  ;;  %v8664_v49 = vsel %vm8379_vm12, %v2712_v23, %v8645_v59  ;;  %v817_v23 = vrot.slane %v815_v27, 7  ;;  %v8681_v3 = vrot.slane %v824_v35, 7  ;;  %v8687_v6 = vrot.slane %v1037_v0, %v8344_v19 }
  0xc0   : > { %v8635_v58 = vpop.permute.xlu0 %2498  ;;  %10359 = vst [vmem:[#allocation44_spill] sm:$0xff] %v8664_v49  ;;  %v8674_v45 = vld [vmem:[#allocation2 + $0x6c] sm:$0xf]  ;;  %10361 = vst [vmem:[#allocation46_spill] sm:$0xff] %v8684_v26  ;;  %v6482_v62 = vcombine.low %v4112_v47, %v4113_v13  ;;  %v1678_v42 = vor.u32 %v1676_v18, %v8532_v10  ;;  %v4230_v35 = vrot.slane %v6481_v11, 1  ;;  %v3220_v0 = vmul.bf16 %v3188_v39, %v8684_v26 }
  0xc1   : > { %10360 = vst [vmem:[#allocation45_spill] sm:$0xff] %v8674_v45  ;;  %v8679_v16 = vcombine.low %v8659_v52, %v8674_v45  ;;  %v820_v57 = vor.u32 %v818_v28, %v817_v23  ;;  %v822_v51 = vrot.slane %v817_v23, 4  ;;  %10362 = vst [vmem:[#allocation47_spill] sm:$0xff] %v8687_v6  ;;  %v829_v29 = vor.u32 %v827_v8, %v8681_v3  ;;  %v3200_v45 = vld [vmem:[#allocation2 + $0x3c] sm:$0xf] }
  0xc2   : > { %v10363_v10 = vrot.slane %v8599_v46, 1  ;;  %v6783_v8 = vunpack.c.l.bf16 %v6802_v40  ;;  %v4115_v18 = vmul.bf16 %v8329_v4, %v8628_v38  ;;  %v3219_v39 = vmul.bf16 %v3187_v22, %v8687_v6 }
  0xc3   : > { %v8666_v17 = vpop.permute.xlu1 %2510  ;;  %v1680_v27 = vshll.u32 %v8679_v16, 16  ;;  %v821_v25 = vsel %vm7859_vm7, %v813_v60, %v820_v57  ;;  %v830_v47 = vsel %vm7859_vm7, %v822_v51, %v829_v29  ;;  %v4232_v60 = vrot.slane %v6482_v62, 1 }
  0xc4   : > { %v8668_v34 = vpop.permute.xlu0 %1072  ;;  %929 = vst.msk [vmem:[#allocation2 + $0x70] sm:$0xf] %vm291_vm4, %v821_v25  ;;  %v4231_v11 = vsel %vm2900_vm13, %v10363_v10, %v4230_v35  ;;  %930 = vst.msk [vmem:[#allocation2 + $0x74] sm:$0xf] %vm291_vm4, %v830_v47  ;;  %v6784_v13 = vunpack.c.h.bf16 %v6802_v40  ;;  %v2507_v29 = vrot.slane %v8635_v58, %v8344_v19  ;;  %v4114_v4 = vmul.bf16 %v8327_v2, %v8612_v53 }
  0xc5   : > { %v1682_v28 = vrot.slane %v1680_v27, 1  ;;  %7162 = vmatprep.mubr.msk.bf16.mxu0 %vm1720_vm9, %v4231_v11  ;;  %v8721_v23 = vcombine.low %v3219_v39, %v3220_v0  ;;  %v4233_v22 = vsel %vm2900_vm13, %v4230_v35, %v4232_v60  ;;  %v2715_v40 = vrot.slane %v8645_v59, 4  ;;  %v8736_v0 = vld [vmem:[#allocation2 + $0x60] sm:$0xf]  ;;  %v8751_v39 = vld [vmem:[#allocation2 + $0x64] sm:$0xf] }
  0xc6   : > { %7163 = vmatmul.mubr.msk.bf16.gmra.mrb[12].mxu0 %vm1720_vm9, %v4233_v22  ;;  %v2716_v62 = vrot.slane %v2507_v29, 7  ;;  %v408_v58 = vmul.f32 %v8200_v20, %v6783_v8  ;;  %v409_v27 = vmul.f32 %v8200_v20, %v6784_v13  ;;  %v8730_v25 = vcombine.low %v4114_v4, %v4115_v18 }
  0xc7   : > { %v8693_v56 = vpop.permute.xlu1 %2534  ;;  %v1683_v51 = vsel %vm1575_vm8, %v1678_v42, %v1682_v28  ;;  %10364 = vst [vmem:[#allocation48_spill] sm:$0xff] %v8721_v23  ;;  %v8726_v42 = vld [vmem:[#allocation2 + $0x68] sm:$0xf]  ;;  %v2519_v59 = vrot.slane %v8666_v17, %v8344_v19  ;;  %v1684_v20 = vshrl.u32 %v8679_v16, 16  ;;  %v4116_v22 = vmul.bf16 %v8352_v15, %v8649_v24 }
  0xc8   : > { %v8695_v5 = vpop.permute.xlu0 %2522  ;;  %6994 = vmatprep.mubr.msk.bf16.mxu1 %vm1720_vm9, %v1683_v51  ;;  %10365 = vst [vmem:[#allocation49_spill] sm:$0xff] %v8726_v42  ;;  %v8734_v2 = vsel %vm8379_vm12, %v2715_v40, %v2716_v62  ;;  %v447_v35 = vadd.f32 %v8217_v32, %v408_v58  ;;  %v448_v18 = vadd.f32 %v8217_v32, %v409_v27  ;;  %v2718_v51 = vrot.slane %v2716_v62, 4  ;;  %v8768_v58 = vld [vmem:[#allocation2 + $0x6c] sm:$0xf] }
  0xc9   : > { %10366 = vst [vmem:[#allocation50_spill] sm:$0xff] %v8734_v2  ;;  %v4234_v17 = vrot.slane %v8730_v25, 1  ;;  %v8756_v4 = vrot.slane %v2519_v59, 7  ;;  %v8766_v32 = vcombine.low %v8736_v0, %v8751_v39  ;;  %10370 = vst [vmem:[#allocation54_spill] sm:$0xff] %v8768_v58  ;;  %v4117_v62 = vmul.bf16 %v8354_v36, %v8664_v49 }
  0xca   : > { %v479_v29 = vmax.f32 %v447_v35, 0.0  ;;  %v480_v40 = vmax.f32 %v448_v18, 0.0  ;;  %v1686_v18 = vor.u32 %v1684_v20, %v1682_v28  ;;  %v8787_v36 = vrot.slane %v8633_v30, %v8344_v19 }
  0xcb   : > { %v8714_v46 = vpop.permute.xlu1 %1096  ;;  %v8745_v11 = vld [vmem:[#allocation2 + $0x70] sm:$0xf]  ;;  %v8753_v13 = vld [vmem:[#allocation2 + $0x74] sm:$0xf]  ;;  %10369 = vst [vmem:[#allocation53_spill] sm:$0xff] %v8766_v32  ;;  %v4235_v25 = vsel %vm2900_vm13, %v4232_v60, %v4234_v17  ;;  %v8776_v15 = vsel %vm8379_vm12, %v2718_v51, %v8756_v4  ;;  %v854_v32 = vshll.u32 %v7831_v37, 16  ;;  %v8798_v30 = vcombine.low %v4116_v22, %v4117_v62 }
  0xcc   : > { %v8716_v57 = vpop.permute.xlu0 %1084  ;;  %10367 = vst [vmem:[#allocation51_spill] sm:$0xff] %v8745_v11  ;;  %10368 = vst [vmem:[#allocation52_spill] sm:$0xff] %v8753_v13  ;;  %v8762_v16 = vcombine.low %v8745_v11, %v8753_v13  ;;  %v6689_v27 = vpack.c.bf16 %v479_v29, %v479_v29  ;;  %v6690_v23 = vpack.c.bf16 %v480_v40, %v480_v40  ;;  %7166 = vmatprep.mubr.msk.bf16.mxu0 %vm1720_vm9, %v4235_v25  ;;  %v3189_v60 = vld [vmem:[#allocation2 + $0x10] sm:$0xf]  ;;  %v3190_v37 = vld [vmem:[#allocation2 + $0x14] sm:$0xf] }
  0xcd   : > { %10371 = vst [vmem:[#allocation55_spill] sm:$0xff] %v8776_v15  ;;  %v8795_v40 = vrot.slane %v8668_v34, %v8344_v19  ;;  %v831_v25 = vrot.slane %v8681_v3, 4  ;;  %v2531_v34 = vrot.slane %v8695_v5, %v8344_v19  ;;  %v3221_v3 = vmul.bf16 %v3189_v60, %v8787_v36  ;;  %v8902_v43 = vld [vmem:[#allocation2 + $0x70] sm:$0xf] }
  0xce   : > { %v1688_v8 = vshll.u32 %v8762_v16, 16  ;;  %v833_v29 = vshrl.u32 %v6689_v27, 16  ;;  %v836_v51 = vshll.u32 %v6689_v27, 16  ;;  %v842_v28 = vshrl.u32 %v6690_v23, 16 }
  0xcf   : > { %v8741_v47 = vpop.permute.xlu1 %1108  ;;  %v845_v20 = vshll.u32 %v6690_v23, 16  ;;  %v856_v23 = vor.u32 %v854_v32, %v7849_v50  ;;  %v3222_v62 = vmul.bf16 %v3190_v37, %v8795_v40  ;;  %v10226_v63 = vrot.slane %v8798_v30, 1  ;;  %v8836_v37 = vld [vmem:[#allocation2 + $0x70] sm:$0xf] }
  0xd0   : > { %v8743_v10 = vpop.permute.xlu0 %2546  ;;  %v8791_v24 = vrot.slane %v1688_v8, 1  ;;  %v835_v49 = vrot.slane %v833_v29, 7  ;;  %v844_v42 = vrot.slane %v842_v28, 7  ;;  %v2721_v5 = vrot.slane %v8756_v4, 4  ;;  %v8820_v28 = vld [vmem:[#allocation2 + $0x68] sm:$0xf] }
  0xd1   : > { %v8818_v32 = vcombine.low %v3221_v3, %v3222_v62  ;;  %v4237_v4 = vsel %vm2900_vm13, %v4234_v17, %v10226_v63  ;;  %10373 = vst [vmem:[#allocation57_spill] sm:$0xff] %v8836_v37  ;;  %v3192_v17 = vld [vmem:[#allocation2 + $0x1c] sm:$0xf]  ;;  %v8859_v3 = vrot.slane %v8716_v57, %v8344_v19  ;;  %v8863_v62 = vld [vmem:[#allocation2] sm:$0xf]  ;;  %v4118_v63 = vmul.bf16 %v8736_v0, %v8734_v2 }
  0xd2   : > { %v1691_v8 = vsel %vm1575_vm8, %v1686_v18, %v8791_v24  ;;  %v838_v29 = vor.u32 %v836_v51, %v835_v49  ;;  %v840_v22 = vrot.slane %v835_v49, 4  ;;  %v847_v58 = vor.u32 %v845_v20, %v844_v42  ;;  %v8834_v20 = vld [vmem:[#allocation2 + $0x6c] sm:$0xf]  ;;  %7167 = vmatmul.mubr.msk.bf16.gmra.mrb[16].mxu0 %vm1720_vm9, %v4237_v4  ;;  %v3194_v0 = vld [vmem:[#allocation2 + $0x24] sm:$0xf] }
  0xd3   : > { %v8778_v35 = vpop.permute.xlu1 %2558  ;;  %6995 = vmatmul.mubr.msk.bf16.gmra.mrb[24].mxu1 %vm1720_vm9, %v1691_v8  ;;  %v849_v38 = vrot.slane %v844_v42, 4  ;;  %v2543_v18 = vrot.slane %v8693_v56, %v8344_v19  ;;  %10372 = vst [vmem:[#allocation56_spill] sm:$0xff] %v8818_v32  ;;  %v2722_v51 = vrot.slane %v2531_v34, 7  ;;  %v8845_v61 = vcombine.low %v8820_v28, %v8834_v20  ;;  %v8855_v34 = vld [vmem:[#allocation2 + $0x74] sm:$0xf] }
  0xd4   : > { %v8780_v59 = vpop.permute.xlu0 %1120  ;;  %v839_v50 = vsel %vm7859_vm7, %v831_v25, %v838_v29  ;;  %v848_v42 = vsel %vm7859_vm7, %v840_v22, %v847_v58  ;;  %v8838_v25 = vld [vmem:[#allocation2] sm:$0xe]  ;;  %10377 = vst [vmem:[#allocation61_spill] sm:$0xff] %v8855_v34  ;;  %v3191_v29 = vld [vmem:[#allocation2 + $0x18] sm:$0xf]  ;;  %v1418_v37 = vmul.bf16 %v8687_v6, %v8863_v62  ;;  %v2555_v34 = vrot.slane %v8743_v10, %v8344_v19 }
  0xd5   : > { %931 = vst.msk [vmem:[#allocation2 + $0x78] sm:$0xf] %vm291_vm4, %v839_v50  ;;  %v857_v56 = vsel %vm7859_vm7, %v849_v38, %v856_v23  ;;  %10374 = vst [vmem:[#allocation58_spill] sm:$0xff] %v8838_v25  ;;  %v8849_v38 = vrot.slane %v8714_v46, %v8344_v19  ;;  %v2725_v58 = vrot.slane %v2543_v18, 7  ;;  %v8853_v8 = vsel %vm8379_vm12, %v2721_v5, %v2722_v51  ;;  %v8861_v22 = vld [vmem:[#allocation2 + $0x4] sm:$0xf] }
  0xd6   : > { %932 = vst.msk [vmem:[#allocation2 + $0x7c] sm:$0xf] %vm291_vm4, %v848_v42  ;;  %933 = vst.msk [vmem:[#allocation2 + $0x80] sm:$0xf] %vm291_vm4, %v857_v56  ;;  %v2724_v23 = vrot.slane %v2722_v51, 4  ;;  %v4119_v46 = vmul.bf16 %v8751_v39, %v8776_v15  ;;  %v3223_v32 = vmul.bf16 %v3191_v29, %v8859_v3  ;;  %v1692_v18 = vshrl.u32 %v8762_v16, 16 }
  0xd7   : > { %v8800_v53 = vpop.permute.xlu1 %2582  ;;  %10375 = vst [vmem:[#allocation59_spill] sm:$0xff] %v8845_v61  ;;  %10376 = vst [vmem:[#allocation60_spill] sm:$0xff] %v8853_v8  ;;  %v8875_v57 = vld [vmem:[#allocation2 + $0xc] sm:$0xf]  ;;  %v3224_v39 = vmul.bf16 %v3192_v17, %v8849_v38  ;;  %v8884_v51 = vld [vmem:[#allocation2 + $0x4] sm:$0xf]  ;;  %v1419_v17 = vmul.bf16 %v8684_v26, %v8861_v22  ;;  %v8934_v10 = vrot.slane %v8780_v59, %v8344_v19 }
  0xd8   : > { %v8802_v27 = vpop.permute.xlu0 %2570  ;;  %10378 = vst [vmem:[#allocation62_spill] sm:$0xff] %v8875_v57  ;;  %v8881_v4 = vsel %vm8379_vm12, %v2724_v23, %v2725_v58  ;;  %10380 = vst [vmem:[#allocation64_spill] sm:$0xff] %v8884_v51  ;;  %v8893_v56 = vld [vmem:[#allocation2 + $0x8] sm:$0xf]  ;;  %v2727_v42 = vrot.slane %v2725_v58, 4  ;;  %v8910_v23 = vcombine.low %v4118_v63, %v4119_v46  ;;  %v8924_v58 = vrot.slane %v8741_v47, %v8344_v19 }
  0xd9   : > { %10379 = vst [vmem:[#allocation63_spill] sm:$0xff] %v8881_v4  ;;  %10381 = vst [vmem:[#allocation65_spill] sm:$0xff] %v8893_v56  ;;  %v8906_v29 = vcombine.low %v3223_v32, %v3224_v39  ;;  %v8912_v61 = vld [vmem:[#allocation2 + $0x74] sm:$0xf]  ;;  %v2567_v32 = vrot.slane %v8778_v35, %v8344_v19  ;;  %v2728_v47 = vrot.slane %v2555_v34, 7  ;;  %v1694_v12 = vor.u32 %v1692_v18, %v8791_v24 }
  0xda   : > { %v8930_v63 = vcombine.low %v8902_v43, %v8912_v61  ;;  %v3226_v59 = vmul.bf16 %v3194_v0, %v8934_v10  ;;  %v1004_v35 = vld [vmem:[#allocation2 + $0x8] sm:$0xf]  ;;  %v10389_v26 = vrot.slane %v8910_v23, 1  ;;  %v10390_v41 = vrot.slane %v8798_v30, 1 }
  0xdb   : > { %v8822_v60 = vpop.permute.xlu1 %1144  ;;  %10384 = vst [vmem:[#allocation67_spill] sm:$0xff] %v8906_v29  ;;  %v3193_v29 = vld [vmem:[#allocation2 + $0x20] sm:$0xf]  ;;  %v8946_v21 = vrot.slane %v2567_v32, 7  ;;  %v8951_v33 = vsel %vm8379_vm12, %v2727_v42, %v2728_v47  ;;  %v2730_v18 = vrot.slane %v2728_v47, 4 }
  0xdc   : > { %v8824_v49 = vpop.permute.xlu0 %1132  ;;  %v8904_v57 = vld [vmem:[#allocation2 + $0x78] sm:$0xf]  ;;  %10386 = vst [vmem:[#allocation69_spill] sm:$0xff] %v8930_v63  ;;  %v4121_v63 = vmul.bf16 %v8834_v20, %v8881_v4  ;;  %10388 = vst [vmem:[#allocation71_spill] sm:$0xff] %v8951_v33  ;;  %v3225_v24 = vmul.bf16 %v3193_v29, %v8924_v58  ;;  %v1005_v4 = vld [vmem:[#allocation2 + $0xc] sm:$0xf]  ;;  %v4239_v29 = vsel %vm2900_vm13, %v10390_v41, %v10389_v26 }
  0xdd   : > { %10383 = vst [vmem:[#allocation66_spill] sm:$0xff] %v8904_v57  ;;  %v8918_v16 = vld [vmem:[#allocation2 + $0x7c] sm:$0xf]  ;;  %v8920_v56 = vld [vmem:[#allocation2 + $0x80] sm:$0x1]  ;;  %7170 = vmatprep.mubr.msk.bf16.mxu0 %vm1720_vm9, %v4239_v29  ;;  %v6320_v26 = vcombine.low %v1418_v37, %v1419_v17  ;;  %v1420_v29 = vmul.bf16 %v8787_v36, %v1004_v35  ;;  %v2579_v35 = vrot.slane %v8802_v27, %v8344_v19 }
  0xde   : > { %10385 = vst [vmem:[#allocation68_spill] sm:$0xff] %v8918_v16  ;;  %v6300_v46 = vcombine.low %v8904_v57, %v8918_v16  ;;  %v6301_v39 = vcombine.low %v8920_v56, %v8920_v56  ;;  %v8940_v25 = vld [vmem:[#allocation2 + $0x78] sm:$0xf]  ;;  %v8971_v47 = vld [vmem:[#allocation2 + $0x7c] sm:$0xf]  ;;  %v8985_v30 = vcombine.low %v3225_v24, %v3226_v59 }
  0xdf   : > { %v8869_v50 = vpop.permute.xlu1 %1156  ;;  %10387 = vst [vmem:[#allocation70_spill] sm:$0xff] %v8940_v25  ;;  %v8962_v32 = vld [vmem:[#allocation2 + $0x18] sm:$0xf]  ;;  %10391 = vst [vmem:[#allocation72_spill] sm:$0xff] %v8971_v47  ;;  %v8973_v20 = vld [vmem:[#allocation2 + $0x1c] sm:$0xf]  ;;  %v4120_v25 = vmul.bf16 %v8820_v28, %v8853_v8 }
  0xe0   : > { %v8871_v5 = vpop.permute.xlu0 %2594  ;;  %v1696_v51 = vshll.u32 %v6300_v46, 16  ;;  %v1700_v15 = vshrl.u32 %v6300_v46, 16  ;;  %v1704_v2 = vshll.u32 %v6301_v39, 16  ;;  %10393 = vst [vmem:[#allocation74_spill] sm:$0xff] %v8985_v30  ;;  %v1007_v42 = vld [vmem:[#allocation2 + $0x14] sm:$0xf] }
  0xe1   : > { %v1006_v59 = vld [vmem:[#allocation2 + $0x10] sm:$0xf]  ;;  %v9003_v17 = vld [vmem:[#allocation2 + $0x7c] sm:$0xf]  ;;  %v1423_v27 = vmul.bf16 %v8849_v38, %v1007_v42  ;;  %v2734_v37 = vrot.slane %v2579_v35, 7 }
  0xe2   : > { %v1698_v46 = vrot.slane %v1696_v51, 1  ;;  %v1706_v39 = vrot.slane %v1704_v2, 1  ;;  %v8983_v2 = vsel %vm8379_vm12, %v2730_v18, %v8946_v21  ;;  %v1421_v18 = vmul.bf16 %v8795_v40, %v1005_v4  ;;  %v3195_v0 = vld [vmem:[#allocation2 + $0x28] sm:$0xf]  ;;  %v1013_v57 = vld [vmem:[#allocation2 + $0x2c] sm:$0xf] }
  0xe3   : > { %v8914_v22 = vpop.permute.xlu1 %2606  ;;  %10392 = vst [vmem:[#allocation73_spill] sm:$0xff] %v8983_v2  ;;  %v4503_v16 = vld [vmem:[#allocation2 + $0x10] sm:$0xf] }
  0xe4   : > { %v8916_v62 = vpop.permute.xlu0 %1168  ;;  %v1699_v41 = vsel %vm1575_vm8, %v1694_v12, %v1698_v46  ;;  %v1702_v51 = vor.u32 %v1700_v15, %v1698_v46  ;;  %v8999_v12 = vcombine.low %v4120_v25, %v4121_v63  ;;  %v9001_v15 = vld [vmem:[#allocation2 + $0x78] sm:$0xf]  ;;  %v2591_v46 = vrot.slane %v8800_v53, %v8344_v19  ;;  %v10420_v8 = vld [vmem:[#allocation46_spill] sm:$0xff] }
  0xe5   : > { %6998 = vmatprep.mubr.msk.bf16.mxu1 %vm1720_vm9, %v1699_v41  ;;  %v9012_v4 = vcombine.low %v9001_v15, %v9003_v17  ;;  %v3196_v41 = vld [vmem:[#allocation2 + $0x2c] sm:$0xf]  ;;  %v4123_v25 = vmul.bf16 %v8912_v61, %v8983_v2  ;;  %v9024_v53 = vrot.slane %v8824_v49, %v8344_v19  ;;  %v9030_v61 = vld [vmem:[#allocation2 + $0x80] sm:$0xf]  ;;  %v6321_v30 = vcombine.low %v1420_v29, %v1421_v18  ;;  %v9051_v18 = vld [vmem:[#allocation2 + $0x84] sm:$0xf] }
  0xe6   : > { %v1707_v24 = vsel %vm1575_vm8, %v1702_v51, %v1706_v39  ;;  %v9020_v39 = vrot.slane %v8822_v60, %v8344_v19  ;;  %v1422_v51 = vmul.bf16 %v8859_v3, %v1006_v59  ;;  %10395 = vst [vmem:[#allocation76_spill] sm:$0xff] %v9030_v61  ;;  %v4122_v49 = vmul.bf16 %v8902_v43, %v8951_v33  ;;  %v9092_v33 = vld [vmem:[#allocation2 + $0x80] sm:$0xf] }
  0xe7   : > { %v8953_v34 = vpop.permute.xlu1 %1192  ;;  %10394 = vst [vmem:[#allocation75_spill] sm:$0xff] %v9012_v4  ;;  %6999 = vmatmul.mubr.msk.bf16.gmra.mrb[28].mxu1 %vm1720_vm9, %v1707_v24  ;;  %v2733_v24 = vrot.slane %v8946_v21, 4  ;;  %v9038_v4 = vld [vmem:[#allocation2 + $0x1c] sm:$0xf]  ;;  %v10396_v42 = vrot.slane %v8999_v12, 1  ;;  %v2737_v35 = vrot.slane %v2591_v46, 7  ;;  %v2603_v43 = vrot.slane %v8871_v5, %v8344_v19 }
  0xe8   : > { %v8955_v6 = vpop.permute.xlu0 %1180  ;;  %7006 = vmatprep.mubr.msk.bf16.mxu1 %vm1720_vm9, %v6320_v26  ;;  %v10397_v26 = vrot.slane %v8910_v23, 1  ;;  %v3228_v59 = vmul.bf16 %v3196_v41, %v9020_v39  ;;  %v2736_v29 = vrot.slane %v2734_v37, 4  ;;  %10399 = vst [vmem:[#allocation78_spill] sm:$0xff] %v9051_v18  ;;  %v1011_v41 = vld [vmem:[#allocation2 + $0x24] sm:$0xf]  ;;  %v9060_v46 = vcombine.low %v4122_v49, %v4123_v25 }
  0xe9   : > { %v9049_v47 = vsel %vm8379_vm12, %v2733_v24, %v2734_v37  ;;  %v1425_v37 = vmul.bf16 %v8934_v10, %v9038_v4  ;;  %v1010_v5 = vld [vmem:[#allocation2 + $0x20] sm:$0xf]  ;;  %v9070_v23 = vrot.slane %v8869_v50, %v8344_v19  ;;  %v9084_v49 = vld [vmem:[#allocation2 + $0x88] sm:$0xf]  ;;  %v1427_v25 = vmul.bf16 %v9020_v39, %v1011_v41  ;;  %v3198_v41 = vld [vmem:[#allocation2 + $0x34] sm:$0xf] }
  0xea   : > { %v4241_v21 = vsel %vm2900_vm13, %v10397_v26, %v10396_v42  ;;  %10398 = vst [vmem:[#allocation77_spill] sm:$0xff] %v9049_v47  ;;  %v3227_v26 = vmul.bf16 %v3195_v0, %v9024_v53  ;;  %v9066_v24 = vsel %vm8379_vm12, %v2736_v29, %v2737_v35  ;;  %v1008_v0 = vld [vmem:[#allocation2 + $0x18] sm:$0xf]  ;;  %10402 = vst [vmem:[#allocation81_spill] sm:$0xff] %v9084_v49  ;;  %v7620_v50 = vld [vmem:[%s10180_s5 + $0x28] sm:$0xff]   ;;  %v2739_v29 = vrot.slane %v2737_v35, 4 }
  0xeb   : > { %v8990_v52 = vpop.permute.xlu1 %1216  ;;  %7171 = vmatmul.mubr.msk.bf16.gmra.mrb[20].mxu0 %vm1720_vm9, %v4241_v21  ;;  %v6322_v21 = vcombine.low %v1422_v51, %v1423_v27  ;;  %10400 = vst [vmem:[#allocation79_spill] sm:$0xff] %v9066_v24  ;;  %v4125_v4 = vmul.bf16 %v9003_v17, %v9066_v24  ;;  %v4124_v61 = vmul.bf16 %v9001_v15, %v9049_v47  ;;  %v2740_v13 = vrot.slane %v2603_v43, 7  ;;  %v9094_v17 = vld [vmem:[#allocation2 + $0x84] sm:$0xf] }
  0xec   : > { %v8992_v28 = vpop.permute.xlu0 %1204  ;;  %v9082_v51 = vcombine.low %v3227_v26, %v3228_v59  ;;  %v1426_v59 = vmul.bf16 %v9024_v53, %v1010_v5  ;;  %v3197_v26 = vld [vmem:[#allocation2 + $0x30] sm:$0xf]  ;;  %v4242_v27 = vrot.slane %v9060_v46, 1  ;;  %v2615_v35 = vrot.slane %v8914_v22, %v8344_v19  ;;  %v7641_v43 = vld [vmem:[%s10180_s5 + $0x20] sm:$0xff]  }
  0xed   : > { %v9103_v15 = vcombine.low %v9092_v33, %v9094_v17  ;;  %v9115_v46 = vrot.slane %v8916_v62, %v8344_v19  ;;  %v9117_v22 = vcombine.low %v4124_v61, %v4125_v4  ;;  %v9134_v62 = vld [vmem:[%s10180_s5 + $0x30] sm:$0xff]   ;;  %v3229_v61 = vmul.bf16 %v3197_v26, %v9070_v23  ;;  %v3621_v26 = vld [vmem:[#allocation2 + $0x88] sm:$0x1] }
  0xee   : > { %10401 = vst [vmem:[#allocation80_spill] sm:$0xff] %v9082_v51  ;;  %10406 = vst [vmem:[#allocation84_spill] sm:$0xff] %v9134_v62  ;;  %v2742_v4 = vrot.slane %v2740_v13, 4  ;;  %v6324_v49 = vcombine.low %v1426_v59, %v1427_v25  ;;  %v9144_v24 = vrot.slane %v8953_v34, %v8344_v19  ;;  %v9156_v25 = vld [vmem:[#allocation2 + $0x20] sm:$0xf] }
  0xef   : > { %v9032_v63 = vpop.permute.xlu1 %1240  ;;  %7007 = vmatmul.mubr.msk.bf16.vlgmr.msra.gmra.mrb[0].mxu1 %vm1720_vm9, %v6321_v30  ;;  %10403 = vst [vmem:[#allocation82_spill] sm:$0xff] %v9103_v15  ;;  %v9111_v30 = vsel %vm8379_vm12, %v2739_v29, %v2740_v13  ;;  %v10405_v29 = vrot.slane %v8999_v12, 1  ;;  %v9138_v15 = vld [vmem:[#allocation2 + $0x8c] sm:$0xf]  ;;  %v10272_v47 = vrot.slane %v9117_v22, 1 }
  0xf0   : > { %v9034_v60 = vpop.permute.xlu0 %1228  ;;  %7010 = vmatprep.mubr.msk.bf16.mxu1 %vm1720_vm9, %v6322_v21  ;;  %7039 = vmatpush3.bf16.msra.mxu1 %v7641_v43  ;;  %10404 = vst [vmem:[#allocation83_spill] sm:$0xff] %v9111_v30  ;;  %v1424_v21 = vmul.bf16 %v8924_v58, %v1008_v0  ;;  %v2743_v0 = vrot.slane %v2615_v35, 7  ;;  %10407 = vst [vmem:[#allocation85_spill] sm:$0xff] %v9138_v15  ;;  %v3230_v43 = vmul.bf16 %v3198_v41, %v9115_v46  ;;  %v1012_v59 = vld [vmem:[#allocation2 + $0x28] sm:$0xf] }
  0xf1   : > { %v4243_v18 = vsel %vm2900_vm13, %v10405_v29, %v4242_v27  ;;  %7040 = vmatprep.subr.bf16.mxu1 %v7620_v50  ;;  %v4937_v29 = vld [vmem:[#allocation2 + $0x90] sm:$0x1]  ;;  %v9178_v41 = vrot.slane %v8990_v52, %v8344_v19  ;;  %v9187_v15 = vld [vmem:[#allocation2 + $0x24] sm:$0xf]  ;;  %v1428_v52 = vmul.bf16 %v9070_v23, %v1012_v59 }
  0xf2   : > { %7174 = vmatprep.mubr.msk.bf16.mxu0 %vm1720_vm9, %v4243_v18  ;;  %v6323_v12 = vcombine.low %v1424_v21, %v1425_v37  ;;  %v9148_v13 = vsel %vm8379_vm12, %v2742_v4, %v2743_v0  ;;  %v2745_v18 = vrot.slane %v2743_v0, 4  ;;  %v9150_v35 = vcombine.low %v3229_v61, %v3230_v43  ;;  %v1015_v43 = vld [vmem:[#allocation2 + $0x34] sm:$0xf]  ;;  %v1014_v61 = vld [vmem:[#allocation2 + $0x30] sm:$0xf] }
  0xf3   : > { %v9072_v11 = vpop.permute.xlu1 %1264  ;;  %10408 = vst [vmem:[#allocation86_spill] sm:$0xff] %v9148_v13  ;;  %v9154_v37 = vrot.slane %v8955_v6, %v8344_v19  ;;  %v1429_v21 = vmul.bf16 %v9115_v46, %v1013_v57  ;;  %v4245_v0 = vsel %vm2900_vm13, %v4242_v27, %v10272_v47  ;;  %10412 = vst [vmem:[#allocation90_spill] sm:$0xff] %v9178_v41  ;;  %v4504_v27 = vld [vmem:[#allocation2 + $0x14] sm:$0xf] }
  0xf4   : > { %v9074_v42 = vpop.permute.xlu0 %1252  ;;  %10409 = vst [vmem:[#allocation87_spill] sm:$0xff] %v9150_v35  ;;  %7041 = vmatpush3.bf16.msra.mxu1 %v7620_v50  ;;  %v9169_v6 = vmul.bf16 %v2745_v18, %v8920_v56  ;;  %v9171_v50 = vmul.bf16 %v4937_v29, %v2745_v18  ;;  %v4127_v34 = vmul.bf16 %v9094_v17, %v9148_v13  ;;  %v3202_v35 = vld [vmem:[#allocation2 + $0x44] sm:$0xf]  ;;  %v9195_v17 = vld [vmem:[#allocation2 + $0x28] sm:$0xf] }
  0xf5   : > { %7074 = vmatprep.subr.bf16.mxu1 %v9134_v62  ;;  %v4128_v56 = vmul.bf16 %v3621_v26, %v2745_v18  ;;  %7175 = vmatmul.mubr.msk.bf16.gmra.mrb[24].mxu0 %vm1720_vm9, %v4245_v0  ;;  %v3232_v29 = vmul.bf16 %v3200_v45, %v9144_v24  ;;  %v1430_v47 = vmul.bf16 %v9154_v37, %v1014_v61  ;;  %v9199_v45 = vld [vmem:[#allocation2 + $0x2c] sm:$0xf]  ;;  %v3203_v26 = vld [vmem:[#allocation2 + $0x48] sm:$0xf] }
  0xf6   : > { %10410 = vst [vmem:[#allocation88_spill] sm:$0xff] %v9169_v6  ;;  %10411 = vst [vmem:[#allocation89_spill] sm:$0xff] %v9171_v50  ;;  %v4126_v0 = vmul.bf16 %v9092_v33, %v9111_v30  ;;  %v3231_v59 = vmul.bf16 %v3199_v7, %v9154_v37  ;;  %v3234_v61 = vmul.bf16 %v3202_v35, %v9178_v41  ;;  %v3204_v62 = vld [vmem:[#allocation2 + $0x4c] sm:$0xf]  ;;  %v1017_v7 = vld [vmem:[#allocation2 + $0x3c] sm:$0xf] }
  0xf7   : > { %v9119_v5 = vpop.permute.xlu1 %1288  ;;  %7011 = vmatmul.mubr.msk.bf16.gmra.mrb[4].mxu1 %vm1720_vm9, %v6323_v12  ;;  %v1431_v12 = vmul.bf16 %v9144_v24, %v1015_v43  ;;  %10413 = vst [vmem:[#allocation91_spill] sm:$0xff] %v9195_v17  ;;  %v6325_v43 = vcombine.low %v1428_v52, %v1429_v21  ;;  %v9209_v50 = vrot.slane %v8992_v28, %v8344_v19  ;;  %v1016_v30 = vld [vmem:[#allocation2 + $0x38] sm:$0xf]  ;;  %v9223_v28 = vld [vmem:[#allocation2 + $0x30] sm:$0xf] }
  0xf8   : > { %v9121_v51 = vpop.permute.xlu0 %1276  ;;  %7014 = vmatprep.mubr.msk.bf16.mxu1 %vm1720_vm9, %v6324_v49  ;;  %v3201_v49 = vld [vmem:[#allocation2 + $0x40] sm:$0xf]  ;;  %v9213_v18 = vrot.slane %v9032_v63, %v8344_v19  ;;  %v6490_v13 = vcombine.low %v4128_v56, %v4128_v56  ;;  %v9215_v33 = vcombine.low %v3231_v59, %v3232_v29  ;;  %v9219_v21 = vrot.slane %v9034_v60, %v8344_v19  ;;  %v9227_v6 = vld [vmem:[#allocation2 + $0x34] sm:$0xf]  ;;  %v9234_v60 = vld [vmem:[#allocation2 + $0x38] sm:$0xf] }
  0xf9   : > { %10414 = vst [vmem:[#allocation92_spill] sm:$0xff] %v9209_v50  ;;  %v6489_v35 = vcombine.low %v4126_v0, %v4127_v34  ;;  %10418 = vst [vmem:[#allocation96_spill] sm:$0xff] %v9223_v28  ;;  %v6326_v29 = vcombine.low %v1430_v47, %v1431_v12  ;;  %v3233_v59 = vmul.bf16 %v3201_v49, %v9209_v50  ;;  %v10421_v17 = vld [vmem:[#allocation47_spill] sm:$0xff] }
  0xfa   : > { %10415 = vst [vmem:[#allocation93_spill] sm:$0xff] %v9213_v18  ;;  %10416 = vst [vmem:[#allocation94_spill] sm:$0xff] %v9215_v33  ;;  %v1019_v33 = vld [vmem:[#allocation2 + $0x44] sm:$0xf]  ;;  %v4536_v1 = vmul.bf16 %v4504_v27, %v10420_v8  ;;  %v3236_v63 = vmul.bf16 %v3204_v62, %v9213_v18  ;;  %v3235_v28 = vmul.bf16 %v3203_v26, %v9219_v21  ;;  %v4248_v27 = vrot.slane %v6490_v13, 1 }
  0xfb   : > { %v9165_v4 = vpop.permute.xlu1 %1312  ;;  %10417 = vst [vmem:[#allocation95_spill] sm:$0xff] %v9219_v21  ;;  %v4535_v56 = vmul.bf16 %v4503_v16, %v10421_v17  ;;  %v1433_v47 = vmul.bf16 %v9178_v41, %v1017_v7  ;;  %v1432_v12 = vmul.bf16 %v9209_v50, %v1016_v30  ;;  %v9244_v49 = vcombine.low %v3233_v59, %v3234_v61  ;;  %v3206_v34 = vld [vmem:[#allocation2 + $0x54] sm:$0xf]  ;;  %v3205_v26 = vld [vmem:[#allocation2 + $0x50] sm:$0xf] }
  0xfc   : > { %v9180_v57 = vpop.permute.xlu0 %1300  ;;  %v1435_v0 = vmul.bf16 %v9213_v18, %v1019_v33  ;;  %v9250_v8 = vcombine.low %v3235_v28, %v3236_v63  ;;  %v4246_v62 = vrot.slane %v6489_v35, 1  ;;  %v1434_v16 = vmul.bf16 %v9219_v21, %v1018_v44  ;;  %v3208_v61 = vld [vmem:[#allocation2 + $0x5c] sm:$0xf]  ;;  %v10427_v33 = vld [vmem:[#allocation31_spill] sm:$0xff]  ;;  %v4508_v44 = vld [vmem:[#allocation2 + $0x24] sm:$0xf] }
  0xfd   : > { %10422 = vst [vmem:[#allocation46_spill] sm:$0xff] %v9244_v49  ;;  %v9256_v30 = vrot.slane %v9072_v11, %v8344_v19  ;;  %v9260_v17 = vrot.slane %v9074_v42, %v8344_v19  ;;  %v9266_v13 = vld [vmem:[#allocation2 + $0x3c] sm:$0xf]  ;;  %v4507_v35 = vld [vmem:[#allocation2 + $0x20] sm:$0xf]  ;;  %v10428_v11 = vrot.slane %v9117_v22, 1  ;;  %v9276_v63 = vrot.slane %v9121_v51, %v8344_v19 }
  0xfe   : > { %10423 = vst [vmem:[#allocation47_spill] sm:$0xff] %v9250_v8  ;;  %v4249_v42 = vsel %vm2900_vm13, %v4246_v62, %v4248_v27  ;;  %v9278_v59 = vld [vmem:[#allocation2 + $0x40] sm:$0xf]  ;;  %v6513_v7 = vcombine.low %v4535_v56, %v4536_v1  ;;  %v4505_v21 = vld [vmem:[#allocation2 + $0x18] sm:$0xf]  ;;  %v4538_v22 = vmul.bf16 %v9246_v54, %v8795_v40  ;;  %v9291_v1 = vrot.slane %v9165_v4, %v8344_v19 }
  0xff   : > { %v9221_v52 = vpop.permute.xlu1 %1336  ;;  %7015 = vmatmul.mubr.msk.bf16.gmra.mrb[8].mxu1 %vm1720_vm9, %v6325_v43  ;;  %10424 = vst [vmem:[#allocation97_spill] sm:$0xff] %v9256_v30  ;;  %10425 = vst [vmem:[#allocation98_spill] sm:$0xff] %v9260_v17  ;;  %v9264_v43 = vrot.slane %v9119_v5, %v8344_v19  ;;  %v4247_v28 = vsel %vm2900_vm13, %v10428_v11, %v4246_v62  ;;  %v3207_v5 = vld [vmem:[#allocation2 + $0x58] sm:$0xf]  ;;  %v3238_v62 = vmul.bf16 %v3206_v34, %v9256_v30  ;;  %v1021_v51 = vld [vmem:[#allocation2 + $0x4c] sm:$0xf] }
 0x100   : > { %v9232_v2 = vpop.permute.xlu0 %1324  ;;  %7018 = vmatprep.mubr.msk.bf16.mxu1 %vm1720_vm9, %v6326_v29  ;;  %10429 = vst [vmem:[#allocation31_spill] sm:$0xff] %v9276_v63  ;;  %7178 = vmatprep.mubr.msk.bf16.mxu0 %vm1720_vm9, %v4247_v28  ;;  %v6327_v11 = vcombine.low %v1432_v12, %v1433_v47  ;;  %v1020_v18 = vld [vmem:[#allocation2 + $0x48] sm:$0xf]  ;;  %v3237_v50 = vmul.bf16 %v3205_v26, %v9260_v17  ;;  %10431 = vst [vmem:[#allocation100_spill] sm:$0xff] %v9291_v1  ;;  %v3210_v47 = vld [vmem:[#allocation2 + $0x64] sm:$0xf] }
 0x101   : > { %10426 = vst [vmem:[#allocation99_spill] sm:$0xff] %v9264_v43  ;;  %7179 = vmatmul.mubr.msk.bf16.gmra.mrb[28].mxu0 %vm1720_vm9, %v4249_v42  ;;  %v3240_v41 = vmul.bf16 %v3208_v61, %v9264_v43  ;;  %v4540_v54 = vmul.bf16 %v4508_v44, %v8849_v38  ;;  %v4539_v40 = vmul.bf16 %v4507_v35, %v8859_v3  ;;  %v9297_v12 = vld [vmem:[#allocation2 + $0x44] sm:$0xf]  ;;  %v10432_v28 = vld [vmem:[#allocation35_spill] sm:$0xff]  ;;  %v9301_v61 = vld [vmem:[#allocation2 + $0x4c] sm:$0xf] }
 0x102   : > { %v6328_v56 = vcombine.low %v1434_v16, %v1435_v0  ;;  %7186 = vmatprep.mubr.msk.bf16.mxu0 %vm1720_vm9, %v6513_v7  ;;  %v3239_v34 = vmul.bf16 %v3207_v5, %v9276_v63  ;;  %10433 = vst [vmem:[#allocation35_spill] sm:$0xff] %v9301_v61  ;;  %v4537_v38 = vmul.bf16 %v4505_v21, %v8787_v36  ;;  %v1023_v3 = vld [vmem:[#allocation2 + $0x54] sm:$0xf]  ;;  %v1022_v0 = vld [vmem:[#allocation2 + $0x50] sm:$0xf] }
 0x103   : > { %v1361_v29 = vpop.permute.xlu1 %1360  ;;  %v9306_v44 = vcombine.low %v3237_v50, %v3238_v62  ;;  %v9308_v16 = vld [vmem:[#allocation2 + $0x58] sm:$0xf]  ;;  %v9312_v5 = vld [vmem:[#allocation2 + $0x2c] sm:$0xf]  ;;  %v9314_v49 = vld [vmem:[#allocation2 + $0x34] sm:$0xf]  ;;  %v1437_v26 = vmul.bf16 %v9256_v30, %v1021_v51  ;;  %v1436_v8 = vmul.bf16 %v9260_v17, %v1020_v18  ;;  %v3242_v50 = vmul.bf16 %v3210_v47, %v9291_v1 }
 0x104   : > { %v1349_v27 = vpop.permute.xlu0 %1348  ;;  %10436 = vst [vmem:[#allocation102_spill] sm:$0xff] %v9308_v16  ;;  %v9318_v4 = vcombine.low %v3239_v34, %v3240_v41  ;;  %v3209_v36 = vld [vmem:[#allocation2 + $0x60] sm:$0xf]  ;;  %v9324_v21 = vrot.slane %v9180_v57, %v8344_v19  ;;  %v9328_v62 = vrot.slane %v9221_v52, %v8344_v19  ;;  %v3212_v35 = vld [vmem:[#allocation2 + $0x6c] sm:$0xf]  ;;  %v9332_v51 = vrot.slane %v9232_v2, %v8344_v19  ;;  %v10444_v42 = vld [vmem:[#allocation55_spill] sm:$0xff] }
 0x105   : > { %10435 = vst [vmem:[#allocation101_spill] sm:$0xff] %v9306_v44  ;;  %v3211_v41 = vld [vmem:[#allocation2 + $0x68] sm:$0xf]  ;;  %v6514_v34 = vcombine.low %v4537_v38, %v4538_v22  ;;  %v1439_v47 = vmul.bf16 %v9264_v43, %v1023_v3  ;;  %v1438_v57 = vmul.bf16 %v9276_v63, %v1022_v0  ;;  %v4542_v52 = vmul.bf16 %v9312_v5, %v8934_v10  ;;  %v9341_v30 = vld [vmem:[#allocation2 + $0x5c] sm:$0xf] }
 0x106   : > { %10438 = vst [vmem:[#allocation103_spill] sm:$0xff] %v9318_v4  ;;  %10439 = vst [vmem:[#allocation104_spill] sm:$0xff] %v9324_v21  ;;  %v6515_v4 = vcombine.low %v4539_v40, %v4540_v54  ;;  %v4509_v17 = vld [vmem:[#allocation2 + $0x28] sm:$0xf]  ;;  %v4544_v2 = vmul.bf16 %v9314_v49, %v9020_v39  ;;  %v3241_v22 = vmul.bf16 %v3209_v36, %v9324_v21  ;;  %v7623_v40 = vld [vmem:[%s10180_s5 + $0x78] sm:$0xff]  }
 0x107   : > { %7019 = vmatmul.mubr.msk.bf16.gmra.mrb[12].mxu1 %vm1720_vm9, %v6327_v11  ;;  %10440 = vst [vmem:[#allocation105_spill] sm:$0xff] %v9328_v62  ;;  %10441 = vst [vmem:[#allocation106_spill] sm:$0xff] %v9332_v51  ;;  %v1385_v18 = vpop.permute.xlu1 %1384  ;;  %v4511_v11 = vld [vmem:[#allocation2 + $0x30] sm:$0xf]  ;;  %v9345_v54 = vrot.slane %v1361_v29, %v8344_v19  ;;  %v9352_v38 = vld [vmem:[#allocation2 + $0x64] sm:$0xf]  ;;  %v3244_v10 = vmul.bf16 %v3212_v35, %v9328_v62  ;;  %v3243_v3 = vmul.bf16 %v3211_v41, %v9332_v51 }
 0x108   : > { %7022 = vmatprep.mubr.msk.bf16.mxu1 %vm1720_vm9, %v6328_v56  ;;  %v1373_v44 = vpop.permute.xlu0 %1372  ;;  %v9350_v56 = vld [vmem:[#allocation2 + $0x58] sm:$0xf]  ;;  %v3214_v39 = vld [vmem:[#allocation2 + $0x74] sm:$0xf]  ;;  %v9357_v49 = vrot.slane %v1349_v27, %v8344_v19  ;;  %v9360_v0 = vrot.slane %v1385_v18, %v8344_v19  ;;  %v4543_v29 = vmul.bf16 %v4511_v11, %v9024_v53  ;;  %v6329_v5 = vcombine.low %v1436_v8, %v1437_v26  ;;  %v1026_v63 = vld [vmem:[#allocation2 + $0x60] sm:$0xf] }
 0x109   : > { %7187 = vmatmul.mubr.msk.bf16.vlgmr.msra.gmra.mrb[0].mxu0 %vm1720_vm9, %v6514_v34  ;;  %v9364_v36 = vcombine.low %v3241_v22, %v3242_v50  ;;  %v3213_v43 = vld [vmem:[#allocation2 + $0x70] sm:$0xf]  ;;  %v3216_v7 = vld [vmem:[#allocation2 + $0x7c] sm:$0xf]  ;;  %v9367_v35 = vrot.slane %v1373_v44, %v8344_v19  ;;  %v10443_v41 = vld [vmem:[#allocation17_spill] sm:$0xff]  ;;  %v6330_v61 = vcombine.low %v1438_v57, %v1439_v47  ;;  %v9378_v8 = vcombine.low %v3243_v3, %v3244_v10 }
 0x10a   : > { %v9370_v27 = vld [vmem:[#allocation2 + $0x5c] sm:$0xf]  ;;  %7190 = vmatprep.mubr.msk.bf16.mxu0 %vm1720_vm9, %v6515_v4  ;;  %v7655_v53 = vld [vmem:[%s10180_s5 + $0x70] sm:$0xff]   ;;  %v3215_v26 = vld [vmem:[#allocation2 + $0x78] sm:$0xf]  ;;  %v4541_v44 = vmul.bf16 %v4509_v17, %v8924_v58  ;;  %v1441_v11 = vmul.bf16 %v9291_v1, %v9341_v30  ;;  %v1440_v4 = vmul.bf16 %v9324_v21, %v9350_v56  ;;  %v3246_v47 = vmul.bf16 %v3214_v39, %v9345_v54 }
 0x10b   : > { %10442 = vst [vmem:[#allocation107_spill] sm:$0xff] %v9364_v36  ;;  %7219 = vmatpush3.bf16.msra.mxu0 %v7655_v53  ;;  %10445 = vst [vmem:[#allocation17_spill] sm:$0xff] %v9378_v8  ;;  %v9381_v50 = vld [vmem:[#allocation2 + $0x38] sm:$0xf]  ;;  %v9383_v34 = vld [vmem:[#allocation2 + $0x3c] sm:$0xf]  ;;  %v1409_v57 = vpop.permute.xlu1 %1408  ;;  %v1443_v10 = vmul.bf16 %v9328_v62, %v9352_v38  ;;  %v1442_v58 = vmul.bf16 %v9332_v51, %v1026_v63  ;;  %v3245_v17 = vmul.bf16 %v3213_v43, %v9357_v49 }
 0x10c   : > { %7220 = vmatprep.subr.bf16.mxu0 %v7623_v40  ;;  %v9390_v22 = vld [vmem:[#allocation2 + $0x44] sm:$0xf]  ;;  %v3248_v3 = vmul.bf16 %v3216_v7, %v9360_v0  ;;  %v1397_v53 = vpop.permute.xlu0 %1396  ;;  %v10447_v39 = vld [vmem:[#allocation63_spill] sm:$0xff]  ;;  %v6516_v16 = vcombine.low %v4541_v44, %v4542_v52  ;;  %v6517_v8 = vcombine.low %v4543_v29, %v4544_v2  ;;  %v4515_v38 = vld [vmem:[#allocation2 + $0x40] sm:$0xf]  ;;  %v3247_v43 = vmul.bf16 %v3215_v26, %v9367_v35 }
 0x10d   : > { %v9400_v30 = vld [vmem:[%s10180_s5 + $0x80] sm:$0xff]   ;;  %v4545_v7 = vmul.bf16 %v9381_v50, %v9070_v23  ;;  %v4546_v36 = vmul.bf16 %v9383_v34, %v9115_v46  ;;  %v1029_v51 = vld [vmem:[#allocation2 + $0x6c] sm:$0xf]  ;;  %v1028_v62 = vld [vmem:[#allocation2 + $0x68] sm:$0xf]  ;;  %v9413_v21 = vcombine.low %v3245_v17, %v3246_v47  ;;  %v9416_v52 = vrot.slane %v1409_v57, %v8344_v19 }
 0x10e   : > { %10446 = vst [vmem:[#allocation55_spill] sm:$0xff] %v9400_v30  ;;  %v9402_v56 = vld [vmem:[#allocation2 + $0x64] sm:$0xf]  ;;  %v3217_v2 = vld [vmem:[#allocation2 + $0x80] sm:$0xf]  ;;  %v4548_v29 = vmul.bf16 %v9390_v22, %v9144_v24  ;;  %v9420_v26 = vcombine.low %v3247_v43, %v3248_v3  ;;  %v9423_v23 = vrot.slane %v1397_v53, %v8344_v19  ;;  %v10451_v44 = vld [vmem:[#allocation14_spill] sm:$0xff]  ;;  %v4547_v57 = vmul.bf16 %v4515_v38, %v9154_v37 }
 0x10f   : > { %7023 = vmatmul.mubr.msk.bf16.gmra.mrb[16].mxu1 %vm1720_vm9, %v6329_v5  ;;  %v3218_v63 = vld [vmem:[#allocation2 + $0x84] sm:$0xf]  ;;  %10448 = vst [vmem:[#allocation108_spill] sm:$0xff] %v9413_v21  ;;  %v1031_v5 = vld [vmem:[#allocation2 + $0x74] sm:$0xf]  ;;  %v10450_v46 = vld [vmem:[#allocation64_spill] sm:$0xff]  ;;  %7221 = vmatpush3.bf16.msra.mxu0 %v7623_v40  ;;  %v6331_v18 = vcombine.low %v1440_v4, %v1441_v11  ;;  %v6332_v21 = vcombine.low %v1442_v58, %v1443_v10 }
 0x110   : > { %7026 = vmatprep.mubr.msk.bf16.mxu1 %vm1720_vm9, %v6330_v61  ;;  %10449 = vst [vmem:[#allocation109_spill] sm:$0xff] %v9420_v26  ;;  %v10452_v61 = vmul.bf16 %v10450_v46, %v10451_v44  ;;  %v10453_v50 = vld [vmem:[#allocation10_spill] sm:$0xff]  ;;  %v3250_v24 = vmul.bf16 %v3218_v63, %v9416_v52  ;;  %7254 = vmatprep.subr.bf16.mxu0 %v9400_v30  ;;  %v10457_v43 = vld [vmem:[#allocation12_spill] sm:$0xff]  ;;  %v10459_v46 = vld [vmem:[#allocation65_spill] sm:$0xff] }
 0x111   : > { %v10454_v34 = vld [vmem:[#allocation58_spill] sm:$0xff]  ;;  %7191 = vmatmul.mubr.msk.bf16.gmra.mrb[4].mxu0 %vm1720_vm9, %v6516_v16  ;;  %v1445_v19 = vmul.bf16 %v9345_v54, %v1029_v51  ;;  %v1444_v22 = vmul.bf16 %v9357_v49, %v1028_v62  ;;  %v3249_v3 = vmul.bf16 %v3217_v2, %v9423_v23  ;;  %v10460_v37 = vld [vmem:[#allocation15_spill] sm:$0xff]  ;;  %v1447_v10 = vmul.bf16 %v9360_v0, %v1031_v5 }
 0x112   : > { %v10455_v47 = vmul.bf16 %v10453_v50, %v10454_v34  ;;  %v1030_v1 = vld [vmem:[#allocation2 + $0x70] sm:$0xf]  ;;  %v10461_v11 = vmul.bf16 %v10459_v46, %v10460_v37  ;;  %7194 = vmatprep.mubr.msk.bf16.mxu0 %vm1720_vm9, %v6517_v8  ;;  %v10462_v16 = vmul.bf16 %v8973_v20, %v8448_v55  ;;  %v10463_v51 = vmul.bf16 %v8962_v32, %v8434_v31  ;;  %v10467_v8 = vld [vmem:[#allocation91_spill] sm:$0xff] }
 0x113   : > { %v10456_v53 = vld [vmem:[#allocation62_spill] sm:$0xff]  ;;  %v10464_v58 = vmul.bf16 %v9187_v15, %v8472_v48  ;;  %v10465_v38 = vmul.bf16 %v9156_v25, %v8462_v14  ;;  %v10466_v2 = vmul.bf16 %v9199_v45, %v8512_v9  ;;  %v1446_v20 = vmul.bf16 %v9367_v35, %v1030_v1 }
 0x114   : > { %v6358_v17 = vcombine.low %v10455_v47, %v10452_v61  ;;  %v10458_v40 = vmul.bf16 %v10456_v53, %v10457_v43  ;;  %v6361_v62 = vcombine.low %v10463_v51, %v10462_v16  ;;  %v10468_v61 = vld [vmem:[#allocation22_spill] sm:$0xff]  ;;  %v9465_v47 = vcombine.low %v3249_v3, %v3250_v24  ;;  %v10473_v16 = vld [vmem:[#allocation96_spill] sm:$0xff]  ;;  %v10474_v51 = vld [vmem:[#allocation25_spill] sm:$0xff] }
 0x115   : > { %v6362_v63 = vcombine.low %v10465_v38, %v10464_v58  ;;  %v10469_v5 = vmul.bf16 %v10467_v8, %v10468_v61  ;;  %v10475_v58 = vmul.bf16 %v10473_v16, %v10474_v51  ;;  %v10476_v1 = vrot.slane %v10443_v41, 1  ;;  %v10478_v3 = vld [vmem:[#allocation29_spill] sm:$0xff] }
 0x116   : > { %v6359_v4 = vcombine.low %v10461_v11, %v10458_v40  ;;  %10470 = vst [vmem:[#allocation64_spill] sm:$0xff] %v9465_v47  ;;  %v2901_v32 = vrot.slane %v6358_v17, 1  ;;  %v2906_v40 = vrot.slane %v6361_v62, 1  ;;  %v10471_v11 = vld [vmem:[#allocation28_spill] sm:$0xff]  ;;  %v10477_v24 = vmul.bf16 %v9266_v13, %v10427_v33  ;;  %v10499_v47 = vld [vmem:[#allocation50_spill] sm:$0xff] }
 0x117   : > { %v6363_v34 = vcombine.low %v10469_v5, %v10466_v2  ;;  %v2908_v46 = vrot.slane %v6362_v63, 1  ;;  %v10472_v25 = vmul.bf16 %v9227_v6, %v10471_v11  ;;  %7027 = vmatmul.mubr.msk.bf16.gmra.mrb[20].mxu1 %vm1720_vm9, %v6331_v18  ;;  %v10479_v6 = vmul.bf16 %v9234_v60, %v10478_v3  ;;  %v10481_v18 = vld [vmem:[#allocation33_spill] sm:$0xff] }
 0x118   : > { %v2902_v53 = vrot.slane %v6359_v4, 1  ;;  %v10480_v62 = vmul.bf16 %v9297_v12, %v10432_v28  ;;  %v10482_v63 = vmul.bf16 %v9278_v59, %v10481_v18  ;;  %7030 = vmatprep.mubr.msk.bf16.mxu1 %vm1720_vm9, %v6332_v21  ;;  %v10483_v8 = vmov %v10476_v1  ;;  %v10485_v59 = vld [vmem:[#allocation39_spill] sm:$0xff] }
 0x119   : > { %v2910_v15 = vrot.slane %v6363_v34, 1  ;;  %v6364_v45 = vcombine.low %v10475_v58, %v10472_v25  ;;  %v6365_v4 = vcombine.low %v10479_v6, %v10477_v24  ;;  %v9498_v5 = vsel %vm2900_vm13, %v10483_v8, %v2906_v40  ;;  %v10484_v25 = vld [vmem:[#allocation35_spill] sm:$0xff]  ;;  %v10487_v58 = vld [vmem:[#allocation37_spill] sm:$0xff]  ;;  %v4518_v6 = vld [vmem:[#allocation2 + $0x4c] sm:$0xf] }
 0x11a   : > { %v9475_v38 = vsel %vm2900_vm13, %v2901_v32, %v2902_v53  ;;  %v9480_v17 = vsel %vm2900_vm13, %v2902_v53, %v10476_v1  ;;  %v6366_v2 = vcombine.low %v10482_v63, %v10480_v62  ;;  %v9501_v13 = vsel %vm2900_vm13, %v2906_v40, %v2908_v46  ;;  %v10488_v21 = vld [vmem:[#allocation3_spill] sm:$0xff]  ;;  %v4517_v62 = vld [vmem:[#allocation2 + $0x48] sm:$0xf]  ;;  %v10491_v63 = vld [vmem:[#allocation44_spill] sm:$0xff] }
 0x11b   : > { %v9504_v60 = vsel %vm2900_vm13, %v2908_v46, %v2910_v15  ;;  %v2912_v34 = vrot.slane %v6364_v45, 1  ;;  %v6518_v32 = vcombine.low %v4545_v7, %v4546_v36  ;;  %v2914_v12 = vrot.slane %v6365_v4, 1  ;;  %v10492_v46 = vld [vmem:[#allocation7_spill] sm:$0xff]  ;;  %v10494_v45 = vld [vmem:[#allocation41_spill] sm:$0xff]  ;;  %v10495_v36 = vld [vmem:[#allocation6_spill] sm:$0xff] }
 0x11c   : > { %v2916_v53 = vrot.slane %v6366_v2, 1  ;;  %v10486_v16 = vmul.bf16 %v10484_v25, %v10485_v59  ;;  %v10489_v1 = vmul.bf16 %v10487_v58, %v10488_v21  ;;  %v6519_v24 = vcombine.low %v4547_v57, %v4548_v29  ;;  %v10498_v25 = vld [vmem:[#allocation102_spill] sm:$0xff]  ;;  %v4520_v29 = vld [vmem:[#allocation2 + $0x54] sm:$0xf] }
 0x11d   : > { %v9513_v40 = vsel %vm2900_vm13, %v2910_v15, %v2912_v34  ;;  %v10493_v8 = vmul.bf16 %v10491_v63, %v10492_v46  ;;  %v10496_v7 = vmul.bf16 %v10494_v45, %v10495_v36  ;;  %v10497_v2 = vmul.bf16 %v9370_v27, %v10444_v42  ;;  %v4519_v57 = vld [vmem:[#allocation2 + $0x50] sm:$0xf]  ;;  %7195 = vmatmul.mubr.msk.bf16.gmra.mrb[8].mxu0 %vm1720_vm9, %v6518_v32  ;;  %v1033_v27 = vld [vmem:[#allocation2 + $0x7c] sm:$0xf] }
 0x11e   : > { %v6367_v41 = vcombine.low %v10489_v1, %v10486_v16  ;;  %10490 = vst [vmem:[#allocation14_spill] sm:$0xff] %v9513_v40  ;;  %v10500_v21 = vmul.bf16 %v10498_v25, %v10499_v47  ;;  %v6333_v1 = vcombine.low %v1444_v22, %v1445_v19  ;;  %v9529_v15 = vsel %vm2900_vm13, %v2912_v34, %v2914_v12  ;;  %v10504_v19 = vld [vmem:[#allocation90_spill] sm:$0xff]  ;;  %v10505_v32 = vld [vmem:[#allocation92_spill] sm:$0xff] }
 0x11f   : > { %v6368_v4 = vcombine.low %v10496_v7, %v10493_v8  ;;  %10501 = vst [vmem:[#allocation10_spill] sm:$0xff] %v9529_v15  ;;  %v9532_v46 = vsel %vm2900_vm13, %v2914_v12, %v2916_v53  ;;  %v6334_v8 = vcombine.low %v1446_v20, %v1447_v10  ;;  %7198 = vmatprep.mubr.msk.bf16.mxu0 %vm1720_vm9, %v6519_v24  ;;  %v1032_v7 = vld [vmem:[#allocation2 + $0x78] sm:$0xf]  ;;  %v10507_v12 = vld [vmem:[#allocation93_spill] sm:$0xff] }
 0x120   : > { %v6369_v16 = vcombine.low %v10500_v21, %v10497_v2  ;;  %10502 = vst [vmem:[#allocation58_spill] sm:$0xff] %v9532_v46  ;;  %v2918_v36 = vrot.slane %v6367_v41, 1  ;;  %v7657_v2 = vld [vmem:[#allocation2 + $0x60] sm:$0xf]  ;;  %v4550_v22 = vmul.bf16 %v4518_v6, %v10504_v19  ;;  %v4549_v40 = vmul.bf16 %v4517_v62, %v10505_v32  ;;  %v10508_v41 = vld [vmem:[#allocation95_spill] sm:$0xff]  ;;  %7031 = vmatmul.mubr.msk.bf16.gmra.mrb[24].mxu1 %vm1720_vm9, %v6333_v1 }
 0x121   : > { %v2920_v26 = vrot.slane %v6368_v4, 1  ;;  %v10503_v21 = vld [vmem:[#allocation60_spill] sm:$0xff]  ;;  %v4552_v46 = vmul.bf16 %v4520_v29, %v10507_v12  ;;  %v4551_v10 = vmul.bf16 %v4519_v57, %v10508_v41  ;;  %v1449_v4 = vmul.bf16 %v9416_v52, %v1033_v27  ;;  %v7659_v29 = vld [vmem:[#allocation2 + $0x24] sm:$0xf]  ;;  %7034 = vmatprep.mubr.msk.bf16.mxu1 %vm1720_vm9, %v6334_v8  ;;  %v10515_v19 = vld [vmem:[#allocation71_spill] sm:$0xff] }
 0x122   : > { %v2922_v25 = vrot.slane %v6369_v16, 1  ;;  %v2803_v30 = vmul.bf16 %v7657_v2, %v10503_v21  ;;  %v9539_v34 = vsel %vm2900_vm13, %v2916_v53, %v2918_v36  ;;  %v1448_v6 = vmul.bf16 %v9423_v23, %v1032_v7  ;;  %v7658_v16 = vld [vmem:[#allocation2 + $0x20] sm:$0xf]  ;;  %v10512_v57 = vld [vmem:[#allocation73_spill] sm:$0xff]  ;;  %v10516_v32 = vld [vmem:[#allocation43_spill] sm:$0xff] }
 0x123   : > { %10506 = vst [vmem:[#allocation62_spill] sm:$0xff] %v9539_v34  ;;  %v9544_v20 = vsel %vm2900_vm13, %v2918_v36, %v2920_v26  ;;  %v10511_v53 = vmul.bf16 %v9402_v56, %v10447_v39  ;;  %v9555_v2 = vcombine.low %v7658_v16, %v7659_v29  ;;  %v10513_v36 = vld [vmem:[#allocation45_spill] sm:$0xff]  ;;  %v10517_v1 = vmul.bf16 %v10515_v19, %v10516_v32  ;;  %v10518_v7 = vld [vmem:[#allocation88_spill] sm:$0xff]  ;;  %v10529_v15 = vld [vmem:[#allocation83_spill] sm:$0xff] }
 0x124   : > { %10509 = vst [vmem:[#allocation12_spill] sm:$0xff] %v9544_v20  ;;  %v9547_v24 = vsel %vm2900_vm13, %v2920_v26, %v2922_v25  ;;  %v10514_v26 = vmul.bf16 %v10512_v57, %v10513_v36  ;;  %v6520_v27 = vcombine.low %v4549_v40, %v4550_v22  ;;  %v6521_v56 = vcombine.low %v4551_v10, %v4552_v46  ;;  %v4524_v16 = vld [vmem:[#allocation2 + $0x64] sm:$0xf]  ;;  %v4523_v29 = vld [vmem:[#allocation2 + $0x60] sm:$0xf]  ;;  %v10520_v36 = vld [vmem:[#allocation79_spill] sm:$0xff] }
 0x125   : > { %10510 = vst [vmem:[#allocation65_spill] sm:$0xff] %v9547_v24  ;;  %v6370_v62 = vcombine.low %v2803_v30, %v10511_v53  ;;  %v6374_v24 = vcombine.low %v10518_v7, %v10518_v7  ;;  %v4522_v30 = vld [vmem:[#allocation2 + $0x5c] sm:$0xf]  ;;  %v4521_v53 = vld [vmem:[#allocation2 + $0x58] sm:$0xf]  ;;  %v6335_v34 = vcombine.low %v1448_v6, %v1449_v4  ;;  %v10523_v40 = vld [vmem:[#allocation77_spill] sm:$0xff] }
 0x126   : > { %v6371_v12 = vcombine.low %v10517_v1, %v10514_v26  ;;  %7199 = vmatmul.mubr.msk.bf16.gmra.mrb[12].mxu0 %vm1720_vm9, %v6520_v27  ;;  %v10521_v32 = vld [vmem:[#allocation52_spill] sm:$0xff]  ;;  %v10524_v22 = vld [vmem:[#allocation51_spill] sm:$0xff]  ;;  %v10526_v7 = vld [vmem:[#allocation86_spill] sm:$0xff]  ;;  %v5042_v6 = vshll.u32 %v9555_v2, 16 }
 0x127   : > { %v2924_v41 = vrot.slane %v6370_v62, 1  ;;  %v10522_v26 = vmul.bf16 %v10520_v36, %v10521_v32  ;;  %v10525_v62 = vmul.bf16 %v10523_v40, %v10524_v22  ;;  %v10527_v46 = vld [vmem:[#allocation68_spill] sm:$0xff]  ;;  %v4905_v4 = vld [vmem:[#allocation2 + $0x10] sm:$0xf]  ;;  %7202 = vmatprep.mubr.msk.bf16.mxu0 %vm1720_vm9, %v6521_v56  ;;  %v10533_v27 = vld [vmem:[#allocation97_spill] sm:$0xff]  ;;  %v2932_v56 = vrot.slane %v6374_v24, 1 }
 0x128   : > { %v2926_v20 = vrot.slane %v6371_v12, 1  ;;  %v10528_v10 = vmul.bf16 %v10526_v7, %v10527_v46  ;;  %v10530_v12 = vld [vmem:[#allocation66_spill] sm:$0xff]  ;;  %v4554_v32 = vmul.bf16 %v4522_v30, %v10533_v27  ;;  %v7660_v40 = vld [vmem:[#allocation2 + $0x1c] sm:$0xf]  ;;  %v7661_v46 = vld [vmem:[#allocation2 + $0x18] sm:$0xf]  ;;  %7035 = vmatmul.mubr.msk.bf16.gmra.mrb[28].mxu1 %vm1720_vm9, %v6335_v34 }
 0x129   : > { %v9568_v8 = vsel %vm2900_vm13, %v2922_v25, %v2924_v41  ;;  %v6372_v1 = vcombine.low %v10525_v62, %v10522_v26  ;;  %v10531_v19 = vmul.bf16 %v10529_v15, %v10530_v12  ;;  %v9589_v7 = vcombine.low %v7661_v46, %v7660_v40  ;;  %v9591_v12 = vld [vmem:[#allocation2 + $0x14] sm:$0xf]  ;;  %7042 = vmatprep.mubr.msk.bf16.mxu1 %vm1720_vm9, %v9475_v38  ;;  %v4526_v24 = vld [vmem:[#allocation2 + $0x6c] sm:$0xf]  ;;  %v4527_v27 = vld [vmem:[#allocation2 + $0x70] sm:$0xf] }
 0x12a   : > { %10519 = vst [vmem:[#allocation15_spill] sm:$0xff] %v9568_v8  ;;  %v9585_v25 = vsel %vm2900_vm13, %v2924_v41, %v2926_v20  ;;  %v10534_v8 = vld [vmem:[#allocation98_spill] sm:$0xff]  ;;  %v10536_v15 = vld [vmem:[#allocation31_spill] sm:$0xff]  ;;  %v9596_v41 = vcombine.low %v4905_v4, %v9591_v12  ;;  %v9606_v40 = vrot.slane %v5042_v6, 1  ;;  %v7662_v46 = vld [vmem:[#allocation2 + $0x28] sm:$0xf] }
 0x12b   : > { %v6373_v57 = vcombine.low %v10531_v19, %v10528_v10  ;;  %10532 = vst [vmem:[#allocation91_spill] sm:$0xff] %v9585_v25  ;;  %v4553_v22 = vmul.bf16 %v4521_v53, %v10534_v8  ;;  %v2928_v26 = vrot.slane %v6372_v1, 1  ;;  %v10535_v19 = vld [vmem:[#allocation99_spill] sm:$0xff]  ;;  %v4555_v36 = vmul.bf16 %v4523_v29, %v10536_v15  ;;  %v5411_v53 = vld [vmem:[#allocation2 + $0x10] sm:$0xe]  ;;  %v10542_v38 = vld [vmem:[#allocation9_spill] sm:$0xff] }
 0x12c   : > { %v4556_v10 = vmul.bf16 %v4524_v16, %v10535_v19  ;;  %10539 = vst [vmem:[#allocation96_spill] sm:$0xff] %v9606_v40  ;;  %v9608_v16 = vld [vmem:[#allocation2 + $0x34] sm:$0xf]  ;;  %v4532_v29 = vld [vmem:[#allocation2 + $0x84] sm:$0xf]  ;;  %v10546_v40 = vld [vmem:[#allocation106_spill] sm:$0xff] }
 0x12d   : > { %v2930_v62 = vrot.slane %v6373_v57, 1  ;;  %v9600_v30 = vsel %vm2900_vm13, %v2926_v20, %v2928_v26  ;;  %v6522_v34 = vcombine.low %v4553_v22, %v4554_v32  ;;  %v4525_v20 = vld [vmem:[#allocation2 + $0x68] sm:$0xf]  ;;  %v4528_v4 = vld [vmem:[#allocation2 + $0x74] sm:$0xf]  ;;  %v5029_v32 = vshll.u32 %v9596_v41, 16 }
 0x12e   : > { %10537 = vst [vmem:[#allocation22_spill] sm:$0xff] %v9600_v30  ;;  %v6523_v1 = vcombine.low %v4555_v36, %v4556_v10  ;;  %v7663_v19 = vld [vmem:[#allocation2 + $0x2c] sm:$0xf]  ;;  %v7664_v8 = vld [vmem:[#allocation2 + $0x30] sm:$0xf]  ;;  %v3790_v30 = vshll.u32 %v10542_v38, 16  ;;  %v5412_v36 = vmul.bf16 %v5411_v53, %v10453_v50  ;;  %v5413_v22 = vmul.bf16 %v9591_v12, %v10451_v44 }
 0x12f   : > { %v9603_v57 = vsel %vm2900_vm13, %v2928_v26, %v2930_v62  ;;  %v9613_v15 = vsel %vm2900_vm13, %v2930_v62, %v2932_v56  ;;  %v4530_v26 = vld [vmem:[#allocation2 + $0x7c] sm:$0xf]  ;;  %v9615_v6 = vcombine.low %v7662_v46, %v7663_v19  ;;  %v4529_v62 = vld [vmem:[#allocation2 + $0x78] sm:$0xf]  ;;  %v4531_v56 = vld [vmem:[#allocation2 + $0x80] sm:$0xf]  ;;  %7203 = vmatmul.mubr.msk.bf16.gmra.mrb[16].mxu0 %vm1720_vm9, %v6522_v34  ;;  %v5421_v10 = vmul.bf16 %v9608_v16, %v8472_v48 }
 0x130   : > { %10538 = vst [vmem:[#allocation28_spill] sm:$0xff] %v9603_v57  ;;  %10540 = vst [vmem:[#allocation25_spill] sm:$0xff] %v9613_v15  ;;  %v9618_v57 = vcombine.low %v7664_v8, %v9608_v16  ;;  %v4534_v46 = vld [vmem:[#allocation2 + $0x8c] sm:$0xf]  ;;  %v4533_v19 = vld [vmem:[#allocation2 + $0x88] sm:$0xf]  ;;  %7206 = vmatprep.mubr.msk.bf16.mxu0 %vm1720_vm9, %v6523_v1  ;;  %v4559_v50 = vmul.bf16 %v4527_v27, %v10546_v40  ;;  %v4562_v48 = vmul.bf16 %v4530_v26, %v9345_v54 }
 0x131   : > { %v5027_v8 = vshrl.u32 %v9596_v41, 16  ;;  %v10543_v15 = vld [vmem:[#allocation100_spill] sm:$0xff]  ;;  %v10545_v21 = vld [vmem:[#allocation105_spill] sm:$0xff]  ;;  %v4561_v12 = vmul.bf16 %v4529_v62, %v9357_v49  ;;  %v4564_v53 = vmul.bf16 %v4532_v29, %v9360_v0  ;;  %v4563_v41 = vmul.bf16 %v4531_v56, %v9367_v35  ;;  %7043 = vmatmul.mubr.msk.bf16.vlgmr.msra.gmra.mrb[0].mxu1 %vm1720_vm9, %v9480_v17  ;;  %v10551_v56 = vld [vmem:[#allocation11_spill] sm:$0xff] }
 0x132   : > { %10541 = vst [vmem:[#allocation29_spill] sm:$0xff] %v9618_v57  ;;  %v4558_v25 = vmul.bf16 %v4526_v24, %v10543_v15  ;;  %v10544_v57 = vld [vmem:[#allocation104_spill] sm:$0xff]  ;;  %v4560_v39 = vmul.bf16 %v4528_v4, %v10545_v21  ;;  %v4566_v16 = vmul.bf16 %v4534_v46, %v9416_v52  ;;  %v5031_v21 = vrot.slane %v5029_v32, 1  ;;  %v10547_v15 = vld [vmem:[#allocation18_spill] sm:$0xff]  ;;  %7046 = vmatprep.mubr.msk.bf16.mxu1 %vm1720_vm9, %v9498_v5  ;;  %v10550_v52 = vld [vmem:[#allocation89_spill] sm:$0xff] }
 0x133   : > { %v4557_v34 = vmul.bf16 %v4525_v20, %v10544_v57  ;;  %v7624_v44 = vld [vmem:[%s10180_s5 + $0x38] sm:$0xff]   ;;  %v4565_v57 = vmul.bf16 %v4533_v19, %v9423_v23  ;;  %v5034_v40 = vshll.u32 %v9589_v7, 16  ;;  %v5536_v24 = vrot.slane %v10547_v15, 1  ;;  %v10553_v46 = vld [vmem:[#allocation13_spill] sm:$0xff] }
 0x134   : > { %v7665_v20 = vld [vmem:[#allocation2 + $0x38] sm:$0xf]  ;;  %v7666_v54 = vld [vmem:[#allocation2 + $0x3c] sm:$0xf]  ;;  %v9650_v29 = vrot.slane %v3790_v30, 1  ;;  %v6606_v23 = vcombine.low %v10550_v52, %v10550_v52  ;;  %v6525_v4 = vcombine.low %v4559_v50, %v4560_v39  ;;  %v6590_v27 = vcombine.low %v5412_v36, %v5413_v22 }
 0x135   : > { %v9647_v1 = vcombine.low %v7665_v20, %v7666_v54  ;;  %v10548_v49 = vld [vmem:[#allocation8_spill] sm:$0xff]  ;;  %v6524_v17 = vcombine.low %v4557_v34, %v4558_v25  ;;  %v6526_v26 = vcombine.low %v4561_v12, %v4562_v48  ;;  %v6527_v62 = vcombine.low %v4563_v41, %v4564_v53  ;;  %v10555_v15 = vld [vmem:[#allocation19_spill] sm:$0xff]  ;;  %v10565_v41 = vld [vmem:[#allocation26_spill] sm:$0xff] }
 0x136   : > { %v3786_v0 = vshrl.u32 %v10548_v49, 16  ;;  %v10549_v35 = vld [vmem:[#allocation84_spill] sm:$0xff]  ;;  %v10552_v32 = vmul.bf16 %v10551_v56, %v10457_v43  ;;  %v10554_v30 = vmul.bf16 %v10553_v46, %v10460_v37  ;;  %v10556_v20 = vmul.bf16 %v10555_v15, %v8448_v55  ;;  %v10561_v12 = vld [vmem:[#allocation23_spill] sm:$0xff] }
 0x137   : > { %7075 = vmatpush3.bf16.msra.mxu1 %v10549_v35  ;;  %v10557_v5 = vld [vmem:[#allocation16_spill] sm:$0xff]  ;;  %v9669_v25 = vcombine.low %v4565_v57, %v4566_v16  ;;  %7207 = vmatmul.mubr.msk.bf16.gmra.mrb[20].mxu0 %vm1720_vm9, %v6524_v17  ;;  %v5032_v39 = vor.u32 %v5031_v21, %v5027_v8  ;;  %v5036_v36 = vrot.slane %v5034_v40, 1  ;;  %v5046_v37 = vshrl.u32 %v9555_v2, 16  ;;  %v10569_v40 = vld [vmem:[#allocation30_spill] sm:$0xff] }
 0x138   : > { %7076 = vmatprep.subr.bf16.mxu1 %v7624_v44  ;;  %v6591_v19 = vcombine.low %v10554_v30, %v10552_v32  ;;  %v10558_v54 = vmul.bf16 %v10557_v5, %v8434_v31  ;;  %v10559_v22 = vld [vmem:[#allocation20_spill] sm:$0xff]  ;;  %7210 = vmatprep.mubr.msk.bf16.mxu0 %vm1720_vm9, %v6525_v4  ;;  %v5533_v55 = vrot.slane %v6590_v27, 1  ;;  %v10566_v2 = vmul.bf16 %v10565_v41, %v10471_v11  ;;  %v10571_v4 = vld [vmem:[#allocation27_spill] sm:$0xff]  ;;  %v10588_v41 = vld [vmem:[#allocation49_spill] sm:$0xff] }
 0x139   : > { %v10560_v43 = vmul.bf16 %v10559_v22, %v8462_v14  ;;  %v9680_v31 = vld [vmem:[%s10180_s5 + $0x40] sm:$0xff]   ;;  %v10562_v14 = vmul.bf16 %v10561_v12, %v8512_v9  ;;  %v10570_v17 = vmul.bf16 %v10569_v40, %v10427_v33  ;;  %v10572_v27 = vmul.bf16 %v10571_v4, %v10478_v3  ;;  %7047 = vmatmul.mubr.msk.bf16.gmra.mrb[4].mxu1 %vm1720_vm9, %v9501_v13  ;;  %v10593_v4 = vld [vmem:[#allocation63_spill] sm:$0xff] }
 0x13a   : > { %v6593_v35 = vcombine.low %v10558_v54, %v10556_v20  ;;  %v5534_v50 = vrot.slane %v6591_v19, 1  ;;  %v10567_v16 = vld [vmem:[#allocation24_spill] sm:$0xff]  ;;  %v5050_v9 = vshll.u32 %v9615_v6, 16  ;;  %7050 = vmatprep.mubr.msk.bf16.mxu1 %vm1720_vm9, %v9504_v60  ;;  %v5037_v30 = vsel %vm1575_vm8, %v5032_v39, %v5036_v36  ;;  %v10573_v19 = vld [vmem:[#allocation34_spill] sm:$0xff] }
 0x13b   : > { %v6594_v34 = vcombine.low %v10560_v43, %v5421_v10  ;;  %7077 = vmatpush3.bf16.msra.mxu1 %v7624_v44  ;;  %v10563_v10 = vld [vmem:[#allocation21_spill] sm:$0xff]  ;;  %v10568_v57 = vmul.bf16 %v10567_v16, %v10474_v51  ;;  %v6597_v56 = vcombine.low %v10572_v27, %v10570_v17  ;;  %v10574_v15 = vmul.bf16 %v10573_v19, %v10432_v28  ;;  %v10575_v20 = vld [vmem:[#allocation32_spill] sm:$0xff]  ;;  %v10577_v54 = vld [vmem:[#allocation38_spill] sm:$0xff] }
 0x13c   : > { %v5538_v48 = vrot.slane %v6593_v35, 1  ;;  %7290 = vmatprep.subr.bf16.mxu1 %v9680_v31  ;;  %v10564_v53 = vmul.bf16 %v10563_v10, %v10468_v61  ;;  %v9703_v32 = vsel %vm2900_vm13, %v5533_v55, %v5534_v50  ;;  %v9706_v61 = vsel %vm2900_vm13, %v5534_v50, %v5536_v24  ;;  %v10579_v35 = vld [vmem:[#allocation36_spill] sm:$0xff]  ;;  %v10590_v16 = vld [vmem:[#allocation53_spill] sm:$0xff]  ;;  %v10598_v19 = vld [vmem:[#allocation59_spill] sm:$0xff] }
 0x13d   : > { %v5540_v8 = vrot.slane %v6594_v34, 1  ;;  %v6596_v21 = vcombine.low %v10568_v57, %v10566_v2  ;;  %v5546_v46 = vrot.slane %v6597_v56, 1  ;;  %v10578_v13 = vmul.bf16 %v10577_v54, %v10485_v59  ;;  %v10583_v50 = vld [vmem:[#allocation40_spill] sm:$0xff]  ;;  %v10595_v56 = vld [vmem:[#allocation57_spill] sm:$0xff] }
 0x13e   : > { %v6595_v44 = vcombine.low %v10564_v53, %v10562_v14  ;;  %v9709_v11 = vsel %vm2900_vm13, %v5536_v24, %v5538_v48  ;;  %v10576_v24 = vmul.bf16 %v10575_v20, %v10481_v18  ;;  %v10580_v22 = vmul.bf16 %v10579_v35, %v10487_v58  ;;  %v10581_v18 = vld [vmem:[#allocation42_spill] sm:$0xff]  ;;  %v10601_v54 = vld [vmem:[#allocation73_spill] sm:$0xff] }
 0x13f   : > { %v9714_v33 = vsel %vm2900_vm13, %v5538_v48, %v5540_v8  ;;  %v5544_v3 = vrot.slane %v6596_v21, 1  ;;  %v3782_v34 = vshll.u32 %v10548_v49, 16  ;;  %v10582_v55 = vmul.bf16 %v10581_v18, %v10491_v63  ;;  %7211 = vmatmul.mubr.msk.bf16.gmra.mrb[24].mxu0 %vm1720_vm9, %v6526_v26  ;;  %v10586_v53 = vld [vmem:[#allocation54_spill] sm:$0xff] }
 0x140   : > { %v5542_v51 = vrot.slane %v6595_v44, 1  ;;  %v6598_v5 = vcombine.low %v10576_v24, %v10574_v15  ;;  %v6599_v43 = vcombine.low %v10580_v22, %v10578_v13  ;;  %v10584_v59 = vmul.bf16 %v10583_v50, %v10494_v45  ;;  %7214 = vmatprep.mubr.msk.bf16.mxu0 %vm1720_vm9, %v6527_v62  ;;  %v10599_v20 = vld [vmem:[#allocation14_spill] sm:$0xff]  ;;  %v10604_v22 = vld [vmem:[#allocation71_spill] sm:$0xff] }
 0x141   : > { %v9739_v28 = vsel %vm2900_vm13, %v5544_v3, %v5546_v46  ;;  %v10585_v58 = vshrl.u32 %v9589_v7, 16  ;;  %v9751_v14 = vrot.slane %v3782_v34, 1  ;;  %v10587_v44 = vmul.bf16 %v10586_v53, %v10444_v42  ;;  %7051 = vmatmul.mubr.msk.bf16.gmra.mrb[8].mxu1 %vm1720_vm9, %v10599_v20  ;;  %v10603_v35 = vld [vmem:[#allocation70_spill] sm:$0xff]  ;;  %v10609_v53 = vld [vmem:[#allocation79_spill] sm:$0xff] }
 0x142   : > { %v9733_v60 = vsel %vm2900_vm13, %v5540_v8, %v5542_v51  ;;  %v9736_v39 = vsel %vm2900_vm13, %v5542_v51, %v5544_v3  ;;  %v6600_v48 = vcombine.low %v10584_v59, %v10582_v55  ;;  %v5548_v49 = vrot.slane %v6598_v5, 1  ;;  %v10596_v51 = vld [vmem:[#allocation60_spill] sm:$0xff]  ;;  %v10606_v55 = vld [vmem:[#allocation10_spill] sm:$0xff] }
 0x143   : > { %v9749_v12 = vor.u32 %v10585_v58, %v5036_v36  ;;  %v5550_v8 = vrot.slane %v6599_v43, 1  ;;  %v10589_v63 = vmul.bf16 %v10588_v41, %v10499_v47  ;;  %v3794_v45 = vshrl.u32 %v10542_v38, 16  ;;  %v10591_v36 = vld [vmem:[#allocation96_spill] sm:$0xff]  ;;  %7054 = vmatprep.mubr.msk.bf16.mxu1 %vm1720_vm9, %v10606_v55  ;;  %v10607_v58 = vld [vmem:[#allocation69_spill] sm:$0xff] }
 0x144   : > { %v5552_v10 = vrot.slane %v6600_v48, 1  ;;  %v3798_v7 = vshll.u32 %v10590_v16, 16  ;;  %v5048_v57 = vor.u32 %v5046_v37, %v10591_v36  ;;  %v9765_v21 = vsel %vm2900_vm13, %v5546_v46, %v5548_v49  ;;  %v10592_v37 = vld [vmem:[#allocation61_spill] sm:$0xff]  ;;  %v10600_v5 = vld [vmem:[#allocation72_spill] sm:$0xff] }
 0x145   : > { %v6601_v2 = vcombine.low %v10589_v63, %v10587_v44  ;;  %v9768_v26 = vsel %vm2900_vm13, %v5548_v49, %v5550_v8  ;;  %v3788_v42 = vor.u32 %v3786_v0, %v9751_v14  ;;  %v3796_v38 = vor.u32 %v3794_v45, %v9650_v29  ;;  %v10611_v41 = vld [vmem:[#allocation76_spill] sm:$0xff]  ;;  %v10612_v63 = vld [vmem:[#allocation77_spill] sm:$0xff] }
 0x146   : > { %v9772_v40 = vsel %vm2900_vm13, %v5550_v8, %v5552_v10  ;;  %v3800_v17 = vrot.slane %v3798_v7, 1  ;;  %v10594_v27 = vmul.bf16 %v10592_v37, %v10593_v4  ;;  %v10597_v3 = vmul.bf16 %v10595_v56, %v10596_v51  ;;  %v10614_v7 = vld [vmem:[#allocation75_spill] sm:$0xff] }
 0x147   : > { %v5554_v47 = vrot.slane %v6601_v2, 1  ;;  %v9777_v62 = vsel %vm1575_vm8, %v3788_v42, %v9650_v29  ;;  %v3802_v0 = vshrl.u32 %v10590_v16, 16  ;;  %v3806_v15 = vshll.u32 %v10598_v19, 16  ;;  %7215 = vmatmul.mubr.msk.bf16.gmra.mrb[28].mxu0 %vm1720_vm9, %v9669_v25 }
 0x148   : > { %v6602_v46 = vcombine.low %v10597_v3, %v10594_v27  ;;  %v9793_v29 = vsel %vm1575_vm8, %v3796_v38, %v3800_v17  ;;  %v10602_v13 = vmul.bf16 %v10600_v5, %v10601_v54  ;;  %v10605_v43 = vmul.bf16 %v10603_v35, %v10604_v22  ;;  %v10615_v3 = vld [vmem:[#allocation85_spill] sm:$0xff]  ;;  %7222 = vmatprep.mubr.msk.bf16.mxu0 %vm1720_vm9, %v5037_v30 }
 0x149   : > { %v9790_v24 = vsel %vm2900_vm13, %v5552_v10, %v5554_v47  ;;  %v3810_v18 = vshrl.u32 %v10598_v19, 16  ;;  %v3804_v59 = vor.u32 %v3802_v0, %v3800_v17  ;;  %v3808_v48 = vrot.slane %v3806_v15, 1  ;;  %v10608_v10 = vld [vmem:[#allocation78_spill] sm:$0xff]  ;;  %v10618_v19 = vld [vmem:[#allocation81_spill] sm:$0xff]  ;;  %v10619_v15 = vld [vmem:[#allocation83_spill] sm:$0xff] }
 0x14a   : > { %v6603_v34 = vcombine.low %v10605_v43, %v10602_v13  ;;  %v5556_v50 = vrot.slane %v6602_v46, 1  ;;  %v3814_v49 = vshll.u32 %v10607_v58, 16  ;;  %v10610_v44 = vmul.bf16 %v10608_v10, %v10609_v53  ;;  %v10616_v46 = vld [vmem:[#allocation86_spill] sm:$0xff] }
 0x14b   : > { %v10613_v2 = vmul.bf16 %v10611_v41, %v10612_v63  ;;  %v3818_v16 = vshrl.u32 %v10607_v58, 16  ;;  %v3822_v42 = vshll.u32 %v10614_v7, 16  ;;  %v9817_v17 = vsel %vm1575_vm8, %v3804_v59, %v3808_v48  ;;  %v10621_v13 = vld [vmem:[#allocation82_spill] sm:$0xff] }
 0x14c   : > { %v5558_v8 = vrot.slane %v6603_v34, 1  ;;  %v9814_v38 = vsel %vm2900_vm13, %v5554_v47, %v5556_v50  ;;  %v3812_v37 = vor.u32 %v3810_v18, %v3808_v48  ;;  %v3816_v4 = vrot.slane %v3814_v49, 1  ;;  %v10622_v59 = vld [vmem:[#allocation58_spill] sm:$0xff]  ;;  %v10623_v48 = vld [vmem:[#allocation29_spill] sm:$0xff] }
 0x14d   : > { %v6604_v45 = vcombine.low %v10613_v2, %v10610_v44  ;;  %v3824_v51 = vrot.slane %v3822_v42, 1  ;;  %v10617_v0 = vmul.bf16 %v10615_v3, %v10616_v46  ;;  %v10620_v47 = vmul.bf16 %v10618_v19, %v10619_v15  ;;  %7055 = vmatmul.mubr.msk.bf16.gmra.mrb[12].mxu1 %vm1720_vm9, %v10622_v59  ;;  %v7626_v63 = vld [vmem:[%s10180_s5 + $0x88] sm:$0xff]   ;;  %v7668_v2 = vld [vmem:[#allocation2 + $0x40] sm:$0xf] }
 0x14e   : > { %v9822_v27 = vsel %vm2900_vm13, %v5556_v50, %v5558_v8  ;;  %v9832_v5 = vsel %vm1575_vm8, %v3812_v37, %v3816_v4  ;;  %v3820_v54 = vor.u32 %v3818_v16, %v3816_v4  ;;  %v3826_v25 = vshrl.u32 %v10614_v7, 16  ;;  %v7671_v7 = vld [vmem:[#allocation2 + $0x4c] sm:$0xf]  ;;  %v10627_v3 = vld [vmem:[#allocation65_spill] sm:$0xff] }
 0x14f   : > { %v5560_v56 = vrot.slane %v6604_v45, 1  ;;  %v6605_v20 = vcombine.low %v10620_v47, %v10617_v0  ;;  %v3830_v35 = vshll.u32 %v10621_v13, 16  ;;  %v5052_v22 = vrot.slane %v5050_v9, 1  ;;  %v7669_v45 = vld [vmem:[#allocation2 + $0x44] sm:$0xf] }
 0x150   : > { %v5564_v18 = vrot.slane %v6606_v23, 1  ;;  %v9845_v30 = vsel %vm1575_vm8, %v3820_v54, %v3824_v51  ;;  %v3828_v55 = vor.u32 %v3826_v25, %v3824_v51  ;;  %v5058_v58 = vshll.u32 %v10623_v48, 16  ;;  %v7673_v54 = vld [vmem:[#allocation2 + $0x54] sm:$0xf] }
 0x151   : > { %v9839_v43 = vsel %vm2900_vm13, %v5558_v8, %v5560_v56  ;;  %v5562_v34 = vrot.slane %v6605_v20, 1  ;;  %v9847_v50 = vrot.slane %v3830_v35, 1  ;;  %v10624_v8 = vld [vmem:[#allocation62_spill] sm:$0xff]  ;;  %v5045_v52 = vsel %vm1575_vm8, %v9749_v12, %v10591_v36  ;;  %v10625_v12 = vld [vmem:[#allocation55_spill] sm:$0xff] }
 0x152   : > { %7058 = vmatprep.mubr.msk.bf16.mxu1 %vm1720_vm9, %v10624_v8  ;;  %v5054_v23 = vshrl.u32 %v9615_v6, 16  ;;  %v5053_v53 = vsel %vm1575_vm8, %v5048_v57, %v5052_v22  ;;  %v5062_v44 = vshrl.u32 %v10623_v48, 16  ;;  %v5066_v41 = vshll.u32 %v9647_v1, 16  ;;  %7223 = vmatmul.mubr.msk.bf16.vlgmr.msra.gmra.mrb[0].mxu0 %vm1720_vm9, %v5045_v52  ;;  %v7670_v57 = vld [vmem:[#allocation2 + $0x48] sm:$0xf]  ;;  %v10629_v8 = vld [vmem:[#allocation91_spill] sm:$0xff] }
 0x153   : > { %v9853_v9 = vsel %vm2900_vm13, %v5560_v56, %v5562_v34  ;;  %v9856_v49 = vsel %vm2900_vm13, %v5562_v34, %v5564_v18  ;;  %v9866_v10 = vsel %vm1575_vm8, %v3828_v55, %v9847_v50  ;;  %v6557_v16 = vcombine.low %v7668_v2, %v7669_v45  ;;  %7255 = vmatpush3.bf16.msra.mxu0 %v10625_v12  ;;  %v10626_v56 = vld [vmem:[#allocation12_spill] sm:$0xff]  ;;  %v7672_v20 = vld [vmem:[#allocation2 + $0x50] sm:$0xf]  ;;  %v7674_v34 = vld [vmem:[#allocation2 + $0x58] sm:$0xf] }
 0x154   : > { %v5060_v6 = vrot.slane %v5058_v58, 1  ;;  %7226 = vmatprep.mubr.msk.bf16.mxu0 %vm1720_vm9, %v5053_v53  ;;  %v5056_v36 = vor.u32 %v5054_v23, %v5052_v22  ;;  %v6558_v42 = vcombine.low %v7670_v57, %v7671_v7  ;;  %v5068_v4 = vrot.slane %v5066_v41, 1  ;;  %7256 = vmatprep.subr.bf16.mxu0 %v7626_v63  ;;  %v7675_v18 = vld [vmem:[#allocation2 + $0x5c] sm:$0xf]  ;;  %v7677_v2 = vld [vmem:[#allocation2 + $0x64] sm:$0xf] }
 0x155   : > { %7059 = vmatmul.mubr.msk.bf16.gmra.mrb[16].mxu1 %vm1720_vm9, %v10626_v56  ;;  %v5074_v51 = vshll.u32 %v6557_v16, 16  ;;  %v5070_v0 = vshrl.u32 %v9647_v1, 16  ;;  %v5078_v15 = vshrl.u32 %v6557_v16, 16  ;;  %v6559_v25 = vcombine.low %v7672_v20, %v7673_v54  ;;  %v10628_v1 = vld [vmem:[#allocation15_spill] sm:$0xff]  ;;  %v7678_v12 = vld [vmem:[#allocation2 + $0x68] sm:$0xf] }
 0x156   : > { %v5064_v37 = vor.u32 %v5062_v44, %v5060_v6  ;;  %7062 = vmatprep.mubr.msk.bf16.mxu1 %vm1720_vm9, %v10627_v3  ;;  %v5061_v46 = vsel %vm1575_vm8, %v5056_v36, %v5060_v6  ;;  %v5082_v47 = vshll.u32 %v6558_v42, 16  ;;  %v6560_v55 = vcombine.low %v7674_v34, %v7675_v18  ;;  %v7679_v36 = vld [vmem:[#allocation2 + $0x6c] sm:$0xf]  ;;  %v10631_v56 = vld [vmem:[#allocation28_spill] sm:$0xff] }
 0x157   : > { %7257 = vmatpush3.bf16.msra.mxu0 %v7626_v63  ;;  %v5076_v35 = vrot.slane %v5074_v51, 1  ;;  %v5072_v22 = vor.u32 %v5070_v0, %v5068_v4  ;;  %v5090_v58 = vshll.u32 %v6559_v25, 16  ;;  %v5086_v23 = vshrl.u32 %v6558_v42, 16  ;;  %v7676_v63 = vld [vmem:[#allocation2 + $0x60] sm:$0xf] }
 0x158   : > { %v5069_v19 = vsel %vm1575_vm8, %v5064_v37, %v5068_v4  ;;  %v5084_v48 = vrot.slane %v5082_v47, 1  ;;  %v5094_v44 = vshrl.u32 %v6559_v25, 16  ;;  %v5098_v41 = vshll.u32 %v6560_v55, 16  ;;  %v10630_v4 = vld [vmem:[#allocation22_spill] sm:$0xff]  ;;  %v7681_v47 = vld [vmem:[#allocation2 + $0x74] sm:$0xf] }
 0x159   : > { %v5080_v59 = vor.u32 %v5078_v15, %v5076_v35  ;;  %v5077_v52 = vsel %vm1575_vm8, %v5072_v22, %v5076_v35  ;;  %v6561_v45 = vcombine.low %v7676_v63, %v7677_v2  ;;  %v5092_v16 = vrot.slane %v5090_v58, 1  ;;  %v7680_v15 = vld [vmem:[#allocation2 + $0x70] sm:$0xf]  ;;  %v7682_v35 = vld [vmem:[#allocation2 + $0x78] sm:$0xf] }
 0x15a   : > { %7227 = vmatmul.mubr.msk.bf16.gmra.mrb[4].mxu0 %vm1720_vm9, %v5061_v46  ;;  %v5088_v6 = vor.u32 %v5086_v23, %v5084_v48  ;;  %v6562_v57 = vcombine.low %v7678_v12, %v7679_v36  ;;  %v5100_v37 = vrot.slane %v5098_v41, 1  ;;  %v5102_v3 = vshrl.u32 %v6560_v55, 16  ;;  %v7683_v22 = vld [vmem:[#allocation2 + $0x7c] sm:$0xf]  ;;  %v7685_v41 = vld [vmem:[#allocation2 + $0x84] sm:$0xf] }
 0x15b   : > { %7230 = vmatprep.mubr.msk.bf16.mxu0 %vm1720_vm9, %v5069_v19  ;;  %v5085_v53 = vsel %vm1575_vm8, %v5080_v59, %v5084_v48  ;;  %v5096_v7 = vor.u32 %v5094_v44, %v5092_v16  ;;  %v5106_v42 = vshll.u32 %v6561_v45, 16  ;;  %v5110_v0 = vshrl.u32 %v6561_v45, 16  ;;  %v10632_v48 = vld [vmem:[#allocation25_spill] sm:$0xff]  ;;  %v7684_v44 = vld [vmem:[#allocation2 + $0x80] sm:$0xf] }
 0x15c   : > { %v5093_v51 = vsel %vm1575_vm8, %v5088_v6, %v5092_v16  ;;  %v5114_v19 = vshll.u32 %v6562_v57, 16  ;;  %v6563_v20 = vcombine.low %v7680_v15, %v7681_v47  ;;  %v5104_v25 = vor.u32 %v5102_v3, %v5100_v37  ;;  %v7686_v16 = vld [vmem:[#allocation2 + $0x88] sm:$0xf]  ;;  %v7687_v6 = vld [vmem:[#allocation2 + $0x8c] sm:$0xf] }
 0x15d   : > { %7063 = vmatmul.mubr.msk.bf16.gmra.mrb[20].mxu1 %vm1720_vm9, %v10628_v1  ;;  %v5101_v46 = vsel %vm1575_vm8, %v5096_v7, %v5100_v37  ;;  %v5108_v54 = vrot.slane %v5106_v42, 1  ;;  %v6564_v34 = vcombine.low %v7682_v35, %v7683_v22  ;;  %v10633_v1 = vld [vmem:[#allocation48_spill] sm:$0xff]  ;;  %v6565_v63 = vcombine.low %v7684_v44, %v7685_v41  ;;  %v7689_v15 = vld [vmem:[#allocation2 + $0x90] sm:$0x1]  ;;  %v10643_v44 = vld [vmem:[#allocation103_spill] sm:$0xff] }
 0x15e   : > { %7066 = vmatprep.mubr.msk.bf16.mxu1 %vm1720_vm9, %v10629_v8  ;;  %v5116_v59 = vrot.slane %v5114_v19, 1  ;;  %v5122_v55 = vshll.u32 %v6563_v20, 16  ;;  %v5118_v8 = vshrl.u32 %v6562_v57, 16  ;;  %v5126_v23 = vshrl.u32 %v6563_v20, 16  ;;  %v10634_v37 = vld [vmem:[#allocation56_spill] sm:$0xff]  ;;  %v10645_v41 = vld [vmem:[#allocation17_spill] sm:$0xff] }
 0x15f   : > { %v5112_v18 = vor.u32 %v5110_v0, %v5108_v54  ;;  %v5109_v58 = vsel %vm1575_vm8, %v5104_v25, %v5108_v54  ;;  %v6566_v12 = vcombine.low %v7686_v16, %v7687_v6  ;;  %v5138_v57 = vshll.u32 %v6565_v63, 16  ;;  %v7688_v0 = vld [vmem:[%s10180_s5 + $0x48] sm:$0xff]   ;;  %v10637_v35 = vld [vmem:[#allocation80_spill] sm:$0xff] }
 0x160   : > { %v5124_v2 = vrot.slane %v5122_v55, 1  ;;  %v5120_v45 = vor.u32 %v5118_v8, %v5116_v59  ;;  %v5142_v3 = vshrl.u32 %v6565_v63, 16  ;;  %v6567_v47 = vcombine.low %v7689_v15, %v7689_v15  ;;  %v10636_v25 = vld [vmem:[#allocation74_spill] sm:$0xff]  ;;  %v10647_v63 = vld [vmem:[#allocation108_spill] sm:$0xff] }
 0x161   : > { %v5140_v19 = vrot.slane %v5138_v57, 1 }
 0x162   : > { %7231 = vmatmul.mubr.msk.bf16.gmra.mrb[8].mxu0 %vm1720_vm9, %v5077_v52  ;;  %v5117_v52 = vsel %vm1575_vm8, %v5112_v18, %v5116_v59  ;;  %v5128_v36 = vor.u32 %v5126_v23, %v5124_v2  ;;  %v5125_v42 = vsel %vm1575_vm8, %v5120_v45, %v5124_v2  ;;  %v5154_v18 = vshll.u32 %v6567_v47, 16  ;;  %v10641_v23 = vld [vmem:[#allocation47_spill] sm:$0xff] }
 0x163   : > { %7234 = vmatprep.mubr.msk.bf16.mxu0 %vm1720_vm9, %v5085_v53  ;;  %v5130_v53 = vshll.u32 %v6564_v34, 16  ;;  %v5144_v20 = vor.u32 %v5142_v3, %v5140_v19 }
 0x164   : > { %v5156_v55 = vrot.slane %v5154_v18, 1 }
 0x165   : > { %7067 = vmatmul.mubr.msk.bf16.gmra.mrb[24].mxu1 %vm1720_vm9, %v10630_v4  ;;  %v5132_v7 = vrot.slane %v5130_v53, 1  ;;  %v10635_v4 = vld [vmem:[#allocation67_spill] sm:$0xff]  ;;  %v10642_v53 = vld [vmem:[#allocation101_spill] sm:$0xff] }
 0x166   : > { %7070 = vmatprep.mubr.msk.bf16.mxu1 %vm1720_vm9, %v10631_v56  ;;  %v5134_v56 = vshrl.u32 %v6564_v34, 16  ;;  %v5150_v34 = vshrl.u32 %v6566_v12, 16 }
 0x16a   : > { %7235 = vmatmul.mubr.msk.bf16.gmra.mrb[12].mxu0 %vm1720_vm9, %v5093_v51  ;;  %v5133_v51 = vsel %vm1575_vm8, %v5128_v36, %v5132_v7 }
 0x16b   : > { %7238 = vmatprep.mubr.msk.bf16.mxu0 %vm1720_vm9, %v5101_v46  ;;  %v5146_v46 = vshll.u32 %v6566_v12, 16 }
 0x16d   : > { %7071 = vmatmul.mubr.msk.bf16.gmra.mrb[28].mxu1 %vm1720_vm9, %v10632_v48  ;;  %v5148_v54 = vrot.slane %v5146_v46, 1 }
 0x16e   : > { %7078 = vmatprep.mubr.msk.bf16.mxu1 %vm1720_vm9, %v10633_v1  ;;  %v10638_v1 = vld [vmem:[#allocation87_spill] sm:$0xff] }
 0x16f   : > { %v5149_v59 = vsel %vm1575_vm8, %v5144_v20, %v5148_v54  ;;  %v5152_v48 = vor.u32 %v5150_v34, %v5148_v54 }
 0x171   : > { %v5157_v8 = vsel %vm1575_vm8, %v5152_v48, %v5156_v55 }
 0x172   : > { %7239 = vmatmul.mubr.msk.bf16.gmra.mrb[16].mxu0 %vm1720_vm9, %v5109_v58  ;;  %v10639_v58 = vld [vmem:[#allocation94_spill] sm:$0xff] }
 0x173   : > { %7242 = vmatprep.mubr.msk.bf16.mxu0 %vm1720_vm9, %v5117_v52  ;;  %v10640_v52 = vld [vmem:[#allocation46_spill] sm:$0xff] }
 0x175   : > { %7079 = vmatmul.mubr.msk.bf16.vlgmr.msra.gmra.mrb[0].mxu1 %vm1720_vm9, %v10634_v37 }
 0x176   : > { %7292 = vmatpush3.bf16.msra.mxu1 %v9680_v31  ;;  %7082 = vmatprep.mubr.msk.bf16.mxu1 %vm1720_vm9, %v10635_v4  ;;  %v5136_v31 = vor.u32 %v5134_v56, %v5132_v7 }
 0x177   : > { %7291 = vmatprep.subr.bf16.mxu1 %v7688_v0 }
 0x178   : > { %v5141_v22 = vsel %vm1575_vm8, %v5136_v31, %v5140_v19 }
 0x17a   : > { %7243 = vmatmul.mubr.msk.bf16.gmra.mrb[20].mxu0 %vm1720_vm9, %v5125_v42  ;;  %7293 = vmatpush3.bf16.msra.mxu1 %v7688_v0 }
 0x17b   : > { %7246 = vmatprep.mubr.msk.bf16.mxu0 %vm1720_vm9, %v5133_v51 }
 0x17d   : > { %7083 = vmatmul.mubr.msk.bf16.gmra.mrb[4].mxu1 %vm1720_vm9, %v10636_v25 }
 0x17e   : > { %7086 = vmatprep.mubr.msk.bf16.mxu1 %vm1720_vm9, %v10637_v35 }
 0x182   : > { %7247 = vmatmul.mubr.msk.bf16.gmra.mrb[24].mxu0 %vm1720_vm9, %v5141_v22 }
 0x183   : > { %7250 = vmatprep.mubr.msk.bf16.mxu0 %vm1720_vm9, %v5149_v59 }
 0x185   : > { %7087 = vmatmul.mubr.msk.bf16.gmra.mrb[8].mxu1 %vm1720_vm9, %v10638_v1 }
 0x186   : > { %7090 = vmatprep.mubr.msk.bf16.mxu1 %vm1720_vm9, %v10639_v58 }
 0x18a   : > { %7251 = vmatmul.mubr.msk.bf16.gmra.mrb[28].mxu0 %vm1720_vm9, %v5157_v8 }
 0x18b   : > { %7258 = vmatprep.mubr.msk.bf16.mxu0 %vm1720_vm9, %v9703_v32  ;;  %v10644_v32 = vld [vmem:[#allocation107_spill] sm:$0xff] }
 0x18d   : > { %7091 = vmatmul.mubr.msk.bf16.gmra.mrb[12].mxu1 %vm1720_vm9, %v10640_v52 }
 0x18e   : > { %7094 = vmatprep.mubr.msk.bf16.mxu1 %vm1720_vm9, %v10641_v23 }
 0x192   : > { %7259 = vmatmul.mubr.msk.bf16.vlgmr.msra.gmra.mrb[0].mxu0 %vm1720_vm9, %v9706_v61  ;;  %v10646_v61 = vld [vmem:[#allocation4_spill] sm:$0xff] }
 0x193   : > { %7262 = vmatprep.mubr.msk.bf16.mxu0 %vm1720_vm9, %v9709_v11  ;;  %v3778_v11 = vshrl.u32 %v10646_v61, 16 }
 0x195   : > { %7095 = vmatmul.mubr.msk.bf16.gmra.mrb[16].mxu1 %vm1720_vm9, %v10642_v53 }
 0x196   : > { %7098 = vmatprep.mubr.msk.bf16.mxu1 %vm1720_vm9, %v10643_v44 }
 0x19a   : > { %7263 = vmatmul.mubr.msk.bf16.gmra.mrb[4].mxu0 %vm1720_vm9, %v9714_v33  ;;  %v10648_v33 = vld [vmem:[#allocation109_spill] sm:$0xff] }
 0x19b   : > { %7266 = vmatprep.mubr.msk.bf16.mxu0 %vm1720_vm9, %v9733_v60  ;;  %v10649_v60 = vld [vmem:[#allocation5_spill] sm:$0xff] }
 0x19c   : > { %v3780_v2 = vor.u32 %v3778_v11, %v10649_v60 }
 0x19d   : > { %7099 = vmatmul.mubr.msk.bf16.gmra.mrb[20].mxu1 %vm1720_vm9, %v10644_v32 }
 0x19e   : > { %7102 = vmatprep.mubr.msk.bf16.mxu1 %vm1720_vm9, %v10645_v41 }
 0x1a2   : > { %7267 = vmatmul.mubr.msk.bf16.gmra.mrb[8].mxu0 %vm1720_vm9, %v9736_v39  ;;  %v3785_v39 = vsel %vm1575_vm8, %v3780_v2, %v9751_v14  ;;  %v7690_v14 = vld [vmem:[#allocation2 + $0x88] sm:$0x1] }
 0x1a3   : > { %7270 = vmatprep.mubr.msk.bf16.mxu0 %vm1720_vm9, %v9739_v28  ;;  %v10650_v28 = vld [vmem:[#allocation64_spill] sm:$0xff] }
 0x1a5   : > { %7103 = vmatmul.mubr.msk.bf16.gmra.mrb[24].mxu1 %vm1720_vm9, %v10647_v63 }
 0x1a6   : > { %7106 = vmatprep.mubr.msk.bf16.mxu1 %vm1720_vm9, %v10648_v33 }
 0x1aa   : > { %7271 = vmatmul.mubr.msk.bf16.gmra.mrb[12].mxu0 %vm1720_vm9, %v9765_v21  ;;  %v6451_v21 = vcombine.low %v7690_v14, %v7690_v14 }
 0x1ab   : > { %7274 = vmatprep.mubr.msk.bf16.mxu0 %vm1720_vm9, %v9768_v26  ;;  %v3834_v26 = vshrl.u32 %v10621_v13, 16 }
 0x1ad   : > { %7107 = vmatmul.mubr.msk.bf16.gmra.mrb[28].mxu1 %vm1720_vm9, %v10650_v28 }
 0x1ae   : > { %7130 = vmatprep.mubr.msk.bf16.mxu1 %vm1720_vm9, %v3785_v39 }
 0x1b2   : > { %7275 = vmatmul.mubr.msk.bf16.gmra.mrb[16].mxu0 %vm1720_vm9, %v9772_v40  ;;  %v3838_v40 = vshll.u32 %v6451_v21, 16 }
 0x1b3   : > { %7278 = vmatprep.mubr.msk.bf16.mxu0 %vm1720_vm9, %v9790_v24 }
 0x1b4   : > { %v3840_v24 = vrot.slane %v3838_v40, 1 }
 0x1b5   : > { %7131 = vmatmul.mubr.msk.bf16.vlgmr.msra.gmra.mrb[16].mxu1 %vm1720_vm9, %v9777_v62  ;;  %v3836_v62 = vor.u32 %v3834_v26, %v9847_v50 }
 0x1b6   : > { %7134 = vmatprep.mubr.msk.bf16.mxu1 %vm1720_vm9, %v9793_v29 }
 0x1b7   : > { %v3841_v29 = vsel %vm1575_vm8, %v3836_v62, %v3840_v24 }
 0x1ba   : > { %7279 = vmatmul.mubr.msk.bf16.gmra.mrb[20].mxu0 %vm1720_vm9, %v9814_v38 }
 0x1bb   : > { %7282 = vmatprep.mubr.msk.bf16.mxu0 %vm1720_vm9, %v9822_v27 }
 0x1bd   : > { %7135 = vmatmul.mubr.msk.bf16.gmra.mrb[20].mxu1 %vm1720_vm9, %v9817_v17 }
 0x1be   : > { %7138 = vmatprep.mubr.msk.bf16.mxu1 %vm1720_vm9, %v9832_v5 }
 0x1c2   : > { %7283 = vmatmul.mubr.msk.bf16.gmra.mrb[24].mxu0 %vm1720_vm9, %v9839_v43 }
 0x1c3   : > { %7286 = vmatprep.mubr.msk.bf16.mxu0 %vm1720_vm9, %v9853_v9 }
 0x1c5   : > { %7139 = vmatmul.mubr.msk.bf16.gmra.mrb[24].mxu1 %vm1720_vm9, %v9845_v30 }
 0x1c6   : > { %7142 = vmatprep.mubr.msk.bf16.mxu1 %vm1720_vm9, %v9866_v10 }
 0x1ca   : > { %7287 = vmatmul.mubr.msk.bf16.gmra.mrb[28].mxu0 %vm1720_vm9, %v9856_v49 }
 0x1cd   : > { %7143 = vmatmul.mubr.msk.bf16.gmra.mrb[28].mxu1 %vm1720_vm9, %v3841_v29 }
 0x248   : > { %v7080_v38 = vpop.f32.mrb[0].mxu1 }
 0x249   : > { %v3430_v17 = vpop.f32.mrb[1].mxu1 }
 0x24a   : > { %v7081_v27 = vpop.f32.mrb[2].mxu1 }
 0x24b   : > { %v3433_v5 = vpop.f32.mrb[3].mxu1 }
 0x250   : > { %v7084_v13 = vpop.f32.mrb[4].mxu1 }
 0x251   : > { %v3446_v43 = vpop.f32.mrb[5].mxu1 }
 0x252   : > { %v7085_v30 = vpop.f32.mrb[6].mxu1 }
 0x253   : > { %v3449_v9 = vpop.f32.mrb[7].mxu1 }
 0x258   : > { %v10007_v10 = vpop.f32.mrb[8].mxu1 }
 0x259   : > { %v10009_v50 = vpop.f32.mrb[9].mxu1 }
 0x25a   : > { %v10011_v45 = vpop.f32.mrb[10].mxu1 }
 0x25b   : > { %v10013_v49 = vpop.f32.mrb[11].mxu1 }
 0x260   : > { %v10015_v16 = vpop.f32.mrb[12].mxu1 }
 0x261   : > { %v10017_v6 = vpop.f32.mrb[13].mxu1 }
 0x262   : > { %v10019_v12 = vpop.f32.mrb[14].mxu1 }
 0x263   : > { %v10021_v36 = vpop.f32.mrb[15].mxu1 }
 0x265   : > { %v7260_v7 = vpop.f32.mrb[0].mxu0 }
 0x266   : > { %v7294_v37 = vadd.f32 %v7260_v7, %v7080_v38  ;;  %v5660_v57 = vpop.f32.mrb[1].mxu0 }
 0x267   : > { %v7295_v4 = vadd.f32 %v5660_v57, %v3430_v17  ;;  %v7261_v42 = vpop.f32.mrb[2].mxu0 }
 0x268   : > { %v6695_v56 = vpack.c.bf16 %v7294_v37, %v7294_v37  ;;  %v7296_v51 = vadd.f32 %v7261_v42, %v7081_v27  ;;  %v5663_v3 = vpop.f32.mrb[3].mxu0  ;;  %v6051_v31 = vmul.f32 %v7294_v37, %v7294_v37  ;;  %v5982_v34 = vsel %vm1720_vm9, %v7294_v37, 0.0 }
 0x269   : > { %v6693_v46 = vpack.c.bf16 %v7295_v4, %v7295_v4  ;;  %v6049_v0 = vmul.f32 %v7295_v4, %v7295_v4  ;;  %v7297_v19 = vadd.f32 %v5663_v3, %v3433_v5  ;;  %v5979_v47 = vsel %vm1720_vm9, %v7295_v4, 0.0 }
 0x26a   : > { %5949 = vst.msk [vmem:[%s10028_s15 + $0x8] sm:$0xf] %vm291_vm4, %v6695_v56  ;;  %v6696_v15 = vpack.c.bf16 %v7296_v51, %v7296_v51  ;;  %v6052_v35 = vmul.f32 %v7296_v51, %v7296_v51  ;;  %v6084_v52 = vsel %vm1720_vm9, %v6051_v31, 0.0  ;;  %v5984_v44 = vsel %vm1720_vm9, %v7296_v51, 0.0 }
 0x26b   : > { %5947 = vst.msk [vmem:[%s10028_s15] sm:$0xf] %vm291_vm4, %v6693_v46  ;;  %v6694_v20 = vpack.c.bf16 %v7297_v19, %v7297_v19  ;;  %v5980_v54 = vsel %vm1720_vm9, %v7297_v19, 0.0  ;;  %v6050_v25 = vmul.f32 %v7297_v19, %v7297_v19  ;;  %v6081_v18 = vsel %vm1720_vm9, %v6049_v0, 0.0 }
 0x26c   : > { %5950 = vst.msk [vmem:[%s10028_s15 + $0xc] sm:$0xf] %vm291_vm4, %v6696_v15  ;;  %v5981_v22 = vadd.f32 %v5980_v54, %v5979_v47  ;;  %v6086_v32 = vsel %vm1720_vm9, %v6052_v35, 0.0 }
 0x26d   : > { %5948 = vst.msk [vmem:[%s10028_s15 + $0x4] sm:$0xf] %vm291_vm4, %v6694_v20  ;;  %v6082_v59 = vsel %vm1720_vm9, %v6050_v25, 0.0  ;;  %v7264_v48 = vpop.f32.mrb[4].mxu0 }
 0x26e   : > { %v5983_v55 = vadd.f32 %v5982_v34, %v5981_v22  ;;  %v6083_v1 = vadd.f32 %v6082_v59, %v6081_v18  ;;  %v7298_v58 = vadd.f32 %v7264_v48, %v7084_v13  ;;  %v5676_v8 = vpop.f32.mrb[5].mxu0 }
 0x26f   : > { %v7299_v23 = vadd.f32 %v5676_v8, %v3446_v43  ;;  %v7265_v53 = vpop.f32.mrb[6].mxu0 }
 0x270   : > { %v6085_v41 = vadd.f32 %v6084_v52, %v6083_v1  ;;  %v6699_v61 = vpack.c.bf16 %v7298_v58, %v7298_v58  ;;  %v5679_v11 = vpop.f32.mrb[7].mxu0  ;;  %v5985_v33 = vadd.f32 %v5984_v44, %v5983_v55  ;;  %v7300_v28 = vadd.f32 %v7265_v53, %v7085_v30 }
 0x271   : > { %v6697_v63 = vpack.c.bf16 %v7299_v23, %v7299_v23  ;;  %v5986_v60 = vsel %vm1720_vm9, %v7299_v23, 0.0  ;;  %v6053_v2 = vmul.f32 %v7299_v23, %v7299_v23  ;;  %v7301_v14 = vadd.f32 %v5679_v11, %v3449_v9 }
 0x272   : > { %5953 = vst.msk [vmem:[%s10028_s15 + $0x18] sm:$0xf] %vm291_vm4, %v6699_v61  ;;  %v6087_v39 = vadd.f32 %v6086_v32, %v6085_v41  ;;  %v5987_v21 = vadd.f32 %v5986_v60, %v5985_v33  ;;  %v6055_v40 = vmul.f32 %v7298_v58, %v7298_v58  ;;  %v6700_v24 = vpack.c.bf16 %v7300_v28, %v7300_v28 }
 0x273   : > { %5951 = vst.msk [vmem:[%s10028_s15 + $0x10] sm:$0xf] %vm291_vm4, %v6697_v63  ;;  %v6088_v26 = vsel %vm1720_vm9, %v6053_v2, 0.0  ;;  %v6698_v29 = vpack.c.bf16 %v7301_v14, %v7301_v14  ;;  %v5988_v38 = vsel %vm1720_vm9, %v7301_v14, 0.0  ;;  %v6054_v17 = vmul.f32 %v7301_v14, %v7301_v14 }
 0x274   : > { %v6089_v62 = vadd.f32 %v6088_v26, %v6087_v39  ;;  %5954 = vst.msk [vmem:[%s10028_s15 + $0x1c] sm:$0xf] %vm291_vm4, %v6700_v24  ;;  %v5989_v5 = vadd.f32 %v5988_v38, %v5987_v21  ;;  %v5990_v30 = vsel %vm1720_vm9, %v7298_v58, 0.0  ;;  %v6056_v9 = vmul.f32 %v7300_v28, %v7300_v28 }
 0x275   : > { %v7268_v27 = vpop.f32.mrb[8].mxu0  ;;  %5952 = vst.msk [vmem:[%s10028_s15 + $0x14] sm:$0xf] %vm291_vm4, %v6698_v29  ;;  %v6090_v7 = vsel %vm1720_vm9, %v6054_v17, 0.0  ;;  %v6092_v4 = vsel %vm1720_vm9, %v6055_v40, 0.0 }
 0x276   : > { %v7302_v13 = vadd.f32 %v7268_v27, %v10007_v10  ;;  %v5692_v43 = vpop.f32.mrb[9].mxu0  ;;  %v5991_v42 = vadd.f32 %v5990_v30, %v5989_v5  ;;  %v6091_v56 = vadd.f32 %v6090_v7, %v6089_v62  ;;  %v5992_v10 = vsel %vm1720_vm9, %v7300_v28, 0.0 }
 0x277   : > { %v7303_v37 = vadd.f32 %v5692_v43, %v10009_v50  ;;  %v7269_v57 = vpop.f32.mrb[10].mxu0  ;;  %v6094_v20 = vsel %vm1720_vm9, %v6056_v9, 0.0 }
 0x278   : > { %v6703_v51 = vpack.c.bf16 %v7302_v13, %v7302_v13  ;;  %v5695_v3 = vpop.f32.mrb[11].mxu0  ;;  %v6093_v31 = vadd.f32 %v6092_v4, %v6091_v56  ;;  %v5993_v15 = vadd.f32 %v5992_v10, %v5991_v42  ;;  %v7304_v50 = vadd.f32 %v7269_v57, %v10011_v45 }
 0x279   : > { %v6701_v46 = vpack.c.bf16 %v7303_v37, %v7303_v37  ;;  %v5994_v0 = vsel %vm1720_vm9, %v7303_v37, 0.0  ;;  %v6057_v19 = vmul.f32 %v7303_v37, %v7303_v37  ;;  %v7305_v47 = vadd.f32 %v5695_v3, %v10013_v49 }
 0x27a   : > { %5957 = vst.msk [vmem:[%s10028_s15 + $0x28] sm:$0xf] %vm291_vm4, %v6703_v51  ;;  %v6059_v25 = vmul.f32 %v7302_v13, %v7302_v13  ;;  %v5995_v35 = vadd.f32 %v5994_v0, %v5993_v15  ;;  %v6095_v22 = vadd.f32 %v6094_v20, %v6093_v31  ;;  %v6704_v34 = vpack.c.bf16 %v7304_v50, %v7304_v50 }
 0x27b   : > { %5955 = vst.msk [vmem:[%s10028_s15 + $0x20] sm:$0xf] %vm291_vm4, %v6701_v46  ;;  %v6096_v54 = vsel %vm1720_vm9, %v6057_v19, 0.0  ;;  %v6702_v18 = vpack.c.bf16 %v7305_v47, %v7305_v47  ;;  %v5996_v59 = vsel %vm1720_vm9, %v7305_v47, 0.0  ;;  %v6058_v48 = vmul.f32 %v7305_v47, %v7305_v47 }
 0x27c   : > { %v6097_v1 = vadd.f32 %v6096_v54, %v6095_v22  ;;  %5958 = vst.msk [vmem:[%s10028_s15 + $0x2c] sm:$0xf] %vm291_vm4, %v6704_v34  ;;  %v5997_v45 = vadd.f32 %v5996_v59, %v5995_v35  ;;  %v5998_v8 = vsel %vm1720_vm9, %v7302_v13, 0.0  ;;  %v6060_v52 = vmul.f32 %v7304_v50, %v7304_v50 }
 0x27d   : > { %v7272_v55 = vpop.f32.mrb[12].mxu0  ;;  %5956 = vst.msk [vmem:[%s10028_s15 + $0x24] sm:$0xf] %vm291_vm4, %v6702_v18  ;;  %v6098_v23 = vsel %vm1720_vm9, %v6058_v48, 0.0  ;;  %v6100_v32 = vsel %vm1720_vm9, %v6059_v25, 0.0 }
 0x27e   : > { %v7306_v49 = vadd.f32 %v7272_v55, %v10015_v16  ;;  %v5708_v58 = vpop.f32.mrb[13].mxu0  ;;  %v5999_v41 = vadd.f32 %v5998_v8, %v5997_v45  ;;  %v6099_v61 = vadd.f32 %v6098_v23, %v6097_v1  ;;  %v6000_v16 = vsel %vm1720_vm9, %v7304_v50, 0.0 }
 0x27f   : > { %v7307_v53 = vadd.f32 %v5708_v58, %v10017_v6  ;;  %v7273_v44 = vpop.f32.mrb[14].mxu0  ;;  %v6102_v21 = vsel %vm1720_vm9, %v6060_v52, 0.0 }
 0x280   : > { %v6707_v11 = vpack.c.bf16 %v7306_v49, %v7306_v49  ;;  %v5711_v63 = vpop.f32.mrb[15].mxu0  ;;  %v6101_v39 = vadd.f32 %v6100_v32, %v6099_v61  ;;  %v6001_v28 = vadd.f32 %v6000_v16, %v5999_v41  ;;  %v7308_v6 = vadd.f32 %v7273_v44, %v10019_v12 }
 0x281   : > { %v6705_v33 = vpack.c.bf16 %v7307_v53, %v7307_v53  ;;  %v6002_v60 = vsel %vm1720_vm9, %v7307_v53, 0.0  ;;  %v6061_v2 = vmul.f32 %v7307_v53, %v7307_v53  ;;  %v7309_v14 = vadd.f32 %v5711_v63, %v10021_v36 }
 0x282   : > { %5961 = vst.msk [vmem:[%s10028_s15 + $0x38] sm:$0xf] %vm291_vm4, %v6707_v11  ;;  %v6003_v40 = vadd.f32 %v6002_v60, %v6001_v28  ;;  %v6103_v62 = vadd.f32 %v6102_v21, %v6101_v39  ;;  %v6708_v24 = vpack.c.bf16 %v7308_v6, %v7308_v6  ;;  %v6063_v29 = vmul.f32 %v7306_v49, %v7306_v49 }
 0x283   : > { %5959 = vst.msk [vmem:[%s10028_s15 + $0x30] sm:$0xf] %vm291_vm4, %v6705_v33  ;;  %v6104_v26 = vsel %vm1720_vm9, %v6061_v2, 0.0  ;;  %v6706_v38 = vpack.c.bf16 %v7309_v14, %v7309_v14  ;;  %v6004_v17 = vsel %vm1720_vm9, %v7309_v14, 0.0  ;;  %v6062_v27 = vmul.f32 %v7309_v14, %v7309_v14 }
 0x284   : > { %v6105_v13 = vadd.f32 %v6104_v26, %v6103_v62  ;;  %5962 = vst.msk [vmem:[%s10028_s15 + $0x3c] sm:$0xf] %vm291_vm4, %v6708_v24  ;;  %v6005_v12 = vadd.f32 %v6004_v17, %v6003_v40  ;;  %v6006_v43 = vsel %vm1720_vm9, %v7306_v49, 0.0  ;;  %v6064_v30 = vmul.f32 %v7308_v6, %v7308_v6 }
 0x285   : > { %v7276_v5 = vpop.f32.mrb[16].mxu0  ;;  %5960 = vst.msk [vmem:[%s10028_s15 + $0x34] sm:$0xf] %vm291_vm4, %v6706_v38  ;;  %v6106_v9 = vsel %vm1720_vm9, %v6062_v27, 0.0  ;;  %v6108_v42 = vsel %vm1720_vm9, %v6063_v29, 0.0  ;;  %v6008_v56 = vsel %vm1720_vm9, %v7308_v6, 0.0 }
 0x286   : > { %v5724_v36 = vpop.f32.mrb[17].mxu0  ;;  %v6007_v37 = vadd.f32 %v6006_v43, %v6005_v12  ;;  %v6107_v57 = vadd.f32 %v6106_v9, %v6105_v13  ;;  %v6110_v19 = vsel %vm1720_vm9, %v6064_v30, 0.0 }
 0x287   : > { %v7277_v7 = vpop.f32.mrb[18].mxu0 }
 0x288   : > { %v5727_v4 = vpop.f32.mrb[19].mxu0  ;;  %v7132_v51 = vpop.f32.mrb[16].mxu1  ;;  %v6109_v3 = vadd.f32 %v6108_v42, %v6107_v57  ;;  %v6009_v0 = vadd.f32 %v6008_v56, %v6007_v37 }
 0x289   : > { %v7310_v10 = vadd.f32 %v7276_v5, %v7132_v51  ;;  %v4000_v46 = vpop.f32.mrb[17].mxu1 }
 0x28a   : > { %v7311_v31 = vadd.f32 %v5724_v36, %v4000_v46  ;;  %v7133_v15 = vpop.f32.mrb[18].mxu1  ;;  %v6111_v47 = vadd.f32 %v6110_v19, %v6109_v3 }
 0x28b   : > { %v6711_v50 = vpack.c.bf16 %v7310_v10, %v7310_v10  ;;  %v4003_v20 = vpop.f32.mrb[19].mxu1  ;;  %v7312_v22 = vadd.f32 %v7277_v7, %v7133_v15  ;;  %v6067_v55 = vmul.f32 %v7310_v10, %v7310_v10  ;;  %v6014_v41 = vsel %vm1720_vm9, %v7310_v10, 0.0 }
 0x28c   : > { %v6709_v54 = vpack.c.bf16 %v7311_v31, %v7311_v31  ;;  %v6010_v25 = vsel %vm1720_vm9, %v7311_v31, 0.0  ;;  %v6065_v35 = vmul.f32 %v7311_v31, %v7311_v31  ;;  %v7313_v59 = vadd.f32 %v5727_v4, %v4003_v20 }
 0x28d   : > { %v7280_v34 = vpop.f32.mrb[20].mxu0  ;;  %5965 = vst.msk [vmem:[%s10028_s15 + $0x48] sm:$0xf] %vm291_vm4, %v6711_v50  ;;  %v6011_v18 = vadd.f32 %v6010_v25, %v6009_v0  ;;  %v6712_v45 = vpack.c.bf16 %v7312_v22, %v7312_v22  ;;  %v6068_v61 = vmul.f32 %v7312_v22, %v7312_v22  ;;  %v6116_v28 = vsel %vm1720_vm9, %v6067_v55, 0.0 }
 0x28e   : > { %v5740_v48 = vpop.f32.mrb[21].mxu0  ;;  %5963 = vst.msk [vmem:[%s10028_s15 + $0x40] sm:$0xf] %vm291_vm4, %v6709_v54  ;;  %v6112_v1 = vsel %vm1720_vm9, %v6065_v35, 0.0  ;;  %v6710_v8 = vpack.c.bf16 %v7313_v59, %v7313_v59  ;;  %v6012_v52 = vsel %vm1720_vm9, %v7313_v59, 0.0  ;;  %v6066_v23 = vmul.f32 %v7313_v59, %v7313_v59 }
 0x28f   : > { %v7281_v49 = vpop.f32.mrb[22].mxu0  ;;  %v6113_v58 = vadd.f32 %v6112_v1, %v6111_v47  ;;  %5966 = vst.msk [vmem:[%s10028_s15 + $0x4c] sm:$0xf] %vm291_vm4, %v6712_v45  ;;  %v6013_v44 = vadd.f32 %v6012_v52, %v6011_v18  ;;  %v6016_v6 = vsel %vm1720_vm9, %v7312_v22, 0.0  ;;  %v6118_v17 = vsel %vm1720_vm9, %v6068_v61, 0.0 }
 0x290   : > { %v5743_v53 = vpop.f32.mrb[23].mxu0  ;;  %v7136_v32 = vpop.f32.mrb[20].mxu1  ;;  %5964 = vst.msk [vmem:[%s10028_s15 + $0x44] sm:$0xf] %vm291_vm4, %v6710_v8  ;;  %v6114_v11 = vsel %vm1720_vm9, %v6066_v23, 0.0 }
 0x291   : > { %v7314_v63 = vadd.f32 %v7280_v34, %v7136_v32  ;;  %v4016_v16 = vpop.f32.mrb[21].mxu1  ;;  %v6015_v33 = vadd.f32 %v6014_v41, %v6013_v44  ;;  %v6115_v60 = vadd.f32 %v6114_v11, %v6113_v58 }
 0x292   : > { %v7315_v2 = vadd.f32 %v5740_v48, %v4016_v16  ;;  %v7137_v39 = vpop.f32.mrb[22].mxu1 }
 0x293   : > { %v6715_v14 = vpack.c.bf16 %v7314_v63, %v7314_v63  ;;  %v7316_v21 = vadd.f32 %v7281_v49, %v7137_v39  ;;  %v4019_v26 = vpop.f32.mrb[23].mxu1  ;;  %v6117_v40 = vadd.f32 %v6116_v28, %v6115_v60  ;;  %v6017_v24 = vadd.f32 %v6016_v6, %v6015_v33 }
 0x294   : > { %v6713_v62 = vpack.c.bf16 %v7315_v2, %v7315_v2  ;;  %v6018_v29 = vsel %vm1720_vm9, %v7315_v2, 0.0  ;;  %v6069_v27 = vmul.f32 %v7315_v2, %v7315_v2  ;;  %v6071_v12 = vmul.f32 %v7314_v63, %v7314_v63 }
 0x295   : > { %v7284_v38 = vpop.f32.mrb[24].mxu0  ;;  %5969 = vst.msk [vmem:[%s10028_s15 + $0x58] sm:$0xf] %vm291_vm4, %v6715_v14  ;;  %v6716_v5 = vpack.c.bf16 %v7316_v21, %v7316_v21  ;;  %v6019_v36 = vadd.f32 %v6018_v29, %v6017_v24  ;;  %v6119_v43 = vadd.f32 %v6118_v17, %v6117_v40  ;;  %v7317_v30 = vadd.f32 %v5743_v53, %v4019_v26 }
 0x296   : > { %v5756_v13 = vpop.f32.mrb[25].mxu0  ;;  %5967 = vst.msk [vmem:[%s10028_s15 + $0x50] sm:$0xf] %vm291_vm4, %v6713_v62  ;;  %v6120_v7 = vsel %vm1720_vm9, %v6069_v27, 0.0  ;;  %v6022_v0 = vsel %vm1720_vm9, %v7314_v63, 0.0  ;;  %v6124_v19 = vsel %vm1720_vm9, %v6071_v12, 0.0  ;;  %v6072_v50 = vmul.f32 %v7316_v21, %v7316_v21 }
 0x297   : > { %v7285_v9 = vpop.f32.mrb[26].mxu0  ;;  %5970 = vst.msk [vmem:[%s10028_s15 + $0x5c] sm:$0xf] %vm291_vm4, %v6716_v5  ;;  %v6121_v57 = vadd.f32 %v6120_v7, %v6119_v43  ;;  %v6714_v4 = vpack.c.bf16 %v7317_v30, %v7317_v30  ;;  %v6020_v42 = vsel %vm1720_vm9, %v7317_v30, 0.0  ;;  %v6070_v3 = vmul.f32 %v7317_v30, %v7317_v30 }
 0x298   : > { %v5759_v37 = vpop.f32.mrb[27].mxu0  ;;  %v7140_v56 = vpop.f32.mrb[24].mxu1  ;;  %v6021_v51 = vadd.f32 %v6020_v42, %v6019_v36  ;;  %v6024_v35 = vsel %vm1720_vm9, %v7316_v21, 0.0  ;;  %v6126_v23 = vsel %vm1720_vm9, %v6072_v50, 0.0 }
 0x299   : > { %v7318_v10 = vadd.f32 %v7284_v38, %v7140_v56  ;;  %v4032_v46 = vpop.f32.mrb[25].mxu1  ;;  %5968 = vst.msk [vmem:[%s10028_s15 + $0x54] sm:$0xf] %vm291_vm4, %v6714_v4  ;;  %v6122_v20 = vsel %vm1720_vm9, %v6070_v3, 0.0 }
 0x29a   : > { %v7319_v31 = vadd.f32 %v5756_v13, %v4032_v46  ;;  %v7141_v15 = vpop.f32.mrb[26].mxu1  ;;  %v6023_v47 = vadd.f32 %v6022_v0, %v6021_v51  ;;  %v6123_v22 = vadd.f32 %v6122_v20, %v6121_v57 }
 0x29b   : > { %v6719_v54 = vpack.c.bf16 %v7318_v10, %v7318_v10  ;;  %v4035_v25 = vpop.f32.mrb[27].mxu1  ;;  %v7320_v1 = vadd.f32 %v7285_v9, %v7141_v15  ;;  %v6075_v8 = vmul.f32 %v7318_v10, %v7318_v10  ;;  %v6030_v28 = vsel %vm1720_vm9, %v7318_v10, 0.0 }
 0x29c   : > { %v6717_v34 = vpack.c.bf16 %v7319_v31, %v7319_v31  ;;  %v6026_v18 = vsel %vm1720_vm9, %v7319_v31, 0.0  ;;  %v6025_v48 = vadd.f32 %v6024_v35, %v6023_v47  ;;  %v6073_v55 = vmul.f32 %v7319_v31, %v7319_v31 }
 0x29d   : > { %v7288_v59 = vpop.f32.mrb[28].mxu0  ;;  %5973 = vst.msk [vmem:[%s10028_s15 + $0x68] sm:$0xf] %vm291_vm4, %v6719_v54  ;;  %v7321_v45 = vadd.f32 %v5759_v37, %v4035_v25  ;;  %v6125_v58 = vadd.f32 %v6124_v19, %v6123_v22  ;;  %v6720_v32 = vpack.c.bf16 %v7320_v1, %v7320_v1  ;;  %v6132_v6 = vsel %vm1720_vm9, %v6075_v8, 0.0 }
 0x29e   : > { %v5772_v49 = vpop.f32.mrb[29].mxu0  ;;  %5971 = vst.msk [vmem:[%s10028_s15 + $0x60] sm:$0xf] %vm291_vm4, %v6717_v34  ;;  %v6027_v53 = vadd.f32 %v6026_v18, %v6025_v48  ;;  %v6128_v44 = vsel %vm1720_vm9, %v6073_v55, 0.0  ;;  %v6076_v40 = vmul.f32 %v7320_v1, %v7320_v1  ;;  %v6032_v17 = vsel %vm1720_vm9, %v7320_v1, 0.0 }
 0x29f   : > { %v7289_v52 = vpop.f32.mrb[30].mxu0  ;;  %v6127_v61 = vadd.f32 %v6126_v23, %v6125_v58  ;;  %v6718_v11 = vpack.c.bf16 %v7321_v45, %v7321_v45  ;;  %v6028_v63 = vsel %vm1720_vm9, %v7321_v45, 0.0  ;;  %5974 = vst.msk [vmem:[%s10028_s15 + $0x6c] sm:$0xf] %vm291_vm4, %v6720_v32  ;;  %v6074_v60 = vmul.f32 %v7321_v45, %v7321_v45 }
 0x2a0   : > { %v5775_v41 = vpop.f32.mrb[31].mxu0  ;;  %v7144_v16 = vpop.f32.mrb[28].mxu1  ;;  %v6029_v33 = vadd.f32 %v6028_v63, %v6027_v53  ;;  %v6134_v7 = vsel %vm1720_vm9, %v6076_v40, 0.0 }
 0x2a1   : > { %v7322_v2 = vadd.f32 %v7288_v59, %v7144_v16  ;;  %v4048_v39 = vpop.f32.mrb[29].mxu1  ;;  %v6129_v14 = vadd.f32 %v6128_v44, %v6127_v61  ;;  %5972 = vst.msk [vmem:[%s10028_s15 + $0x64] sm:$0xf] %vm291_vm4, %v6718_v11  ;;  %v6130_v24 = vsel %vm1720_vm9, %v6074_v60, 0.0 }
 0x2a2   : > { %v7323_v21 = vadd.f32 %v5772_v49, %v4048_v39  ;;  %v7145_v26 = vpop.f32.mrb[30].mxu1  ;;  %v6031_v62 = vadd.f32 %v6030_v28, %v6029_v33 }
 0x2a3   : > { %v6723_v29 = vpack.c.bf16 %v7322_v2, %v7322_v2  ;;  %v4051_v38 = vpop.f32.mrb[31].mxu1  ;;  %v6131_v27 = vadd.f32 %v6130_v24, %v6129_v14  ;;  %v7324_v43 = vadd.f32 %v7289_v52, %v7145_v26  ;;  %v6079_v3 = vmul.f32 %v7322_v2, %v7322_v2 }
 0x2a4   : > { %v6721_v5 = vpack.c.bf16 %v7323_v21, %v7323_v21  ;;  %v6034_v13 = vsel %vm1720_vm9, %v7323_v21, 0.0  ;;  %v6033_v12 = vadd.f32 %v6032_v17, %v6031_v62  ;;  %v6077_v36 = vmul.f32 %v7323_v21, %v7323_v21 }
 0x2a5   : > { %5977 = vst.msk [vmem:[%s10028_s15 + $0x78] sm:$0xf] %vm291_vm4, %v6723_v29  ;;  %v7325_v30 = vadd.f32 %v5775_v41, %v4051_v38  ;;  %v6133_v9 = vadd.f32 %v6132_v6, %v6131_v27  ;;  %v6724_v4 = vpack.c.bf16 %v7324_v43, %v7324_v43  ;;  %v6038_v0 = vsel %vm1720_vm9, %v7322_v2, 0.0 }
 0x2a6   : > { %5975 = vst.msk [vmem:[%s10028_s15 + $0x70] sm:$0xf] %vm291_vm4, %v6721_v5  ;;  %v6035_v37 = vadd.f32 %v6034_v13, %v6033_v12  ;;  %v6136_v57 = vsel %vm1720_vm9, %v6077_v36, 0.0  ;;  %v6080_v31 = vmul.f32 %v7324_v43, %v7324_v43  ;;  %v6040_v47 = vsel %vm1720_vm9, %v7324_v43, 0.0 }
 0x2a7   : > { %v6135_v42 = vadd.f32 %v6134_v7, %v6133_v9  ;;  %v6722_v56 = vpack.c.bf16 %v7325_v30, %v7325_v30  ;;  %v6036_v51 = vsel %vm1720_vm9, %v7325_v30, 0.0  ;;  %5978 = vst.msk [vmem:[%s10028_s15 + $0x7c] sm:$0xf] %vm291_vm4, %v6724_v4  ;;  %v6078_v46 = vmul.f32 %v7325_v30, %v7325_v30 }
 0x2a8   : > { %v6037_v10 = vadd.f32 %v6036_v51, %v6035_v37  ;;  %v6140_v54 = vsel %vm1720_vm9, %v6079_v3, 0.0  ;;  %v6142_v22 = vsel %vm1720_vm9, %v6080_v31, 0.0 }
 0x2a9   : > { %v6137_v19 = vadd.f32 %v6136_v57, %v6135_v42  ;;  %5976 = vst.msk [vmem:[%s10028_s15 + $0x74] sm:$0xf] %vm291_vm4, %v6722_v56  ;;  %v6138_v50 = vsel %vm1720_vm9, %v6078_v46, 0.0 }
 0x2aa   : > { %v6039_v15 = vadd.f32 %v6038_v0, %v6037_v10 }
 0x2ab   : > { %v6139_v20 = vadd.f32 %v6138_v50, %v6137_v19 }
 0x2ac   : > { %v6041_v25 = vadd.f32 %v6040_v47, %v6039_v15 }
 0x2ad   : > { %v6141_v35 = vadd.f32 %v6140_v54, %v6139_v20 }
 0x2ae   : > { %v6042_v34 = vrot.slane %v6041_v25, 4 }
 0x2af   : > { %v6143_v18 = vadd.f32 %v6142_v22, %v6141_v35 }
 0x2b0   : > { %v6043_v59 = vadd.f32 %v6042_v34, %v6041_v25 }
 0x2b1   : > { %v6144_v48 = vrot.slane %v6143_v18, 4 }
 0x2b2   : > { %v6044_v55 = vrot.slane %v6043_v59, 2 }
 0x2b3   : > { %v6145_v1 = vadd.f32 %v6144_v48, %v6143_v18 }
 0x2b4   : > { %v6045_v45 = vadd.f32 %v6044_v55, %v6043_v59 }
 0x2b5   : > { %v6146_v49 = vrot.slane %v6145_v1, 2 }
 0x2b6   : > { %v6046_v58 = vrot.slane %v6045_v45, 1 }
 0x2b7   : > { %v6147_v8 = vadd.f32 %v6146_v49, %v6145_v1 }
 0x2b8   : > { %v6047_v52 = vadd.f32 %v6046_v58, %v6045_v45 }
 0x2b9   : > { %v6148_v23 = vrot.slane %v6147_v8, 1 }
 0x2ba   : > { %6048 = vst.msk [vmem:[%s289_s19] sm:$0x1] %vm294_vm0, %v6047_v52 }
 0x2bb   : > { %v6149_v53 = vadd.f32 %v6148_v23, %v6147_v8 }
 0x2bd   : > { %6150 = vst.msk [vmem:[%s289_s19 + $0x1] sm:$0x1] %vm294_vm0, %v6149_v53 }
 0x2be PF: > { %s18_s24 = sadd.s32 1, %s7697_s24  }
 0x2bf   : > { %p15_p4 = scmp.ge.s32.totalorder %s18_s24, 4  }
 0x2c1   :  { %17 = sbr.rel (!%p15_p4) target bundleno = 1 (0x1), region = 94 }

</bundles_post_ra>
